<compile_context>
chip_gen: v6e
topology: v6e:2x2x1
jax: 0.10.0
libtpu: 0.0.40
codegen_flags: <defaults>
</compile_context>

<pallas_src>
import math
import functools
import numpy as np
import jax
import jax.numpy as jnp
from jax.experimental import pallas as pl
from jax.experimental.pallas import tpu as pltpu


# ----------------------------- Pallas kernels ------------------------------

def window_attn_kernel(xw_ref, g1_ref, b1_ref, qkvw_ref, qkvb_ref,
                       projw_ref, projb_ref, bias_ref,
                       yw_ref, attn_ref, *, num_heads, wblk, n_tok, n_win):
    """LN1 + QKV + head-batched window attention + proj for `wblk` windows."""
    NH = num_heads
    N = n_tok
    nW = n_win
    C = xw_ref.shape[-1]
    hd = C // NH
    T = wblk * N                                            # token rows in this block

    # ---- LayerNorm1 (f32 statistics, eps=1e-5, elementwise affine) ----
    x = xw_ref[...].astype(jnp.float32)                     # (T, C)
    mu = jnp.mean(x, axis=-1, keepdims=True)
    var = jnp.mean((x - mu) ** 2, axis=-1, keepdims=True)
    xn = (x - mu) * jax.lax.rsqrt(var + 1e-5)
    xn = xn * g1_ref[...] + b1_ref[...]

    # ---- fused QKV projection: (T, C) @ (C, 3C), bf16 in, f32 accumulate ----
    # (qk scale is pre-folded into the Q columns of qkv_w / qkv_b at init time)
    qkv = jnp.dot(xn.astype(jnp.bfloat16), qkvw_ref[...],
                  preferred_element_type=jnp.float32) + qkvb_ref[...]   # (T, 3C) f32

    def split_heads(z):
        # (T, C) token-major rows / head-major lanes  ->  (wblk*NH, N, hd)
        z = z.reshape(wblk, N, C)            # split token rows per window
        z = jnp.swapaxes(z, 1, 2)            # (wblk, C, N)  minor transpose
        z = z.reshape(wblk * NH, hd, N)      # split C -> (NH, hd); NH joins the batch
        return jnp.swapaxes(z, 1, 2)         # (wblk*NH, N, hd)

    q = split_heads(qkv[:, 0:C])
    k = split_heads(qkv[:, C:2 * C])
    v = split_heads(qkv[:, 2 * C:3 * C])

    # ---- head-batched scores: one einsum over (window, head) batch ----
    att = jnp.einsum('bnd,bmd->bnm',
                     q.astype(jnp.bfloat16), k.astype(jnp.bfloat16),
                     preferred_element_type=jnp.float32)    # (wblk*NH, N, N)

    # relative-position bias (+ shift mask), resident (nW, NH, N, N).  The block
    # covers wblk // nW whole batch samples, so the bias repeats with period nW.
    k_rep = wblk // nW
    bias = jnp.broadcast_to(bias_ref[...][None],
                            (k_rep, nW, NH, N, N)).reshape(wblk * NH, N, N)
    att = att + bias

    # ---- softmax (f32), denominator reciprocal on the EUP ----
    att = att - jnp.max(att, axis=-1, keepdims=True)
    att = jnp.exp(att)
    att = att * pl.reciprocal(jnp.sum(att, axis=-1, keepdims=True), approx=True)

    # lane-dense store of the attention probabilities: flatten the (N, N) maps to
    # N*N = 256 lanes and write the whole block once.  (The flatten is built with
    # lane-axis concatenation, which keeps the relayout in well-supported ops.)
    att_flat = jnp.concatenate([att[:, i, :] for i in range(N)], axis=-1)  # (wblk*NH, N*N)
    attn_ref[...] = att_flat.reshape(wblk, NH, N * N).astype(attn_ref.dtype)

    # ---- attn @ V, merge heads back to token-major, output projection ----
    out = jnp.einsum('bnm,bmd->bnd',
                     att.astype(jnp.bfloat16), v.astype(jnp.bfloat16),
                     preferred_element_type=jnp.float32)    # (wblk*NH, N, hd)
    out = jnp.swapaxes(out, 1, 2)            # (wblk*NH, hd, N)
    out = out.reshape(wblk, C, N)            # merge (NH, hd) -> C
    out = jnp.swapaxes(out, 1, 2)            # (wblk, N, C)
    out = out.reshape(T, C)

    y = jnp.dot(out.astype(jnp.bfloat16), projw_ref[...],
                preferred_element_type=jnp.float32) + projb_ref[...]
    yw_ref[...] = y.astype(yw_ref.dtype)


def mlp_kernel(x_ref, g2_ref, b2_ref, w1_ref, fb1_ref, w2_ref, fb2_ref, o_ref):
    # x_ref: (R, C) rows of post-attention tokens; out = x + fc2(gelu(fc1(LN(x))))
    x = x_ref[...].astype(jnp.float32)                      # (R, C)
    mu = jnp.mean(x, axis=-1, keepdims=True)
    var = jnp.mean((x - mu) ** 2, axis=-1, keepdims=True)
    xn = (x - mu) * jax.lax.rsqrt(var + 1e-5)
    xn = xn * g2_ref[...] + b2_ref[...]

    h = jnp.dot(xn.astype(jnp.bfloat16), w1_ref[...],
                preferred_element_type=jnp.float32) + fb1_ref[...]
    # exact GELU (torch.nn.GELU default): 0.5*x*(1+erf(x/sqrt(2)))
    h = 0.5 * h * (1.0 + jax.lax.erf(h * (1.0 / math.sqrt(2.0))))
    y = jnp.dot(h.astype(jnp.bfloat16), w2_ref[...],
                preferred_element_type=jnp.float32) + fb2_ref[...]
    o_ref[...] = (x + y).astype(o_ref.dtype)


# ----------------------------- pallas_call wrappers -------------------------

# Default per-step VMEM budget.  For real Swin dims (C=384-768) re-derive block
# sizes for v7x, whose physical VMEM is 64 MiB vs 128 MiB on v5e/v6e.
_VMEM_LIMIT = 32 * 1024 * 1024


def _pick_window_block(Bw, nW, N, target_rows=128):
    # wblk must be a multiple of nW (bias repeats cleanly inside a block) and
    # divide Bw; aim for wblk*N ~ target_rows (MXU-sized row blocks; use
    # target_rows=256 on v6e/v7x for larger configs).
    best = nW
    w = nW
    while w <= Bw:
        if Bw % w == 0 and w * N <= max(target_rows, nW * N):
            best = w
        w += nW
    return best


def _pick_row_block(rows, cap=128):
    # largest divisor of `rows` that is a multiple of 8 and <= cap; fall back to
    # the full extent (always a legal block).
    best = rows
    for r in range(8, min(rows, cap) + 1, 8):
        if rows % r == 0:
            best = r
    return best


def window_attention_pallas(xw, g1, b1, qkvw, qkvb, projw, projb, attn_bias,
                            num_heads, wblk):
    Bw, N, C = xw.shape
    nW = attn_bias.shape[0]
    NH = num_heads
    T = wblk * N
    x2 = xw.reshape(Bw * N, C)                              # lane-/row-dense token slab

    kernel = functools.partial(window_attn_kernel, num_heads=NH, wblk=wblk,
                               n_tok=N, n_win=nW)
    out_shape = (jax.ShapeDtypeStruct((Bw * N, C), jnp.float32),
                 jax.ShapeDtypeStruct((Bw, NH, N * N), jnp.float32))
    in_specs = [
        pl.BlockSpec((T, C), lambda i: (i, 0)),             # wblk windows of tokens
        pl.BlockSpec((1, C), lambda i: (0, 0)),             # LN1 gamma
        pl.BlockSpec((1, C), lambda i: (0, 0)),             # LN1 beta
        pl.BlockSpec((C, 3 * C), lambda i: (0, 0)),         # qkv weight (bf16, resident)
        pl.BlockSpec((1, 3 * C), lambda i: (0, 0)),         # qkv bias
        pl.BlockSpec((C, C), lambda i: (0, 0)),             # proj weight (bf16, resident)
        pl.BlockSpec((1, C), lambda i: (0, 0)),             # proj bias
        pl.BlockSpec((nW, NH, N, N), lambda i: (0, 0, 0, 0)),  # bias(+mask), resident
    ]
    out_specs = (pl.BlockSpec((T, C), lambda i: (i, 0)),
                 pl.BlockSpec((wblk, NH, N * N), lambda i: (i, 0, 0)))
    y2, attn_flat = pl.pallas_call(
        kernel,
        grid=(Bw // wblk,),
        in_specs=in_specs,
        out_specs=out_specs,
        out_shape=out_shape,
        compiler_params=pltpu.CompilerParams(
            dimension_semantics=("parallel",),
            vmem_limit_bytes=_VMEM_LIMIT),
    )(x2, g1, b1, qkvw, qkvb, projw, projb, attn_bias)
    return y2.reshape(Bw, N, C), attn_flat.reshape(Bw, NH, N, N)


def mlp_block_pallas(x, g2, b2, w1, fb1, w2, fb2, rblk):
    B, L, C = x.shape
    hidden = w1.shape[1]
    rows = B * L
    x2 = x.reshape(rows, C)
    in_specs = [
        pl.BlockSpec((rblk, C), lambda i: (i, 0)),
        pl.BlockSpec((1, C), lambda i: (0, 0)),
        pl.BlockSpec((1, C), lambda i: (0, 0)),
        pl.BlockSpec((C, hidden), lambda i: (0, 0)),
        pl.BlockSpec((1, hidden), lambda i: (0, 0)),
        pl.BlockSpec((hidden, C), lambda i: (0, 0)),
        pl.BlockSpec((1, C), lambda i: (0, 0)),
    ]
    y2 = pl.pallas_call(
        mlp_kernel,
        grid=(rows // rblk,),
        in_specs=in_specs,
        out_specs=pl.BlockSpec((rblk, C), lambda i: (i, 0)),
        out_shape=jax.ShapeDtypeStruct((rows, C), jnp.float32),
        compiler_params=pltpu.CompilerParams(
            dimension_semantics=("parallel",),
            vmem_limit_bytes=_VMEM_LIMIT),
    )(x2, g2, b2, w1, fb1, w2, fb2)
    return y2.reshape(B, L, C)


# ----------------------------- glue (plain JAX / numpy) ---------------------

def window_partition_jax(x, ws):
    B, H, W, C = x.shape
    x = x.reshape(B, H // ws, ws, W // ws, ws, C)
    return x.transpose(0, 1, 3, 2, 4, 5).reshape(-1, ws, ws, C)


def window_reverse_jax(windows, ws, H, W):
    B = windows.shape[0] // ((H * W) // (ws * ws))
    x = windows.reshape(B, H // ws, W // ws, ws, ws, -1)
    return x.transpose(0, 1, 3, 2, 4, 5).reshape(B, H, W, -1)


def relative_position_index_np(ws):
    coords = np.stack(np.meshgrid(np.arange(ws), np.arange(ws), indexing="ij"))
    coords_flatten = coords.reshape(2, -1)                              # (2, N)
    rel = coords_flatten[:, :, None] - coords_flatten[:, None, :]       # (2, N, N)
    rel = rel.transpose(1, 2, 0).astype(np.int64)
    rel[:, :, 0] += ws - 1
    rel[:, :, 1] += ws - 1
    rel[:, :, 0] *= 2 * ws - 1
    return rel.sum(-1)                                                  # (N, N)


def shift_attn_mask_np(H, W, ws, shift):
    img_mask = np.zeros((1, H, W, 1), dtype=np.float32)
    slices = (slice(0, -ws), slice(-ws, -shift), slice(-shift, None))
    cnt = 0
    for hs in slices:
        for wsl in slices:
            img_mask[:, hs, wsl, :] = cnt
            cnt += 1
    mw = img_mask.reshape(1, H // ws, ws, W // ws, ws, 1)
    mw = mw.transpose(0, 1, 3, 2, 4, 5).reshape(-1, ws * ws)            # (nW, N)
    am = mw[:, None, :] - mw[:, :, None]                                # (nW, N, N)
    return np.where(am != 0, -100.0, 0.0).astype(np.float32)


def init_params(key, depth, dim, num_heads, window_size, H, W, mlp_ratio):
    ws = window_size
    N = ws * ws
    nW = (H // ws) * (W // ws)
    hidden = int(dim * mlp_ratio)
    scale = (dim // num_heads) ** -0.5
    rpi = relative_position_index_np(ws)
    blocks = []
    for i in range(depth):
        keys = jax.random.split(jax.random.fold_in(key, i), 6)
        shift = 0 if i % 2 == 0 else ws // 2
        table = 0.02 * jax.random.normal(
            keys[0], ((2 * ws - 1) * (2 * ws - 1), num_heads), jnp.float32)
        rel_bias = table[rpi.reshape(-1)].reshape(N, N, num_heads)
        rel_bias = jnp.transpose(rel_bias, (2, 0, 1))                   # (nh, N, N)
        if shift > 0:
            mask = jnp.asarray(shift_attn_mask_np(H, W, ws, shift))     # (nW, N, N)
            attn_bias = rel_bias[None] + mask[:, None]                  # (nW, nh, N, N)
        else:
            attn_bias = jnp.broadcast_to(rel_bias[None], (nW, num_heads, N, N))

        qkv_w = 0.02 * jax.random.normal(keys[1], (dim, 3 * dim), jnp.float32)
        qkv_b = jnp.zeros((1, 3 * dim), jnp.float32)
        # fold the qk scale into the Q columns so the kernel never multiplies by it
        qkv_w = qkv_w.at[:, :dim].multiply(scale)
        qkv_b = qkv_b.at[:, :dim].multiply(scale)

        blk = dict(
            shift=shift,
            g1=jnp.ones((1, dim), jnp.float32),
            b1=jnp.zeros((1, dim), jnp.float32),
            # matmul weights stored bf16: MXU-native and half the DMA bytes
            qkv_w=qkv_w.astype(jnp.bfloat16),
            qkv_b=qkv_b,
            proj_w=(0.02 * jax.random.normal(keys[2], (dim, dim),
                                             jnp.float32)).astype(jnp.bfloat16),
            proj_b=jnp.zeros((1, dim), jnp.float32),
            attn_bias=jnp.asarray(attn_bias, jnp.float32),              # (nW, nh, N, N)
            g2=jnp.ones((1, dim), jnp.float32),
            b2=jnp.zeros((1, dim), jnp.float32),
            fc1_w=(0.02 * jax.random.normal(keys[3], (dim, hidden),
                                            jnp.float32)).astype(jnp.bfloat16),
            fc1_b=jnp.zeros((1, hidden), jnp.float32),
            fc2_w=(0.02 * jax.random.normal(keys[4], (hidden, dim),
                                            jnp.float32)).astype(jnp.bfloat16),
            fc2_b=jnp.zeros((1, dim), jnp.float32),
        )
        blocks.append(blk)
    return blocks


def basic_layer_forward(x, blocks, *, H, W, window_size, num_heads):
    # eval-mode forward (dropout / drop_path are identity); downsample=None
    B, L, C = x.shape
    ws = window_size
    N = ws * ws
    nW = (H // ws) * (W // ws)
    Bw = B * nW
    wblk = _pick_window_block(Bw, nW, N)          # windows per attention grid step
    rblk = _pick_row_block(B * L)                 # token rows per MLP grid step
    attns = []
    for blk in blocks:
        shift = blk["shift"]
        shortcut = x
        xg = x.reshape(B, H, W, C)
        if shift > 0:
            xg = jnp.roll(xg, shift=(-shift, -shift), axis=(1, 2))
        xw = window_partition_jax(xg, ws).reshape(Bw, N, C)             # (B*nW, N, C)
        yw, attn = window_attention_pallas(
            xw, blk["g1"], blk["b1"], blk["qkv_w"], blk["qkv_b"],
            blk["proj_w"], blk["proj_b"], blk["attn_bias"], num_heads, wblk)
        yg = window_reverse_jax(yw.reshape(-1, ws, ws, C), ws, H, W)
        if shift > 0:
            yg = jnp.roll(yg, shift=(shift, shift), axis=(1, 2))
        x = shortcut + yg.reshape(B, L, C)                              # attn residual
        x = mlp_block_pallas(x, blk["g2"], blk["b2"],
                             blk["fc1_w"], blk["fc1_b"],
                             blk["fc2_w"], blk["fc2_b"], rblk)          # MLP residual fused
        attns.append(attn[None])
    attn_mean = jnp.mean(jnp.concatenate(attns, axis=0), axis=0)
    return x, attn_mean


# ----------------------------- main -----------------------------------------

if __name__ == "__main__":
    # Small config: dim=32, input_resolution=(8, 8), depth=2 (one regular + one
    # shifted block), num_heads=4, window_size=4, batch=4.
    B, H, W, C = 4, 8, 8, 32
    depth, num_heads, window_size, mlp_ratio = 2, 4, 4, 4.0
    L = H * W

    key = jax.random.PRNGKey(0)
    kx, kp = jax.random.split(key)
    x = jax.random.normal(kx, (B, L, C), jnp.float32)
    blocks = init_params(kp, depth, C, num_heads, window_size, H, W, mlp_ratio)

    out, attn = basic_layer_forward(
        x, blocks, H=H, W=W, window_size=window_size, num_heads=num_heads)
    jax.block_until_ready(out)
    jax.block_until_ready(attn)

    assert out.shape == (B, L, C)
    nW = (H // window_size) * (W // window_size)
    Nw = window_size * window_size
    assert attn.shape == (B * nW, num_heads, Nw, Nw)
    assert bool(jnp.all(jnp.isfinite(out))) and bool(jnp.all(jnp.isfinite(attn)))
    print("KERNEL_OK")
</pallas_src>

<mosaic_0001>
module attributes {stable_mosaic.version = 11 : i64} {
  func.func @window_attn_kernel(%arg0: i32, %arg1: memref<128x32xf32, #tpu.memory_space<vmem>>, %arg2: memref<1x32xf32, #tpu.memory_space<vmem>>, %arg3: memref<1x32xf32, #tpu.memory_space<vmem>>, %arg4: memref<32x96xbf16, #tpu.memory_space<vmem>>, %arg5: memref<1x96xf32, #tpu.memory_space<vmem>>, %arg6: memref<32x32xbf16, #tpu.memory_space<vmem>>, %arg7: memref<1x32xf32, #tpu.memory_space<vmem>>, %arg8: memref<4x4x16x16xf32, #tpu.memory_space<vmem>>, %arg9: memref<128x32xf32, #tpu.memory_space<vmem>>, %arg10: memref<8x4x256xf32, #tpu.memory_space<vmem>>) attributes {dimension_semantics = [#tpu.dimension_semantics<parallel>], iteration_bounds = array<i64: 2>, scalar_prefetch = 0 : i64, scratch_operands = 0 : i64, tpu.core_type = #tpu.core_type<tc>, window_params = [{transform_indices = @transform_0, window_bounds = array<i64: 128, 32>}, {pipeline_mode = #tpu.pipeline_mode<synchronous>, transform_indices = @transform_1, window_bounds = array<i64: 1, 32>}, {pipeline_mode = #tpu.pipeline_mode<synchronous>, transform_indices = @transform_2, window_bounds = array<i64: 1, 32>}, {pipeline_mode = #tpu.pipeline_mode<synchronous>, transform_indices = @transform_3, window_bounds = array<i64: 32, 96>}, {pipeline_mode = #tpu.pipeline_mode<synchronous>, transform_indices = @transform_4, window_bounds = array<i64: 1, 96>}, {pipeline_mode = #tpu.pipeline_mode<synchronous>, transform_indices = @transform_5, window_bounds = array<i64: 32, 32>}, {pipeline_mode = #tpu.pipeline_mode<synchronous>, transform_indices = @transform_6, window_bounds = array<i64: 1, 32>}, {pipeline_mode = #tpu.pipeline_mode<synchronous>, transform_indices = @transform_7, window_bounds = array<i64: 4, 4, 16, 16>}, {transform_indices = @transform_8, window_bounds = array<i64: 128, 32>}, {transform_indices = @transform_9, window_bounds = array<i64: 8, 4, 256>}]} {
    %c0 = arith.constant 0 : index
    %c0_0 = arith.constant 0 : index
    %0 = vector.load %arg1[%c0, %c0_0] : memref<128x32xf32, #tpu.memory_space<vmem>>, vector<128x32xf32>
    %cst = arith.constant dense<0.000000e+00> : vector<128xf32>
    %1 = vector.multi_reduction <add>, %0, %cst [1] : vector<128x32xf32> to vector<128xf32>
    %2 = vector.shape_cast %1 : vector<128xf32> to vector<128x1xf32>
    %cst_1 = arith.constant 3.200000e+01 : f32
    %3 = vector.broadcast %cst_1 : f32 to vector<128x1xf32>
    %4 = arith.divf %2, %3 : vector<128x1xf32>
    %5 = vector.broadcast %4 : vector<128x1xf32> to vector<128x32xf32>
    %6 = arith.subf %0, %5 : vector<128x32xf32>
    %7 = arith.mulf %6, %6 : vector<128x32xf32>
    %cst_2 = arith.constant dense<0.000000e+00> : vector<128xf32>
    %8 = vector.multi_reduction <add>, %7, %cst_2 [1] : vector<128x32xf32> to vector<128xf32>
    %9 = vector.shape_cast %8 : vector<128xf32> to vector<128x1xf32>
    %cst_3 = arith.constant 3.200000e+01 : f32
    %10 = vector.broadcast %cst_3 : f32 to vector<128x1xf32>
    %11 = arith.divf %9, %10 : vector<128x1xf32>
    %12 = vector.broadcast %4 : vector<128x1xf32> to vector<128x32xf32>
    %13 = arith.subf %0, %12 : vector<128x32xf32>
    %cst_4 = arith.constant 9.99999974E-6 : f32
    %14 = vector.broadcast %cst_4 : f32 to vector<128x1xf32>
    %15 = arith.addf %11, %14 : vector<128x1xf32>
    %16 = math.rsqrt %15 : vector<128x1xf32>
    %17 = vector.broadcast %16 : vector<128x1xf32> to vector<128x32xf32>
    %18 = arith.mulf %13, %17 : vector<128x32xf32>
    %c0_5 = arith.constant 0 : index
    %c0_6 = arith.constant 0 : index
    %19 = vector.load %arg2[%c0_5, %c0_6] : memref<1x32xf32, #tpu.memory_space<vmem>>, vector<1x32xf32>
    %20 = vector.broadcast %19 : vector<1x32xf32> to vector<128x32xf32>
    %21 = arith.mulf %18, %20 : vector<128x32xf32>
    %c0_7 = arith.constant 0 : index
    %c0_8 = arith.constant 0 : index
    %22 = vector.load %arg3[%c0_7, %c0_8] : memref<1x32xf32, #tpu.memory_space<vmem>>, vector<1x32xf32>
    %23 = vector.broadcast %22 : vector<1x32xf32> to vector<128x32xf32>
    %24 = arith.addf %21, %23 : vector<128x32xf32>
    %25 = arith.truncf %24 : vector<128x32xf32> to vector<128x32xbf16>
    %c0_9 = arith.constant 0 : index
    %c0_10 = arith.constant 0 : index
    %26 = vector.load %arg4[%c0_9, %c0_10] : memref<32x96xbf16, #tpu.memory_space<vmem>>, vector<32x96xbf16>
    %cst_11 = arith.constant dense<0.000000e+00> : vector<128x96xf32>
    %27 = tpu.matmul %25, %26, %cst_11 {dimension_numbers = #tpu.dot_dimension_numbers<[1], [0], [0], [1], [0, 0, 1, 1], [], []>} : vector<128x32xbf16>, vector<32x96xbf16>, vector<128x96xf32> -> vector<128x96xf32>
    %c0_12 = arith.constant 0 : index
    %c0_13 = arith.constant 0 : index
    %28 = vector.load %arg5[%c0_12, %c0_13] : memref<1x96xf32, #tpu.memory_space<vmem>>, vector<1x96xf32>
    %29 = vector.broadcast %28 : vector<1x96xf32> to vector<128x96xf32>
    %30 = arith.addf %27, %29 : vector<128x96xf32>
    %31 = vector.extract_strided_slice %30 {offsets = [0, 0], sizes = [128, 32], strides = [1, 1]} : vector<128x96xf32> to vector<128x32xf32>
    %32 = vector.shape_cast %31 : vector<128x32xf32> to vector<8x16x32xf32>
    %33 = tpu.transpose %32, [0, 2, 1] : vector<8x16x32xf32> -> vector<8x32x16xf32>
    %34 = vector.shape_cast %33 : vector<8x32x16xf32> to vector<32x8x16xf32>
    %35 = tpu.transpose %34, [0, 2, 1] : vector<32x8x16xf32> -> vector<32x16x8xf32>
    %36 = vector.extract_strided_slice %30 {offsets = [0, 32], sizes = [128, 32], strides = [1, 1]} : vector<128x96xf32> to vector<128x32xf32>
    %37 = vector.shape_cast %36 : vector<128x32xf32> to vector<8x16x32xf32>
    %38 = tpu.transpose %37, [0, 2, 1] : vector<8x16x32xf32> -> vector<8x32x16xf32>
    %39 = vector.shape_cast %38 : vector<8x32x16xf32> to vector<32x8x16xf32>
    %40 = tpu.transpose %39, [0, 2, 1] : vector<32x8x16xf32> -> vector<32x16x8xf32>
    %41 = vector.extract_strided_slice %30 {offsets = [0, 64], sizes = [128, 32], strides = [1, 1]} : vector<128x96xf32> to vector<128x32xf32>
    %42 = vector.shape_cast %41 : vector<128x32xf32> to vector<8x16x32xf32>
    %43 = tpu.transpose %42, [0, 2, 1] : vector<8x16x32xf32> -> vector<8x32x16xf32>
    %44 = vector.shape_cast %43 : vector<8x32x16xf32> to vector<32x8x16xf32>
    %45 = tpu.transpose %44, [0, 2, 1] : vector<32x8x16xf32> -> vector<32x16x8xf32>
    %46 = arith.truncf %35 : vector<32x16x8xf32> to vector<32x16x8xbf16>
    %47 = arith.truncf %40 : vector<32x16x8xf32> to vector<32x16x8xbf16>
    "tpu.trace_start"() <{level = 10 : i32, message = "bnd,bmd->bnm"}> : () -> ()
    %cst_14 = arith.constant dense<0.000000e+00> : vector<32x16x16xf32>
    %48 = tpu.matmul %46, %47, %cst_14 {dimension_numbers = #tpu.dot_dimension_numbers<[2], [2], [1], [1], [0, 0, 0, 1, 1, 1], [0], [0]>} : vector<32x16x8xbf16>, vector<32x16x8xbf16>, vector<32x16x16xf32> -> vector<32x16x16xf32>
    "tpu.trace_stop"() : () -> ()
    %c0_15 = arith.constant 0 : index
    %c0_16 = arith.constant 0 : index
    %c0_17 = arith.constant 0 : index
    %c0_18 = arith.constant 0 : index
    %49 = vector.load %arg8[%c0_15, %c0_16, %c0_17, %c0_18] : memref<4x4x16x16xf32, #tpu.memory_space<vmem>>, vector<4x4x16x16xf32>
    %50 = vector.shape_cast %49 : vector<4x4x16x16xf32> to vector<1x4x4x16x16xf32>
    %51 = vector.shape_cast %50 : vector<1x4x4x16x16xf32> to vector<1x4x4x16x16xf32>
    %52 = vector.broadcast %51 : vector<1x4x4x16x16xf32> to vector<2x4x4x16x16xf32>
    %53 = vector.shape_cast %52 : vector<2x4x4x16x16xf32> to vector<32x16x16xf32>
    %54 = arith.addf %48, %53 : vector<32x16x16xf32>
    %cst_19 = arith.constant dense<0xFF800000> : vector<32x16xf32>
    %55 = vector.multi_reduction <maximumf>, %54, %cst_19 [2] : vector<32x16x16xf32> to vector<32x16xf32>
    %56 = vector.shape_cast %55 : vector<32x16xf32> to vector<32x16x1xf32>
    %57 = vector.broadcast %56 : vector<32x16x1xf32> to vector<32x16x16xf32>
    %58 = arith.subf %54, %57 : vector<32x16x16xf32>
    %59 = math.exp %58 : vector<32x16x16xf32>
    %cst_20 = arith.constant dense<0.000000e+00> : vector<32x16xf32>
    %60 = vector.multi_reduction <add>, %59, %cst_20 [2] : vector<32x16x16xf32> to vector<32x16xf32>
    %61 = vector.shape_cast %60 : vector<32x16xf32> to vector<32x16x1xf32>
    %62 = tpu.reciprocal %61 {approx = true} : vector<32x16x1xf32> -> vector<32x16x1xf32>
    %63 = vector.broadcast %62 : vector<32x16x1xf32> to vector<32x16x16xf32>
    %64 = arith.mulf %59, %63 : vector<32x16x16xf32>
    %65 = vector.extract_strided_slice %64 {offsets = [0, 0, 0], sizes = [32, 1, 16], strides = [1, 1, 1]} : vector<32x16x16xf32> to vector<32x1x16xf32>
    %66 = vector.shape_cast %65 : vector<32x1x16xf32> to vector<32x16xf32>
    %67 = vector.extract_strided_slice %64 {offsets = [0, 1, 0], sizes = [32, 1, 16], strides = [1, 1, 1]} : vector<32x16x16xf32> to vector<32x1x16xf32>
    %68 = vector.shape_cast %67 : vector<32x1x16xf32> to vector<32x16xf32>
    %69 = vector.extract_strided_slice %64 {offsets = [0, 2, 0], sizes = [32, 1, 16], strides = [1, 1, 1]} : vector<32x16x16xf32> to vector<32x1x16xf32>
    %70 = vector.shape_cast %69 : vector<32x1x16xf32> to vector<32x16xf32>
    %71 = vector.extract_strided_slice %64 {offsets = [0, 3, 0], sizes = [32, 1, 16], strides = [1, 1, 1]} : vector<32x16x16xf32> to vector<32x1x16xf32>
    %72 = vector.shape_cast %71 : vector<32x1x16xf32> to vector<32x16xf32>
    %73 = vector.extract_strided_slice %64 {offsets = [0, 4, 0], sizes = [32, 1, 16], strides = [1, 1, 1]} : vector<32x16x16xf32> to vector<32x1x16xf32>
    %74 = vector.shape_cast %73 : vector<32x1x16xf32> to vector<32x16xf32>
    %75 = vector.extract_strided_slice %64 {offsets = [0, 5, 0], sizes = [32, 1, 16], strides = [1, 1, 1]} : vector<32x16x16xf32> to vector<32x1x16xf32>
    %76 = vector.shape_cast %75 : vector<32x1x16xf32> to vector<32x16xf32>
    %77 = vector.extract_strided_slice %64 {offsets = [0, 6, 0], sizes = [32, 1, 16], strides = [1, 1, 1]} : vector<32x16x16xf32> to vector<32x1x16xf32>
    %78 = vector.shape_cast %77 : vector<32x1x16xf32> to vector<32x16xf32>
    %79 = vector.extract_strided_slice %64 {offsets = [0, 7, 0], sizes = [32, 1, 16], strides = [1, 1, 1]} : vector<32x16x16xf32> to vector<32x1x16xf32>
    %80 = vector.shape_cast %79 : vector<32x1x16xf32> to vector<32x16xf32>
    %81 = vector.extract_strided_slice %64 {offsets = [0, 8, 0], sizes = [32, 1, 16], strides = [1, 1, 1]} : vector<32x16x16xf32> to vector<32x1x16xf32>
    %82 = vector.shape_cast %81 : vector<32x1x16xf32> to vector<32x16xf32>
    %83 = vector.extract_strided_slice %64 {offsets = [0, 9, 0], sizes = [32, 1, 16], strides = [1, 1, 1]} : vector<32x16x16xf32> to vector<32x1x16xf32>
    %84 = vector.shape_cast %83 : vector<32x1x16xf32> to vector<32x16xf32>
    %85 = vector.extract_strided_slice %64 {offsets = [0, 10, 0], sizes = [32, 1, 16], strides = [1, 1, 1]} : vector<32x16x16xf32> to vector<32x1x16xf32>
    %86 = vector.shape_cast %85 : vector<32x1x16xf32> to vector<32x16xf32>
    %87 = vector.extract_strided_slice %64 {offsets = [0, 11, 0], sizes = [32, 1, 16], strides = [1, 1, 1]} : vector<32x16x16xf32> to vector<32x1x16xf32>
    %88 = vector.shape_cast %87 : vector<32x1x16xf32> to vector<32x16xf32>
    %89 = vector.extract_strided_slice %64 {offsets = [0, 12, 0], sizes = [32, 1, 16], strides = [1, 1, 1]} : vector<32x16x16xf32> to vector<32x1x16xf32>
    %90 = vector.shape_cast %89 : vector<32x1x16xf32> to vector<32x16xf32>
    %91 = vector.extract_strided_slice %64 {offsets = [0, 13, 0], sizes = [32, 1, 16], strides = [1, 1, 1]} : vector<32x16x16xf32> to vector<32x1x16xf32>
    %92 = vector.shape_cast %91 : vector<32x1x16xf32> to vector<32x16xf32>
    %93 = vector.extract_strided_slice %64 {offsets = [0, 14, 0], sizes = [32, 1, 16], strides = [1, 1, 1]} : vector<32x16x16xf32> to vector<32x1x16xf32>
    %94 = vector.shape_cast %93 : vector<32x1x16xf32> to vector<32x16xf32>
    %95 = vector.extract_strided_slice %64 {offsets = [0, 15, 0], sizes = [32, 1, 16], strides = [1, 1, 1]} : vector<32x16x16xf32> to vector<32x1x16xf32>
    %96 = vector.shape_cast %95 : vector<32x1x16xf32> to vector<32x16xf32>
    %97 = tpu.concatenate %66, %68, %70, %72, %74, %76, %78, %80, %82, %84, %86, %88, %90, %92, %94, %96 in 1 : vector<32x16xf32>, vector<32x16xf32>, vector<32x16xf32>, vector<32x16xf32>, vector<32x16xf32>, vector<32x16xf32>, vector<32x16xf32>, vector<32x16xf32>, vector<32x16xf32>, vector<32x16xf32>, vector<32x16xf32>, vector<32x16xf32>, vector<32x16xf32>, vector<32x16xf32>, vector<32x16xf32>, vector<32x16xf32> -> vector<32x256xf32>
    %98 = vector.shape_cast %97 : vector<32x256xf32> to vector<8x4x256xf32>
    %c0_21 = arith.constant 0 : index
    %c0_22 = arith.constant 0 : index
    %c0_23 = arith.constant 0 : index
    %99 = vector.load %arg10[%c0_21, %c0_22, %c0_23] : memref<8x4x256xf32, #tpu.memory_space<vmem>>, vector<8x4x256xf32>
    tpu.vector_store %arg10[%c0_21, %c0_22, %c0_23], %98 {strides = array<i32>} : memref<8x4x256xf32, #tpu.memory_space<vmem>>, vector<8x4x256xf32>,
    %100 = arith.truncf %64 : vector<32x16x16xf32> to vector<32x16x16xbf16>
    %101 = arith.truncf %45 : vector<32x16x8xf32> to vector<32x16x8xbf16>
    "tpu.trace_start"() <{level = 10 : i32, message = "bnm,bmd->bnd"}> : () -> ()
    %cst_24 = arith.constant dense<0.000000e+00> : vector<32x16x8xf32>
    %102 = tpu.matmul %100, %101, %cst_24 {dimension_numbers = #tpu.dot_dimension_numbers<[2], [1], [1], [2], [0, 0, 0, 1, 1, 2], [0], [0]>} : vector<32x16x16xbf16>, vector<32x16x8xbf16>, vector<32x16x8xf32> -> vector<32x16x8xf32>
    "tpu.trace_stop"() : () -> ()
    %103 = tpu.transpose %102, [0, 2, 1] : vector<32x16x8xf32> -> vector<32x8x16xf32>
    %104 = vector.shape_cast %103 : vector<32x8x16xf32> to vector<8x32x16xf32>
    %105 = tpu.transpose %104, [0, 2, 1] : vector<8x32x16xf32> -> vector<8x16x32xf32>
    %106 = vector.shape_cast %105 : vector<8x16x32xf32> to vector<128x32xf32>
    %107 = arith.truncf %106 : vector<128x32xf32> to vector<128x32xbf16>
    %c0_25 = arith.constant 0 : index
    %c0_26 = arith.constant 0 : index
    %108 = vector.load %arg6[%c0_25, %c0_26] : memref<32x32xbf16, #tpu.memory_space<vmem>>, vector<32x32xbf16>
    %cst_27 = arith.constant dense<0.000000e+00> : vector<128x32xf32>
    %109 = tpu.matmul %107, %108, %cst_27 {dimension_numbers = #tpu.dot_dimension_numbers<[1], [0], [0], [1], [0, 0, 1, 1], [], []>} : vector<128x32xbf16>, vector<32x32xbf16>, vector<128x32xf32> -> vector<128x32xf32>
    %c0_28 = arith.constant 0 : index
    %c0_29 = arith.constant 0 : index
    %110 = vector.load %arg7[%c0_28, %c0_29] : memref<1x32xf32, #tpu.memory_space<vmem>>, vector<1x32xf32>
    %111 = vector.broadcast %110 : vector<1x32xf32> to vector<128x32xf32>
    %112 = arith.addf %109, %111 : vector<128x32xf32>
    %c0_30 = arith.constant 0 : index
    %c0_31 = arith.constant 0 : index
    %113 = vector.load %arg9[%c0_30, %c0_31] : memref<128x32xf32, #tpu.memory_space<vmem>>, vector<128x32xf32>
    tpu.vector_store %arg9[%c0_30, %c0_31], %112 {strides = array<i32>} : memref<128x32xf32, #tpu.memory_space<vmem>>, vector<128x32xf32>,
    return
  }
  func.func @transform_0(%arg0: i32) -> (i32, i32) {
    %c0_i32 = arith.constant 0 : i32
    %c0_i32_0 = arith.constant 0 : i32
    return %arg0, %c0_i32 : i32, i32
  }
  func.func @transform_1(%arg0: i32) -> (i32, i32) {
    %c0_i32 = arith.constant 0 : i32
    %c0_i32_0 = arith.constant 0 : i32
    %c0_i32_1 = arith.constant 0 : i32
    return %c0_i32, %c0_i32_0 : i32, i32
  }
  func.func @transform_2(%arg0: i32) -> (i32, i32) {
    %c0_i32 = arith.constant 0 : i32
    %c0_i32_0 = arith.constant 0 : i32
    %c0_i32_1 = arith.constant 0 : i32
    return %c0_i32, %c0_i32_0 : i32, i32
  }
  func.func @transform_3(%arg0: i32) -> (i32, i32) {
    %c0_i32 = arith.constant 0 : i32
    %c0_i32_0 = arith.constant 0 : i32
    %c0_i32_1 = arith.constant 0 : i32
    return %c0_i32, %c0_i32_0 : i32, i32
  }
  func.func @transform_4(%arg0: i32) -> (i32, i32) {
    %c0_i32 = arith.constant 0 : i32
    %c0_i32_0 = arith.constant 0 : i32
    %c0_i32_1 = arith.constant 0 : i32
    return %c0_i32, %c0_i32_0 : i32, i32
  }
  func.func @transform_5(%arg0: i32) -> (i32, i32) {
    %c0_i32 = arith.constant 0 : i32
    %c0_i32_0 = arith.constant 0 : i32
    %c0_i32_1 = arith.constant 0 : i32
    return %c0_i32, %c0_i32_0 : i32, i32
  }
  func.func @transform_6(%arg0: i32) -> (i32, i32) {
    %c0_i32 = arith.constant 0 : i32
    %c0_i32_0 = arith.constant 0 : i32
    %c0_i32_1 = arith.constant 0 : i32
    return %c0_i32, %c0_i32_0 : i32, i32
  }
  func.func @transform_7(%arg0: i32) -> (i32, i32, i32, i32) {
    %c0_i32 = arith.constant 0 : i32
    %c0_i32_0 = arith.constant 0 : i32
    %c0_i32_1 = arith.constant 0 : i32
    %c0_i32_2 = arith.constant 0 : i32
    %c0_i32_3 = arith.constant 0 : i32
    return %c0_i32, %c0_i32_0, %c0_i32_1, %c0_i32_2 : i32, i32, i32, i32
  }
  func.func @transform_8(%arg0: i32) -> (i32, i32) {
    %c0_i32 = arith.constant 0 : i32
    %c0_i32_0 = arith.constant 0 : i32
    return %arg0, %c0_i32 : i32, i32
  }
  func.func @transform_9(%arg0: i32) -> (i32, i32, i32) {
    %c0_i32 = arith.constant 0 : i32
    %c0_i32_0 = arith.constant 0 : i32
    %c0_i32_1 = arith.constant 0 : i32
    return %arg0, %c0_i32, %c0_i32_0 : i32, i32, i32
  }
}

</mosaic_0001>

<bundles_post_ra>
// kernel: tpu_custom_call.1
= control target key start
LH: loop header
LB: loop body
LE: loop exit
PB: predicated region body
PF: predicated region fallthrough
CT: control target
= control target key end

     0   :  { %15 = vsyncpa [#allocation3], 0  ;;  %s17409_s0 = inlined_call_operand.vmem [shape: f32[256,32], index: 0, kind: input, shape index: {}]   ;;  %s17410_s1 = inlined_call_operand.vmem [shape: f32[1,32], index: 1, kind: input, shape index: {}]   ;;  %s17411_s2 = inlined_call_operand.vmem [shape: f32[1,32], index: 2, kind: input, shape index: {}]   ;;  %s17412_s3 = inlined_call_operand.vmem [shape: bf16[32,96], index: 3, kind: input, shape index: {}]   ;;  %s17413_s4 = inlined_call_operand.vmem [shape: f32[1,96], index: 4, kind: input, shape index: {}]   ;;  %s17414_s5 = inlined_call_operand.vmem [shape: bf16[32,32], index: 5, kind: input, shape index: {}]   ;;  %s17415_s6 = inlined_call_operand.vmem [shape: f32[1,32], index: 6, kind: input, shape index: {}]   ;;  %s17416_s7 = inlined_call_operand.vmem [shape: f32[4,4,16,16], index: 7, kind: input, shape index: {}]   ;;  %s17417_s8 = inlined_call_operand.vmem [shape: f32[256,32], index: 8, kind: output, shape index: {0}]   ;;  %s17418_s9 = inlined_call_operand.hbm [shape: f32[16,4,256], index: 9, kind: output, shape index: {1}]  }
   0x1   :  { %17 = vsyncpa [#allocation3 + $0x1], 0  ;;  %s13593_s30 = smov 0   ;;  %s13595_s10 = smov 0  }
   0x2   :  { %s13597_s11 = smov 0   ;;  %s13599_s12 = smov 0  }
   0x3 LB: > { %s13614_s13 = sadd.s32 4294967295, %s13529_s12   ;;  %s11298_s14 = sadd.s32 4294967294, %s13529_s12   ;;  %s13529_s12 = sphi %s13599_s12, %s17944_s12   ;;  %s13525_s11 = sphi %s13597_s11, %s17943_s11   ;;  %s13521_s10 = sphi %s13595_s10, %s17942_s10   ;;  %s13517_s30 = sphi %s13593_s30, %s17941_s30  }
   0x4   : > { %s13618_s15 = sadd.s32 1, %s13529_s12   ;;  %s229_s16 = sadd.s32 1, %s13525_s11 }
   0x5   : > { %s226_s17 = ssub.s32 %s13529_s12, %s13618_s15  ;;  %p239_p0 = scmp.ne.s32.totalorder %s13525_s11, %s13521_s10 }
   0x6   : > { %p227_p1 = scmp.eq.s32.totalorder %s226_s17, 0  ;;  %p240_p2 = scmp.eq.s32.totalorder %s13614_s13, 1 }
   0x7   : > { %p245_p3 = scmp.ne.s32.totalorder %s13521_s10, %s13517_s30  ;;  %p246_p4 = scmp.eq.s32.totalorder %s11298_s14, 1 }
   0x8   : > { %s13629_s18 = scalar_select %p227_p1, %s13525_s11, %s229_s16  }
   0x9   : > { %p13631_p5 = por %p240_p2, %p239_p0  ;;  %p13635_p6 = por %p246_p4, %p245_p3 }
   0xa   : > { %p11301_p7 = scmp.ge.s32.totalorder %s13529_s12, 1  ;;  %p294_p8 = scmp.lt.s32.totalorder %s13529_s12, 3 }
   0xc   : > { %p295_p9 = pnand %p11301_p7, %p294_p8 }
   0xe   : > { %298 = sbr.rel (%p295_p9) target bundleno = 2873 (0xb39), region = 52 }
  0x13   : > { %s11303_s21 = sshll.u32 %s13614_s13, 4  ;;  %vm365_vm0 = vcmask 261120   ;;  %s13531_s26 = smov 96   ;;  %vm13534_vm1 = vmmov 0   ;;  %vm4821_vm2 = vcmask 64512   ;;  %vm6326_vm3 = vcmask 130048  }
  0x14   : > { %p336_p10 = scmp.lt.s32.totalorder %s11303_s21, 31  ;;  %s13532_s27 = smov 64   ;;  %vm7064_vm4 = vcmask 1041409   ;;  %vm7067_vm5 = vcmask 1042434   ;;  %vm7070_vm6 = vcmask 1043459   ;;  %vm7073_vm7 = vcmask 1044484  }
  0x15   : > { %vm7076_vm8 = vcmask 1045509   ;;  %vm7079_vm9 = vcmask 1046534   ;;  %vm7082_vm10 = vcmask 1047559   ;;  %s13535_s28 = smov 16   ;;  %s13536_s16 = smov 32   ;;  %vm8182_vm11 = vcmask 392192  }
  0x16   : > { %s17946_s21 = smov (!%p336_p10, %s11303_s21), 31  ;;  %s13537_s24 = smov 48   ;;  %vm8187_vm12 = vcmask 523264   ;;  %vm8192_vm13 = vcmask 654336   ;;  %vm8197_vm14 = vcmask 785408   ;;  %vm8202_vm15 = vcmask 916480  }
  0x17   : > { %s11304_s22 = sshll.u32 %s17946_s21, 3  ;;  %s13539_s29 = smov 112  }
  0x18   : > { %s13650_s25 = scalar_lea.vmem %s17409_s0, %s11304_s22  ;;  %s11402_s21 = sshll.u32 %s13614_s13, 10 }
  0x19   : > { %v349_v0 = vld [vmem:[%s13650_s25] sm:$0xff]  ;;  %v351_v1 = vld [vmem:[%s13650_s25 + $0x10] sm:$0xff]  ;;  %v350_v2 = vld [vmem:[%s13650_s25 + $0x8] sm:$0xff] }
  0x1a   : > { %v366_v3 = vsel %vm365_vm0, %v349_v0, 0.0  ;;  %v372_v4 = vsel %vm365_vm0, %v351_v1, 0.0  ;;  %v352_v5 = vld [vmem:[%s13650_s25 + $0x18] sm:$0xff]  ;;  %v369_v6 = vsel %vm365_vm0, %v350_v2, 0.0  ;;  %v353_v8 = vld [vmem:[%s13650_s25 + $0x20] sm:$0xff]  ;;  %v13662_v9 = vld [vmem:[%s13650_s25 + $0x28] sm:$0xff] }
  0x1b   : > { %367 = vadd.xlane.f32.xlu0 %v366_v3  ;;  %373 = vadd.xlane.f32.xlu1 %v372_v4  ;;  %v375_v7 = vsel %vm365_vm0, %v352_v5, 0.0  ;;  %v378_v10 = vsel %vm365_vm0, %v353_v8, 0.0  ;;  %v381_v11 = vsel %vm365_vm0, %v13662_v9, 0.0  ;;  %v355_v12 = vld [vmem:[%s13650_s25 + $0x30] sm:$0xff]  ;;  %v13669_v13 = vld [vmem:[%s13650_s25 + $0x38] sm:$0xff]  ;;  %v13675_v16 = vld [vmem:[%s13650_s25 + $0x40] sm:$0xff] }
  0x1c   : > { %v384_v14 = vsel %vm365_vm0, %v355_v12, 0.0  ;;  %v387_v15 = vsel %vm365_vm0, %v13669_v13, 0.0  ;;  %v13678_v17 = vld [vmem:[%s13650_s25 + $0x48] sm:$0xff]  ;;  %v390_v18 = vsel %vm365_vm0, %v13675_v16, 0.0  ;;  %v13703_v39 = vld [vmem:[%s13650_s25 + $0x50] sm:$0xff]  ;;  %v13710_v46 = vld [vmem:[%s13650_s25 + $0x60] sm:$0xff] }
  0x1d   : > { %v393_v19 = vsel %vm365_vm0, %v13678_v17, 0.0  ;;  %v396_v43 = vsel %vm365_vm0, %v13703_v39, 0.0  ;;  %v13713_v47 = vld [vmem:[%s13650_s25 + $0x58] sm:$0xff]  ;;  %v402_v50 = vsel %vm365_vm0, %v13710_v46, 0.0  ;;  %v13722_v53 = vld [vmem:[%s13650_s25 + $0x70] sm:$0xff]  ;;  %v13725_v55 = vld [vmem:[%s13650_s25 + $0x68] sm:$0xff] }
  0x1e   : > { %v399_v51 = vsel %vm365_vm0, %v13713_v47, 0.0  ;;  %v408_v58 = vsel %vm365_vm0, %v13722_v53, 0.0  ;;  %v405_v60 = vsel %vm365_vm0, %v13725_v55, 0.0  ;;  %v13737_v62 = vld [vmem:[%s13650_s25 + $0x78] sm:$0xff]  ;;  %s13538_s25 = smov 80  }
  0x1f   : > { %370 = vadd.xlane.f32.xlu0 %v369_v6  ;;  %376 = vadd.xlane.f32.xlu1 %v375_v7  ;;  %v411_v3 = vsel %vm365_vm0, %v13737_v62, 0.0 }
  0x23   : > { %379 = vadd.xlane.f32.xlu0 %v378_v10  ;;  %382 = vadd.xlane.f32.xlu1 %v381_v11 }
  0x27   : > { %385 = vadd.xlane.f32.xlu0 %v384_v14  ;;  %388 = vadd.xlane.f32.xlu1 %v387_v15 }
  0x2b   : > { %391 = vadd.xlane.f32.xlu0 %v390_v18  ;;  %394 = vadd.xlane.f32.xlu1 %v393_v19  ;;  %v13177_v18 = vld [vmem:[%s17412_s3 + $0x8] sm:$0xff]   ;;  %v13178_v19 = vld [vmem:[%s17412_s3] sm:$0xff]  }
  0x2c   : > { %11551 = vmatprep.subr.bf16.mxu0 %v13177_v18  ;;  %11975 = vmatprep.subr.bf16.mxu1 %v13177_v18 }
  0x2d   : > { %11552 = vmatpush3.bf16.msra.mxu0 %v13177_v18  ;;  %11977 = vmatpush3.bf16.msra.mxu1 %v13177_v18 }
  0x2e   : > { %11553 = vmatprep.subr.bf16.mxu0 %v13178_v19  ;;  %11976 = vmatprep.subr.bf16.mxu1 %v13178_v19 }
  0x31   : > { %11554 = vmatpush3.bf16.msra.mxu0 %v13178_v19  ;;  %11978 = vmatpush3.bf16.msra.mxu1 %v13178_v19 }
  0xa4   : > { %v368_v20 = vpop.xlane.xlu0 %367  ;;  %v374_v21 = vpop.xlane.xlu1 %373 }
  0xa5   : > { %v415_v22 = vmul.f32 0.03125, %v368_v20  ;;  %v417_v23 = vmul.f32 0.03125, %v374_v21 }
  0xa7   : > { %v13684_v24 = vsub.f32 %v349_v0, %v415_v22  ;;  %v13686_v25 = vsub.f32 %v351_v1, %v417_v23 }
  0xa8   : > { %v371_v26 = vpop.xlane.xlu0 %370  ;;  %v377_v27 = vpop.xlane.xlu1 %376 }
  0xa9   : > { %v416_v28 = vmul.f32 0.03125, %v371_v26  ;;  %v418_v29 = vmul.f32 0.03125, %v377_v27  ;;  %v447_v30 = vmul.f32 %v13684_v24, %v13684_v24  ;;  %v449_v31 = vmul.f32 %v13686_v25, %v13686_v25 }
  0xab   : > { %v13692_v32 = vsub.f32 %v350_v2, %v416_v28  ;;  %v13694_v33 = vsub.f32 %v352_v5, %v418_v29  ;;  %v463_v34 = vsel %vm365_vm0, %v447_v30, 0.0  ;;  %v469_v36 = vsel %vm365_vm0, %v449_v31, 0.0 }
  0xac   : > { %464 = vadd.xlane.f32.xlu0 %v463_v34  ;;  %v380_v35 = vpop.xlane.xlu0 %379  ;;  %v383_v40 = vpop.xlane.xlu1 %382 }
  0xad   : > { %v448_v37 = vmul.f32 %v13692_v32, %v13692_v32  ;;  %v450_v38 = vmul.f32 %v13694_v33, %v13694_v33  ;;  %v419_v45 = vmul.f32 0.03125, %v380_v35  ;;  %v420_v48 = vmul.f32 0.03125, %v383_v40 }
  0xaf   : > { %v466_v41 = vsel %vm365_vm0, %v448_v37, 0.0  ;;  %v472_v44 = vsel %vm365_vm0, %v450_v38, 0.0  ;;  %v13719_v52 = vsub.f32 %v353_v8, %v419_v45  ;;  %v13728_v57 = vsub.f32 %v13662_v9, %v420_v48 }
  0xb0   : > { %470 = vadd.xlane.f32.xlu0 %v469_v36  ;;  %467 = vadd.xlane.f32.xlu1 %v466_v41  ;;  %v386_v42 = vpop.xlane.xlu0 %385  ;;  %v389_v49 = vpop.xlane.xlu1 %388 }
  0xb1   : > { %v421_v54 = vmul.f32 0.03125, %v386_v42  ;;  %v422_v59 = vmul.f32 0.03125, %v389_v49  ;;  %v451_v63 = vmul.f32 %v13719_v52, %v13719_v52  ;;  %v452_v4 = vmul.f32 %v13728_v57, %v13728_v57 }
  0xb3   : > { %v13734_v61 = vsub.f32 %v355_v12, %v421_v54  ;;  %v13742_v2 = vsub.f32 %v13669_v13, %v422_v59  ;;  %v475_v5 = vsel %vm365_vm0, %v451_v63, 0.0  ;;  %v478_v9 = vsel %vm365_vm0, %v452_v4, 0.0 }
  0xb4   : > { %397 = vadd.xlane.f32.xlu0 %v396_v43  ;;  %473 = vadd.xlane.f32.xlu1 %v472_v44  ;;  %v392_v56 = vpop.xlane.xlu0 %391  ;;  %v395_v1 = vpop.xlane.xlu1 %394 }
  0xb5   : > { %v423_v0 = vmul.f32 0.03125, %v392_v56  ;;  %v424_v7 = vmul.f32 0.03125, %v395_v1  ;;  %v453_v8 = vmul.f32 %v13734_v61, %v13734_v61  ;;  %v454_v12 = vmul.f32 %v13742_v2, %v13742_v2 }
  0xb7   : > { %v13750_v6 = vsub.f32 %v13675_v16, %v423_v0  ;;  %v13756_v10 = vsub.f32 %v13678_v17, %v424_v7  ;;  %v481_v11 = vsel %vm365_vm0, %v453_v8, 0.0  ;;  %v484_v14 = vsel %vm365_vm0, %v454_v12, 0.0 }
  0xb8   : > { %403 = vadd.xlane.f32.xlu0 %v402_v50  ;;  %400 = vadd.xlane.f32.xlu1 %v399_v51 }
  0xb9   : > { %v455_v13 = vmul.f32 %v13750_v6, %v13750_v6  ;;  %v456_v16 = vmul.f32 %v13756_v10, %v13756_v10 }
  0xbb   : > { %v487_v15 = vsel %vm365_vm0, %v455_v13, 0.0  ;;  %v490_v17 = vsel %vm365_vm0, %v456_v16, 0.0 }
  0xbc   : > { %409 = vadd.xlane.f32.xlu0 %v408_v58  ;;  %406 = vadd.xlane.f32.xlu1 %v405_v60 }
  0xc0   : > { %412 = vadd.xlane.f32.xlu1 %v411_v3  ;;  %476 = vadd.xlane.f32.xlu0 %v475_v5 }
  0xc4   : > { %479 = vadd.xlane.f32.xlu1 %v478_v9  ;;  %482 = vadd.xlane.f32.xlu0 %v481_v11 }
  0xc8   : > { %485 = vadd.xlane.f32.xlu1 %v484_v14  ;;  %488 = vadd.xlane.f32.xlu0 %v487_v15 }
  0xcc   : > { %491 = vadd.xlane.f32.xlu1 %v490_v17 }
 0x135   : > { %v465_v20 = vpop.xlane.xlu0 %464 }
 0x136   : > { %v511_v21 = vmul.f32 0.03125, %v465_v20 }
 0x138   : > { %v527_v22 = vadd.f32 1e-05, %v511_v21  ;;  %v13821_v21 = vld [vmem:[%s17411_s2] ss:$0 sm:$0xff] }
 0x139   : > { %v468_v23 = vpop.xlane.xlu1 %467  ;;  %v471_v26 = vpop.xlane.xlu0 %470 }
 0x13a   : > { %13181 = vrsqrt.f32 %v527_v22  ;;  %v512_v27 = vmul.f32 0.03125, %v468_v23  ;;  %v513_v28 = vmul.f32 0.03125, %v471_v26 }
 0x13c   : > { %v528_v29 = vadd.f32 1e-05, %v512_v27  ;;  %v529_v30 = vadd.f32 1e-05, %v513_v28 }
 0x13d   : > { %v474_v31 = vpop.xlane.xlu1 %473  ;;  %v398_v34 = vpop.xlane.xlu0 %397 }
 0x13e   : > { %13183 = vrsqrt.f32 %v528_v29  ;;  %v514_v35 = vmul.f32 0.03125, %v474_v31  ;;  %v425_v36 = vmul.f32 0.03125, %v398_v34 }
 0x13f   : > { %13185 = vrsqrt.f32 %v529_v30 }
 0x140   : > { %v530_v37 = vadd.f32 1e-05, %v514_v35  ;;  %v13775_v38 = vsub.f32 %v13703_v39, %v425_v36 }
 0x141   : > { %v401_v40 = vpop.xlane.xlu1 %400  ;;  %v404_v41 = vpop.xlane.xlu0 %403 }
 0x142   : > { %13187 = vrsqrt.f32 %v530_v37  ;;  %v426_v42 = vmul.f32 0.03125, %v401_v40  ;;  %v427_v43 = vmul.f32 0.03125, %v404_v41  ;;  %v457_v44 = vmul.f32 %v13775_v38, %v13775_v38 }
 0x144   : > { %v13780_v45 = vsub.f32 %v13713_v47, %v426_v42  ;;  %v13783_v48 = vsub.f32 %v13710_v46, %v427_v43  ;;  %v493_v49 = vsel %vm365_vm0, %v457_v44, 0.0 }
 0x145   : > { %v407_v50 = vpop.xlane.xlu1 %406  ;;  %494 = vadd.xlane.f32.xlu0 %v493_v49  ;;  %v410_v39 = vpop.xlane.xlu0 %409 }
 0x146   : > { %v428_v51 = vmul.f32 0.03125, %v407_v50  ;;  %v429_v54 = vmul.f32 0.03125, %v410_v39  ;;  %v458_v56 = vmul.f32 %v13780_v45, %v13780_v45  ;;  %v459_v58 = vmul.f32 %v13783_v48, %v13783_v48 }
 0x147   : > { %v13182_v59 = vpop.eup %13181 }
 0x148   : > { %v13791_v47 = vsub.f32 %v13725_v55, %v428_v51  ;;  %v13794_v46 = vsub.f32 %v13722_v53, %v429_v54  ;;  %v496_v60 = vsel %vm365_vm0, %v458_v56, 0.0  ;;  %v499_v63 = vsel %vm365_vm0, %v459_v58, 0.0  ;;  %v13806_v53 = vld [vmem:[%s17410_s1] ss:$0 sm:$0xff] }
 0x149   : > { %497 = vadd.xlane.f32.xlu1 %v496_v60  ;;  %v413_v0 = vpop.xlane.xlu1 %412  ;;  %500 = vadd.xlane.f32.xlu0 %v499_v63  ;;  %v477_v1 = vpop.xlane.xlu0 %476  ;;  %v559_v3 = vmul.f32 %v13182_v59, %v13684_v24 }
 0x14a   : > { %v430_v4 = vmul.f32 0.03125, %v413_v0  ;;  %v515_v5 = vmul.f32 0.03125, %v477_v1  ;;  %v460_v7 = vmul.f32 %v13791_v47, %v13791_v47  ;;  %v461_v55 = vmul.f32 %v13794_v46, %v13794_v46 }
 0x14b   : > { %v13184_v8 = vpop.eup %13183  ;;  %v582_v17 = vmul.f32 %v13806_v53, %v559_v3 }
 0x14c   : > { %v13186_v9 = vpop.eup %13185  ;;  %v13809_v11 = vsub.f32 %v13737_v62, %v430_v4  ;;  %v531_v12 = vadd.f32 1e-05, %v515_v5  ;;  %v502_v24 = vsel %vm365_vm0, %v460_v7, 0.0  ;;  %v505_v13 = vsel %vm365_vm0, %v461_v55, 0.0 }
 0x14d   : > { %503 = vadd.xlane.f32.xlu1 %v502_v24  ;;  %v480_v14 = vpop.xlane.xlu1 %479  ;;  %506 = vadd.xlane.f32.xlu0 %v505_v13  ;;  %v483_v15 = vpop.xlane.xlu0 %482  ;;  %v560_v16 = vmul.f32 %v13184_v8, %v13692_v32  ;;  %v561_v18 = vmul.f32 %v13186_v9, %v13686_v25  ;;  %v605_v31 = vadd.f32 %v13821_v21, %v582_v17 }
 0x14e   : > { %13189 = vrsqrt.f32 %v531_v12  ;;  %v516_v19 = vmul.f32 0.03125, %v480_v14  ;;  %v517_v20 = vmul.f32 0.03125, %v483_v15  ;;  %v462_v62 = vmul.f32 %v13809_v11, %v13809_v11 }
 0x14f   : > { %v13188_v22 = vpop.eup %13187  ;;  %v583_v23 = vmul.f32 %v13806_v53, %v560_v16  ;;  %v584_v32 = vmul.f32 %v13806_v53, %v561_v18 }
 0x150   : > { %v532_v26 = vadd.f32 1e-05, %v516_v19  ;;  %v533_v27 = vadd.f32 1e-05, %v517_v20  ;;  %v508_v25 = vsel %vm365_vm0, %v462_v62, 0.0  ;;  %v562_v28 = vmul.f32 %v13188_v22, %v13694_v33 }
 0x151   : > { %509 = vadd.xlane.f32.xlu1 %v508_v25  ;;  %v486_v29 = vpop.xlane.xlu1 %485  ;;  %v489_v30 = vpop.xlane.xlu0 %488  ;;  %v606_v34 = vadd.f32 %v13821_v21, %v583_v23  ;;  %v607_v43 = vadd.f32 %v13821_v21, %v584_v32 }
 0x152   : > { %13191 = vrsqrt.f32 %v532_v26  ;;  %v518_v35 = vmul.f32 0.03125, %v486_v29  ;;  %v519_v36 = vmul.f32 0.03125, %v489_v30  ;;  %v585_v37 = vmul.f32 %v13806_v53, %v562_v28 }
 0x153   : > { %13193 = vrsqrt.f32 %v533_v27  ;;  %v621_v40 = vpack.c.bf16 %v606_v34, %v605_v31 }
 0x154   : > { %v534_v41 = vadd.f32 1e-05, %v518_v35  ;;  %v535_v42 = vadd.f32 1e-05, %v519_v36  ;;  %v608_v33 = vadd.f32 %v13821_v21, %v585_v37 }
 0x155   : > { %11555 = vmatprep.mubr.msk.bf16.mxu0 %vm365_vm0, %v621_v40  ;;  %v492_v44 = vpop.xlane.xlu1 %491 }
 0x156   : > { %13195 = vrsqrt.f32 %v534_v41  ;;  %v520_v49 = vmul.f32 0.03125, %v492_v44  ;;  %v622_v50 = vpack.c.bf16 %v608_v33, %v607_v43 }
 0x157   : > { %13197 = vrsqrt.f32 %v535_v42 }
 0x158   : > { %v536_v39 = vadd.f32 1e-05, %v520_v49  ;;  %11556 = vmatmul.mubr.msk.bf16.vlgmr.msra.gmra.mxu0 %vm365_vm0, %v622_v50 }
 0x15a   : > { %13199 = vrsqrt.f32 %v536_v39 }
 0x15b   : > { %v13190_v51 = vpop.eup %13189 }
 0x15c   : > { %v563_v54 = vmul.f32 %v13190_v51, %v13719_v52 }
 0x15e   : > { %v586_v60 = vmul.f32 %v13806_v53, %v563_v54 }
 0x15f   : > { %v13192_v56 = vpop.eup %13191 }
 0x160   : > { %v13194_v58 = vpop.eup %13193  ;;  %v564_v59 = vmul.f32 %v13192_v56, %v13728_v57  ;;  %v609_v4 = vadd.f32 %v13821_v21, %v586_v60 }
 0x161   : > { %v565_v63 = vmul.f32 %v13194_v58, %v13734_v61 }
 0x162   : > { %v587_v0 = vmul.f32 %v13806_v53, %v564_v59 }
 0x163   : > { %v13196_v1 = vpop.eup %13195  ;;  %v588_v52 = vmul.f32 %v13806_v53, %v565_v63 }
 0x164   : > { %v13198_v3 = vpop.eup %13197  ;;  %v610_v5 = vadd.f32 %v13821_v21, %v587_v0  ;;  %v566_v7 = vmul.f32 %v13196_v1, %v13742_v2 }
 0x165   : > { %v567_v55 = vmul.f32 %v13198_v3, %v13750_v6  ;;  %v611_v61 = vadd.f32 %v13821_v21, %v588_v52 }
 0x166   : > { %v623_v8 = vpack.c.bf16 %v610_v5, %v609_v4  ;;  %v589_v57 = vmul.f32 %v13806_v53, %v566_v7  ;;  %v11309_v7 = vld [vmem:[%s17413_s4] ss:$0 sm:$0xff] }
 0x167   : > { %v13200_v9 = vpop.eup %13199  ;;  %v590_v13 = vmul.f32 %v13806_v53, %v567_v55 }
 0x168   : > { %11559 = vmatprep.mubr.msk.bf16.mxu0 %vm365_vm0, %v623_v8  ;;  %v612_v12 = vadd.f32 %v13821_v21, %v589_v57  ;;  %v568_v24 = vmul.f32 %v13200_v9, %v13756_v10 }
 0x169   : > { %v613_v6 = vadd.f32 %v13821_v21, %v590_v13 }
 0x16a   : > { %v624_v14 = vpack.c.bf16 %v612_v12, %v611_v61  ;;  %v591_v2 = vmul.f32 %v13806_v53, %v568_v24 }
 0x16c   : > { %11560 = vmatmul.mubr.msk.bf16.gmra.mxu0 %vm365_vm0, %v624_v14  ;;  %v614_v15 = vadd.f32 %v13821_v21, %v591_v2 }
 0x16e   : > { %v625_v16 = vpack.c.bf16 %v614_v15, %v613_v6 }
 0x170   : > { %11563 = vmatprep.mubr.msk.bf16.mxu1 %vm365_vm0, %v625_v16 }
 0x1ce   : > { %v495_v17 = vpop.xlane.xlu0 %494 }
 0x1cf   : > { %v521_v18 = vmul.f32 0.03125, %v495_v17 }
 0x1d1   : > { %v537_v19 = vadd.f32 1e-05, %v521_v18 }
 0x1d2   : > { %v498_v20 = vpop.xlane.xlu1 %497  ;;  %v501_v62 = vpop.xlane.xlu0 %500 }
 0x1d3   : > { %13201 = vrsqrt.f32 %v537_v19  ;;  %v522_v10 = vmul.f32 0.03125, %v498_v20  ;;  %v523_v22 = vmul.f32 0.03125, %v501_v62 }
 0x1d5   : > { %v538_v23 = vadd.f32 1e-05, %v522_v10  ;;  %v539_v32 = vadd.f32 1e-05, %v523_v22 }
 0x1d6   : > { %v504_v26 = vpop.xlane.xlu1 %503  ;;  %v507_v27 = vpop.xlane.xlu0 %506 }
 0x1d7   : > { %13203 = vrsqrt.f32 %v538_v23  ;;  %v524_v25 = vmul.f32 0.03125, %v504_v26  ;;  %v525_v28 = vmul.f32 0.03125, %v507_v27 }
 0x1d8   : > { %13205 = vrsqrt.f32 %v539_v32 }
 0x1d9   : > { %v540_v29 = vadd.f32 1e-05, %v524_v25  ;;  %v541_v30 = vadd.f32 1e-05, %v525_v28 }
 0x1da   : > { %v510_v31 = vpop.xlane.xlu1 %509 }
 0x1db   : > { %13207 = vrsqrt.f32 %v540_v29  ;;  %v526_v34 = vmul.f32 0.03125, %v510_v31 }
 0x1dc   : > { %13209 = vrsqrt.f32 %v541_v30 }
 0x1dd   : > { %v542_v35 = vadd.f32 1e-05, %v526_v34 }
 0x1df   : > { %13211 = vrsqrt.f32 %v542_v35 }
 0x1e0   : > { %v13202_v36 = vpop.eup %13201 }
 0x1e1   : > { %v569_v37 = vmul.f32 %v13202_v36, %v13775_v38 }
 0x1e3   : > { %v592_v43 = vmul.f32 %v13806_v53, %v569_v37 }
 0x1e4   : > { %v13204_v40 = vpop.eup %13203 }
 0x1e5   : > { %v13206_v41 = vpop.eup %13205  ;;  %v570_v42 = vmul.f32 %v13204_v40, %v13780_v45  ;;  %v615_v39 = vadd.f32 %v13821_v21, %v592_v43 }
 0x1e6   : > { %v571_v33 = vmul.f32 %v13206_v41, %v13783_v48 }
 0x1e7   : > { %v593_v44 = vmul.f32 %v13806_v53, %v570_v42 }
 0x1e8   : > { %v13208_v49 = vpop.eup %13207  ;;  %v594_v38 = vmul.f32 %v13806_v53, %v571_v33 }
 0x1e9   : > { %v13210_v50 = vpop.eup %13209  ;;  %v616_v51 = vadd.f32 %v13821_v21, %v593_v44  ;;  %v572_v54 = vmul.f32 %v13208_v49, %v13791_v47 }
 0x1ea   : > { %v573_v56 = vmul.f32 %v13210_v50, %v13794_v46  ;;  %v617_v48 = vadd.f32 %v13821_v21, %v594_v38 }
 0x1eb   : > { %v626_v58 = vpack.c.bf16 %v616_v51, %v615_v39  ;;  %v595_v45 = vmul.f32 %v13806_v53, %v572_v54 }
 0x1ec   : > { %v13212_v59 = vpop.eup %13211  ;;  %v596_v0 = vmul.f32 %v13806_v53, %v573_v56 }
 0x1ed   : > { %11564 = vmatmul.mubr.msk.bf16.vlgmr.msra.gmra.mxu1 %vm365_vm0, %v626_v58  ;;  %v618_v60 = vadd.f32 %v13821_v21, %v595_v45  ;;  %v574_v63 = vmul.f32 %v13212_v59, %v13809_v11 }
 0x1ee   : > { %v619_v46 = vadd.f32 %v13821_v21, %v596_v0 }
 0x1ef   : > { %v627_v1 = vpack.c.bf16 %v618_v60, %v617_v48  ;;  %v597_v47 = vmul.f32 %v13806_v53, %v574_v63 }
 0x1f1   : > { %11567 = vmatprep.mubr.msk.bf16.mxu1 %vm365_vm0, %v627_v1  ;;  %v620_v3 = vadd.f32 %v13821_v21, %v597_v47 }
 0x1f3   : > { %v628_v4 = vpack.c.bf16 %v620_v3, %v619_v46 }
 0x1f5   : > { %11568 = vmatmul.mubr.msk.bf16.gmra.mxu1 %vm365_vm0, %v628_v4 }
 0x218   : > { %v11557_v5 = vpop.f32.mrf.mxu0 }
 0x219   : > { %v719_v52 = vadd.f32 %v11557_v5, %v11309_v7 }
 0x21a   : > { %v710_v11 = vpop.f32.mrf.mxu0 }
 0x21b   : > { %v711_v55 = vadd.f32 %v11309_v7, %v710_v11 }
 0x21c   : > { %v11558_v8 = vpop.f32.mrf.mxu0 }
 0x21d   : > { %v722_v57 = vadd.f32 %v11558_v8, %v11309_v7  ;;  %v12049_v53 = vpack.i.bf16 %v719_v52, %v711_v55 }
 0x21e   : > { %v713_v9 = vpop.f32.mrf.mxu0 }
 0x21f   : > { %v714_v61 = vadd.f32 %v11309_v7, %v713_v9  ;;  %v12029_v12 = vpack.i.bf16 %v722_v57, %v719_v52 }
 0x221   : > { %12030 = vrot.lane.b32.xlu1 %v12029_v12, %s13531_s26  ;;  %v12051_v21 = vpack.i.bf16 %v722_v57, %v714_v61  ;;  %v12097_v24 = vpack.i.bf16 %v714_v61, %v711_v55 }
 0x225   : > { %12108 = vrot.lane.b32.xlu1 %v12097_v24, %s13532_s27 }
 0x22c   : > { %v11561_v13 = vpop.f32.mrf.mxu0 }
 0x22d   : > { %v735_v6 = vadd.f32 %v11561_v13, %v11309_v7 }
 0x22e   : > { %v726_v14 = vpop.f32.mrf.mxu0 }
 0x22f   : > { %v727_v35 = vadd.f32 %v11309_v7, %v726_v14 }
 0x230   : > { %v11562_v2 = vpop.f32.mrf.mxu0 }
 0x231   : > { %v738_v15 = vadd.f32 %v11562_v2, %v11309_v7  ;;  %v12132_v41 = vpack.i.bf16 %v735_v6, %v727_v35 }
 0x232   : > { %v729_v36 = vpop.f32.mrf.mxu0 }
 0x233   : > { %v12117_v16 = vpack.i.bf16 %v738_v15, %v735_v6  ;;  %v730_v40 = vadd.f32 %v11309_v7, %v729_v36 }
 0x235   : > { %v12134_v33 = vpack.i.bf16 %v738_v15, %v730_v40  ;;  %v12180_v39 = vpack.i.bf16 %v730_v40, %v727_v35 }
 0x293   : > { %v12031_v58 = vpop.permute.xlu1 %12030 }
 0x297   : > { %v12109_v59 = vpop.permute.xlu1 %12108 }
 0x298   : > { %v12111_v40 = vunpack.i.h.bf16 %v12109_v59 }
 0x2ad   : > { %v11565_v17 = vpop.f32.mrf.mxu1 }
 0x2ae   : > { %v751_v20 = vadd.f32 %v11565_v17, %v11309_v7 }
 0x2af   : > { %v742_v18 = vpop.f32.mrf.mxu1 }
 0x2b0   : > { %v743_v37 = vadd.f32 %v11309_v7, %v742_v18  ;;  %v12032_v18 = vunpack.i.l.bf16 %v12031_v58 }
 0x2b1   : > { %v11566_v19 = vpop.f32.mrf.mxu1 }
 0x2b2   : > { %v754_v62 = vadd.f32 %v11566_v19, %v11309_v7  ;;  %v12073_v43 = vpack.i.bf16 %v751_v20, %v743_v37 }
 0x2b3   : > { %v745_v10 = vpop.f32.mrf.mxu1 }
 0x2b4   : > { %v12034_v22 = vpack.i.bf16 %v754_v62, %v751_v20  ;;  %v746_v42 = vadd.f32 %v11309_v7, %v745_v10  ;;  %v12033_v10 = vunpack.i.h.bf16 %v12031_v58 }
 0x2b5   : > { %v11569_v23 = vpop.f32.mrf.mxu1 }
 0x2b6   : > { %12035 = vrot.lane.b32.xlu0 %v12034_v22, %s13531_s26  ;;  %v767_v27 = vadd.f32 %v11569_v23, %v11309_v7  ;;  %v12075_v44 = vpack.i.bf16 %v754_v62, %v746_v42  ;;  %v12102_v51 = vpack.i.bf16 %v746_v42, %v743_v37 }
 0x2b7   : > { %v758_v32 = vpop.f32.mrf.mxu1 }
 0x2b8   : > { %v759_v29 = vadd.f32 %v11309_v7, %v758_v32 }
 0x2b9   : > { %v11570_v26 = vpop.f32.mrf.mxu1 }
 0x2ba   : > { %v770_v25 = vadd.f32 %v11570_v26, %v11309_v7  ;;  %12040 = vrot.lane.b32.xlu0 %v12029_v12, %s13532_s27  ;;  %v12156_v49 = vpack.i.bf16 %v767_v27, %v759_v29 }
 0x2bb   : > { %v761_v28 = vpop.f32.mrf.mxu1 }
 0x2bc   : > { %v13883_v30 = vpack.i.bf16 %v770_v25, %v767_v27  ;;  %v762_v31 = vadd.f32 %v11309_v7, %v761_v28 }
 0x2be   : > { %17589 = vst [vmem:[#allocation5_spill] sm:$0xff] %v13883_v30  ;;  %v13885_v34 = vpack.i.bf16 %v762_v31, %v759_v29  ;;  %12045 = vrot.lane.b32.xlu0 %v12034_v22, %s13532_s27  ;;  %12123 = vrot.lane.b32.xlu1 %v13883_v30, %s13531_s26  ;;  %v12158_v50 = vpack.i.bf16 %v770_v25, %v762_v31  ;;  %v12110_v31 = vunpack.i.l.bf16 %v12109_v59 }
 0x2dc   : > { %12050 = vxpose.xlu0.b32.start [1/2] (short) (narrow) %v12049_v53, 32 }
 0x2e0   : > { %12052 = vxpose.xlu0.b32.end [2/2] (short) (narrow) %v12051_v21, 32 }
 0x2e7   : > { %12133 = vxpose.xlu1.b32.start [1/2] (short) (narrow) %v12132_v41, 32 }
 0x2e9   : > { %12074 = vxpose.xlu0.b32.start [1/2] (short) (narrow) %v12073_v43, 32 }
 0x2eb   : > { %12135 = vxpose.xlu1.b32.end [2/2] (short) (narrow) %v12134_v33, 32 }
 0x2ed   : > { %12076 = vxpose.xlu0.b32.end [2/2] (short) (narrow) %v12075_v44, 32 }
 0x2f4   : > { %12157 = vxpose.xlu1.b32.start [1/2] (short) (narrow) %v12156_v49, 32 }
 0x2f8   : > { %12159 = vxpose.xlu1.b32.end [2/2] (short) (narrow) %v12158_v50, 32 }
 0x31e   : > { %12098 = vrot.lane.b32.xlu0 %v12097_v24, %s13531_s26  ;;  %12181 = vrot.lane.b32.xlu1 %v12180_v39, %s13531_s26 }
 0x322   : > { %12103 = vrot.lane.b32.xlu0 %v12102_v51, %s13531_s26  ;;  %12186 = vrot.lane.b32.xlu1 %v13885_v34, %s13531_s26 }
 0x326   : > { %12113 = vrot.lane.b32.xlu0 %v12102_v51, %s13532_s27  ;;  %12191 = vrot.lane.b32.xlu1 %v12180_v39, %s13532_s27 }
 0x328   : > { %v12036_v54 = vpop.permute.xlu0 %12035 }
 0x329   : > { %v12037_v23 = vunpack.i.l.bf16 %v12036_v54  ;;  %v12038_v25 = vunpack.i.h.bf16 %v12036_v54 }
 0x32a   : > { %12118 = vrot.lane.b32.xlu0 %v12117_v16, %s13531_s26 }
 0x32c   : > { %v13899_v38 = vpop.permute.xlu0 %12040 }
 0x32d   : > { %v12042_v29 = vunpack.i.l.bf16 %v13899_v38  ;;  %v12043_v35 = vunpack.i.h.bf16 %v13899_v38 }
 0x32e   : > { %12128 = vrot.lane.b32.xlu0 %v12117_v16, %s13532_s27 }
 0x32f   : > { %v12279_v37 = vpack.i.bf16 %v12042_v29, %v12110_v31  ;;  %v12281_v41 = vpack.i.bf16 %v12043_v35, %v12111_v40 }
 0x330   : > { %v13901_v56 = vpop.permute.xlu0 %12045  ;;  %v13903_v47 = vpop.permute.xlu1 %12123 }
 0x331   : > { %v12125_v38 = vunpack.i.l.bf16 %v13903_v47  ;;  %v12126_v59 = vunpack.i.h.bf16 %v13903_v47 }
 0x358   : > { %v12053_v45 = vpop.trf.xlu0 }
 0x359   : > { %v12057_v48 = vunpack.i.h.bf16 %v12053_v45  ;;  %v12054_v1 = vunpack.i.l.bf16 %v12053_v45 }
 0x35c   : > { %v12058_v60 = vpop.trf.xlu0 }
 0x35d   : > { %v12062_v63 = vunpack.i.h.bf16 %v12058_v60  ;;  %v12059_v0 = vunpack.i.l.bf16 %v12058_v60 }
 0x35f   : > { %v12195_v46 = vpack.i.bf16 %v12062_v63, %v12057_v48  ;;  %v12207_v5 = vpack.i.bf16 %v12059_v0, %v12054_v1 }
 0x360   : > { %v12063_v3 = vpop.trf.xlu0 }
 0x361   : > { %12196 = vxpose.xlu0.b32.start.end [1/1] (short) (narrow) %v12195_v46, 16  ;;  %v12067_v4 = vunpack.i.h.bf16 %v12063_v3  ;;  %v12064_v11 = vunpack.i.l.bf16 %v12063_v3 }
 0x363   : > { %v13905_v7 = vpop.trf.xlu1  ;;  %1221 = vxpose.xlu1.b32.start.end [1/1] (short) (narrow) %v12067_v4, 16 }
 0x364   : > { %v13907_v52 = vpop.trf.xlu0 }
 0x365   : > { %v12069_v55 = vunpack.i.l.bf16 %v13907_v52 }
 0x366   : > { %12208 = vxpose.xlu0.b32.start.end [1/1] (short) (narrow) %v12207_v5, 16 }
 0x367   : > { %v13910_v8 = vpop.trf.xlu1  ;;  %v12219_v57 = vpack.i.bf16 %v12069_v55, %v12064_v11 }
 0x368   : > { %v13912_v53 = vpop.trf.xlu0 }
 0x369   : > { %12220 = vxpose.xlu1.b32.start.end [1/1] (short) (narrow) %v12219_v57, 16 }
 0x36b   : > { %v13914_v9 = vpop.trf.xlu1 }
 0x36c   : > { %v13916_v61 = vpop.trf.xlu0 }
 0x36f   : > { %v13918_v12 = vpop.trf.xlu1 }
 0x370   : > { %v13920_v21 = vpop.trf.xlu0 }
 0x373   : > { %v13922_v24 = vpop.trf.xlu1 }
 0x374   : > { %v13924_v13 = vpop.trf.xlu0 }
 0x375   : > { %v12093_v31 = vunpack.i.l.bf16 %v13924_v13 }
 0x377   : > { %v13926_v14 = vpop.trf.xlu1 }
 0x37b   : > { %v13928_v2 = vpop.trf.xlu1 }
 0x37f   : > { %v13930_v6 = vpop.trf.xlu1 }
 0x380   : > { %v12179_v15 = vunpack.i.h.bf16 %v13930_v6 }
 0x382   : > { %2021 = vxpose.xlu0.b32.start.end [1/1] (short) (narrow) %v12179_v15, 16 }
 0x390   : > { %v12099_v16 = vpop.permute.xlu0 %12098  ;;  %v12182_v43 = vpop.permute.xlu1 %12181 }
 0x391   : > { %v12100_v17 = vunpack.i.l.bf16 %v12099_v16  ;;  %v12101_v19 = vunpack.i.h.bf16 %v12099_v16  ;;  %v12183_v44 = vunpack.i.l.bf16 %v12182_v43  ;;  %v12184_v39 = vunpack.i.h.bf16 %v12182_v43 }
 0x392   : > { %v12081_v43 = vunpack.i.h.bf16 %v13912_v53 }
 0x393   : > { %v12231_v20 = vpack.i.bf16 %v12032_v18, %v12100_v17  ;;  %v12233_v32 = vpack.i.bf16 %v12033_v10, %v12101_v19 }
 0x394   : > { %v12104_v62 = vpop.permute.xlu0 %12103  ;;  %v12187_v54 = vpop.permute.xlu1 %12186 }
 0x395   : > { %12232 = vxpose.xlu1.b32.start [1/2] (short) (narrow) %v12231_v20, 32  ;;  %v12105_v22 = vunpack.i.l.bf16 %v12104_v62  ;;  %v12106_v26 = vunpack.i.h.bf16 %v12104_v62  ;;  %v12188_v58 = vunpack.i.l.bf16 %v12187_v54  ;;  %v12189_v45 = vunpack.i.h.bf16 %v12187_v54 }
 0x397   : > { %v12255_v27 = vpack.i.bf16 %v12037_v23, %v12105_v22  ;;  %v12257_v28 = vpack.i.bf16 %v12038_v25, %v12106_v26  ;;  %v12327_v48 = vpack.i.bf16 %v12125_v38, %v12188_v58  ;;  %v12329_v60 = vpack.i.bf16 %v12126_v59, %v12189_v45 }
 0x398   : > { %v13935_v36 = vpop.permute.xlu0 %12113  ;;  %v12192_v0 = vpop.permute.xlu1 %12191 }
 0x399   : > { %12234 = vxpose.xlu1.b32.end [2/2] (short) (narrow) %v12233_v32, 32  ;;  %12256 = vxpose.xlu0.b32.start [1/2] (short) (narrow) %v12255_v27, 32  ;;  %v12193_v46 = vunpack.i.l.bf16 %v12192_v0  ;;  %v12194_v5 = vunpack.i.h.bf16 %v12192_v0 }
 0x39c   : > { %v12119_v42 = vpop.permute.xlu0 %12118 }
 0x39d   : > { %12258 = vxpose.xlu0.b32.end [2/2] (short) (narrow) %v12257_v28, 32  ;;  %v12120_v33 = vunpack.i.l.bf16 %v12119_v42  ;;  %v12121_v49 = vunpack.i.h.bf16 %v12119_v42 }
 0x39f   : > { %v12303_v50 = vpack.i.bf16 %v12120_v33, %v12183_v44  ;;  %v12305_v51 = vpack.i.bf16 %v12121_v49, %v12184_v39  ;;  %v12155_v44 = vunpack.i.h.bf16 %v13918_v12 }
 0x3a0   : > { %v12129_v63 = vpop.permute.xlu0 %12128 }
 0x3a1   : > { %v12130_v1 = vunpack.i.l.bf16 %v12129_v63  ;;  %v12131_v3 = vunpack.i.h.bf16 %v12129_v63 }
 0x3a2   : > { %12280 = vxpose.xlu1.b32.start [1/2] (short) (narrow) %v12279_v37, 32 }
 0x3a3   : > { %v12351_v4 = vpack.i.bf16 %v12130_v1, %v12193_v46  ;;  %v12353_v11 = vpack.i.bf16 %v12131_v3, %v12194_v5 }
 0x3a6   : > { %12282 = vxpose.xlu1.b32.end [2/2] (short) (narrow) %v12281_v41, 32 }
 0x3af   : > { %12304 = vxpose.xlu1.b32.start [1/2] (short) (narrow) %v12303_v50, 32 }
 0x3b3   : > { %12306 = vxpose.xlu1.b32.end [2/2] (short) (narrow) %v12305_v51, 32 }
 0x3bc   : > { %12328 = vxpose.xlu1.b32.start [1/2] (short) (narrow) %v12327_v48, 32 }
 0x3c0   : > { %12330 = vxpose.xlu1.b32.end [2/2] (short) (narrow) %v12329_v60, 32 }
 0x3c9   : > { %12352 = vxpose.xlu1.b32.start [1/2] (short) (narrow) %v12351_v4, 32 }
 0x3cd   : > { %12354 = vxpose.xlu1.b32.end [2/2] (short) (narrow) %v12353_v11, 32 }
 0x3dd   : > { %v12197_v55 = vpop.trf.xlu0 }
 0x3de   : > { %v12201_v15 = vunpack.i.h.bf16 %v12197_v55  ;;  %v12198_v16 = vunpack.i.l.bf16 %v12197_v55  ;;  %v12078_v55 = vunpack.i.l.bf16 %v13912_v53 }
 0x3df   : > { %v13939_v57 = vpop.trf.xlu1 }
 0x3e1   : > { %v12202_v17 = vpop.trf.xlu0 }
 0x3e2   : > { %v12206_v47 = vunpack.i.h.bf16 %v12202_v17  ;;  %v12203_v18 = vunpack.i.l.bf16 %v12202_v17  ;;  %v12152_v17 = vunpack.i.l.bf16 %v13918_v12  ;;  %v12083_v12 = vunpack.i.l.bf16 %v13916_v61 }
 0x3e3   : > { %v13941_v19 = vpop.trf.xlu1 }
 0x3e4   : > { %v13943_v20 = vpack.c.bf16 %v12203_v18, %v12198_v16  ;;  %v13945_v62 = vpack.c.bf16 %v12206_v47, %v12201_v15  ;;  %v17423_v15 = vmov 0.0  }
 0x3e5   : > { %v13947_v10 = vpop.trf.xlu0  ;;  %11595 = vmatprep.subr.bf16.mxu0 %v17423_v15  ;;  %11571 = vmatprep.subr.bf16.mxu1 %v17423_v15 }
 0x3e6   : > { %11597 = vmatprep.mubr.msk.bf16.mxu0 %vm13534_vm1, %v17423_v15  ;;  %11573 = vmatprep.mubr.msk.bf16.mxu1 %vm13534_vm1, %v17423_v15 }
 0x3e7   : > { %v13949_v22 = vpop.trf.xlu1 }
 0x3e9   : > { %v13951_v23 = vpop.trf.xlu0 }
 0x3eb   : > { %v13953_v32 = vpop.trf.xlu1 }
 0x3fe   : > { %v13955_v26 = vpop.trf.xlu0 }
 0x402   : > { %v13957_v27 = vpop.trf.xlu0 }
 0x411   : > { %v12235_v25 = vpop.trf.xlu1 }
 0x412   : > { %v12239_v58 = vunpack.i.h.bf16 %v12235_v25  ;;  %v12236_v3 = vunpack.i.l.bf16 %v12235_v25 }
 0x415   : > { %v12240_v28 = vpop.trf.xlu1  ;;  %v12259_v29 = vpop.trf.xlu0 }
 0x416   : > { %v12263_v35 = vunpack.i.h.bf16 %v12259_v29  ;;  %v12260_v42 = vunpack.i.l.bf16 %v12259_v29  ;;  %v12244_v54 = vunpack.i.h.bf16 %v12240_v28  ;;  %v12241_v46 = vunpack.i.l.bf16 %v12240_v28 }
 0x418   : > { %v12375_v41 = vpack.i.bf16 %v12093_v31, %v12263_v35  ;;  %v12387_v51 = vpack.i.bf16 %v12155_v44, %v12260_v42  ;;  %v12399_v48 = vpack.i.bf16 %v12244_v54, %v12239_v58  ;;  %v12435_v5 = vpack.i.bf16 %v12241_v46, %v12236_v3 }
 0x419   : > { %v13960_v37 = vpop.trf.xlu1  ;;  %v12264_v40 = vpop.trf.xlu0  ;;  %v12164_v46 = vunpack.i.h.bf16 %v13922_v24 }
 0x41a   : > { %12376 = vxpose.xlu0.b32.start.end [1/1] (short) (narrow) %v12375_v41, 16  ;;  %v12268_v33 = vunpack.i.h.bf16 %v12264_v40  ;;  %v12265_v11 = vunpack.i.l.bf16 %v12264_v40  ;;  %v12249_v44 = vunpack.i.h.bf16 %v13960_v37 }
 0x41c   : > { %v12411_v39 = vpack.i.bf16 %v12081_v43, %v12268_v33  ;;  %v12447_v47 = vpack.i.bf16 %v12078_v55, %v12265_v11  ;;  %v12086_v43 = vunpack.i.h.bf16 %v13916_v61 }
 0x41d   : > { %v13964_v49 = vpop.trf.xlu1  ;;  %v12269_v50 = vpop.trf.xlu0 }
 0x41e   : > { %12412 = vxpose.xlu1.b32.start.end [1/1] (short) (narrow) %v12411_v39, 16  ;;  %v12270_v35 = vunpack.i.l.bf16 %v12269_v50  ;;  %v12273_v40 = vunpack.i.h.bf16 %v12269_v50  ;;  %v12254_v33 = vunpack.i.h.bf16 %v13964_v49  ;;  %v12091_v50 = vunpack.i.h.bf16 %v13920_v21 }
 0x41f   : > { %12388 = vxpose.xlu0.b32.start.end [1/1] (short) (narrow) %v12387_v51, 16 }
 0x420   : > { %v12519_v42 = vpack.i.bf16 %v12083_v12, %v12270_v35  ;;  %v12483_v39 = vpack.i.bf16 %v12086_v43, %v12273_v40  ;;  %v12543_v54 = vpack.i.bf16 %v12254_v33, %v12249_v44  ;;  %v12140_v12 = vunpack.i.h.bf16 %v13905_v7 }
 0x421   : > { %v12283_v38 = vpop.trf.xlu1  ;;  %v13966_v45 = vpop.trf.xlu0  ;;  %v12161_v44 = vunpack.i.l.bf16 %v13922_v24 }
 0x422   : > { %v12287_v59 = vunpack.i.h.bf16 %v12283_v38  ;;  %v12284_v25 = vunpack.i.l.bf16 %v12283_v38  ;;  %v12278_v58 = vunpack.i.h.bf16 %v13966_v45 }
 0x424   : > { %12400 = vxpose.xlu0.b32.start.end [1/1] (short) (narrow) %v12399_v48, 16  ;;  %v12176_v48 = vunpack.i.l.bf16 %v13930_v6  ;;  %v12567_v61 = vpack.i.bf16 %v12091_v50, %v12278_v58 }
 0x425   : > { %v12288_v60 = vpop.trf.xlu1 }
 0x426   : > { %v12292_v63 = vunpack.i.h.bf16 %v12288_v60  ;;  %v12289_v28 = vunpack.i.l.bf16 %v12288_v60 }
 0x428   : > { %v12423_v0 = vpack.i.bf16 %v12292_v63, %v12287_v59  ;;  %v12459_v53 = vpack.i.bf16 %v12289_v28, %v12284_v25  ;;  %v12096_v28 = vunpack.i.h.bf16 %v13924_v13 }
 0x429   : > { %v13968_v1 = vpop.trf.xlu1 }
 0x42a   : > { %12424 = vxpose.xlu0.b32.start.end [1/1] (short) (narrow) %v12423_v0, 16  ;;  %v12297_v6 = vunpack.i.h.bf16 %v13968_v1  ;;  %v12294_v50 = vunpack.i.l.bf16 %v13968_v1  ;;  %v12145_v1 = vunpack.i.h.bf16 %v13910_v8 }
 0x42d   : > { %v13970_v4 = vpop.trf.xlu1 }
 0x42e   : > { %v12299_v58 = vunpack.i.l.bf16 %v13970_v4 }
 0x42f   : > { %12436 = vxpose.xlu0.b32.start.end [1/1] (short) (narrow) %v12435_v5, 16  ;;  %v12072_v5 = vunpack.i.h.bf16 %v13907_v52  ;;  %v12251_v52 = vunpack.i.l.bf16 %v13964_v49  ;;  %v12137_v49 = vunpack.i.l.bf16 %v13905_v7 }
 0x430   : > { %v12651_v24 = vpack.i.bf16 %v12299_v58, %v12294_v50 }
 0x431   : > { %v12307_v16 = vpop.trf.xlu1 }
 0x432   : > { %v12311_v18 = vunpack.i.h.bf16 %v12307_v16  ;;  %v12308_v0 = vunpack.i.l.bf16 %v12307_v16 }
 0x434   : > { %12448 = vxpose.xlu0.b32.start.end [1/1] (short) (narrow) %v12447_v47, 16  ;;  %v12471_v29 = vpack.i.bf16 %v12152_v17, %v12311_v18  ;;  %v12507_v17 = vpack.i.bf16 %v12072_v5, %v12308_v0  ;;  %v12302_v47 = vunpack.i.h.bf16 %v13970_v4  ;;  %v12169_v4 = vunpack.i.h.bf16 %v13926_v14 }
 0x435   : > { %v13976_v31 = vpop.trf.xlu1 }
 0x436   : > { %12472 = vxpose.xlu1.b32.start.end [1/1] (short) (narrow) %v12471_v29, 16  ;;  %v12591_v25 = vpack.i.bf16 %v12302_v47, %v12297_v6  ;;  %v12246_v29 = vunpack.i.l.bf16 %v13960_v37  ;;  %v12313_v13 = vunpack.i.l.bf16 %v13976_v31 }
 0x439   : > { %v13983_v41 = vpop.trf.xlu1  ;;  %12460 = vxpose.xlu0.b32.start.end [1/1] (short) (narrow) %v12459_v53, 16  ;;  %v12316_v53 = vunpack.i.h.bf16 %v13976_v31  ;;  %v12088_v31 = vunpack.i.l.bf16 %v13920_v21 }
 0x43a   : > { %v12318_v21 = vunpack.i.l.bf16 %v13983_v41 }
 0x43b   : > { %12520 = vxpose.xlu1.b32.start.end [1/1] (short) (narrow) %v12519_v42, 16  ;;  %v12603_v42 = vpack.i.bf16 %v12251_v52, %v12246_v29  ;;  %v12555_v43 = vpack.i.bf16 %v12140_v12, %v12316_v53 }
 0x43d   : > { %v13988_v51 = vpop.trf.xlu1 }
 0x43e   : > { %12484 = vxpose.xlu0.b32.start.end [1/1] (short) (narrow) %v12483_v39, 16  ;;  %v12326_v29 = vunpack.i.h.bf16 %v13988_v51 }
 0x440   : > { %12544 = vxpose.xlu1.b32.start.end [1/1] (short) (narrow) %v12543_v54, 16  ;;  %v12615_v54 = vpack.i.bf16 %v12137_v49, %v12313_v13  ;;  %v12116_v13 = vunpack.i.h.bf16 %v13935_v36  ;;  %v12048_v49 = vunpack.i.h.bf16 %v13901_v56 }
 0x441   : > { %v12331_v38 = vpop.trf.xlu1 }
 0x442   : > { %v12335_v59 = vunpack.i.h.bf16 %v12331_v38  ;;  %v12332_v18 = vunpack.i.l.bf16 %v12331_v38  ;;  %v12275_v38 = vunpack.i.l.bf16 %v13966_v45 }
 0x444   : > { %v12495_v60 = vpack.i.bf16 %v12176_v48, %v12335_v59  ;;  %v12531_v35 = vpack.i.bf16 %v12096_v28, %v12332_v18  ;;  %v12627_v59 = vpack.i.bf16 %v12088_v31, %v12275_v38  ;;  %v12166_v28 = vunpack.i.l.bf16 %v13926_v14 }
 0x445   : > { %v12336_v63 = vpop.trf.xlu1  ;;  %12568 = vxpose.xlu1.b32.start.end [1/1] (short) (narrow) %v12567_v61, 16  ;;  %v12321_v61 = vunpack.i.h.bf16 %v13983_v41  ;;  %v12323_v14 = vunpack.i.l.bf16 %v13988_v51 }
 0x446   : > { %12496 = vxpose.xlu0.b32.start.end [1/1] (short) (narrow) %v12495_v60, 16  ;;  %v12340_v3 = vunpack.i.h.bf16 %v12336_v63  ;;  %v12337_v33 = vunpack.i.l.bf16 %v12336_v63 }
 0x447   : > { %v12663_v45 = vpack.i.bf16 %v12145_v1, %v12321_v61 }
 0x448   : > { %v12579_v11 = vpack.i.bf16 %v12164_v46, %v12340_v3  ;;  %v12639_v39 = vpack.i.bf16 %v12161_v44, %v12337_v33  ;;  %v12174_v46 = vunpack.i.h.bf16 %v13928_v2  ;;  %v12142_v3 = vunpack.i.l.bf16 %v13910_v8 }
 0x449   : > { %v13995_v55 = vpop.trf.xlu1  ;;  %v12171_v8 = vunpack.i.l.bf16 %v13928_v2  ;;  %v12115_v33 = vunpack.i.l.bf16 %v13935_v36  ;;  %v12047_v2 = vunpack.i.l.bf16 %v13901_v56 }
 0x44a   : > { %12580 = vxpose.xlu1.b32.start.end [1/1] (short) (narrow) %v12579_v11, 16  ;;  %v12345_v7 = vunpack.i.h.bf16 %v13995_v55  ;;  %v12687_v47 = vpack.i.bf16 %v12142_v3, %v12318_v21  ;;  %v12342_v6 = vunpack.i.l.bf16 %v13995_v55 }
 0x44b   : > { %12508 = vxpose.xlu0.b32.start.end [1/1] (short) (narrow) %v12507_v17, 16  ;;  %v12747_v44 = vpack.i.bf16 %v12047_v2, %v12115_v33 }
 0x44c   : > { %v12675_v63 = vpack.i.bf16 %v12169_v4, %v12345_v7 }
 0x44d   : > { %v14000_v16 = vpop.trf.xlu1 }
 0x44e   : > { %v12350_v0 = vunpack.i.h.bf16 %v14000_v16  ;;  %v12347_v41 = vunpack.i.l.bf16 %v14000_v16  ;;  %v12147_v16 = vunpack.i.l.bf16 %v13914_v9 }
 0x44f   : > { %12592 = vxpose.xlu1.b32.start.end [1/1] (short) (narrow) %v12591_v25, 16  ;;  %v12699_v25 = vpack.i.bf16 %v12166_v28, %v12342_v6 }
 0x450   : > { %12532 = vxpose.xlu0.b32.start.end [1/1] (short) (narrow) %v12531_v35, 16  ;;  %v12723_v17 = vpack.i.bf16 %v12174_v46, %v12350_v0  ;;  %v12150_v35 = vunpack.i.h.bf16 %v13914_v9  ;;  %v12800_v55 = vpack.i.bf16 %v12171_v8, %v12347_v41 }
 0x451   : > { %v14006_v40 = vpop.trf.xlu1 }
 0x452   : > { %v12356_v11 = vunpack.i.l.bf16 %v14006_v40  ;;  %v12711_v12 = vpack.i.bf16 %v12150_v35, %v12326_v29 }
 0x454   : > { %12604 = vxpose.xlu1.b32.start.end [1/1] (short) (narrow) %v12603_v42, 16 }
 0x455   : > { %12556 = vxpose.xlu0.b32.start.end [1/1] (short) (narrow) %v12555_v43, 16  ;;  %v14010_v37 = vpop.trf.xlu1  ;;  %v12735_v43 = vpack.i.bf16 %v12147_v16, %v12323_v14  ;;  %v12218_v16 = vunpack.i.h.bf16 %v13951_v23 }
 0x456   : > { %v12361_v5 = vunpack.i.l.bf16 %v14010_v37  ;;  %v12364_v51 = vunpack.i.h.bf16 %v14010_v37 }
 0x458   : > { %v12771_v18 = vpack.i.bf16 %v12361_v5, %v12356_v11 }
 0x459   : > { %12640 = vxpose.xlu1.b32.start.end [1/1] (short) (narrow) %v12639_v39, 16  ;;  %v14016_v48 = vpop.trf.xlu1  ;;  %v12749_v39 = vpack.i.bf16 %v12048_v49, %v12116_v13 }
 0x45a   : > { %12616 = vxpose.xlu0.b32.start.end [1/1] (short) (narrow) %v12615_v54, 16  ;;  %v12366_v53 = vunpack.i.l.bf16 %v14016_v48  ;;  %v12359_v54 = vunpack.i.h.bf16 %v14006_v40 }
 0x45c   : > { %v12783_v9 = vpack.i.bf16 %v12364_v51, %v12359_v54 }
 0x45d   : > { %v14020_v60 = vpop.trf.xlu1 }
 0x45e   : > { %12652 = vxpose.xlu1.b32.start.end [1/1] (short) (narrow) %v12651_v24, 16  ;;  %v12371_v52 = vunpack.i.l.bf16 %v14020_v60 }
 0x45f   : > { %12628 = vxpose.xlu0.b32.start.end [1/1] (short) (narrow) %v12627_v59, 16 }
 0x460   : > { %v12812_v42 = vpack.i.bf16 %v12371_v52, %v12366_v53 }
 0x463   : > { %12664 = vxpose.xlu1.b32.start.end [1/1] (short) (narrow) %v12663_v45, 16 }
 0x464   : > { %12676 = vxpose.xlu0.b32.start.end [1/1] (short) (narrow) %v12675_v63, 16 }
 0x468   : > { %12724 = vxpose.xlu1.b32.start.end [1/1] (short) (narrow) %v12723_v17, 16 }
 0x469   : > { %12688 = vxpose.xlu0.b32.start.end [1/1] (short) (narrow) %v12687_v47, 16 }
 0x46d   : > { %12772 = vxpose.xlu1.b32.start.end [1/1] (short) (narrow) %v12771_v18, 16 }
 0x46e   : > { %12700 = vxpose.xlu0.b32.start.end [1/1] (short) (narrow) %v12699_v25, 16 }
 0x472   : > { %12801 = vxpose.xlu1.b32.start.end [1/1] (short) (narrow) %v12800_v55, 16 }
 0x473   : > { %12712 = vxpose.xlu0.b32.start.end [1/1] (short) (narrow) %v12711_v12, 16 }
 0x477   : > { %12813 = vxpose.xlu1.b32.start.end [1/1] (short) (narrow) %v12812_v42, 16  ;;  %v12213_v42 = vunpack.i.h.bf16 %v13947_v10 }
 0x478   : > { %12736 = vxpose.xlu0.b32.start.end [1/1] (short) (narrow) %v12735_v43, 16 }
 0x479   : > { %v4726_v13 = vpack.c.bf16 %v12218_v16, %v12213_v42 }
 0x47d   : > { %12748 = vxpose.xlu0.b32.start [1/2] (short) (narrow) %v12747_v44, 32 }
 0x481   : > { %12750 = vxpose.xlu0.b32.end [2/2] (short) (narrow) %v12749_v39, 32 }
 0x48a   : > { %12784 = vxpose.xlu0.b32.start.end [1/1] (short) (narrow) %v12783_v9, 16 }
 0x496   : > { %v14047_v58 = vpop.trf.xlu0 }
 0x49a   : > { %v14049_v50 = vpop.trf.xlu0  ;;  %v14051_v38 = vpop.trf.xlu1 }
 0x49e   : > { %v14053_v31 = vpop.trf.xlu0  ;;  %v14055_v36 = vpop.trf.xlu1 }
 0x4a2   : > { %v14057_v56 = vpop.trf.xlu0 }
 0x4a6   : > { %v14059_v24 = vpop.trf.xlu0 }
 0x4a7   : > { %v12402_v37 = vunpack.i.l.bf16 %v14059_v24 }
 0x4aa   : > { %v14061_v59 = vpop.trf.xlu0 }
 0x4ab   : > { %v12407_v40 = vunpack.i.l.bf16 %v14061_v59 }
 0x4ad   : > { %v4761_v61 = vpack.c.bf16 %v12407_v40, %v12402_v37 }
 0x4ae   : > { %v14065_v7 = vpop.trf.xlu0 }
 0x4af   : > { %17590 = vst [vmem:[#allocation6_spill] sm:$0xff] %v14065_v7  ;;  %v5014_v1 = vsel %vm4821_vm2, %v4761_v61, 0 }
 0x4b0   : > { %11596 = vmatpush3.bf16.xpose.msra.mxu0 %v5014_v1 }
 0x4b1   : > { %11607 = vmatprep.subr.bf16.mxu0 %v17423_v15 }
 0x4b2   : > { %v14068_v4 = vpop.trf.xlu1  ;;  %v14070_v45 = vpop.trf.xlu0 }
 0x4b3   : > { %17591 = vst [vmem:[#allocation7_spill] sm:$0xff] %v14070_v45 }
 0x4b6   : > { %v14073_v63 = vpop.trf.xlu1  ;;  %v12437_v0 = vpop.trf.xlu0 }
 0x4b7   : > { %12796 = vrot.lane.b32.xlu0 %v13885_v34, %s13532_s27  ;;  %11598 = vmatmul.mubr.msk.bf16.vlgmr.msra.gmra.mxu0 %vm4821_vm2, %v13943_v20  ;;  %v12438_v5 = vunpack.i.l.bf16 %v12437_v0  ;;  %v12210_v34 = vunpack.i.l.bf16 %v13947_v10  ;;  %v12215_v20 = vunpack.i.l.bf16 %v13951_v23  ;;  %v12441_v25 = vunpack.i.h.bf16 %v12437_v0 }
 0x4b8   : > { %11609 = vmatprep.mubr.msk.bf16.mxu0 %vm13534_vm1, %v17423_v15  ;;  %v4731_v10 = vpack.c.bf16 %v13941_v19, %v13939_v57 }
 0x4b9   : > { %v4725_v35 = vpack.c.bf16 %v12215_v20, %v12210_v34 }
 0x4ba   : > { %v14079_v21 = vpop.trf.xlu1  ;;  %v12442_v46 = vpop.trf.xlu0 }
 0x4bb   : > { %v12443_v3 = vunpack.i.l.bf16 %v12442_v46  ;;  %v12446_v18 = vunpack.i.h.bf16 %v12442_v46 }
 0x4bd   : > { %v4757_v17 = vpack.c.bf16 %v12443_v3, %v12438_v5  ;;  %v4758_v29 = vpack.c.bf16 %v12446_v18, %v12441_v25 }
 0x4be   : > { %v14083_v11 = vpop.trf.xlu1  ;;  %v14085_v47 = vpop.trf.xlu0 }
 0x4bf   : > { %v4826_v6 = vsel %vm4821_vm2, %v4757_v17, 0  ;;  %v4873_v12 = vsel %vm4821_vm2, %v4758_v29, 0 }
 0x4c0   : > { %11572 = vmatpush3.bf16.xpose.msra.mxu1 %v4826_v6 }
 0x4c1   : > { %11577 = vmatprep.subr.bf16.mxu1 %v17423_v15 }
 0x4c2   : > { %v14090_v28 = vpop.trf.xlu1  ;;  %v14093_v41 = vpop.trf.xlu0 }
 0x4c3   : > { %v12546_v8 = vunpack.i.l.bf16 %v14090_v28 }
 0x4c6   : > { %v14096_v52 = vpop.trf.xlu1  ;;  %v14098_v53 = vpop.trf.xlu0 }
 0x4c7   : > { %v12551_v55 = vunpack.i.l.bf16 %v14096_v52  ;;  %11574 = vmatmul.mubr.msk.bf16.vlgmr.msra.gmra.mxu1 %vm4821_vm2, %v4725_v35 }
 0x4c8   : > { %11578 = vmatpush3.bf16.xpose.msra.mxu1 %v4873_v12  ;;  %11579 = vmatprep.mubr.msk.bf16.mxu1 %vm13534_vm1, %v17423_v15  ;;  %v12227_v12 = vunpack.i.l.bf16 %v13953_v32 }
 0x4c9   : > { %v4763_v14 = vpack.c.bf16 %v12551_v55, %v12546_v8  ;;  %11583 = vmatprep.subr.bf16.mxu1 %v17423_v15  ;;  %v12222_v55 = vunpack.i.l.bf16 %v13949_v22 }
 0x4ca   : > { %v14107_v43 = vpop.trf.xlu1  ;;  %v14110_v33 = vpop.trf.xlu0 }
 0x4cb   : > { %v5108_v2 = vsel %vm4821_vm2, %v4763_v14, 0 }
 0x4cc   : > { %11608 = vmatpush3.bf16.xpose.msra.mxu0 %v5108_v2  ;;  %v4727_v2 = vpack.c.bf16 %v12227_v12, %v12222_v55 }
 0x4cd   : > { %11619 = vmatprep.subr.bf16.mxu0 %v17423_v15 }
 0x4ce   : > { %v14114_v44 = vpop.trf.xlu1  ;;  %v14116_v49 = vpop.trf.xlu0 }
 0x4cf   : > { %11580 = vmatmul.mubr.msk.bf16.vlgmr.msra.gmra.mxu1 %vm4821_vm2, %v4726_v13 }
 0x4d0   : > { %11585 = vmatprep.mubr.msk.bf16.mxu1 %vm13534_vm1, %v17423_v15 }
 0x4d2   : > { %v14123_v23 = vpop.trf.xlu1  ;;  %v14125_v39 = vpop.trf.xlu0 }
 0x4d3   : > { %11610 = vmatmul.mubr.msk.bf16.vlgmr.msra.gmra.mxu0 %vm4821_vm2, %v4731_v10  ;;  %v12410_v10 = vunpack.i.h.bf16 %v14061_v59 }
 0x4d4   : > { %11621 = vmatprep.mubr.msk.bf16.mxu0 %vm13534_vm1, %v17423_v15 }
 0x4d6   : > { %v14130_v51 = vpop.trf.xlu1  ;;  %v14132_v54 = vpop.trf.xlu0 }
 0x4da   : > { %v14134_v9 = vpop.trf.xlu1  ;;  %v14136_v40 = vpop.trf.xlu0 }
 0x4db   : > { %17592 = vst [vmem:[#allocation8_spill] sm:$0xff] %v14134_v9 }
 0x4de   : > { %v14138_v57 = vpop.trf.xlu1  ;;  %v14140_v19 = vpop.trf.xlu0 }
 0x4df   : > { %17593 = vst [vmem:[#allocation9_spill] sm:$0xff] %v14138_v57  ;;  %v12510_v0 = vunpack.i.l.bf16 %v14140_v19 }
 0x4e2   : > { %v12605_v37 = vpop.trf.xlu1  ;;  %v14142_v61 = vpop.trf.xlu0 }
 0x4e3   : > { %v12515_v1 = vunpack.i.l.bf16 %v14142_v61  ;;  %v12606_v46 = vunpack.i.l.bf16 %v12605_v37  ;;  %v12609_v25 = vunpack.i.h.bf16 %v12605_v37 }
 0x4e5   : > { %v4765_v5 = vpack.c.bf16 %v12515_v1, %v12510_v0  ;;  %v12405_v0 = vunpack.i.h.bf16 %v14059_v24  ;;  %v12554_v24 = vunpack.i.h.bf16 %v14096_v52 }
 0x4e6   : > { %v12610_v3 = vpop.trf.xlu1  ;;  %v14146_v17 = vpop.trf.xlu0 }
 0x4e7   : > { %v12611_v6 = vunpack.i.l.bf16 %v12610_v3  ;;  %v5202_v18 = vsel %vm4821_vm2, %v4765_v5, 0  ;;  %v12614_v20 = vunpack.i.h.bf16 %v12610_v3  ;;  %v12230_v3 = vunpack.i.h.bf16 %v13953_v32 }
 0x4e8   : > { %11620 = vmatpush3.bf16.xpose.msra.mxu0 %v5202_v18  ;;  %v4762_v5 = vpack.c.bf16 %v12410_v10, %v12405_v0  ;;  %v12518_v0 = vunpack.i.h.bf16 %v14142_v61 }
 0x4e9   : > { %v4759_v34 = vpack.c.bf16 %v12611_v6, %v12606_v46  ;;  %11631 = vmatprep.subr.bf16.mxu0 %v17423_v15  ;;  %v4760_v14 = vpack.c.bf16 %v12614_v20, %v12609_v25  ;;  %v12225_v46 = vunpack.i.h.bf16 %v13949_v22  ;;  %v12549_v22 = vunpack.i.h.bf16 %v14090_v28 }
 0x4ea   : > { %v14150_v29 = vpop.trf.xlu1  ;;  %v14152_v8 = vpop.trf.xlu0 }
 0x4eb   : > { %v4920_v35 = vsel %vm4821_vm2, %v4759_v34, 0  ;;  %v4967_v13 = vsel %vm4821_vm2, %v4760_v14, 0  ;;  %v4728_v18 = vpack.c.bf16 %v12230_v3, %v12225_v46  ;;  %v5061_v34 = vsel %vm4821_vm2, %v4762_v5, 0 }
 0x4ec   : > { %11584 = vmatpush3.bf16.xpose.msra.mxu1 %v4920_v35  ;;  %v12513_v5 = vunpack.i.h.bf16 %v14140_v19 }
 0x4ed   : > { %11589 = vmatprep.subr.bf16.mxu1 %v17423_v15 }
 0x4ee   : > { %v14158_v42 = vpop.trf.xlu1  ;;  %v14160_v16 = vpop.trf.xlu0 }
 0x4f2   : > { %v14164_v37 = vpop.trf.xlu1  ;;  %v14166_v1 = vpop.trf.xlu0 }
 0x4f3   : > { %17594 = vst [vmem:[#allocation10_spill] sm:$0xff] %v14164_v37  ;;  %11586 = vmatmul.mubr.msk.bf16.vlgmr.msra.gmra.mxu1 %vm4821_vm2, %v4727_v2  ;;  %v4764_v2 = vpack.c.bf16 %v12554_v24, %v12549_v22  ;;  %v12563_v45 = vunpack.i.l.bf16 %v14166_v1 }
 0x4f4   : > { %11590 = vmatpush3.bf16.xpose.msra.mxu1 %v4967_v13  ;;  %11591 = vmatprep.mubr.msk.bf16.mxu1 %vm13534_vm1, %v17423_v15 }
 0x4f5   : > { %11601 = vmatprep.subr.bf16.mxu1 %v17423_v15  ;;  %v5155_v13 = vsel %vm4821_vm2, %v4764_v2, 0 }
 0x4f6   : > { %v14175_v59 = vpop.trf.xlu1  ;;  %v12617_v6 = vpop.trf.xlu0 }
 0x4f7   : > { %17595 = vst [vmem:[#allocation11_spill] sm:$0xff] %v14175_v59  ;;  %v12621_v35 = vunpack.i.h.bf16 %v12617_v6  ;;  %v12618_v46 = vunpack.i.l.bf16 %v12617_v6 }
 0x4fa   : > { %v14178_v20 = vpop.trf.xlu1  ;;  %v12622_v25 = vpop.trf.xlu0 }
 0x4fb   : > { %11592 = vmatmul.mubr.msk.bf16.vlgmr.msra.gmra.mxu1 %vm4821_vm2, %v4728_v18  ;;  %v12626_v32 = vunpack.i.h.bf16 %v12622_v25  ;;  %v12623_v10 = vunpack.i.l.bf16 %v12622_v25  ;;  %v12666_v7 = vunpack.i.l.bf16 %v14178_v20 }
 0x4fc   : > { %11602 = vmatpush3.bf16.xpose.msra.mxu1 %v5061_v34  ;;  %11603 = vmatprep.mubr.msk.bf16.mxu1 %vm13534_vm1, %v17423_v15 }
 0x4fd   : > { %11613 = vmatprep.subr.bf16.mxu1 %v17423_v15  ;;  %v4733_v55 = vpack.c.bf16 %v12626_v32, %v12621_v35  ;;  %v4766_v34 = vpack.c.bf16 %v12623_v10, %v12618_v46 }
 0x4fe   : > { %v14186_v12 = vpop.trf.xlu1  ;;  %v14188_v14 = vpop.trf.xlu0 }
 0x4ff   : > { %11622 = vmatmul.mubr.msk.bf16.vlgmr.msra.gmra.mxu0 %vm4821_vm2, %v4733_v55  ;;  %v5249_v22 = vsel %vm4821_vm2, %v4766_v34, 0  ;;  %v12671_v37 = vunpack.i.l.bf16 %v14186_v12 }
 0x500   : > { %11633 = vmatprep.mubr.msk.bf16.mxu0 %vm13534_vm1, %v17423_v15 }
 0x502   : > { %v14193_v28 = vpop.trf.xlu1  ;;  %v14195_v52 = vpop.trf.xlu0 }
 0x503   : > { %11604 = vmatmul.mubr.msk.bf16.vlgmr.msra.gmra.mxu1 %vm4821_vm2, %v13945_v62  ;;  %v4732_v62 = vpack.c.bf16 %v12518_v0, %v12513_v5 }
 0x504   : > { %11614 = vmatpush3.bf16.xpose.msra.mxu1 %v5155_v13  ;;  %11615 = vmatprep.mubr.msk.bf16.mxu1 %vm13534_vm1, %v17423_v15 }
 0x505   : > { %11625 = vmatprep.subr.bf16.mxu1 %v17423_v15 }
 0x506   : > { %v14204_v3 = vpop.trf.xlu1  ;;  %v14207_v18 = vpop.trf.xlu0 }
 0x50a   : > { %v14209_v24 = vpop.trf.xlu1  ;;  %v14211_v25 = vpop.trf.xlu0 }
 0x50b   : > { %17596 = vst [vmem:[#allocation12_spill] sm:$0xff] %v14209_v24  ;;  %11616 = vmatmul.mubr.msk.bf16.vlgmr.msra.gmra.mxu1 %vm4821_vm2, %v4732_v62 }
 0x50c   : > { %11626 = vmatpush3.bf16.xpose.msra.mxu1 %v5249_v22  ;;  %11627 = vmatprep.mubr.msk.bf16.mxu1 %vm13534_vm1, %v17423_v15 }
 0x50d   : > { %11637 = vmatprep.subr.bf16.mxu1 %v17423_v15 }
 0x50e   : > { %v14218_v61 = vpop.trf.xlu1  ;;  %v12689_v19 = vpop.trf.xlu0 }
 0x50f   : > { %17597 = vst [vmem:[#allocation13_spill] sm:$0xff] %v14218_v61  ;;  %v12693_v35 = vunpack.i.h.bf16 %v12689_v19  ;;  %v12690_v55 = vunpack.i.l.bf16 %v12689_v19 }
 0x512   : > { %v14220_v6 = vpop.trf.xlu1  ;;  %v12694_v32 = vpop.trf.xlu0 }
 0x513   : > { %v12698_v2 = vunpack.i.h.bf16 %v12694_v32  ;;  %v12695_v13 = vunpack.i.l.bf16 %v12694_v32 }
 0x515   : > { %v4734_v10 = vpack.c.bf16 %v12698_v2, %v12693_v35  ;;  %v4767_v0 = vpack.c.bf16 %v12695_v13, %v12690_v55  ;;  %v12479_v35 = vunpack.i.l.bf16 %v14073_v63  ;;  %v12474_v55 = vunpack.i.l.bf16 %v14068_v4 }
 0x516   : > { %v14222_v46 = vpop.trf.xlu1  ;;  %v14224_v5 = vpop.trf.xlu0 }
 0x517   : > { %11628 = vmatmul.mubr.msk.bf16.vlgmr.msra.gmra.mxu1 %vm4821_vm2, %v4734_v10  ;;  %v5296_v34 = vsel %vm4821_vm2, %v4767_v0, 0  ;;  %v4769_v10 = vpack.c.bf16 %v12479_v35, %v12474_v55  ;;  %v12558_v35 = vunpack.i.l.bf16 %v14160_v16  ;;  %v12566_v55 = vunpack.i.h.bf16 %v14166_v1 }
 0x518   : > { %11632 = vmatpush3.bf16.xpose.msra.mxu0 %v5296_v34  ;;  %11639 = vmatprep.mubr.msk.bf16.mxu1 %vm13534_vm1, %v17423_v15  ;;  %v12395_v1 = vunpack.i.l.bf16 %v14057_v56 }
 0x519   : > { %11643 = vmatprep.subr.bf16.mxu0 %v17423_v15  ;;  %v5390_v15 = vsel %vm4821_vm2, %v4769_v10, 0 }
 0x51a   : > { %v14231_v62 = vpop.trf.xlu0 }
 0x51e   : > { %v12713_v22 = vpop.trf.xlu0 }
 0x522   : > { %v12718_v19 = vpop.trf.xlu0 }
 0x526   : > { %v12737_v32 = vpop.trf.xlu0 }
 0x527   : > { %v12741_v2 = vunpack.i.h.bf16 %v12737_v32  ;;  %v12738_v61 = vunpack.i.l.bf16 %v12737_v32  ;;  %v12482_v32 = vunpack.i.h.bf16 %v14073_v63 }
 0x52a   : > { %v12742_v13 = vpop.trf.xlu0 }
 0x52b   : > { %v12746_v0 = vunpack.i.h.bf16 %v12742_v13  ;;  %v12743_v34 = vunpack.i.l.bf16 %v12742_v13 }
 0x52d   : > { %v4735_v24 = vpack.c.bf16 %v12746_v0, %v12741_v2  ;;  %v4768_v57 = vpack.c.bf16 %v12743_v34, %v12738_v61  ;;  %v12477_v61 = vunpack.i.h.bf16 %v14068_v4  ;;  %v17599_v2 = vmov 0.0  }
 0x52e   : > { %v14235_v9 = vpop.trf.xlu0  ;;  %v12719_v34 = vunpack.i.l.bf16 %v12718_v19 }
 0x52f   : > { %17598 = vst [vmem:[#allocation14_spill] sm:$0xff] %v14235_v9  ;;  %11634 = vmatmul.mubr.msk.bf16.vlgmr.msra.gmra.mxu0 %vm4821_vm2, %v4735_v24  ;;  %v5343_v59 = vsel %vm4821_vm2, %v4768_v57, 0  ;;  %v4770_v57 = vpack.c.bf16 %v12563_v45, %v12558_v35  ;;  %v4736_v13 = vpack.c.bf16 %v12482_v32, %v12477_v61  ;;  %v12390_v45 = vunpack.i.l.bf16 %v14053_v31 }
 0x530   : > { %11644 = vmatpush3.bf16.xpose.msra.mxu0 %v5390_v15  ;;  %11638 = vmatpush3.bf16.xpose.msra.mxu1 %v5343_v59  ;;  %v12561_v15 = vunpack.i.h.bf16 %v14160_v16  ;;  %v4771_v59 = vpack.c.bf16 %v12671_v37, %v12666_v7  ;;  %v12722_v7 = vunpack.i.h.bf16 %v12718_v19  ;;  %v12669_v16 = vunpack.i.h.bf16 %v14178_v20 }
 0x531   : > { %11645 = vmatprep.mubr.msk.bf16.mxu0 %vm13534_vm1, %v17599_v2  ;;  %11655 = vmatprep.subr.bf16.mxu0 %v17599_v2  ;;  %v5437_v63 = vsel %vm4821_vm2, %v4770_v57, 0  ;;  %v12674_v37 = vunpack.i.h.bf16 %v14186_v12  ;;  %v12714_v35 = vunpack.i.l.bf16 %v12713_v22  ;;  %v4773_v32 = vpack.c.bf16 %v12395_v1, %v12390_v45 }
 0x532   : > { %v14250_v24 = vpop.trf.xlu0  ;;  %11649 = vmatprep.subr.bf16.mxu1 %v17599_v2  ;;  %v4737_v10 = vpack.c.bf16 %v12566_v55, %v12561_v15  ;;  %v5484_v0 = vsel %vm4821_vm2, %v4771_v59, 0  ;;  %v12717_v55 = vunpack.i.h.bf16 %v12713_v22  ;;  %v12527_v12 = vunpack.i.l.bf16 %v14083_v11 }
 0x533   : > { %17600 = vst [vmem:[#allocation15_spill] sm:$0xff] %v14250_v24  ;;  %v4772_v19 = vpack.c.bf16 %v12719_v34, %v12714_v35  ;;  %v4738_v20 = vpack.c.bf16 %v12674_v37, %v12669_v16  ;;  %v5578_v59 = vsel %vm4821_vm2, %v4773_v32, 0  ;;  %v12398_v22 = vunpack.i.h.bf16 %v14057_v56 }
 0x534   : > { %v4739_v57 = vpack.c.bf16 %v12722_v7, %v12717_v55  ;;  %v12458_v1 = vunpack.i.h.bf16 %v14093_v41  ;;  %v12393_v34 = vunpack.i.h.bf16 %v14053_v31  ;;  %v12453_v45 = vunpack.i.h.bf16 %v14085_v47 }
 0x535   : > { %v12635_v32 = vunpack.i.l.bf16 %v14195_v52  ;;  %v12378_v55 = vunpack.i.l.bf16 %v14047_v58 }
 0x536   : > { %v14254_v4 = vpop.trf.xlu0  ;;  %v4740_v16 = vpack.c.bf16 %v12398_v22, %v12393_v34  ;;  %v4741_v37 = vpack.c.bf16 %v12458_v1, %v12453_v45  ;;  %v12491_v1 = vunpack.i.l.bf16 %v14125_v39  ;;  %v12417_v34 = vunpack.i.h.bf16 %v14051_v38 }
 0x537   : > { %17601 = vst [vmem:[#allocation16_spill] sm:$0xff] %v14254_v4  ;;  %11640 = vmatmul.mubr.msk.bf16.vlgmr.msra.gmra.mxu1 %vm4821_vm2, %v4736_v13  ;;  %11646 = vmatmul.mubr.msk.bf16.vlgmr.msra.gmra.mxu0 %vm4821_vm2, %v4737_v10  ;;  %v12522_v13 = vunpack.i.l.bf16 %v14079_v21  ;;  %v5531_v10 = vsel %vm4821_vm2, %v4772_v19, 0  ;;  %v12525_v19 = vunpack.i.h.bf16 %v14079_v21  ;;  %v12422_v45 = vunpack.i.h.bf16 %v14055_v36 }
 0x538   : > { %11656 = vmatpush3.bf16.xpose.msra.mxu0 %v5484_v0  ;;  %11650 = vmatpush3.bf16.xpose.msra.mxu1 %v5437_v63  ;;  %v12455_v63 = vunpack.i.l.bf16 %v14093_v41  ;;  %v12450_v0 = vunpack.i.l.bf16 %v14085_v47  ;;  %v12383_v47 = vunpack.i.l.bf16 %v14049_v50 }
 0x539   : > { %11651 = vmatprep.mubr.msk.bf16.mxu1 %vm13534_vm1, %v17599_v2  ;;  %11657 = vmatprep.mubr.msk.bf16.mxu0 %vm13534_vm1, %v17599_v2  ;;  %v4775_v56 = vpack.c.bf16 %v12527_v12, %v12522_v13  ;;  %v12630_v12 = vunpack.i.l.bf16 %v14188_v14 }
 0x53a   : > { %v14268_v61 = vpop.trf.xlu0  ;;  %11667 = vmatprep.subr.bf16.mxu0 %v17599_v2  ;;  %11661 = vmatprep.subr.bf16.mxu1 %v17599_v2  ;;  %v4774_v41 = vpack.c.bf16 %v12455_v63, %v12450_v0  ;;  %v4777_v13 = vpack.c.bf16 %v12383_v47, %v12378_v55  ;;  %v12419_v0 = vunpack.i.l.bf16 %v14055_v36  ;;  %v12575_v36 = vunpack.i.l.bf16 %v14114_v44 }
 0x53b   : > { %17602 = vst [vmem:[#allocation17_spill] sm:$0xff] %v14268_v61  ;;  %v5672_v35 = vsel %vm4821_vm2, %v4775_v56, 0  ;;  %v4776_v21 = vpack.c.bf16 %v12635_v32, %v12630_v12  ;;  %v12486_v56 = vunpack.i.l.bf16 %v14116_v49  ;;  %v12539_v32 = vunpack.i.l.bf16 %v14152_v8 }
 0x53c   : > { %v5625_v31 = vsel %vm4821_vm2, %v4774_v41, 0  ;;  %v5766_v63 = vsel %vm4821_vm2, %v4777_v13, 0  ;;  %v12381_v41 = vunpack.i.h.bf16 %v14047_v58  ;;  %v12573_v58 = vunpack.i.h.bf16 %v14107_v43 }
 0x53d   : > { %v5719_v22 = vsel %vm4821_vm2, %v4776_v21, 0  ;;  %v12578_v55 = vunpack.i.h.bf16 %v14114_v44  ;;  %v12489_v12 = vunpack.i.h.bf16 %v14116_v49  ;;  %v12707_v21 = vunpack.i.l.bf16 %v14231_v62 }
 0x53e   : > { %v14273_v15 = vpop.trf.xlu0  ;;  %v12542_v49 = vunpack.i.h.bf16 %v14152_v8 }
 0x53f   : > { %17603 = vst [vmem:[#allocation18_spill] sm:$0xff] %v14273_v15  ;;  %11652 = vmatmul.mubr.msk.bf16.vlgmr.msra.gmra.mxu1 %vm4821_vm2, %v4738_v20  ;;  %11658 = vmatmul.mubr.msk.bf16.vlgmr.msra.gmra.mxu0 %vm4821_vm2, %v4739_v57  ;;  %v12530_v57 = vunpack.i.h.bf16 %v14083_v11  ;;  %v12638_v20 = vunpack.i.h.bf16 %v14195_v52  ;;  %v12414_v52 = vunpack.i.l.bf16 %v14051_v38  ;;  %v4745_v38 = vpack.c.bf16 %v12422_v45, %v12417_v34 }
 0x540   : > { %11668 = vmatpush3.bf16.xpose.msra.mxu0 %v5578_v59  ;;  %11662 = vmatpush3.bf16.xpose.msra.mxu1 %v5531_v10  ;;  %v12633_v59 = vunpack.i.h.bf16 %v14188_v14  ;;  %v12386_v14 = vunpack.i.h.bf16 %v14049_v50  ;;  %v12803_v34 = vunpack.i.l.bf16 %v14220_v6  ;;  %v12503_v45 = vunpack.i.l.bf16 %v14136_v40 }
 0x541   : > { %11663 = vmatprep.mubr.msk.bf16.mxu1 %vm13534_vm1, %v17599_v2  ;;  %11669 = vmatprep.mubr.msk.bf16.mxu0 %vm13534_vm1, %v17599_v2  ;;  %v4742_v10 = vpack.c.bf16 %v12530_v57, %v12525_v19  ;;  %v4778_v50 = vpack.c.bf16 %v12419_v0, %v12414_v52  ;;  %v12494_v19 = vunpack.i.h.bf16 %v14125_v39  ;;  %v12534_v57 = vunpack.i.l.bf16 %v14146_v17 }
 0x542   : > { %v14290_v7 = vpop.trf.xlu0  ;;  %11679 = vmatprep.subr.bf16.mxu0 %v17599_v2  ;;  %11673 = vmatprep.subr.bf16.mxu1 %v17599_v2  ;;  %v4743_v11 = vpack.c.bf16 %v12638_v20, %v12633_v59  ;;  %v4747_v59 = vpack.c.bf16 %v12578_v55, %v12573_v58  ;;  %v12645_v52 = vunpack.i.h.bf16 %v14150_v29  ;;  %v12582_v58 = vunpack.i.l.bf16 %v14123_v23 }
 0x543   : > { %17604 = vst [vmem:[#allocation19_spill] sm:$0xff] %v14290_v7  ;;  %v5813_v47 = vsel %vm4821_vm2, %v4778_v50, 0  ;;  %v4746_v44 = vpack.c.bf16 %v12494_v19, %v12489_v12  ;;  %v12710_v50 = vunpack.i.h.bf16 %v14231_v62  ;;  %v12590_v55 = vunpack.i.h.bf16 %v14130_v51 }
 0x544   : > { %v12506_v19 = vunpack.i.h.bf16 %v14136_v40  ;;  %v14405_v40 = vld [vmem:[%s17416_s7 + $0x40] sm:$0xff] }
 0x547   : > { %11664 = vmatmul.mubr.msk.bf16.vlgmr.msra.gmra.mxu1 %vm4821_vm2, %v4740_v16  ;;  %11670 = vmatmul.mubr.msk.bf16.vlgmr.msra.gmra.mxu0 %vm4821_vm2, %v4741_v37  ;;  %v4779_v16 = vpack.c.bf16 %v12491_v1, %v12486_v56  ;;  %v4744_v37 = vpack.c.bf16 %v12386_v14, %v12381_v41  ;;  %v12537_v1 = vunpack.i.h.bf16 %v14146_v17  ;;  %v12806_v56 = vunpack.i.h.bf16 %v14220_v6 }
 0x548   : > { %11680 = vmatpush3.bf16.xpose.msra.mxu0 %v5672_v35  ;;  %11674 = vmatpush3.bf16.xpose.msra.mxu1 %v5625_v31  ;;  %v12570_v35 = vunpack.i.l.bf16 %v14107_v43  ;;  %v4781_v43 = vpack.c.bf16 %v12539_v32, %v12534_v57  ;;  %v12498_v6 = vunpack.i.l.bf16 %v14132_v54  ;;  %v12587_v32 = vunpack.i.l.bf16 %v14130_v51 }
 0x549   : > { %11675 = vmatprep.mubr.msk.bf16.mxu1 %vm13534_vm1, %v17599_v2  ;;  %11681 = vmatprep.mubr.msk.bf16.mxu0 %vm13534_vm1, %v17599_v2  ;;  %v5860_v31 = vsel %vm4821_vm2, %v4779_v16, 0  ;;  %v4748_v14 = vpack.c.bf16 %v12542_v49, %v12537_v1  ;;  %v12811_v16 = vunpack.i.h.bf16 %v14222_v46  ;;  %v12678_v57 = vunpack.i.l.bf16 %v14207_v18 }
 0x54a   : > { %11691 = vmatprep.subr.bf16.mxu0 %v17599_v2  ;;  %11685 = vmatprep.subr.bf16.mxu1 %v17599_v2  ;;  %v4780_v20 = vpack.c.bf16 %v12575_v36, %v12570_v35  ;;  %v5954_v13 = vsel %vm4821_vm2, %v4781_v43, 0  ;;  %v4785_v36 = vpack.c.bf16 %v12503_v45, %v12498_v6  ;;  %v4756_v6 = vpack.c.bf16 %v13957_v27, %v13955_v26 }
 0x54c   : > { %v5907_v39 = vsel %vm4821_vm2, %v4780_v20, 0  ;;  %v12501_v20 = vunpack.i.h.bf16 %v14132_v54 }
 0x54e   : > { %v4752_v51 = vpack.c.bf16 %v12506_v19, %v12501_v20  ;;  %v14497_v20 = vld [vmem:[%s17416_s7 + $0x68] sm:$0xff] }
 0x54f   : > { %11676 = vmatmul.mubr.msk.bf16.vlgmr.msra.gmra.mxu1 %vm4821_vm2, %v4742_v10  ;;  %11682 = vmatmul.mubr.msk.bf16.vlgmr.msra.gmra.mxu0 %vm4821_vm2, %v4743_v11  ;;  %v12647_v10 = vunpack.i.l.bf16 %v14158_v42  ;;  %v12642_v11 = vunpack.i.l.bf16 %v14150_v29 }
 0x550   : > { %11692 = vmatpush3.bf16.xpose.msra.mxu0 %v5766_v63  ;;  %11686 = vmatpush3.bf16.xpose.msra.mxu1 %v5719_v22  ;;  %v12650_v63 = vunpack.i.h.bf16 %v14158_v42  ;;  %v12702_v22 = vunpack.i.l.bf16 %v14224_v5  ;;  %v12808_v42 = vunpack.i.l.bf16 %v14222_v46  ;;  %v4751_v46 = vpack.c.bf16 %v12811_v16, %v12806_v56 }
 0x551   : > { %11687 = vmatprep.mubr.msk.bf16.mxu1 %vm13534_vm1, %v17599_v2  ;;  %11693 = vmatprep.mubr.msk.bf16.mxu0 %vm13534_vm1, %v17599_v2  ;;  %v4782_v8 = vpack.c.bf16 %v12647_v10, %v12642_v11  ;;  %v12686_v11 = vunpack.i.h.bf16 %v14211_v25  ;;  %v12465_v16 = vunpack.i.h.bf16 %v14098_v53 }
 0x552   : > { %11703 = vmatprep.subr.bf16.mxu0 %v17599_v2  ;;  %11697 = vmatprep.subr.bf16.mxu1 %v17599_v2  ;;  %v4783_v0 = vpack.c.bf16 %v12707_v21, %v12702_v22  ;;  %v4749_v29 = vpack.c.bf16 %v12650_v63, %v12645_v52  ;;  %v14427_v52 = vld [vmem:[%s17416_s7 + $0x48] sm:$0xff]  ;;  %v12681_v63 = vunpack.i.h.bf16 %v14207_v18 }
 0x553   : > { %v6001_v17 = vsel %vm4821_vm2, %v4782_v8, 0 }
 0x554   : > { %v6048_v41 = vsel %vm4821_vm2, %v4783_v0, 0  ;;  %v12462_v0 = vunpack.i.l.bf16 %v14098_v53  ;;  %v14469_v53 = vld [vmem:[%s17416_s7 + $0x8] sm:$0xff] }
 0x557   : > { %11688 = vmatmul.mubr.msk.bf16.vlgmr.msra.gmra.mxu1 %vm4821_vm2, %v4744_v37  ;;  %11694 = vmatmul.mubr.msk.bf16.vlgmr.msra.gmra.mxu0 %vm4821_vm2, %v4745_v38  ;;  %v4784_v37 = vpack.c.bf16 %v12808_v42, %v12803_v34  ;;  %v12705_v38 = vunpack.i.h.bf16 %v14224_v5  ;;  %v12585_v5 = vunpack.i.h.bf16 %v14123_v23  ;;  %v4786_v23 = vpack.c.bf16 %v12587_v32, %v12582_v58  ;;  %v14489_v58 = vld [vmem:[%s17416_s7 + $0x10] sm:$0xff] }
 0x558   : > { %11704 = vmatpush3.bf16.xpose.msra.mxu0 %v5860_v31  ;;  %11698 = vmatpush3.bf16.xpose.msra.mxu1 %v5813_v47  ;;  %v6142_v31 = vsel %vm4821_vm2, %v4785_v36, 0  ;;  %v12683_v47 = vunpack.i.l.bf16 %v14211_v25 }
 0x559   : > { %11699 = vmatprep.mubr.msk.bf16.mxu1 %vm13534_vm1, %v17599_v2  ;;  %11705 = vmatprep.mubr.msk.bf16.mxu0 %vm13534_vm1, %v17599_v2  ;;  %v4750_v35 = vpack.c.bf16 %v12710_v50, %v12705_v38  ;;  %v6095_v62 = vsel %vm4821_vm2, %v4784_v37, 0  ;;  %v4753_v43 = vpack.c.bf16 %v12590_v55, %v12585_v5  ;;  %v6189_v21 = vsel %vm4821_vm2, %v4786_v23, 0  ;;  %v14458_v50 = vld [vmem:[%s17416_s7] sm:$0xff] }
 0x55a   : > { %11715 = vmatprep.subr.bf16.mxu0 %v17599_v2  ;;  %11709 = vmatprep.subr.bf16.mxu1 %v17599_v2  ;;  %v4787_v12 = vpack.c.bf16 %v12683_v47, %v12678_v57  ;;  %v14484_v47 = vld [vmem:[%s17416_s7 + $0x60] sm:$0xff] }
 0x55c   : > { %v6236_v54 = vsel %vm4821_vm2, %v4787_v12, 0 }
 0x55f   : > { %11700 = vmatmul.mubr.msk.bf16.vlgmr.msra.gmra.mxu1 %vm4821_vm2, %v4746_v44  ;;  %11706 = vmatmul.mubr.msk.bf16.vlgmr.msra.gmra.mxu0 %vm4821_vm2, %v4747_v59  ;;  %v12731_v59 = vunpack.i.l.bf16 %v14204_v3  ;;  %v12726_v44 = vunpack.i.l.bf16 %v14193_v28 }
 0x560   : > { %11716 = vmatpush3.bf16.xpose.msra.mxu0 %v5954_v13  ;;  %11710 = vmatpush3.bf16.xpose.msra.mxu1 %v5907_v39  ;;  %v12729_v39 = vunpack.i.h.bf16 %v14193_v28  ;;  %v12734_v13 = vunpack.i.h.bf16 %v14204_v3  ;;  %v12467_v28 = vunpack.i.l.bf16 %v14110_v33 }
 0x561   : > { %11711 = vmatprep.mubr.msk.bf16.mxu1 %vm13534_vm1, %v17599_v2  ;;  %11717 = vmatprep.mubr.msk.bf16.mxu0 %vm13534_vm1, %v17599_v2  ;;  %v4788_v25 = vpack.c.bf16 %v12731_v59, %v12726_v44 }
 0x562   : > { %11727 = vmatprep.subr.bf16.mxu0 %v17599_v2  ;;  %11721 = vmatprep.subr.bf16.mxu1 %v17599_v2  ;;  %v4755_v22 = vpack.c.bf16 %v12734_v13, %v12729_v39  ;;  %v8299_v45 = vpack.c.bf16 %v12467_v28, %v12462_v0 }
 0x563   : > { %v6283_v56 = vsel %vm4821_vm2, %v4788_v25, 0 }
 0x567   : > { %11712 = vmatmul.mubr.msk.bf16.vlgmr.msra.gmra.mxu1 %vm4821_vm2, %v4748_v14  ;;  %11718 = vmatmul.mubr.msk.bf16.vlgmr.msra.gmra.mxu0 %vm4821_vm2, %v4749_v29  ;;  %v14435_v14 = vpop.trf.xlu1  ;;  %v4754_v29 = vpack.c.bf16 %v12686_v11, %v12681_v63 }
 0x568   : > { %11728 = vmatpush3.bf16.xpose.msra.mxu0 %v6048_v41  ;;  %11722 = vmatpush3.bf16.xpose.msra.mxu1 %v6001_v17  ;;  %17605 = vst [vmem:[#allocation20_spill] sm:$0xff] %v14435_v14  ;;  %v12470_v17 = vunpack.i.h.bf16 %v14110_v33 }
 0x569   : > { %11723 = vmatprep.mubr.msk.bf16.mxu1 %vm13534_vm1, %v17599_v2  ;;  %11729 = vmatprep.mubr.msk.bf16.mxu0 %vm13534_vm1, %v17599_v2 }
 0x56a   : > { %11739 = vmatprep.subr.bf16.mxu0 %v17599_v2  ;;  %11733 = vmatprep.subr.bf16.mxu1 %v17599_v2  ;;  %v8300_v38 = vpack.c.bf16 %v12470_v17, %v12465_v16 }
 0x56b   : > { %v14445_v41 = vpop.trf.xlu1 }
 0x56c   : > { %17606 = vst [vmem:[#allocation21_spill] sm:$0xff] %v14445_v41 }
 0x56f   : > { %11724 = vmatmul.mubr.msk.bf16.vlgmr.msra.gmra.mxu1 %vm4821_vm2, %v4750_v35  ;;  %11730 = vmatmul.mubr.msk.bf16.vlgmr.msra.gmra.mxu0 %vm4821_vm2, %v4751_v46 }
 0x570   : > { %11740 = vmatpush3.bf16.xpose.msra.mxu0 %v6142_v31  ;;  %11734 = vmatpush3.bf16.xpose.msra.mxu1 %v6095_v62 }
 0x571   : > { %11735 = vmatprep.mubr.msk.bf16.mxu1 %vm13534_vm1, %v17599_v2  ;;  %11741 = vmatprep.mubr.msk.bf16.mxu0 %vm13534_vm1, %v17599_v2 }
 0x572   : > { %11751 = vmatprep.subr.bf16.mxu0 %v17599_v2  ;;  %11745 = vmatprep.subr.bf16.mxu1 %v17599_v2 }
 0x577   : > { %11736 = vmatmul.mubr.msk.bf16.vlgmr.msra.gmra.mxu1 %vm4821_vm2, %v4752_v51  ;;  %11742 = vmatmul.mubr.msk.bf16.vlgmr.msra.gmra.mxu0 %vm4821_vm2, %v4753_v43  ;;  %v5050_v10 = vpop.f32.mrf.mxu0  ;;  %v14507_v51 = vld [vmem:[%s17416_s7 + $0x18] sm:$0xff] }
 0x578   : > { %11752 = vmatpush3.bf16.xpose.msra.mxu0 %v6236_v54  ;;  %11746 = vmatpush3.bf16.xpose.msra.mxu1 %v6189_v21  ;;  %v14417_v49 = vadd.f32 %v5050_v10, %v14405_v40 }
 0x579   : > { %11747 = vmatprep.mubr.msk.bf16.mxu1 %vm13534_vm1, %v17599_v2  ;;  %11753 = vmatprep.mubr.msk.bf16.mxu0 %vm13534_vm1, %v17599_v2  ;;  %v11599_v3 = vpop.f32.mrf.mxu0 }
 0x57a   : > { %11763 = vmatprep.subr.bf16.mxu0 %v17599_v2  ;;  %11757 = vmatprep.subr.bf16.mxu1 %v17599_v2  ;;  %v6351_v1 = vsel %vm6326_vm3, %v14417_v49, -inf }
 0x57b   : > { %6352 = vmax.xlane.f32.xlu1 %v6351_v1  ;;  %v5053_v8 = vpop.f32.mrf.mxu0  ;;  %v14524_v1 = vld [vmem:[%s17416_s7 + $0x80] sm:$0xff] }
 0x57c   : > { %v14438_v42 = vadd.f32 %v5053_v8, %v14427_v52  ;;  %v14529_v8 = vld [vmem:[%s17416_s7 + $0x20] sm:$0xff] }
 0x57d   : > { %v11600_v34 = vpop.f32.mrf.mxu0 }
 0x57e   : > { %v6354_v18 = vsel %vm6326_vm3, %v14438_v42, -inf }
 0x57f   : > { %11748 = vmatmul.mubr.msk.bf16.vlgmr.msra.gmra.mxu1 %vm4821_vm2, %v4754_v29  ;;  %11754 = vmatmul.mubr.msk.bf16.vlgmr.msra.gmra.mxu0 %vm4821_vm2, %v4755_v22 }
 0x580   : > { %6355 = vmax.xlane.f32.xlu0 %v6354_v18  ;;  %11764 = vmatpush3.bf16.msra.mxu0 %v8299_v45  ;;  %v14537_v18 = vld [vmem:[%s17416_s7 + $0x88] sm:$0xff] }
 0x581   : > { %11758 = vmatpush3.bf16.xpose.msra.mxu1 %v6283_v56  ;;  %11759 = vmatprep.mubr.msk.bf16.mxu1 %vm13534_vm1, %v17599_v2 }
 0x582   : > { %11769 = vmatprep.subr.bf16.mxu1 %v17599_v2  ;;  %11765 = vmatprep.mubr.msk.bf16.mxu0 %vm13534_vm1, %v17599_v2 }
 0x583   : > { %11775 = vmatprep.subr.bf16.mxu0 %v17599_v2 }
 0x587   : > { %v4862_v37 = vpop.f32.mrf.mxu1 }
 0x588   : > { %v14463_v46 = vadd.f32 %v4862_v37, %v14458_v50  ;;  %11760 = vmatmul.mubr.msk.bf16.vlgmr.msra.gmra.mxu1 %vm4821_vm2, %v4756_v6  ;;  %v14547_v37 = vld [vmem:[%s17416_s7 + $0x28] sm:$0xff] }
 0x589   : > { %11770 = vmatpush3.bf16.msra.mxu1 %v8300_v38  ;;  %v11575_v33 = vpop.f32.mrf.mxu1  ;;  %11771 = vmatprep.mubr.msk.bf16.mxu1 %vm13534_vm1, %v17599_v2 }
 0x58a   : > { %v6327_v26 = vsel %vm6326_vm3, %v14463_v46, -inf  ;;  %11781 = vmatprep.subr.bf16.mxu1 %v17599_v2 }
 0x58b   : > { %v4865_v27 = vpop.f32.mrf.mxu1  ;;  %6328 = vmax.xlane.f32.xlu1 %v6327_v26 }
 0x58c   : > { %v14477_v36 = vadd.f32 %v4865_v27, %v14469_v53 }
 0x58d   : > { %v11576_v35 = vpop.f32.mrf.mxu1 }
 0x58e   : > { %v6330_v62 = vsel %vm6326_vm3, %v14477_v36, -inf }
 0x58f   : > { %v4909_v31 = vpop.f32.mrf.mxu1  ;;  %6331 = vmax.xlane.f32.xlu0 %v6330_v62 }
 0x590   : > { %v14500_v12 = vadd.f32 %v4909_v31, %v14489_v58 }
 0x591   : > { %v11581_v32 = vpop.f32.mrf.mxu1 }
 0x592   : > { %v6333_v54 = vsel %vm6326_vm3, %v14500_v12, -inf }
 0x593   : > { %v5144_v5 = vpop.f32.mrf.mxu0  ;;  %v4912_v55 = vpop.f32.mrf.mxu1 }
 0x594   : > { %v14492_v19 = vadd.f32 %v5144_v5, %v14484_v47  ;;  %v14513_v13 = vadd.f32 %v4912_v55, %v14507_v51 }
 0x595   : > { %v11611_v57 = vpop.f32.mrf.mxu0  ;;  %v11582_v23 = vpop.f32.mrf.mxu1 }
 0x596   : > { %v6363_v43 = vsel %vm6326_vm3, %v14492_v19, -inf  ;;  %v6336_v10 = vsel %vm6326_vm3, %v14513_v13, -inf }
 0x597   : > { %6364 = vmax.xlane.f32.xlu1 %v6363_v43  ;;  %v5147_v59 = vpop.f32.mrf.mxu0 }
 0x598   : > { %v14510_v44 = vadd.f32 %v5147_v59, %v14497_v20 }
 0x599   : > { %v11612_v39 = vpop.f32.mrf.mxu0 }
 0x59a   : > { %17607 = vst [vmem:[#allocation22_spill] sm:$0xff] %v14510_v44  ;;  %v6366_v21 = vsel %vm6326_vm3, %v14510_v44, -inf  ;;  %v14720_v44 = vld [vmem:[%s17416_s7 + $0x98] sm:$0xff] }
 0x59b   : > { %6334 = vmax.xlane.f32.xlu1 %v6333_v54  ;;  %6367 = vmax.xlane.f32.xlu0 %v6366_v21  ;;  %17617 = vst [vmem:[#allocation32_spill] sm:$0xff] %v14720_v44 }
 0x59f   : > { %6337 = vmax.xlane.f32.xlu1 %v6336_v10 }
 0x5b3   : > { %v4956_v11 = vpop.f32.mrf.mxu1 }
 0x5b4   : > { %v14540_v17 = vadd.f32 %v4956_v11, %v14529_v8  ;;  %v14570_v11 = vld [vmem:[%s17416_s7 + $0xa0] sm:$0xff] }
 0x5b5   : > { %v11587_v28 = vpop.f32.mrf.mxu1 }
 0x5b6   : > { %v6339_v31 = vsel %vm6326_vm3, %v14540_v17, -inf  ;;  %v14575_v28 = vld [vmem:[%s17416_s7 + $0x30] sm:$0xff] }
 0x5b7   : > { %v4959_v3 = vpop.f32.mrf.mxu1 }
 0x5b8   : > { %v14553_v35 = vadd.f32 %v4959_v3, %v14547_v37 }
 0x5b9   : > { %v11588_v25 = vpop.f32.mrf.mxu1 }
 0x5ba   : > { %v6342_v57 = vsel %vm6326_vm3, %v14553_v35, -inf }
 0x5bb   : > { %v5003_v63 = vpop.f32.mrf.mxu1 }
 0x5bd   : > { %v11593_v22 = vpop.f32.mrf.mxu1 }
 0x5bf   : > { %v5006_v0 = vpop.f32.mrf.mxu1  ;;  %v5238_v29 = vpop.f32.mrf.mxu0 }
 0x5c0   : > { %v14532_v34 = vadd.f32 %v5238_v29, %v14524_v1  ;;  %v14583_v29 = vld [vmem:[%s17416_s7 + $0xa8] sm:$0xff] }
 0x5c1   : > { %v11594_v45 = vpop.f32.mrf.mxu1  ;;  %v11623_v56 = vpop.f32.mrf.mxu0 }
 0x5c2   : > { %v6375_v6 = vsel %vm6326_vm3, %v14532_v34, -inf  ;;  %v14586_v45 = vadd.f32 %v5003_v63, %v14575_v28 }
 0x5c3   : > { %v5097_v16 = vpop.f32.mrf.mxu1  ;;  %6376 = vmax.xlane.f32.xlu1 %v6375_v6  ;;  %v5241_v38 = vpop.f32.mrf.mxu0  ;;  %v14593_v6 = vld [vmem:[%s17416_s7 + $0x38] sm:$0xff] }
 0x5c4   : > { %v14550_v33 = vadd.f32 %v5241_v38, %v14537_v18  ;;  %v14598_v38 = vld [vmem:[%s17416_s7 + $0x50] sm:$0xff] }
 0x5c5   : > { %v11605_v26 = vpop.f32.mrf.mxu1  ;;  %v11624_v27 = vpop.f32.mrf.mxu0 }
 0x5c6   : > { %17608 = vst [vmem:[#allocation23_spill] sm:$0xff] %v14550_v33  ;;  %v6378_v32 = vsel %vm6326_vm3, %v14550_v33, -inf }
 0x5c7   : > { %v14555_v62 = vpop.f32.mrf.mxu1  ;;  %6340 = vmax.xlane.f32.xlu1 %v6339_v31  ;;  %6379 = vmax.xlane.f32.xlu0 %v6378_v32  ;;  %v14604_v31 = vadd.f32 %v5006_v0, %v14593_v6  ;;  %v14607_v32 = vadd.f32 %v5097_v16, %v14598_v38  ;;  %v14623_v0 = vld [vmem:[%s17416_s7 + $0xc0] sm:$0xff] }
 0x5c8   : > { %17611 = vst [vmem:[#allocation26_spill] sm:$0xff] %v14623_v0 }
 0x5c9   : > { %v11606_v5 = vpop.f32.mrf.mxu1 }
 0x5ca   : > { %v6345_v5 = vsel %vm6326_vm3, %v14586_v45, -inf }
 0x5cb   : > { %v5191_v55 = vpop.f32.mrf.mxu1  ;;  %6343 = vmax.xlane.f32.xlu0 %v6342_v57 }
 0x5cd   : > { %v11617_v23 = vpop.f32.mrf.mxu1 }
 0x5ce   : > { %v14616_v23 = vld [vmem:[%s17416_s7 + $0x70] sm:$0xff] }
 0x5cf   : > { %v14563_v43 = vpop.f32.mrf.mxu1 }
 0x5d1   : > { %v11618_v59 = vpop.f32.mrf.mxu1 }
 0x5d7   : > { %v5285_v39 = vpop.f32.mrf.mxu1 }
 0x5d9   : > { %v11629_v54 = vpop.f32.mrf.mxu1 }
 0x5db   : > { %v14565_v21 = vpop.f32.mrf.mxu1 }
 0x5dd   : > { %v11630_v10 = vpop.f32.mrf.mxu1 }
 0x5ef   : > { %v5332_v3 = vpop.f32.mrf.mxu0 }
 0x5f0   : > { %v14578_v25 = vadd.f32 %v5332_v3, %v14570_v11  ;;  %v14626_v3 = vadd.f32 %v5191_v55, %v14616_v23 }
 0x5f1   : > { %v11635_v22 = vpop.f32.mrf.mxu0 }
 0x5f2   : > { %17609 = vst [vmem:[#allocation24_spill] sm:$0xff] %v14578_v25  ;;  %v6387_v56 = vsel %vm6326_vm3, %v14578_v25, -inf }
 0x5f3   : > { %6388 = vmax.xlane.f32.xlu1 %v6387_v56  ;;  %v5335_v26 = vpop.f32.mrf.mxu0  ;;  %v6357_v56 = vsel %vm6326_vm3, %v14607_v32, -inf }
 0x5f4   : > { %v14601_v27 = vadd.f32 %v5335_v26, %v14583_v29  ;;  %v6348_v26 = vsel %vm6326_vm3, %v14604_v31, -inf }
 0x5f5   : > { %v11636_v63 = vpop.f32.mrf.mxu0 }
 0x5f6   : > { %17610 = vst [vmem:[#allocation25_spill] sm:$0xff] %v14601_v27  ;;  %v6390_v57 = vsel %vm6326_vm3, %v14601_v27, -inf }
 0x5f7   : > { %v14618_v59 = vpop.f32.mrf.mxu1  ;;  %6346 = vmax.xlane.f32.xlu1 %v6345_v5  ;;  %6391 = vmax.xlane.f32.xlu0 %v6390_v57  ;;  %v5426_v16 = vpop.f32.mrf.mxu0  ;;  %v14640_v5 = vld [vmem:[%s17416_s7 + $0xc8] sm:$0xff] }
 0x5f8   : > { %v14629_v22 = vadd.f32 %v5426_v16, %v14623_v0 }
 0x5f9   : > { %v11641_v54 = vpop.f32.mrf.mxu1  ;;  %v11647_v10 = vpop.f32.mrf.mxu0 }
 0x5fa   : > { %v6369_v10 = vsel %vm6326_vm3, %v14626_v3, -inf  ;;  %v6399_v4 = vsel %vm6326_vm3, %v14629_v22, -inf }
 0x5fb   : > { %v14635_v63 = vpop.f32.mrf.mxu1  ;;  %6358 = vmax.xlane.f32.xlu1 %v6357_v56  ;;  %6349 = vmax.xlane.f32.xlu0 %v6348_v26  ;;  %v5429_v55 = vpop.f32.mrf.mxu0  ;;  %v14652_v56 = vld [vmem:[%s17416_s7 + $0x58] sm:$0xff] }
 0x5fc   : > { %v14643_v16 = vadd.f32 %v5429_v55, %v14640_v5  ;;  %v14659_v55 = vld [vmem:[%s17416_s7 + $0xe8] sm:$0xff]  ;;  %v14663_v7 = vadd.f32 %v14555_v62, %v14652_v56 }
 0x5fd   : > { %v11642_v57 = vpop.f32.mrf.mxu1  ;;  %v11648_v54 = vpop.f32.mrf.mxu0  ;;  %17613 = vst [vmem:[#allocation28_spill] sm:$0xff] %v14659_v55 }
 0x5fe   : > { %17612 = vst [vmem:[#allocation27_spill] sm:$0xff] %v14643_v16  ;;  %v6402_v15 = vsel %vm6326_vm3, %v14643_v16, -inf  ;;  %v6360_v16 = vsel %vm6326_vm3, %v14663_v7, -inf }
 0x5ff   : > { %v14654_v26 = vpop.f32.mrf.mxu1  ;;  %6370 = vmax.xlane.f32.xlu1 %v6369_v10  ;;  %6400 = vmax.xlane.f32.xlu0 %v6399_v4  ;;  %v5520_v57 = vpop.f32.mrf.mxu0  ;;  %v14670_v10 = vld [vmem:[%s17416_s7 + $0x90] sm:$0xff]  ;;  %v14675_v4 = vld [vmem:[%s17416_s7 + $0xe0] sm:$0xff] }
 0x600   : > { %v14683_v14 = vadd.f32 %v5285_v39, %v14670_v10  ;;  %v14686_v2 = vadd.f32 %v5520_v57, %v14675_v4 }
 0x601   : > { %v11653_v54 = vpop.f32.mrf.mxu1  ;;  %v11659_v61 = vpop.f32.mrf.mxu0 }
 0x602   : > { %v6381_v25 = vsel %vm6326_vm3, %v14683_v14, -inf }
 0x603   : > { %v14677_v61 = vpop.f32.mrf.mxu1  ;;  %6403 = vmax.xlane.f32.xlu0 %v6402_v15  ;;  %v5523_v54 = vpop.f32.mrf.mxu0  ;;  %v14695_v15 = vld [vmem:[%s17416_s7 + $0x78] sm:$0xff] }
 0x604   : > { %v14680_v62 = vadd.f32 %v5523_v54, %v14659_v55  ;;  %v6411_v55 = vsel %vm6326_vm3, %v14686_v2, -inf }
 0x605   : > { %v11654_v41 = vpop.f32.mrf.mxu1  ;;  %v11660_v30 = vpop.f32.mrf.mxu0 }
 0x606   : > { %v6414_v27 = vsel %vm6326_vm3, %v14680_v62, -inf  ;;  %v14701_v30 = vadd.f32 %v14563_v43, %v14695_v15 }
 0x607   : > { %6361 = vmax.xlane.f32.xlu0 %v6360_v16  ;;  %6415 = vmax.xlane.f32.xlu1 %v6414_v27  ;;  %v14697_v41 = vpop.f32.mrf.mxu1  ;;  %v5614_v39 = vpop.f32.mrf.mxu0 }
 0x608   : > { %17614 = vst [vmem:[#allocation29_spill] sm:$0xff] %v14701_v30  ;;  %v14713_v0 = vadd.f32 %v5614_v39, %v14458_v50 }
 0x609   : > { %v11665_v54 = vpop.f32.mrf.mxu1  ;;  %v11671_v57 = vpop.f32.mrf.mxu0 }
 0x60a   : > { %17616 = vst [vmem:[#allocation31_spill] sm:$0xff] %v14713_v0  ;;  %v6372_v57 = vsel %vm6326_vm3, %v14701_v30, -inf }
 0x60b   : > { %6412 = vmax.xlane.f32.xlu0 %v6411_v55  ;;  %6382 = vmax.xlane.f32.xlu1 %v6381_v25  ;;  %v14707_v33 = vpop.f32.mrf.mxu1  ;;  %v5617_v27 = vpop.f32.mrf.mxu0 }
 0x60c   : > { %v14710_v16 = vadd.f32 %v5617_v27, %v14469_v53  ;;  %v14727_v53 = vld [vmem:[%s17416_s7 + $0xb0] sm:$0xff] }
 0x60d   : > { %v11666_v54 = vpop.f32.mrf.mxu1  ;;  %v11672_v43 = vpop.f32.mrf.mxu0  ;;  %v14740_v30 = vadd.f32 %v14618_v59, %v14727_v53 }
 0x60e   : > { %17615 = vst [vmem:[#allocation30_spill] sm:$0xff] %v14710_v16  ;;  %v6426_v55 = vsel %vm6326_vm3, %v14710_v16, -inf  ;;  %v14734_v54 = vadd.f32 %v14565_v21, %v14720_v44 }
 0x60f   : > { %6373 = vmax.xlane.f32.xlu0 %v6372_v57  ;;  %v5661_v25 = vpop.f32.mrf.mxu1  ;;  %6427 = vmax.xlane.f32.xlu1 %v6426_v55  ;;  %v5708_v50 = vpop.f32.mrf.mxu0  ;;  %v6423_v57 = vsel %vm6326_vm3, %v14713_v0, -inf  ;;  %17620 = vst [vmem:[#allocation35_spill] sm:$0xff] %v14740_v30  ;;  %v14745_v55 = vld [vmem:[%s17416_s7 + $0xb8] sm:$0xff] }
 0x610   : > { %v14730_v39 = vadd.f32 %v5708_v50, %v14529_v8  ;;  %17619 = vst [vmem:[#allocation34_spill] sm:$0xff] %v14734_v54  ;;  %v6384_v59 = vsel %vm6326_vm3, %v14734_v54, -inf }
 0x611   : > { %v11677_v27 = vpop.f32.mrf.mxu1  ;;  %v11683_v43 = vpop.f32.mrf.mxu0 }
 0x612   : > { %17618 = vst [vmem:[#allocation33_spill] sm:$0xff] %v14730_v39  ;;  %v6435_v50 = vsel %vm6326_vm3, %v14730_v39, -inf  ;;  %v14751_v43 = vadd.f32 %v14635_v63, %v14745_v55 }
 0x613   : > { %v5664_v8 = vpop.f32.mrf.mxu1  ;;  %6424 = vmax.xlane.f32.xlu0 %v6423_v57  ;;  %6436 = vmax.xlane.f32.xlu1 %v6435_v50  ;;  %v5711_v21 = vpop.f32.mrf.mxu0  ;;  %v6393_v57 = vsel %vm6326_vm3, %v14740_v30, -inf }
 0x614   : > { %17621 = vst [vmem:[#allocation36_spill] sm:$0xff] %v14751_v43  ;;  %v14756_v44 = vadd.f32 %v5711_v21, %v14547_v37  ;;  %v14768_v37 = vld [vmem:[%s17416_s7 + $0xd0] sm:$0xff] }
 0x615   : > { %v11678_v27 = vpop.f32.mrf.mxu1  ;;  %v11684_v0 = vpop.f32.mrf.mxu0 }
 0x616   : > { %17622 = vst [vmem:[#allocation37_spill] sm:$0xff] %v14756_v44  ;;  %v6396_v0 = vsel %vm6326_vm3, %v14751_v43, -inf }
 0x617   : > { %v5755_v16 = vpop.f32.mrf.mxu1  ;;  %6385 = vmax.xlane.f32.xlu0 %v6384_v59  ;;  %6394 = vmax.xlane.f32.xlu1 %v6393_v57  ;;  %v5802_v50 = vpop.f32.mrf.mxu0  ;;  %v6438_v59 = vsel %vm6326_vm3, %v14756_v44, -inf }
 0x618   : > { %v14761_v27 = vadd.f32 %v5802_v50, %v14405_v40  ;;  %v14774_v40 = vadd.f32 %v14654_v26, %v14768_v37  ;;  %v14788_v26 = vld [vmem:[%s17416_s7 + $0xd8] sm:$0xff] }
 0x619   : > { %v11689_v39 = vpop.f32.mrf.mxu1  ;;  %v11695_v63 = vpop.f32.mrf.mxu0 }
 0x61a   : > { %17623 = vst [vmem:[#allocation38_spill] sm:$0xff] %v14761_v27  ;;  %17624 = vst [vmem:[#allocation39_spill] sm:$0xff] %v14774_v40  ;;  %v6447_v63 = vsel %vm6326_vm3, %v14761_v27, -inf  ;;  %v14802_v27 = vadd.f32 %v5661_v25, %v14489_v58  ;;  %v14818_v58 = vld [vmem:[%s17416_s7 + $0xf0] sm:$0xff]  ;;  %v14821_v25 = vadd.f32 %v5664_v8, %v14507_v51  ;;  %v14838_v51 = vld [vmem:[%s17416_s7 + $0xf8] sm:$0xff]  ;;  %v14841_v8 = vadd.f32 %v5755_v16, %v14575_v28 }
 0x61b   : > { %v5758_v21 = vpop.f32.mrf.mxu1  ;;  %6397 = vmax.xlane.f32.xlu0 %v6396_v0  ;;  %6439 = vmax.xlane.f32.xlu1 %v6438_v59  ;;  %v5805_v57 = vpop.f32.mrf.mxu0  ;;  %v6405_v59 = vsel %vm6326_vm3, %v14774_v40, -inf  ;;  %17629 = vst [vmem:[#allocation44_spill] sm:$0xff] %v14838_v51 }
 0x61c   : > { %v14781_v0 = vadd.f32 %v5805_v57, %v14427_v52  ;;  %v14797_v52 = vadd.f32 %v14677_v61, %v14788_v26  ;;  %17626 = vst [vmem:[#allocation41_spill] sm:$0xff] %v14802_v27  ;;  %17628 = vst [vmem:[#allocation43_spill] sm:$0xff] %v14821_v25  ;;  %v14854_v28 = vadd.f32 %v5758_v21, %v14593_v6 }
 0x61d   : > { %v11690_v39 = vpop.f32.mrf.mxu1  ;;  %v11696_v50 = vpop.f32.mrf.mxu0  ;;  %17630 = vst [vmem:[#allocation45_spill] sm:$0xff] %v14841_v8 }
 0x61e   : > { %v6450_v57 = vsel %vm6326_vm3, %v14781_v0, -inf  ;;  %17632 = vst [vmem:[#allocation47_spill] sm:$0xff] %v14854_v28  ;;  %v6444_v6 = vsel %vm6326_vm3, %v14854_v28, -inf }
 0x61f   : > { %v14778_v43 = vpop.f32.mrf.mxu1  ;;  %6448 = vmax.xlane.f32.xlu0 %v6447_v63  ;;  %v5896_v30 = vpop.f32.mrf.mxu0 }
 0x620   : > { %v14811_v61 = vadd.f32 %v5896_v30, %v14484_v47  ;;  %v14878_v28 = vadd.f32 %v14778_v43, %v14598_v38 }
 0x621   : > { %v11701_v54 = vpop.f32.mrf.mxu1  ;;  %v11707_v44 = vpop.f32.mrf.mxu0 }
 0x622   : > { %17627 = vst [vmem:[#allocation42_spill] sm:$0xff] %v14811_v61 }
 0x623   : > { %v14790_v39 = vpop.f32.mrf.mxu1  ;;  %6406 = vmax.xlane.f32.xlu0 %v6405_v59  ;;  %v5899_v50 = vpop.f32.mrf.mxu0 }
 0x624   : > { %v14793_v63 = vadd.f32 %v5899_v50, %v14497_v20  ;;  %v14892_v43 = vadd.f32 %v14790_v39, %v14652_v56 }
 0x625   : > { %v11702_v54 = vpop.f32.mrf.mxu1  ;;  %v11708_v44 = vpop.f32.mrf.mxu0 }
 0x626   : > { %17625 = vst [vmem:[#allocation40_spill] sm:$0xff] %v14793_v63  ;;  %v6462_v59 = vsel %vm6326_vm3, %v14793_v63, -inf  ;;  %v6408_v44 = vsel %vm6326_vm3, %v14797_v52, -inf  ;;  %v6459_v63 = vsel %vm6326_vm3, %v14811_v61, -inf }
 0x627   : > { %v14804_v40 = vpop.f32.mrf.mxu1  ;;  %6451 = vmax.xlane.f32.xlu0 %v6450_v57  ;;  %6463 = vmax.xlane.f32.xlu1 %v6462_v59  ;;  %v14808_v20 = vpop.f32.mrf.mxu0  ;;  %v6429_v59 = vsel %vm6326_vm3, %v14802_v27, -inf }
 0x628   : > { %v14907_v39 = vadd.f32 %v14804_v40, %v14616_v23 }
 0x629   : > { %v11713_v50 = vpop.f32.mrf.mxu1  ;;  %v11719_v54 = vpop.f32.mrf.mxu0 }
 0x62a   : > { %v14831_v50 = vadd.f32 %v14697_v41, %v14818_v58 }
 0x62b   : > { %v14823_v57 = vpop.f32.mrf.mxu1  ;;  %6409 = vmax.xlane.f32.xlu0 %v6408_v44  ;;  %6430 = vmax.xlane.f32.xlu1 %v6429_v59  ;;  %v14827_v47 = vpop.f32.mrf.mxu0  ;;  %v6432_v59 = vsel %vm6326_vm3, %v14821_v25, -inf }
 0x62c   : > { %v6417_v61 = vsel %vm6326_vm3, %v14831_v50, -inf }
 0x62d   : > { %v11714_v30 = vpop.f32.mrf.mxu1  ;;  %v11720_v54 = vpop.f32.mrf.mxu0 }
 0x62e   : > { %v14849_v54 = vadd.f32 %v14707_v33, %v14838_v51 }
 0x62f   : > { %v14843_v44 = vpop.f32.mrf.mxu1  ;;  %6460 = vmax.xlane.f32.xlu0 %v6459_v63  ;;  %6433 = vmax.xlane.f32.xlu1 %v6432_v59  ;;  %v6084_v41 = vpop.f32.mrf.mxu0  ;;  %v6441_v63 = vsel %vm6326_vm3, %v14841_v8, -inf }
 0x630   : > { %17631 = vst [vmem:[#allocation46_spill] sm:$0xff] %v14849_v54  ;;  %v14861_v59 = vadd.f32 %v6084_v41, %v14570_v11 }
 0x631   : > { %v11725_v30 = vpop.f32.mrf.mxu1  ;;  %v11731_v27 = vpop.f32.mrf.mxu0 }
 0x632   : > { %17633 = vst [vmem:[#allocation48_spill] sm:$0xff] %v14861_v59  ;;  %v6420_v27 = vsel %vm6326_vm3, %v14849_v54, -inf  ;;  %v6483_v11 = vsel %vm6326_vm3, %v14861_v59, -inf }
 0x633   : > { %v14856_v16 = vpop.f32.mrf.mxu1  ;;  %6418 = vmax.xlane.f32.xlu0 %v6417_v61  ;;  %6442 = vmax.xlane.f32.xlu1 %v6441_v63  ;;  %v6087_v30 = vpop.f32.mrf.mxu0 }
 0x634   : > { %v14868_v21 = vadd.f32 %v6087_v30, %v14583_v29 }
 0x635   : > { %v11726_v33 = vpop.f32.mrf.mxu1  ;;  %v11732_v25 = vpop.f32.mrf.mxu0 }
 0x636   : > { %17634 = vst [vmem:[#allocation49_spill] sm:$0xff] %v14868_v21 }
 0x637   : > { %v6131_v51 = vpop.f32.mrf.mxu1  ;;  %6421 = vmax.xlane.f32.xlu0 %v6420_v27  ;;  %6445 = vmax.xlane.f32.xlu1 %v6444_v6  ;;  %v14870_v61 = vpop.f32.mrf.mxu0  ;;  %v6486_v27 = vsel %vm6326_vm3, %v14868_v21, -inf }
 0x639   : > { %v11737_v41 = vpop.f32.mrf.mxu1  ;;  %v11743_v63 = vpop.f32.mrf.mxu0 }
 0x63b   : > { %v6134_v25 = vpop.f32.mrf.mxu1  ;;  %6484 = vmax.xlane.f32.xlu0 %v6483_v11  ;;  %v6181_v33 = vpop.f32.mrf.mxu0  ;;  %v6453_v11 = vsel %vm6326_vm3, %v14878_v28, -inf }
 0x63c   : > { %v14881_v59 = vadd.f32 %v6181_v33, %v14640_v5 }
 0x63d   : > { %v11738_v54 = vpop.f32.mrf.mxu1  ;;  %v11744_v29 = vpop.f32.mrf.mxu0 }
 0x63e   : > { %v6498_v5 = vsel %vm6326_vm3, %v14881_v59, -inf }
 0x63f   : > { %v6225_v30 = vpop.f32.mrf.mxu1  ;;  %6487 = vmax.xlane.f32.xlu0 %v6486_v27  ;;  %v6272_v6 = vpop.f32.mrf.mxu0 }
 0x640   : > { %v14897_v27 = vadd.f32 %v6272_v6, %v14675_v4  ;;  %v14911_v4 = vadd.f32 %v14823_v57, %v14695_v15  ;;  %v6465_v6 = vsel %vm6326_vm3, %v14907_v39, -inf }
 0x641   : > { %v11749_v8 = vpop.f32.mrf.mxu1  ;;  %v11755_v41 = vpop.f32.mrf.mxu0 }
 0x642   : > { %v6507_v56 = vsel %vm6326_vm3, %v14897_v27, -inf  ;;  %v6468_v23 = vsel %vm6326_vm3, %v14911_v4, -inf }
 0x643   : > { %v6228_v63 = vpop.f32.mrf.mxu1  ;;  %6454 = vmax.xlane.f32.xlu0 %v6453_v11  ;;  %v14888_v21 = vpop.f32.mrf.mxu0 }
 0x644   : > { %v14886_v54 = vadd.f32 %v6228_v63, %v14788_v26  ;;  %v6456_v26 = vsel %vm6326_vm3, %v14892_v43, -inf  ;;  %v6353_v63 = vpop.xlane.xlu1 %6352 }
 0x645   : > { %v11750_v38 = vpop.f32.mrf.mxu1  ;;  %v11756_v8 = vpop.f32.mrf.mxu0 }
 0x646   : > { %v14915_v38 = vpop.permute.xlu0 %12796  ;;  %v14920_v8 = vadd.f32 %v14843_v44, %v14670_v10  ;;  %v14932_v44 = vadd.f32 %v6134_v25, %v14745_v55  ;;  %v12369_v55 = vunpack.i.h.bf16 %v14016_v48  ;;  %v12374_v25 = vunpack.i.h.bf16 %v14020_v60 }
 0x647   : > { %6499 = vmax.xlane.f32.xlu0 %v6498_v5  ;;  %17635 = vst [vmem:[#allocation50_spill] sm:$0xff] %v14915_v38  ;;  %v6527_v5 = vsub.f32 %v14417_v49, %v6353_v63 }
 0x648   : > { %v6319_v33 = vpop.f32.mrf.mxu1  ;;  %v6329_v40 = vpop.xlane.xlu1 %6328 }
 0x649   : > { %v6599_v15 = vmul.f32 1.442695, %v6527_v5 }
 0x64a   : > { %v11761_v29 = vpop.f32.mrf.mxu1  ;;  %v6356_v57 = vpop.xlane.xlu0 %6355 }
 0x64b   : > { %6457 = vmax.xlane.f32.xlu0 %v6456_v26  ;;  %v6519_v29 = vsub.f32 %v14463_v46, %v6329_v40  ;;  %v14926_v26 = vadd.f32 %v6131_v51, %v14727_v53  ;;  %v6528_v49 = vsub.f32 %v14438_v42, %v6356_v57  ;;  %13213 = vpow2.f32 %v6599_v15 }
 0x64c   : > { %v14901_v11 = vpop.f32.mrf.mxu1  ;;  %v6365_v63 = vpop.xlane.xlu1 %6364  ;;  %v14938_v51 = vadd.f32 %v6225_v30, %v14768_v37  ;;  %v6492_v42 = vsel %vm6326_vm3, %v14932_v44, -inf  ;;  %v14946_v15 = vadd.f32 %v6319_v33, %v14818_v58  ;;  %v12824_v37 = vpack.i.bf16 %v12374_v25, %v12369_v55 }
 0x64d   : > { %v6583_v10 = vmul.f32 1.442695, %v6519_v29  ;;  %v6601_v46 = vmul.f32 1.442695, %v6528_v49  ;;  %v6531_v40 = vsub.f32 %v14492_v19, %v6365_v63  ;;  %v12757_v30 = vunpack.i.l.bf16 %v14250_v24 }
 0x64e   : > { %v11762_v41 = vpop.f32.mrf.mxu1  ;;  %v12752_v57 = vunpack.i.l.bf16 %v14235_v9  ;;  %v6513_v29 = vsel %vm6326_vm3, %v14946_v15, -inf }
 0x64f   : > { %6508 = vmax.xlane.f32.xlu0 %v6507_v56  ;;  %v6477_v56 = vsel %vm6326_vm3, %v14920_v8, -inf  ;;  %v6489_v41 = vsel %vm6326_vm3, %v14926_v26, -inf  ;;  %13215 = vpow2.f32 %v6583_v10  ;;  %v6607_v48 = vmul.f32 1.442695, %v6531_v40 }
 0x650   : > { %13217 = vpow2.f32 %v6601_v46  ;;  %v6335_v5 = vpop.xlane.xlu1 %6334  ;;  %v12836_v33 = vpack.i.bf16 %v12757_v30, %v12752_v57 }
 0x651   : > { %v6521_v60 = vsub.f32 %v14500_v12, %v6335_v5 }
 0x653   : > { %6466 = vmax.xlane.f32.xlu0 %v6465_v6  ;;  %v6332_v6 = vpop.xlane.xlu0 %6331 }
 0x654   : > { %v6520_v53 = vsub.f32 %v14477_v36, %v6332_v6  ;;  %v6501_v36 = vsel %vm6326_vm3, %v14938_v51, -inf  ;;  %v6338_v58 = vpop.xlane.xlu1 %6337 }
 0x655   : > { %v6522_v49 = vsub.f32 %v14513_v13, %v6338_v58 }
 0x657   : > { %6469 = vmax.xlane.f32.xlu0 %v6468_v23  ;;  %v6585_v23 = vmul.f32 1.442695, %v6520_v53  ;;  %v14964_v63 = vpop.xlane.xlu0 %6367  ;;  %v6589_v46 = vmul.f32 1.442695, %v6522_v49 }
 0x658   : > { %v14955_v19 = vpop.eup %13213  ;;  %v6377_v6 = vpop.xlane.xlu1 %6376 }
 0x659   : > { %13219 = vpow2.f32 %v6585_v23  ;;  %v6735_v10 = vsel %vm6326_vm3, %v14955_v19, 0.0  ;;  %v6535_v53 = vsub.f32 %v14532_v34, %v6377_v6 }
 0x65a   : > { %13221 = vpow2.f32 %v6607_v48 }
 0x65b   : > { %6478 = vmax.xlane.f32.xlu0 %v6477_v56  ;;  %v6587_v56 = vmul.f32 1.442695, %v6521_v60  ;;  %v6615_v13 = vmul.f32 1.442695, %v6535_v53  ;;  %v14969_v55 = vpop.xlane.xlu0 %6379 }
 0x65c   : > { %v6341_v23 = vpop.xlane.xlu1 %6340 }
 0x65d   : > { %13223 = vpow2.f32 %v6587_v56 }
 0x65e   : > { %13225 = vpow2.f32 %v6589_v46 }
 0x65f   : > { %6490 = vmax.xlane.f32.xlu0 %v6489_v41  ;;  %v14960_v41 = vpop.eup %13215  ;;  %13227 = vpow2.f32 %v6615_v13 }
 0x660   : > { %v14962_v12 = vpop.eup %13217 }
 0x661   : > { %v6738_v25 = vsel %vm6326_vm3, %v14962_v12, 0.0 }
 0x663   : > { %6493 = vmax.xlane.f32.xlu0 %v6492_v42  ;;  %v6711_v42 = vsel %vm6326_vm3, %v14960_v41, 0.0 }
 0x666   : > { %v14973_v5 = vpop.eup %13219 }
 0x667   : > { %6502 = vmax.xlane.f32.xlu0 %v6501_v36  ;;  %v6714_v40 = vsel %vm6326_vm3, %v14973_v5, 0.0  ;;  %v14977_v34 = vpop.eup %13221  ;;  %v6344_v36 = vpop.xlane.xlu0 %6343 }
 0x668   : > { %v6747_v30 = vsel %vm6326_vm3, %v14977_v34, 0.0  ;;  %v6524_v9 = vsub.f32 %v14553_v35, %v6344_v36 }
 0x66a   : > { %12825 = vxpose.xlu1.b32.start.end [1/1] (short) (narrow) %v12824_v37, 16  ;;  %v14983_v57 = vpop.eup %13223 }
 0x66b   : > { %6514 = vmax.xlane.f32.xlu0 %v6513_v29  ;;  %v6717_v29 = vsel %vm6326_vm3, %v14983_v57, 0.0  ;;  %v14989_v58 = vpop.eup %13225 }
 0x66c   : > { %v6720_v49 = vsel %vm6326_vm3, %v14989_v58, 0.0 }
 0x66f   : > { %6736 = vadd.xlane.f32.xlu0 %v6735_v10  ;;  %12837 = vxpose.xlu1.b32.start.end [1/1] (short) (narrow) %v12836_v33, 16  ;;  %v14993_v10 = vpop.eup %13227 }
 0x670   : > { %17636 = vst [vmem:[#allocation51_spill] sm:$0xff] %v14993_v10  ;;  %v6759_v13 = vsel %vm6326_vm3, %v14993_v10, 0.0 }
 0x673   : > { %6712 = vadd.xlane.f32.xlu0 %v6711_v42  ;;  %v6523_v42 = vsub.f32 %v14540_v17, %v6341_v23  ;;  %v6593_v17 = vmul.f32 1.442695, %v6524_v9 }
 0x675   : > { %v6591_v24 = vmul.f32 1.442695, %v6523_v42  ;;  %v15008_v42 = vadd.f32 %v14808_v20, %v14524_v1 }
 0x677   : > { %6739 = vadd.xlane.f32.xlu0 %v6738_v25  ;;  %v6471_v1 = vsel %vm6326_vm3, %v15008_v42, -inf }
 0x67b   : > { %6715 = vadd.xlane.f32.xlu0 %v6714_v40 }
 0x67c   : > { %v14979_v37 = vpop.xlane.xlu1 %6388 }
 0x67f   : > { %6748 = vadd.xlane.f32.xlu0 %v6747_v30 }
 0x680   : > { %v6347_v48 = vpop.xlane.xlu1 %6346  ;;  %v14985_v60 = vpop.xlane.xlu0 %6391 }
 0x681   : > { %v6525_v35 = vsub.f32 %v14586_v45, %v6347_v48 }
 0x683   : > { %6718 = vadd.xlane.f32.xlu0 %v6717_v29 }
 0x684   : > { %v6350_v33 = vpop.xlane.xlu0 %6349  ;;  %v6359_v56 = vpop.xlane.xlu1 %6358 }
 0x685   : > { %v6529_v6 = vsub.f32 %v14607_v32, %v6359_v56 }
 0x687   : > { %6721 = vadd.xlane.f32.xlu0 %v6720_v49  ;;  %v6603_v40 = vmul.f32 1.442695, %v6529_v6 }
 0x688   : > { %v6401_v46 = vpop.xlane.xlu0 %6400  ;;  %v6371_v30 = vpop.xlane.xlu1 %6370 }
 0x689   : > { %v6543_v53 = vsub.f32 %v14629_v22, %v6401_v46  ;;  %v6533_v49 = vsub.f32 %v14626_v3, %v6371_v30  ;;  %v15016_v3 = vadd.f32 %v14827_v47, %v14537_v18 }
 0x68b   : > { %v6631_v25 = vmul.f32 1.442695, %v6543_v53  ;;  %6760 = vadd.xlane.f32.xlu0 %v6759_v13  ;;  %v6611_v13 = vmul.f32 1.442695, %v6533_v49 }
 0x68c   : > { %v15000_v29 = vpop.xlane.xlu0 %6403 }
 0x68d   : > { %13229 = vpow2.f32 %v6631_v25  ;;  %v6526_v25 = vsub.f32 %v14604_v31, %v6350_v33  ;;  %v6474_v33 = vsel %vm6326_vm3, %v15016_v3, -inf }
 0x68e   : > { %13231 = vpow2.f32 %v6603_v40 }
 0x68f   : > { %13233 = vpow2.f32 %v6591_v24  ;;  %v6597_v31 = vmul.f32 1.442695, %v6526_v25 }
 0x690   : > { %v6362_v32 = vpop.xlane.xlu0 %6361  ;;  %v6416_v56 = vpop.xlane.xlu1 %6415 }
 0x691   : > { %v6530_v22 = vsub.f32 %v14663_v7, %v6362_v32  ;;  %v6548_v24 = vsub.f32 %v14680_v62, %v6416_v56 }
 0x693   : > { %v6605_v23 = vmul.f32 1.442695, %v6530_v22  ;;  %v6641_v45 = vmul.f32 1.442695, %v6548_v24  ;;  %v17640_v24 = vld [vmem:[#allocation33_spill] sm:$0xff] }
 0x694   : > { %v6413_v46 = vpop.xlane.xlu0 %6412  ;;  %v6383_v53 = vpop.xlane.xlu1 %6382 }
 0x695   : > { %13235 = vpow2.f32 %v6605_v23  ;;  %v6547_v6 = vsub.f32 %v14686_v2, %v6413_v46  ;;  %v6595_v2 = vmul.f32 1.442695, %v6525_v35  ;;  %v6537_v62 = vsub.f32 %v14683_v14, %v6383_v53  ;;  %v17638_v14 = vld [vmem:[#allocation30_spill] sm:$0xff] }
 0x696   : > { %13237 = vpow2.f32 %v6593_v17  ;;  %v17639_v46 = vld [vmem:[#allocation22_spill] sm:$0xff] }
 0x697   : > { %v6639_v36 = vmul.f32 1.442695, %v6547_v6  ;;  %v6619_v32 = vmul.f32 1.442695, %v6537_v62  ;;  %v6532_v53 = vsub.f32 %v17639_v46, %v14964_v63 }
 0x698   : > { %v15012_v9 = vpop.xlane.xlu0 %6373  ;;  %v6428_v7 = vpop.xlane.xlu1 %6427 }
 0x699   : > { %13239 = vpow2.f32 %v6639_v36  ;;  %v6552_v56 = vsub.f32 %v17638_v14, %v6428_v7  ;;  %v6609_v63 = vmul.f32 1.442695, %v6532_v53 }
 0x69a   : > { %v15021_v20 = vpop.eup %13229  ;;  %6472 = vmax.xlane.f32.xlu1 %v6471_v1  ;;  %13241 = vpow2.f32 %v6611_v13 }
 0x69b   : > { %17637 = vst [vmem:[#allocation52_spill] sm:$0xff] %v15021_v20  ;;  %v6783_v40 = vsel %vm6326_vm3, %v15021_v20, 0.0  ;;  %v15028_v18 = vpop.eup %13231  ;;  %13243 = vpow2.f32 %v6595_v2  ;;  %v6649_v13 = vmul.f32 1.442695, %v6552_v56 }
 0x69c   : > { %v15024_v48 = vpop.xlane.xlu0 %6424  ;;  %v6437_v47 = vpop.xlane.xlu1 %6436  ;;  %6784 = vadd.xlane.f32.xlu0 %v6783_v40  ;;  %13245 = vpow2.f32 %v6641_v45  ;;  %v6741_v17 = vsel %vm6326_vm3, %v15028_v18, 0.0  ;;  %v17642_v45 = vld [vmem:[#allocation32_spill] sm:$0xff] }
 0x69d   : > { %v15032_v30 = vpop.eup %13233  ;;  %13247 = vpow2.f32 %v6597_v31  ;;  %v6555_v7 = vsub.f32 %v17640_v24, %v6437_v47  ;;  %v15058_v62 = vadd.f32 %v14856_v16, %v17642_v45  ;;  %v17645_v16 = vld [vmem:[#allocation29_spill] sm:$0xff] }
 0x69e   : > { %6475 = vmax.xlane.f32.xlu1 %v6474_v33  ;;  %v6723_v6 = vsel %vm6326_vm3, %v15032_v30, 0.0  ;;  %13249 = vpow2.f32 %v6619_v32  ;;  %v17643_v33 = vld [vmem:[#allocation37_spill] sm:$0xff] }
 0x69f   : > { %13251 = vpow2.f32 %v6649_v13  ;;  %v6655_v47 = vmul.f32 1.442695, %v6555_v7  ;;  %v6480_v46 = vsel %vm6326_vm3, %v15058_v62, -inf  ;;  %v17647_v7 = vld [vmem:[#allocation39_spill] sm:$0xff] }
 0x6a0   : > { %v15035_v22 = vpop.xlane.xlu0 %6385  ;;  %v15039_v23 = vpop.xlane.xlu1 %6394  ;;  %6742 = vadd.xlane.f32.xlu0 %v6741_v17  ;;  %13253 = vpow2.f32 %v6609_v63  ;;  %v6534_v17 = vsub.f32 %v17645_v16, %v15012_v9 }
 0x6a1   : > { %13255 = vpow2.f32 %v6655_v47 }
 0x6a2   : > { %v15041_v49 = vpop.eup %13235  ;;  %6724 = vadd.xlane.f32.xlu1 %v6723_v6  ;;  %v6613_v63 = vmul.f32 1.442695, %v6534_v17 }
 0x6a3   : > { %v15047_v35 = vpop.eup %13237  ;;  %v6744_v36 = vsel %vm6326_vm3, %v15041_v49, 0.0 }
 0x6a4   : > { %v15052_v2 = vpop.xlane.xlu0 %6397  ;;  %v6440_v25 = vpop.xlane.xlu1 %6439  ;;  %6745 = vadd.xlane.f32.xlu0 %v6744_v36  ;;  %v6726_v40 = vsel %vm6326_vm3, %v15047_v35, 0.0 }
 0x6a5   : > { %v6556_v32 = vsub.f32 %v17643_v33, %v6440_v25 }
 0x6a6   : > { %v15054_v1 = vpop.eup %13239  ;;  %6727 = vadd.xlane.f32.xlu1 %v6726_v40 }
 0x6a7   : > { %17641 = vst [vmem:[#allocation30_spill] sm:$0xff] %v15054_v1  ;;  %v6795_v31 = vsel %vm6326_vm3, %v15054_v1, 0.0  ;;  %v15067_v56 = vpop.eup %13241  ;;  %v6657_v6 = vmul.f32 1.442695, %v6556_v32 }
 0x6a8   : > { %v15065_v14 = vpop.xlane.xlu0 %6448  ;;  %17644 = vst [vmem:[#allocation22_spill] sm:$0xff] %v15067_v56  ;;  %6796 = vadd.xlane.f32.xlu0 %v6795_v31  ;;  %v15073_v53 = vpop.eup %13243  ;;  %v6753_v13 = vsel %vm6326_vm3, %v15067_v56, 0.0 }
 0x6a9   : > { %v15077_v24 = vpop.eup %13245  ;;  %v6729_v9 = vsel %vm6326_vm3, %v15073_v53, 0.0  ;;  %13257 = vpow2.f32 %v6657_v6 }
 0x6aa   : > { %6481 = vmax.xlane.f32.xlu1 %v6480_v46  ;;  %17646 = vst [vmem:[#allocation33_spill] sm:$0xff] %v15077_v24  ;;  %v15082_v45 = vpop.eup %13247  ;;  %v6798_v47 = vsel %vm6326_vm3, %v15077_v24, 0.0  ;;  %v17649_v46 = vld [vmem:[#allocation26_spill] sm:$0xff]  ;;  %13259 = vpow2.f32 %v6613_v63 }
 0x6ab   : > { %v15086_v33 = vpop.eup %13249  ;;  %v15091_v17 = vadd.f32 %v14870_v61, %v17649_v46  ;;  %v6732_v6 = vsel %vm6326_vm3, %v15082_v45, 0.0 }
 0x6ac   : > { %v6407_v36 = vpop.xlane.xlu0 %6406  ;;  %6754 = vadd.xlane.f32.xlu0 %v6753_v13  ;;  %17648 = vst [vmem:[#allocation32_spill] sm:$0xff] %v15086_v33 }
 0x6ad   : > { %v6545_v25 = vsub.f32 %v17647_v7, %v6407_v36  ;;  %v17650_v36 = vld [vmem:[#allocation23_spill] sm:$0xff] }
 0x6ae   : > { %6730 = vadd.xlane.f32.xlu1 %v6729_v9  ;;  %v6536_v13 = vsub.f32 %v17650_v36, %v14969_v55  ;;  %v15099_v9 = vpop.eup %13251  ;;  %v6495_v55 = vsel %vm6326_vm3, %v15091_v17, -inf }
 0x6af   : > { %v6635_v40 = vmul.f32 1.442695, %v6545_v25  ;;  %17651 = vst [vmem:[#allocation37_spill] sm:$0xff] %v15099_v9  ;;  %v15106_v63 = vpop.eup %13253  ;;  %v6810_v46 = vsel %vm6326_vm3, %v15099_v9, 0.0 }
 0x6b0   : > { %v6452_v31 = vpop.xlane.xlu0 %6451  ;;  %v6464_v16 = vpop.xlane.xlu1 %6463  ;;  %6799 = vadd.xlane.f32.xlu0 %v6798_v47  ;;  %v6617_v47 = vmul.f32 1.442695, %v6536_v13  ;;  %v17654_v13 = vld [vmem:[#allocation34_spill] sm:$0xff] }
 0x6b1   : > { %v6560_v32 = vsub.f32 %v14781_v0, %v6452_v31  ;;  %13261 = vpow2.f32 %v6635_v40  ;;  %v6765_v0 = vsel %vm6326_vm3, %v15086_v33, 0.0  ;;  %v15110_v36 = vpop.eup %13255 }
 0x6b2   : > { %6733 = vadd.xlane.f32.xlu1 %v6732_v6  ;;  %17652 = vst [vmem:[#allocation29_spill] sm:$0xff] %v15110_v36  ;;  %v17653_v6 = vld [vmem:[#allocation42_spill] sm:$0xff]  ;;  %v6819_v9 = vsel %vm6326_vm3, %v15110_v36, 0.0 }
 0x6b3   : > { %v6665_v7 = vmul.f32 1.442695, %v6560_v32 }
 0x6b4   : > { %v6410_v25 = vpop.xlane.xlu0 %6409  ;;  %v15102_v61 = vpop.xlane.xlu1 %6430  ;;  %6766 = vadd.xlane.f32.xlu0 %v6765_v0  ;;  %v6538_v0 = vsub.f32 %v17654_v13, %v15035_v22  ;;  %v6504_v22 = vsel %vm6326_vm3, %v14886_v54, -inf }
 0x6b5   : > { %v6546_v31 = vsub.f32 %v14797_v52, %v6410_v25  ;;  %13263 = vpow2.f32 %v6665_v7 }
 0x6b6   : > { %6496 = vmax.xlane.f32.xlu1 %v6495_v55  ;;  %13265 = vpow2.f32 %v6617_v47  ;;  %v6750_v55 = vsel %vm6326_vm3, %v15106_v63, 0.0  ;;  %v15121_v1 = vpop.eup %13257  ;;  %v17656_v47 = vld [vmem:[#allocation24_spill] sm:$0xff] }
 0x6b7   : > { %v6637_v40 = vmul.f32 1.442695, %v6546_v31  ;;  %17655 = vst [vmem:[#allocation39_spill] sm:$0xff] %v15121_v1  ;;  %v15128_v13 = vpop.eup %13259 }
 0x6b8   : > { %v6461_v32 = vpop.xlane.xlu0 %6460  ;;  %v15113_v25 = vpop.xlane.xlu1 %6433  ;;  %6811 = vadd.xlane.f32.xlu0 %v6810_v46  ;;  %v6539_v46 = vsub.f32 %v17656_v47, %v14979_v37  ;;  %17657 = vst [vmem:[#allocation26_spill] sm:$0xff] %v15128_v13  ;;  %v17660_v37 = vld [vmem:[#allocation28_spill] sm:$0xff]  ;;  %v17661_v47 = vld [vmem:[#allocation25_spill] sm:$0xff] }
 0x6b9   : > { %v6563_v52 = vsub.f32 %v17653_v6, %v6461_v32  ;;  %13267 = vpow2.f32 %v6637_v40  ;;  %v6621_v6 = vmul.f32 1.442695, %v6538_v0  ;;  %v15139_v0 = vadd.f32 %v14888_v21, %v17660_v37 }
 0x6ba   : > { %6751 = vadd.xlane.f32.xlu1 %v6750_v55 }
 0x6bb   : > { %v6671_v7 = vmul.f32 1.442695, %v6563_v52  ;;  %v17658_v52 = vld [vmem:[#allocation40_spill] sm:$0xff] }
 0x6bc   : > { %v6419_v31 = vpop.xlane.xlu0 %6418  ;;  %6820 = vadd.xlane.f32.xlu0 %v6819_v9  ;;  %v6443_v40 = vpop.xlane.xlu1 %6442  ;;  %v6564_v55 = vsub.f32 %v17658_v52, %v6464_v16  ;;  %v6756_v16 = vsel %vm6326_vm3, %v15128_v13, 0.0 }
 0x6bd   : > { %v6549_v32 = vsub.f32 %v14831_v50, %v6419_v31  ;;  %13269 = vpow2.f32 %v6671_v7  ;;  %v6822_v50 = vsel %vm6326_vm3, %v15121_v1, 0.0  ;;  %v6623_v31 = vmul.f32 1.442695, %v6539_v46 }
 0x6be   : > { %6505 = vmax.xlane.f32.xlu1 %v6504_v22  ;;  %v15135_v9 = vpop.eup %13261  ;;  %v6540_v22 = vsub.f32 %v17661_v47, %v14985_v60  ;;  %13271 = vpow2.f32 %v6621_v6  ;;  %v6673_v7 = vmul.f32 1.442695, %v6564_v55  ;;  %v17664_v6 = vld [vmem:[#allocation35_spill] sm:$0xff]  ;;  %v6510_v55 = vsel %vm6326_vm3, %v15139_v0, -inf }
 0x6bf   : > { %v6643_v36 = vmul.f32 1.442695, %v6549_v32  ;;  %17659 = vst [vmem:[#allocation23_spill] sm:$0xff] %v15135_v9  ;;  %v17662_v32 = vld [vmem:[#allocation45_spill] sm:$0xff]  ;;  %v6789_v21 = vsel %vm6326_vm3, %v15135_v9, 0.0  ;;  %v17666_v47 = vld [vmem:[#allocation47_spill] sm:$0xff] }
 0x6c0   : > { %v15131_v24 = vpop.xlane.xlu0 %6421  ;;  %6823 = vadd.xlane.f32.xlu0 %v6822_v50  ;;  %v6557_v52 = vsub.f32 %v17662_v32, %v6443_v40  ;;  %v6446_v46 = vpop.xlane.xlu1 %6445  ;;  %v6625_v60 = vmul.f32 1.442695, %v6540_v22  ;;  %v6541_v50 = vsub.f32 %v17664_v6, %v15039_v23  ;;  %v17668_v22 = vld [vmem:[#allocation44_spill] sm:$0xff] }
 0x6c1   : > { %13273 = vpow2.f32 %v6643_v36  ;;  %v15167_v23 = vadd.f32 %v14901_v11, %v17668_v22  ;;  %v17672_v11 = vld [vmem:[#allocation27_spill] sm:$0xff] }
 0x6c2   : > { %6757 = vadd.xlane.f32.xlu1 %v6756_v16  ;;  %v15150_v37 = vpop.eup %13263  ;;  %13275 = vpow2.f32 %v6623_v31  ;;  %v6659_v40 = vmul.f32 1.442695, %v6557_v52  ;;  %v6558_v16 = vsub.f32 %v17666_v47, %v6446_v46  ;;  %v6627_v6 = vmul.f32 1.442695, %v6541_v50 }
 0x6c3   : > { %17663 = vst [vmem:[#allocation42_spill] sm:$0xff] %v15150_v37  ;;  %v15156_v36 = vpop.eup %13265  ;;  %13277 = vpow2.f32 %v6673_v7  ;;  %17669 = vst [vmem:[#allocation40_spill] sm:$0xff] %v15167_v23 }
 0x6c4   : > { %v15146_v1 = vpop.xlane.xlu0 %6484  ;;  %6790 = vadd.xlane.f32.xlu0 %v6789_v21  ;;  %17665 = vst [vmem:[#allocation34_spill] sm:$0xff] %v15156_v36  ;;  %v6834_v21 = vsel %vm6326_vm3, %v15150_v37, 0.0  ;;  %13279 = vpow2.f32 %v6625_v60  ;;  %v6762_v52 = vsel %vm6326_vm3, %v15156_v36, 0.0  ;;  %v6661_v46 = vmul.f32 1.442695, %v6558_v16 }
 0x6c5   : > { %13281 = vpow2.f32 %v6659_v40  ;;  %v6544_v60 = vsub.f32 %v17672_v11, %v15000_v29  ;;  %v17675_v29 = vld [vmem:[#allocation46_spill] sm:$0xff] }
 0x6c6   : > { %6511 = vmax.xlane.f32.xlu1 %v6510_v55  ;;  %v15163_v31 = vpop.eup %13267  ;;  %v17670_v55 = vld [vmem:[#allocation36_spill] sm:$0xff]  ;;  %13283 = vpow2.f32 %v6627_v6  ;;  %v6550_v6 = vsub.f32 %v17675_v29, %v15131_v24 }
 0x6c7   : > { %17667 = vst [vmem:[#allocation24_spill] sm:$0xff] %v15163_v31  ;;  %v6542_v7 = vsub.f32 %v17670_v55, %v15052_v2  ;;  %v6792_v37 = vsel %vm6326_vm3, %v15163_v31, 0.0  ;;  %v6516_v2 = vsel %vm6326_vm3, %v15167_v23, -inf  ;;  %13285 = vpow2.f32 %v6661_v46 }
 0x6c8   : > { %v15159_v32 = vpop.xlane.xlu0 %6487  ;;  %6835 = vadd.xlane.f32.xlu0 %v6834_v21 }
 0x6c9   : > { %v6629_v50 = vmul.f32 1.442695, %v6542_v7 }
 0x6ca   : > { %6763 = vadd.xlane.f32.xlu1 %v6762_v52  ;;  %v15177_v38 = vpop.eup %13269 }
 0x6cb   : > { %17671 = vst [vmem:[#allocation28_spill] sm:$0xff] %v15177_v38  ;;  %v15183_v21 = vpop.eup %13271  ;;  %v6843_v16 = vsel %vm6326_vm3, %v15177_v38, 0.0  ;;  %13287 = vpow2.f32 %v6629_v50 }
 0x6cc   : > { %v15173_v47 = vpop.xlane.xlu0 %6454  ;;  %6793 = vadd.xlane.f32.xlu0 %v6792_v37  ;;  %17673 = vst [vmem:[#allocation25_spill] sm:$0xff] %v15183_v21  ;;  %v6633_v37 = vmul.f32 1.442695, %v6544_v60  ;;  %v6768_v55 = vsel %vm6326_vm3, %v15183_v21, 0.0  ;;  %v17678_v60 = vld [vmem:[#allocation31_spill] sm:$0xff] }
 0x6cd   : > { %v6551_v50 = vsub.f32 %v17678_v60, %v15024_v48 }
 0x6ce   : > { %6517 = vmax.xlane.f32.xlu1 %v6516_v2  ;;  %v15189_v22 = vpop.eup %13273  ;;  %13289 = vpow2.f32 %v6633_v37  ;;  %v6645_v2 = vmul.f32 1.442695, %v6550_v6  ;;  %v17681_v37 = vld [vmem:[#allocation41_spill] sm:$0xff] }
 0x6cf   : > { %17674 = vst [vmem:[#allocation45_spill] sm:$0xff] %v15189_v22  ;;  %v15195_v7 = vpop.eup %13275  ;;  %v6801_v46 = vsel %vm6326_vm3, %v15189_v22, 0.0  ;;  %v6553_v22 = vsub.f32 %v17681_v37, %v15102_v61 }
 0x6d0   : > { %v15185_v40 = vpop.xlane.xlu0 %6499  ;;  %6844 = vadd.xlane.f32.xlu0 %v6843_v16  ;;  %17676 = vst [vmem:[#allocation35_spill] sm:$0xff] %v15195_v7  ;;  %v15201_v11 = vpop.eup %13277  ;;  %v6771_v24 = vsel %vm6326_vm3, %v15195_v7, 0.0  ;;  %13291 = vpow2.f32 %v6645_v2 }
 0x6d1   : > { %17677 = vst [vmem:[#allocation47_spill] sm:$0xff] %v15201_v11  ;;  %v15207_v16 = vpop.eup %13279  ;;  %v6846_v29 = vsel %vm6326_vm3, %v15201_v11, 0.0 }
 0x6d2   : > { %6769 = vadd.xlane.f32.xlu1 %v6768_v55  ;;  %17679 = vst [vmem:[#allocation44_spill] sm:$0xff] %v15207_v16  ;;  %v15213_v38 = vpop.eup %13281  ;;  %v6774_v48 = vsel %vm6326_vm3, %v15207_v16, 0.0 }
 0x6d3   : > { %17680 = vst [vmem:[#allocation36_spill] sm:$0xff] %v15213_v38  ;;  %v15219_v6 = vpop.eup %13283  ;;  %v6825_v60 = vsel %vm6326_vm3, %v15213_v38, 0.0 }
 0x6d4   : > { %v15197_v52 = vpop.xlane.xlu0 %6457  ;;  %6802 = vadd.xlane.f32.xlu0 %v6801_v46  ;;  %v6647_v46 = vmul.f32 1.442695, %v6551_v50  ;;  %17682 = vst [vmem:[#allocation27_spill] sm:$0xff] %v15219_v6  ;;  %v15225_v11 = vpop.eup %13285  ;;  %v6651_v50 = vmul.f32 1.442695, %v6553_v22  ;;  %v6777_v2 = vsel %vm6326_vm3, %v15219_v6, 0.0 }
 0x6d5   : > { %17683 = vst [vmem:[#allocation46_spill] sm:$0xff] %v15225_v11 }
 0x6d6   : > { %6772 = vadd.xlane.f32.xlu1 %v6771_v24  ;;  %13293 = vpow2.f32 %v6647_v46 }
 0x6d7   : > { %13295 = vpow2.f32 %v6651_v50 }
 0x6d8   : > { %v15211_v55 = vpop.xlane.xlu0 %6508  ;;  %6847 = vadd.xlane.f32.xlu0 %v6846_v29  ;;  %v17684_v29 = vld [vmem:[#allocation43_spill] sm:$0xff]  ;;  %v15231_v37 = vpop.eup %13287 }
 0x6d9   : > { %v6554_v61 = vsub.f32 %v17684_v29, %v15113_v25  ;;  %17685 = vst [vmem:[#allocation31_spill] sm:$0xff] %v15231_v37  ;;  %v6780_v22 = vsel %vm6326_vm3, %v15231_v37, 0.0  ;;  %v17687_v25 = vld [vmem:[#allocation48_spill] sm:$0xff] }
 0x6da   : > { %6775 = vadd.xlane.f32.xlu1 %v6774_v48  ;;  %v6828_v48 = vsel %vm6326_vm3, %v15225_v11, 0.0  ;;  %v6571_v29 = vsub.f32 %v17687_v25, %v15146_v1 }
 0x6db   : > { %v15238_v46 = vpop.eup %13289 }
 0x6dc   : > { %v15223_v24 = vpop.xlane.xlu0 %6466  ;;  %6826 = vadd.xlane.f32.xlu0 %v6825_v60  ;;  %v6653_v60 = vmul.f32 1.442695, %v6554_v61  ;;  %17686 = vst [vmem:[#allocation41_spill] sm:$0xff] %v15238_v46  ;;  %v6687_v50 = vmul.f32 1.442695, %v6571_v29  ;;  %v17689_v61 = vld [vmem:[#allocation49_spill] sm:$0xff] }
 0x6de   : > { %6778 = vadd.xlane.f32.xlu1 %v6777_v2 }
 0x6e0   : > { %v6470_v38 = vpop.xlane.xlu0 %6469  ;;  %6829 = vadd.xlane.f32.xlu0 %v6828_v48  ;;  %v6572_v48 = vsub.f32 %v17689_v61, %v15159_v32 }
 0x6e1   : > { %v6566_v9 = vsub.f32 %v14911_v4, %v6470_v38  ;;  %v6786_v4 = vsel %vm6326_vm3, %v15238_v46, 0.0  ;;  %v15245_v38 = vpop.eup %13291 }
 0x6e2   : > { %6781 = vadd.xlane.f32.xlu1 %v6780_v22  ;;  %17688 = vst [vmem:[#allocation43_spill] sm:$0xff] %v15245_v38 }
 0x6e3   : > { %v6677_v31 = vmul.f32 1.442695, %v6566_v9  ;;  %v15255_v9 = vpop.eup %13293 }
 0x6e4   : > { %v6479_v2 = vpop.xlane.xlu0 %6478  ;;  %17691 = vst [vmem:[#allocation49_spill] sm:$0xff] %v15255_v9  ;;  %v15262_v25 = vpop.eup %13295 }
 0x6e5   : > { %13297 = vpow2.f32 %v6677_v31  ;;  %v6569_v11 = vsub.f32 %v14920_v8, %v6479_v2  ;;  %v6804_v8 = vsel %vm6326_vm3, %v15245_v38, 0.0  ;;  %v6689_v31 = vmul.f32 1.442695, %v6572_v48  ;;  %17693 = vst [vmem:[#allocation54_spill] sm:$0xff] %v15262_v25 }
 0x6e6   : > { %13299 = vpow2.f32 %v6653_v60  ;;  %6787 = vadd.xlane.f32.xlu1 %v6786_v4  ;;  %v15249_v37 = vpop.trf.xlu1 }
 0x6e7   : > { %v6683_v20 = vmul.f32 1.442695, %v6569_v11  ;;  %17690 = vst [vmem:[#allocation48_spill] sm:$0xff] %v15249_v37  ;;  %v6807_v11 = vsel %vm6326_vm3, %v15255_v9, 0.0 }
 0x6e8   : > { %v15251_v1 = vpop.xlane.xlu0 %6490 }
 0x6e9   : > { %13301 = vpow2.f32 %v6683_v20 }
 0x6ea   : > { %13303 = vpow2.f32 %v6687_v50  ;;  %6805 = vadd.xlane.f32.xlu1 %v6804_v8  ;;  %v15257_v60 = vpop.trf.xlu1  ;;  %v6813_v50 = vsel %vm6326_vm3, %v15262_v25, 0.0 }
 0x6eb   : > { %17692 = vst [vmem:[#allocation53_spill] sm:$0xff] %v15257_v60  ;;  %13305 = vpow2.f32 %v6689_v31 }
 0x6ec   : > { %v6494_v22 = vpop.xlane.xlu0 %6493 }
 0x6ed   : > { %v6574_v32 = vsub.f32 %v14932_v44, %v6494_v22 }
 0x6ee   : > { %6808 = vadd.xlane.f32.xlu1 %v6807_v11  ;;  %v15264_v29 = vpop.trf.xlu1 }
 0x6ef   : > { %v6693_v20 = vmul.f32 1.442695, %v6574_v32  ;;  %17694 = vst [vmem:[#allocation55_spill] sm:$0xff] %v15264_v29 }
 0x6f0   : > { %v15266_v2 = vpop.xlane.xlu0 %6502 }
 0x6f1   : > { %13307 = vpow2.f32 %v6693_v20 }
 0x6f2   : > { %v15268_v4 = vpop.eup %13297  ;;  %6814 = vadd.xlane.f32.xlu1 %v6813_v50  ;;  %v15276_v48 = vpop.trf.xlu1 }
 0x6f3   : > { %17695 = vst [vmem:[#allocation56_spill] sm:$0xff] %v15268_v4  ;;  %v15272_v61 = vpop.eup %13299  ;;  %v6852_v44 = vsel %vm6326_vm3, %v15268_v4, 0.0  ;;  %17697 = vst [vmem:[#allocation58_spill] sm:$0xff] %v15276_v48 }
 0x6f4   : > { %17696 = vst [vmem:[#allocation57_spill] sm:$0xff] %v15272_v61  ;;  %6853 = vadd.xlane.f32.xlu0 %v6852_v44  ;;  %v15278_v8 = vpop.xlane.xlu0 %6514  ;;  %v6816_v22 = vsel %vm6326_vm3, %v15272_v61, 0.0 }
 0x6f6   : > { %v15280_v31 = vpop.eup %13301  ;;  %6817 = vadd.xlane.f32.xlu1 %v6816_v22 }
 0x6f7   : > { %17698 = vst [vmem:[#allocation59_spill] sm:$0xff] %v15280_v31  ;;  %v6861_v32 = vsel %vm6326_vm3, %v15280_v31, 0.0  ;;  %v15286_v11 = vpop.eup %13303 }
 0x6f8   : > { %17699 = vst [vmem:[#allocation60_spill] sm:$0xff] %v15286_v11  ;;  %6862 = vadd.xlane.f32.xlu0 %v6861_v32  ;;  %v15288_v20 = vpop.xlane.xlu0 %6736  ;;  %v6867_v50 = vsel %vm6326_vm3, %v15286_v11, 0.0  ;;  %v15292_v44 = vpop.eup %13305  ;;  %v17702_v11 = vld [vmem:[#allocation5_spill] sm:$0xff] }
 0x6f9   : > { %17700 = vst [vmem:[#allocation61_spill] sm:$0xff] %v15292_v44  ;;  %v6870_v25 = vsel %vm6326_vm3, %v15292_v44, 0.0  ;;  %v17703_v44 = vld [vmem:[#allocation38_spill] sm:$0xff] }
 0x6fa   : > { %v6559_v38 = vsub.f32 %v17703_v44, %v15065_v14 }
 0x6fc   : > { %6868 = vadd.xlane.f32.xlu0 %v6867_v50  ;;  %v6713_v4 = vpop.xlane.xlu0 %6712  ;;  %v6663_v60 = vmul.f32 1.442695, %v6559_v38 }
 0x6fd   : > { %13309 = vrcp.f32 %v6713_v4  ;;  %v6561_v4 = vsub.f32 %v14878_v28, %v15173_v47 }
 0x6fe   : > { %v15296_v61 = vpop.eup %13307 }
 0x6ff   : > { %17701 = vst [vmem:[#allocation62_spill] sm:$0xff] %v15296_v61  ;;  %v6876_v32 = vsel %vm6326_vm3, %v15296_v61, 0.0  ;;  %v17704_v61 = vld [vmem:[#allocation10_spill] sm:$0xff]  ;;  %v6667_v47 = vmul.f32 1.442695, %v6561_v4 }
 0x700   : > { %6871 = vadd.xlane.f32.xlu0 %v6870_v25  ;;  %v15298_v22 = vpop.xlane.xlu0 %6739  ;;  %v12654_v29 = vunpack.i.l.bf16 %v17704_v61  ;;  %v12657_v14 = vunpack.i.h.bf16 %v17704_v61 }
 0x704   : > { %6877 = vadd.xlane.f32.xlu0 %v6876_v32  ;;  %v6716_v31 = vpop.xlane.xlu0 %6715  ;;  %v6562_v32 = vsub.f32 %v14892_v43, %v15197_v52  ;;  %v6565_v43 = vsub.f32 %v14907_v39, %v15223_v24 }
 0x705   : > { %13311 = vrcp.f32 %v6716_v31 }
 0x706   : > { %v6669_v44 = vmul.f32 1.442695, %v6562_v32  ;;  %v15326_v38 = vmul.f32 1.442695, %v6565_v43 }
 0x707   : > { %12849 = vrot.lane.b32.xlu1 %v17702_v11, %s13532_s27  ;;  %v17705_v11 = vld [vmem:[#allocation11_spill] sm:$0xff] }
 0x708   : > { %v15304_v50 = vpop.xlane.xlu0 %6748  ;;  %v12659_v46 = vunpack.i.l.bf16 %v17705_v11  ;;  %v12662_v28 = vunpack.i.h.bf16 %v17705_v11 }
 0x70a   : > { %v13310_v25 = vpop.eup %13309 }
 0x70c   : > { %v6719_v9 = vpop.xlane.xlu0 %6718 }
 0x70d   : > { %13313 = vrcp.f32 %v6719_v9  ;;  %v6967_v9 = vmul.f32 %v13310_v25, %v14960_v41  ;;  %v8302_v41 = vpack.c.bf16 %v12662_v28, %v12657_v14 }
 0x70f   : > { %v7130_v61 = vrot.slane %v6967_v9, 1  ;;  %v7198_v39 = vrot.slane %v6967_v9, 2  ;;  %v7266_v25 = vrot.slane %v6967_v9, 3  ;;  %v7538_v11 = vrot.slane %v6967_v9, 7 }
 0x710   : > { %v6722_v48 = vpop.xlane.xlu0 %6721 }
 0x711   : > { %13315 = vrcp.f32 %v6722_v48  ;;  %v8301_v48 = vpack.c.bf16 %v12659_v46, %v12654_v29  ;;  %v7334_v46 = vrot.slane %v6967_v9, 4  ;;  %v7470_v29 = vrot.slane %v6967_v9, 6 }
 0x712   : > { %v13312_v31 = vpop.eup %13311  ;;  %13317 = vpow2.f32 %v6663_v60  ;;  %v7402_v60 = vrot.slane %v6967_v9, 5 }
 0x713   : > { %v15316_v37 = vmul.f32 %v13312_v31, %v14973_v5  ;;  %13319 = vpow2.f32 %v6667_v47  ;;  %v17706_v5 = vmov 0.0  }
 0x714   : > { %13321 = vpow2.f32 %v6669_v44 }
 0x715   : > { %v8267_v52 = vpack.c.bf16 %v15316_v37, %v6967_v9  ;;  %v7698_v32 = vrot.slane %v15316_v37, 1  ;;  %v7766_v31 = vrot.slane %v15316_v37, 2  ;;  %v7834_v14 = vrot.slane %v15316_v37, 3 }
 0x716   : > { %v7902_v28 = vrot.slane %v15316_v37, 4  ;;  %v7970_v47 = vrot.slane %v15316_v37, 5  ;;  %v8038_v44 = vrot.slane %v15316_v37, 6  ;;  %13323 = vpow2.f32 %v15326_v38 }
 0x717   : > { %11766 = vmatmul.mubr.msk.bf16.vlgmr.msra.gmra.mxu0 %vm6326_vm3, %v8267_v52 }
 0x718   : > { %11776 = vmatpush3.bf16.msra.mxu0 %v8301_v48  ;;  %11777 = vmatprep.mubr.msk.bf16.mxu0 %vm13534_vm1, %v17706_v5 }
 0x719   : > { %11787 = vmatprep.subr.bf16.mxu0 %v17706_v5 }
 0x71a   : > { %v13314_v24 = vpop.eup %13313 }
 0x71b   : > { %v6969_v4 = vmul.f32 %v13314_v24, %v14983_v57 }
 0x71d   : > { %v15337_v43 = vsel %vm7064_vm4, %v6969_v4, %v7130_v61  ;;  %v7199_v52 = vrot.slane %v6969_v4, 1  ;;  %v7267_v48 = vrot.slane %v6969_v4, 2  ;;  %v7335_v6 = vrot.slane %v6969_v4, 3 }
 0x71e   : > { %v13316_v57 = vpop.eup %13315  ;;  %v7403_v24 = vrot.slane %v6969_v4, 4  ;;  %v7471_v16 = vrot.slane %v6969_v4, 5  ;;  %v7539_v7 = vrot.slane %v6969_v4, 6  ;;  %v7063_v21 = vrot.slane %v6969_v4, 7 }
 0x71f   : > { %v6970_v33 = vmul.f32 %v13316_v57, %v14989_v58  ;;  %v15341_v36 = vsel %vm7064_vm4, %v7199_v52, %v7198_v39  ;;  %v15344_v10 = vsel %vm7064_vm4, %v7267_v48, %v7266_v25  ;;  %v15347_v13 = vsel %vm7064_vm4, %v7335_v6, %v7334_v46  ;;  %v15364_v6 = vpop.xlane.xlu0 %6760 }
 0x720   : > { %v15350_v61 = vsel %vm7064_vm4, %v7403_v24, %v7402_v60  ;;  %v15353_v56 = vsel %vm7064_vm4, %v7471_v16, %v7470_v29  ;;  %v15356_v23 = vsel %vm7064_vm4, %v7539_v7, %v7538_v11  ;;  %v15359_v58 = vsel %vm7064_vm4, %v7063_v21, %v6967_v9  ;;  %v15374_v29 = vpop.eup %13317 }
 0x721   : > { %v8268_v39 = vpack.c.bf16 %v6970_v33, %v6969_v4  ;;  %v15362_v52 = vsel %vm7064_vm4, %v6970_v33, %v7698_v32  ;;  %v7767_v25 = vrot.slane %v6970_v33, 1  ;;  %v7835_v48 = vrot.slane %v6970_v33, 2 }
 0x722   : > { %17707 = vst [vmem:[#allocation5_spill] sm:$0xff] %v15362_v52  ;;  %v7903_v46 = vrot.slane %v6970_v33, 3  ;;  %v7971_v60 = vrot.slane %v6970_v33, 4  ;;  %v8039_v57 = vrot.slane %v6970_v33, 5  ;;  %v8107_v24 = vrot.slane %v6970_v33, 6 }
 0x723   : > { %11772 = vmatmul.mubr.msk.bf16.vlgmr.msra.gmra.mxu1 %vm6326_vm3, %v8268_v39  ;;  %v15368_v7 = vsel %vm7064_vm4, %v7767_v25, %v7766_v31  ;;  %v15371_v21 = vsel %vm7064_vm4, %v7835_v48, %v7834_v14  ;;  %v8106_v16 = vrot.slane %v15316_v37, 7  ;;  %v7638_v9 = vrot.slane %v6970_v33, 7  ;;  %v6473_v4 = vpop.xlane.xlu1 %6472  ;;  %v15387_v14 = vpop.eup %13319 }
 0x724   : > { %17708 = vst [vmem:[#allocation38_spill] sm:$0xff] %v15368_v7  ;;  %17709 = vst [vmem:[#allocation10_spill] sm:$0xff] %v15371_v21  ;;  %11782 = vmatpush3.bf16.msra.mxu1 %v8302_v41  ;;  %11783 = vmatprep.mubr.msk.bf16.mxu1 %vm13534_vm1, %v17706_v5  ;;  %v15379_v32 = vsel %vm7064_vm4, %v7903_v46, %v7902_v28  ;;  %v15382_v11 = vsel %vm7064_vm4, %v7971_v60, %v7970_v47  ;;  %v15394_v39 = vpop.eup %13321  ;;  %v6831_v60 = vsel %vm6326_vm3, %v15374_v29, 0.0 }
 0x725   : > { %17710 = vst [vmem:[#allocation11_spill] sm:$0xff] %v15379_v32  ;;  %17711 = vst [vmem:[#allocation63_spill] sm:$0xff] %v15382_v11  ;;  %v15385_v31 = vsel %vm7064_vm4, %v8039_v57, %v8038_v44  ;;  %v6567_v33 = vsub.f32 %v15008_v42, %v6473_v4  ;;  %11793 = vmatprep.subr.bf16.mxu1 %v17706_v5  ;;  %v15392_v41 = vsel %vm7064_vm4, %v8107_v24, %v8106_v16  ;;  %v15396_v25 = vpop.xlane.xlu0 %6784 }
 0x726   : > { %17712 = vst [vmem:[#allocation64_spill] sm:$0xff] %v15385_v31  ;;  %17713 = vst [vmem:[#allocation65_spill] sm:$0xff] %v15392_v41  ;;  %v15400_v28 = vsel %vm7064_vm4, %v7638_v9, %v15316_v37  ;;  %v6573_v37 = vsub.f32 %v14926_v26, %v15251_v1  ;;  %v6837_v38 = vsel %vm6326_vm3, %v15387_v14, 0.0  ;;  %v6840_v4 = vsel %vm6326_vm3, %v15394_v39, 0.0 }
 0x727   : > { %17714 = vst [vmem:[#allocation66_spill] sm:$0xff] %v15400_v28  ;;  %v6679_v47 = vmul.f32 1.442695, %v6567_v33  ;;  %v6476_v44 = vpop.xlane.xlu1 %6475  ;;  %v15414_v33 = vpop.eup %13323  ;;  %v6576_v1 = vsub.f32 %v14881_v59, %v15185_v40 }
 0x728   : > { %v6568_v48 = vsub.f32 %v15016_v3, %v6476_v44  ;;  %v6691_v9 = vmul.f32 1.442695, %v6573_v37 }
 0x729   : > { %v6743_v42 = vpop.xlane.xlu0 %6742  ;;  %13325 = vpow2.f32 %v6679_v47 }
 0x72a   : > { %v6681_v46 = vmul.f32 1.442695, %v6568_v48 }
 0x72b   : > { %v6725_v57 = vpop.xlane.xlu1 %6724  ;;  %6832 = vadd.xlane.f32.xlu1 %v6831_v60 }
 0x72c   : > { %13327 = vpow2.f32 %v6681_v46  ;;  %v6849_v46 = vsel %vm6326_vm3, %v15414_v33, 0.0 }
 0x72d   : > { %v6746_v24 = vpop.xlane.xlu0 %6745  ;;  %13329 = vrcp.f32 %v6725_v57  ;;  %v6697_v57 = vmul.f32 1.442695, %v6576_v1 }
 0x72f   : > { %v6728_v16 = vpop.xlane.xlu1 %6727  ;;  %6838 = vadd.xlane.f32.xlu1 %v6837_v38 }
 0x730   : > { %13331 = vrcp.f32 %v6728_v16  ;;  %v17715_v16 = vld [vmem:[#allocation7_spill] sm:$0xff] }
 0x731   : > { %v15410_v3 = vpop.xlane.xlu0 %6796  ;;  %13333 = vrcp.f32 %v15288_v20 }
 0x732   : > { %13335 = vrcp.f32 %v15298_v22 }
 0x733   : > { %v6482_v47 = vpop.xlane.xlu1 %6481  ;;  %6841 = vadd.xlane.f32.xlu1 %v6840_v4  ;;  %13337 = vpow2.f32 %v6691_v9  ;;  %v12431_v9 = vunpack.i.l.bf16 %v17715_v16 }
 0x734   : > { %v6570_v26 = vsub.f32 %v15058_v62, %v6482_v47  ;;  %13339 = vrcp.f32 %v6743_v42  ;;  %v6579_v62 = vsub.f32 %v14897_v27, %v15211_v55  ;;  %v6577_v27 = vsub.f32 %v14938_v51, %v15266_v2 }
 0x735   : > { %v15421_v44 = vpop.xlane.xlu0 %6754 }
 0x736   : > { %v6685_v48 = vmul.f32 1.442695, %v6570_v26  ;;  %v15425_v60 = vpop.eup %13325  ;;  %v6703_v4 = vmul.f32 1.442695, %v6579_v62 }
 0x737   : > { %v6731_v20 = vpop.xlane.xlu1 %6730  ;;  %6850 = vadd.xlane.f32.xlu1 %v6849_v46  ;;  %v6855_v40 = vsel %vm6326_vm3, %v15425_v60, 0.0 }
 0x738   : > { %13341 = vpow2.f32 %v6685_v48  ;;  %v17717_v48 = vld [vmem:[#allocation6_spill] sm:$0xff] }
 0x739   : > { %13343 = vrcp.f32 %v6731_v20  ;;  %v15429_v22 = vpop.xlane.xlu0 %6799  ;;  %v15431_v59 = vpop.eup %13327  ;;  %v12426_v46 = vunpack.i.l.bf16 %v17717_v48  ;;  %v17718_v20 = vld [vmem:[#allocation8_spill] sm:$0xff] }
 0x73a   : > { %v13330_v37 = vpop.eup %13329  ;;  %v6858_v1 = vsel %vm6326_vm3, %v15431_v59, 0.0 }
 0x73b   : > { %v6734_v38 = vpop.xlane.xlu1 %6733  ;;  %6856 = vadd.xlane.f32.xlu1 %v6855_v40  ;;  %v15441_v55 = vmul.f32 %v13330_v37, %v15032_v30  ;;  %v12594_v40 = vunpack.i.l.bf16 %v17718_v20  ;;  %v8303_v37 = vpack.c.bf16 %v12431_v9, %v12426_v46 }
 0x73c   : > { %13345 = vrcp.f32 %v6734_v38  ;;  %v17719_v38 = vld [vmem:[#allocation9_spill] sm:$0xff] }
 0x73d   : > { %v13332_v42 = vpop.eup %13331  ;;  %13347 = vpow2.f32 %v6697_v57  ;;  %v15436_v47 = vpop.xlane.xlu0 %6766  ;;  %v12599_v28 = vunpack.i.l.bf16 %v17719_v38 }
 0x73e   : > { %v15444_v26 = vmul.f32 %v13332_v42, %v15047_v35  ;;  %v13334_v62 = vpop.eup %13333  ;;  %13349 = vrcp.f32 %v6746_v24  ;;  %v6699_v42 = vmul.f32 1.442695, %v6577_v27  ;;  %v12434_v24 = vunpack.i.h.bf16 %v17715_v16 }
 0x73f   : > { %v6497_v57 = vpop.xlane.xlu1 %6496  ;;  %6859 = vadd.xlane.f32.xlu1 %v6858_v1  ;;  %v13336_v35 = vpop.eup %13335  ;;  %13351 = vpow2.f32 %v6703_v4  ;;  %v12429_v1 = vunpack.i.h.bf16 %v17717_v48  ;;  %v8305_v27 = vpack.c.bf16 %v12599_v28, %v12594_v40 }
 0x740   : > { %17716 = vst [vmem:[#allocation7_spill] sm:$0xff] %v15444_v26  ;;  %v6575_v51 = vsub.f32 %v15091_v17, %v6497_v57  ;;  %v8269_v30 = vpack.c.bf16 %v15444_v26, %v15441_v55  ;;  %v15457_v31 = vpop.eup %13337  ;;  %v15462_v17 = vmul.f32 %v13334_v62, %v14955_v19  ;;  %13353 = vrcp.f32 %v15304_v50 }
 0x741   : > { %v15454_v2 = vpop.xlane.xlu0 %6811  ;;  %v13340_v9 = vpop.eup %13339  ;;  %v15468_v4 = vmul.f32 %v13336_v35, %v14962_v12  ;;  %v7132_v12 = vrot.slane %v15441_v55, 7  ;;  %v6873_v62 = vsel %vm6326_vm3, %v15457_v31, 0.0 }
 0x742   : > { %v6695_v41 = vmul.f32 1.442695, %v6575_v51  ;;  %11778 = vmatmul.mubr.msk.bf16.vlgmr.msra.gmra.mxu0 %vm6326_vm3, %v8269_v30  ;;  %v15480_v28 = vmul.f32 %v13340_v9, %v15028_v18  ;;  %v7136_v51 = vrot.slane %v15462_v17, 5  ;;  %v7272_v18 = vrot.slane %v15462_v17, 7 }
 0x743   : > { %11788 = vmatpush3.bf16.msra.mxu0 %v8303_v37  ;;  %v6752_v57 = vpop.xlane.xlu1 %6751  ;;  %11789 = vmatprep.mubr.msk.bf16.mxu0 %vm13534_vm1, %v17706_v5  ;;  %17720 = vst [vmem:[#allocation6_spill] sm:$0xff] %v15468_v4  ;;  %v8271_v35 = vpack.c.bf16 %v15468_v4, %v15462_v17  ;;  %v7204_v37 = vrot.slane %v15462_v17, 6  ;;  %v7201_v9 = vsel %vm7067_vm5, %v15441_v55, %v15341_v36 }
 0x744   : > { %13355 = vpow2.f32 %v6695_v41  ;;  %11799 = vmatprep.subr.bf16.mxu0 %v17706_v5  ;;  %v7269_v41 = vrot.slane %v15441_v55, 1  ;;  %v7138_v21 = vrot.slane %v15480_v28, 4 }
 0x745   : > { %v15471_v16 = vpop.eup %13341  ;;  %13357 = vrcp.f32 %v6752_v57  ;;  %v15473_v19 = vpop.xlane.xlu0 %6820 }
 0x746   : > { %v13344_v50 = vpop.eup %13343  ;;  %13359 = vpow2.f32 %v6699_v42  ;;  %v6864_v48 = vsel %vm6326_vm3, %v15471_v16, 0.0  ;;  %v7270_v11 = vsel %vm7067_vm5, %v7269_v41, %v15344_v10 }
 0x747   : > { %v15483_v46 = vmul.f32 %v13344_v50, %v15073_v53  ;;  %v6506_v40 = vpop.xlane.xlu1 %6505  ;;  %6865 = vadd.xlane.f32.xlu1 %v6864_v48  ;;  %13361 = vrcp.f32 %v15421_v44  ;;  %v7133_v44 = vsel %vm7067_vm5, %v7132_v12, %v15337_v43  ;;  %v7206_v43 = vrot.slane %v15480_v28, 5 }
 0x748   : > { %v6578_v30 = vsub.f32 %v14886_v54, %v6506_v40  ;;  %v8304_v12 = vpack.c.bf16 %v12434_v24, %v12429_v1 }
 0x749   : > { %v13346_v42 = vpop.eup %13345  ;;  %v15494_v53 = vpop.xlane.xlu0 %6823  ;;  %v7134_v57 = vrot.slane %v15483_v46, 6  ;;  %v7202_v54 = vrot.slane %v15483_v46, 7 }
 0x74a   : > { %v15501_v50 = vpop.eup %13347  ;;  %v15504_v48 = vmul.f32 %v13346_v42, %v15082_v45  ;;  %v6701_v40 = vmul.f32 1.442695, %v6578_v30  ;;  %11790 = vmatmul.mubr.msk.bf16.vlgmr.msra.gmra.mxu0 %vm6326_vm3, %v8271_v35  ;;  %v7271_v45 = vsel %vm7070_vm6, %v15483_v46, %v7270_v11 }
 0x74b   : > { %17721 = vst [vmem:[#allocation8_spill] sm:$0xff] %v15501_v50  ;;  %11800 = vmatpush3.bf16.msra.mxu0 %v8305_v27  ;;  %v6758_v32 = vpop.xlane.xlu1 %6757  ;;  %6874 = vadd.xlane.f32.xlu1 %v6873_v62  ;;  %v7135_v36 = vsel %vm7070_vm6, %v7134_v57, %v7133_v44  ;;  %v7203_v7 = vsel %vm7070_vm6, %v7202_v54, %v7201_v9  ;;  %v13350_v27 = vpop.eup %13349  ;;  %v12602_v57 = vunpack.i.h.bf16 %v17719_v38  ;;  %v17728_v9 = vld [vmem:[#allocation12_spill] sm:$0xff] }
 0x74c   : > { %17722 = vst [vmem:[#allocation9_spill] sm:$0xff] %v15504_v48  ;;  %13363 = vpow2.f32 %v6701_v40  ;;  %v8270_v30 = vpack.c.bf16 %v15504_v48, %v15483_v46  ;;  %11801 = vmatprep.mubr.msk.bf16.mxu0 %vm13534_vm1, %v17706_v5  ;;  %11811 = vmatprep.subr.bf16.mxu0 %v17706_v5  ;;  %v7137_v10 = vsel %vm7073_vm7, %v7136_v51, %v7135_v36  ;;  %v6882_v51 = vsel %vm6326_vm3, %v15501_v50, 0.0  ;;  %v15538_v1 = vpop.eup %13351  ;;  %v17729_v40 = vld [vmem:[#allocation13_spill] sm:$0xff] }
 0x74d   : > { %13365 = vrcp.f32 %v6758_v32  ;;  %v15524_v41 = vsel %vm7076_vm8, %v7138_v21, %v7137_v10  ;;  %v7205_v11 = vsel %vm7073_vm7, %v7204_v37, %v7203_v7  ;;  %v6581_v62 = vsub.f32 %v14946_v15, %v15278_v8  ;;  %v15529_v35 = vpop.xlane.xlu0 %6790  ;;  %17725 = vst [vmem:[#allocation69_spill] sm:$0xff] %v15538_v1  ;;  %v13354_v15 = vpop.eup %13353 }
 0x74e   : > { %17723 = vst [vmem:[#allocation67_spill] sm:$0xff] %v15524_v41  ;;  %11784 = vmatmul.mubr.msk.bf16.vlgmr.msra.gmra.mxu1 %vm6326_vm3, %v8270_v30  ;;  %v15535_v42 = vsel %vm7076_vm8, %v7206_v43, %v7205_v11  ;;  %v7273_v32 = vsel %vm7073_vm7, %v7272_v18, %v7271_v45  ;;  %v7274_v21 = vrot.slane %v15480_v28, 6  ;;  %v12597_v8 = vunpack.i.h.bf16 %v17718_v20 }
 0x74f   : > { %17724 = vst [vmem:[#allocation68_spill] sm:$0xff] %v15535_v42  ;;  %11794 = vmatpush3.bf16.msra.mxu1 %v8304_v12  ;;  %6883 = vadd.xlane.f32.xlu1 %v6882_v51  ;;  %v6512_v7 = vpop.xlane.xlu1 %6511  ;;  %v15543_v24 = vmul.f32 %v13350_v27, %v15041_v49  ;;  %v12774_v54 = vunpack.i.l.bf16 %v17728_v9  ;;  %v12779_v44 = vunpack.i.l.bf16 %v17729_v40  ;;  %v6707_v36 = vmul.f32 1.442695, %v6581_v62  ;;  %v17791_v42 = vld [vmem:[#allocation39_spill] sm:$0xff] }
 0x750   : > { %v6580_v37 = vsub.f32 %v15139_v0, %v6512_v7  ;;  %11795 = vmatprep.mubr.msk.bf16.mxu1 %vm13534_vm1, %v17706_v5  ;;  %11805 = vmatprep.subr.bf16.mxu1 %v17706_v5  ;;  %v15555_v20 = vsel %vm7076_vm8, %v7274_v21, %v7273_v32  ;;  %v6891_v30 = vsel %vm6326_vm3, %v15538_v1, 0.0  ;;  %v15564_v38 = vmul.f32 %v13354_v15, %v14977_v34  ;;  %v17734_v15 = vld [vmem:[#allocation40_spill] sm:$0xff] }
 0x751   : > { %17726 = vst [vmem:[#allocation70_spill] sm:$0xff] %v15543_v24  ;;  %v15549_v18 = vpop.eup %13355  ;;  %17730 = vst [vmem:[#allocation12_spill] sm:$0xff] %v15555_v20  ;;  %13367 = vrcp.f32 %v15364_v6  ;;  %v15570_v12 = vpop.xlane.xlu0 %6835  ;;  %v8272_v11 = vpack.c.bf16 %v15543_v24, %v15480_v28  ;;  %v7337_v62 = vrot.slane %v15441_v55, 2  ;;  %v8306_v51 = vpack.c.bf16 %v12602_v57, %v12597_v8 }
 0x752   : > { %17727 = vst [vmem:[#allocation71_spill] sm:$0xff] %v15549_v18  ;;  %v13358_v49 = vpop.eup %13357  ;;  %v6705_v45 = vmul.f32 1.442695, %v6580_v37  ;;  %v6879_v0 = vsel %vm6326_vm3, %v15549_v18, 0.0  ;;  %17732 = vst [vmem:[#allocation72_spill] sm:$0xff] %v15564_v38  ;;  %v7339_v6 = vrot.slane %v15483_v46, 1  ;;  %v8307_v32 = vpack.c.bf16 %v12779_v44, %v12774_v54 }
 0x753   : > { %v15561_v10 = vpop.eup %13359  ;;  %v15568_v43 = vmul.f32 %v13358_v49, %v15106_v63  ;;  %6880 = vadd.xlane.f32.xlu0 %v6879_v0  ;;  %6892 = vadd.xlane.f32.xlu1 %v6891_v30  ;;  %v6764_v27 = vpop.xlane.xlu1 %6763  ;;  %v7338_v8 = vsel %vm7067_vm5, %v7337_v62, %v15347_v13  ;;  %v12777_v49 = vunpack.i.h.bf16 %v17728_v9  ;;  %v7342_v9 = vrot.slane %v15480_v28, 7  ;;  %v17736_v30 = vld [vmem:[#allocation22_spill] sm:$0xff]  ;;  %v17811_v18 = vld [vmem:[#allocation29_spill] sm:$0xff] }
 0x754   : > { %17731 = vst [vmem:[#allocation13_spill] sm:$0xff] %v15561_v10  ;;  %13369 = vpow2.f32 %v6705_v45  ;;  %v13362_v63 = vpop.eup %13361  ;;  %v6885_v7 = vsel %vm6326_vm3, %v15561_v10, 0.0  ;;  %v7340_v54 = vsel %vm7070_vm6, %v7339_v6, %v7338_v8  ;;  %v7405_v6 = vrot.slane %v15441_v55, 3 }
 0x755   : > { %17733 = vst [vmem:[#allocation73_spill] sm:$0xff] %v15568_v43  ;;  %13371 = vrcp.f32 %v6764_v27  ;;  %v8273_v34 = vpack.c.bf16 %v15568_v43, %v15564_v38  ;;  %v15593_v45 = vpop.xlane.xlu0 %6793  ;;  %v15602_v27 = vmul.f32 %v13362_v63, %v17736_v30 }
 0x756   : > { %13373 = vpow2.f32 %v6707_v36  ;;  %11796 = vmatmul.mubr.msk.bf16.vlgmr.msra.gmra.mxu1 %vm6326_vm3, %v8272_v11  ;;  %v12782_v36 = vunpack.i.h.bf16 %v17729_v40  ;;  %v17738_v11 = vld [vmem:[#allocation26_spill] sm:$0xff] }
 0x757   : > { %11802 = vmatmul.mubr.msk.bf16.vlgmr.msra.gmra.mxu0 %vm6326_vm3, %v8273_v34  ;;  %11806 = vmatpush3.bf16.msra.mxu1 %v8306_v51  ;;  %v6518_v21 = vpop.xlane.xlu1 %6517  ;;  %17737 = vst [vmem:[#allocation22_spill] sm:$0xff] %v15602_v27  ;;  %13375 = vrcp.f32 %v15436_v47  ;;  %v7341_v34 = vsel %vm7073_vm7, %v15462_v17, %v7340_v54  ;;  %v7407_v47 = vrot.slane %v15483_v46, 2 }
 0x758   : > { %11812 = vmatpush3.bf16.msra.mxu0 %v8307_v32  ;;  %6886 = vadd.xlane.f32.xlu0 %v6885_v7  ;;  %v6582_v37 = vsub.f32 %v17734_v15, %v6518_v21  ;;  %v15611_v51 = vsel %vm7076_vm8, %v7342_v9, %v7341_v34  ;;  %v8308_v32 = vpack.c.bf16 %v12782_v36, %v12777_v49  ;;  %v7409_v49 = vrot.slane %v15462_v17, 1  ;;  %v17742_v36 = vld [vmem:[#allocation20_spill] sm:$0xff]  ;;  %v17747_v34 = vld [vmem:[#allocation34_spill] sm:$0xff] }
 0x759   : > { %v15585_v57 = vpop.eup %13363  ;;  %11807 = vmatprep.mubr.msk.bf16.mxu1 %vm13534_vm1, %v17706_v5  ;;  %11817 = vmatprep.subr.bf16.mxu1 %v17706_v5  ;;  %17740 = vst [vmem:[#allocation74_spill] sm:$0xff] %v15611_v51  ;;  %v15618_v15 = vpop.xlane.xlu0 %6844 }
 0x75a   : > { %17735 = vst [vmem:[#allocation40_spill] sm:$0xff] %v15585_v57  ;;  %v13366_v44 = vpop.eup %13365  ;;  %v6709_v0 = vmul.f32 1.442695, %v6582_v37  ;;  %v6888_v13 = vsel %vm6326_vm3, %v15585_v57, 0.0  ;;  %11813 = vmatprep.mubr.msk.bf16.mxu0 %vm13534_vm1, %v17706_v5  ;;  %11823 = vmatprep.subr.bf16.mxu0 %v17706_v5  ;;  %v7406_v37 = vsel %vm7067_vm5, %v7405_v6, %v15350_v61  ;;  %v17745_v61 = vld [vmem:[#allocation51_spill] sm:$0xff] }
 0x75b   : > { %v15606_v40 = vmul.f32 %v13366_v44, %v17738_v11  ;;  %v6770_v62 = vpop.xlane.xlu1 %6769  ;;  %v7408_v54 = vsel %vm7070_vm6, %v7407_v47, %v7406_v37 }
 0x75c   : > { %13377 = vpow2.f32 %v6709_v0  ;;  %6889 = vadd.xlane.f32.xlu0 %v6888_v13  ;;  %v12815_v0 = vunpack.i.l.bf16 %v17742_v36  ;;  %v17743_v13 = vld [vmem:[#allocation21_spill] sm:$0xff]  ;;  %v7410_v47 = vsel %vm7073_vm7, %v7409_v49, %v7408_v54 }
 0x75d   : > { %17739 = vst [vmem:[#allocation26_spill] sm:$0xff] %v15606_v40  ;;  %13379 = vrcp.f32 %v6770_v62  ;;  %v8274_v63 = vpack.c.bf16 %v15606_v40, %v15602_v27  ;;  %v12820_v9 = vunpack.i.l.bf16 %v17743_v13  ;;  %v15648_v37 = vpop.xlane.xlu0 %6802 }
 0x75e   : > { %v13368_v21 = vpop.eup %13367 }
 0x75f   : > { %11808 = vmatmul.mubr.msk.bf16.vlgmr.msra.gmra.mxu1 %vm6326_vm3, %v8274_v63  ;;  %v6773_v7 = vpop.xlane.xlu1 %6772  ;;  %v15636_v62 = vmul.f32 %v13368_v21, %v17745_v61  ;;  %v8309_v51 = vpack.c.bf16 %v12820_v9, %v12815_v0  ;;  %v12818_v0 = vunpack.i.h.bf16 %v17742_v36  ;;  %v12823_v9 = vunpack.i.h.bf16 %v17743_v13 }
 0x760   : > { %11818 = vmatpush3.bf16.msra.mxu1 %v8308_v32  ;;  %11819 = vmatprep.mubr.msk.bf16.mxu1 %vm13534_vm1, %v17706_v5  ;;  %13381 = vrcp.f32 %v6773_v7  ;;  %v15644_v32 = vsel %vm7076_vm8, %v15480_v28, %v7410_v47  ;;  %v7477_v47 = vrot.slane %v15462_v17, 2 }
 0x761   : > { %v15624_v8 = vpop.eup %13369  ;;  %11829 = vmatprep.subr.bf16.mxu1 %v17706_v5  ;;  %17746 = vst [vmem:[#allocation21_spill] sm:$0xff] %v15636_v62  ;;  %17749 = vst [vmem:[#allocation34_spill] sm:$0xff] %v15644_v32 }
 0x762   : > { %17741 = vst [vmem:[#allocation75_spill] sm:$0xff] %v15624_v8  ;;  %v13372_v44 = vpop.eup %13371  ;;  %v6894_v30 = vsel %vm6326_vm3, %v15624_v8, 0.0 }
 0x763   : > { %v15633_v11 = vpop.eup %13373  ;;  %v15639_v6 = vmul.f32 %v13372_v44, %v17747_v34  ;;  %6895 = vadd.xlane.f32.xlu1 %v6894_v30  ;;  %v6776_v63 = vpop.xlane.xlu1 %6775  ;;  %v7473_v44 = vrot.slane %v15441_v55, 4  ;;  %v7475_v30 = vrot.slane %v15483_v46, 3 }
 0x764   : > { %17744 = vst [vmem:[#allocation20_spill] sm:$0xff] %v15633_v11  ;;  %13383 = vrcp.f32 %v6776_v63  ;;  %v6897_v21 = vsel %vm6326_vm3, %v15633_v11, 0.0  ;;  %v13376_v49 = vpop.eup %13375 }
 0x765   : > { %17748 = vst [vmem:[#allocation51_spill] sm:$0xff] %v15639_v6  ;;  %v8275_v7 = vpack.c.bf16 %v15639_v6, %v15636_v62  ;;  %v17753_v6 = vld [vmem:[#allocation25_spill] sm:$0xff]  ;;  %v15675_v62 = vpop.xlane.xlu0 %6847 }
 0x767   : > { %11814 = vmatmul.mubr.msk.bf16.vlgmr.msra.gmra.mxu0 %vm6326_vm3, %v8275_v7  ;;  %6898 = vadd.xlane.f32.xlu1 %v6897_v21  ;;  %v6779_v54 = vpop.xlane.xlu1 %6778  ;;  %v17751_v7 = vld [vmem:[#allocation32_spill] sm:$0xff] }
 0x768   : > { %11824 = vmatpush3.bf16.msra.mxu0 %v8309_v51  ;;  %11825 = vmatprep.mubr.msk.bf16.mxu0 %vm13534_vm1, %v17706_v5  ;;  %13385 = vrcp.f32 %v6779_v54  ;;  %v7474_v51 = vsel %vm7067_vm5, %v7473_v44, %v15353_v56  ;;  %v15668_v21 = vmul.f32 %v13376_v49, %v17751_v7  ;;  %v7479_v54 = vrot.slane %v15480_v28, 1 }
 0x769   : > { %v15657_v61 = vpop.eup %13377  ;;  %11835 = vmatprep.subr.bf16.mxu0 %v17706_v5  ;;  %v7476_v13 = vsel %vm7070_vm6, %v7475_v30, %v7474_v51  ;;  %v15698_v7 = vpop.xlane.xlu0 %6826 }
 0x76a   : > { %17750 = vst [vmem:[#allocation76_spill] sm:$0xff] %v15657_v61  ;;  %v13380_v34 = vpop.eup %13379  ;;  %v6900_v63 = vsel %vm6326_vm3, %v15657_v61, 0.0  ;;  %17752 = vst [vmem:[#allocation32_spill] sm:$0xff] %v15668_v21  ;;  %v7478_v20 = vsel %vm7073_vm7, %v7477_v47, %v7476_v13  ;;  %v17757_v47 = vld [vmem:[#allocation19_spill] sm:$0xff] }
 0x76b   : > { %v15671_v32 = vmul.f32 %v13380_v34, %v17753_v6  ;;  %6901 = vadd.xlane.f32.xlu1 %v6900_v63  ;;  %v6782_v36 = vpop.xlane.xlu1 %6781  ;;  %v15681_v44 = vsel %vm7076_vm8, %v7479_v54, %v7478_v20  ;;  %v8310_v6 = vpack.c.bf16 %v12823_v9, %v12818_v0  ;;  %v17756_v63 = vld [vmem:[#allocation18_spill] sm:$0xff]  ;;  %v12791_v20 = vunpack.i.l.bf16 %v17757_v47 }
 0x76c   : > { %13387 = vrcp.f32 %v6782_v36  ;;  %17755 = vst [vmem:[#allocation77_spill] sm:$0xff] %v15681_v44  ;;  %v12786_v51 = vunpack.i.l.bf16 %v17756_v63 }
 0x76d   : > { %17754 = vst [vmem:[#allocation25_spill] sm:$0xff] %v15671_v32  ;;  %v8276_v56 = vpack.c.bf16 %v15671_v32, %v15668_v21  ;;  %13389 = vrcp.f32 %v15396_v25  ;;  %v13382_v49 = vpop.eup %13381  ;;  %v17758_v25 = vld [vmem:[#allocation35_spill] sm:$0xff]  ;;  %v17771_v32 = vld [vmem:[#allocation41_spill] sm:$0xff] }
 0x76e   : > { %13391 = vrcp.f32 %v15593_v45  ;;  %v15693_v0 = vmul.f32 %v13382_v49, %v17758_v25  ;;  %v17760_v45 = vld [vmem:[#allocation44_spill] sm:$0xff]  ;;  %v8311_v54 = vpack.c.bf16 %v12791_v20, %v12786_v51  ;;  %v12789_v20 = vunpack.i.h.bf16 %v17756_v63 }
 0x76f   : > { %11820 = vmatmul.mubr.msk.bf16.vlgmr.msra.gmra.mxu1 %vm6326_vm3, %v8276_v56  ;;  %v6788_v30 = vpop.xlane.xlu1 %6787  ;;  %v7541_v56 = vrot.slane %v15441_v55, 5 }
 0x770   : > { %11830 = vmatpush3.bf16.msra.mxu1 %v8310_v6  ;;  %13393 = vrcp.f32 %v6788_v30  ;;  %11831 = vmatprep.mubr.msk.bf16.mxu1 %vm13534_vm1, %v17706_v5  ;;  %17759 = vst [vmem:[#allocation18_spill] sm:$0xff] %v15693_v0  ;;  %v7543_v6 = vrot.slane %v15483_v46, 4  ;;  %v7545_v30 = vrot.slane %v15462_v17, 3 }
 0x771   : > { %v13384_v34 = vpop.eup %13383  ;;  %11841 = vmatprep.subr.bf16.mxu1 %v17706_v5  ;;  %13395 = vrcp.f32 %v15529_v35 }
 0x772   : > { %v15696_v9 = vmul.f32 %v13384_v34, %v17760_v45  ;;  %13397 = vrcp.f32 %v15429_v22  ;;  %v7542_v22 = vsel %vm7067_vm5, %v7541_v56, %v15356_v23  ;;  %v6830_v34 = vpop.xlane.xlu0 %6829  ;;  %v17762_v23 = vld [vmem:[#allocation27_spill] sm:$0xff] }
 0x773   : > { %v6806_v36 = vpop.xlane.xlu1 %6805  ;;  %13399 = vrcp.f32 %v15410_v3  ;;  %v7544_v3 = vsel %vm7070_vm6, %v7543_v6, %v7542_v22  ;;  %v17767_v22 = vld [vmem:[#allocation48_spill] sm:$0xff] }
 0x774   : > { %17761 = vst [vmem:[#allocation19_spill] sm:$0xff] %v15696_v9  ;;  %v8277_v13 = vpack.c.bf16 %v15696_v9, %v15693_v0  ;;  %13401 = vrcp.f32 %v15454_v2  ;;  %v12794_v2 = vunpack.i.h.bf16 %v17757_v47  ;;  %v7546_v25 = vsel %vm7073_vm7, %v7545_v30, %v7544_v3  ;;  %v17768_v30 = vld [vmem:[#allocation53_spill] sm:$0xff] }
 0x775   : > { %v13386_v35 = vpop.eup %13385  ;;  %13403 = vrcp.f32 %v6806_v36  ;;  %v12832_v3 = vunpack.i.l.bf16 %v17768_v30 }
 0x776   : > { %11826 = vmatmul.mubr.msk.bf16.vlgmr.msra.gmra.mxu0 %vm6326_vm3, %v8277_v13  ;;  %13405 = vrcp.f32 %v15494_v53  ;;  %v15721_v45 = vmul.f32 %v13386_v35, %v17762_v23  ;;  %v17764_v13 = vld [vmem:[#allocation31_spill] sm:$0xff]  ;;  %v12827_v35 = vunpack.i.l.bf16 %v17767_v22  ;;  %v17769_v23 = vld [vmem:[#allocation52_spill] sm:$0xff] }
 0x777   : > { %11836 = vmatpush3.bf16.msra.mxu0 %v8311_v54  ;;  %v6809_v49 = vpop.xlane.xlu1 %6808  ;;  %11837 = vmatprep.mubr.msk.bf16.mxu0 %vm13534_vm1, %v17706_v5  ;;  %13407 = vrcp.f32 %v15648_v37  ;;  %v7547_v54 = vrot.slane %v15480_v28, 2 }
 0x778   : > { %11847 = vmatprep.subr.bf16.mxu0 %v17706_v5  ;;  %17763 = vst [vmem:[#allocation35_spill] sm:$0xff] %v15721_v45  ;;  %13409 = vrcp.f32 %v6830_v34 }
 0x779   : > { %v13388_v51 = vpop.eup %13387  ;;  %13411 = vrcp.f32 %v6809_v49  ;;  %v15730_v47 = vsel %vm7076_vm8, %v7547_v54, %v7546_v25  ;;  %v17773_v25 = vld [vmem:[#allocation24_spill] sm:$0xff] }
 0x77a   : > { %v15724_v36 = vmul.f32 %v13388_v51, %v17764_v13  ;;  %v13390_v56 = vpop.eup %13389  ;;  %17766 = vst [vmem:[#allocation27_spill] sm:$0xff] %v15730_v47  ;;  %v8312_v51 = vpack.c.bf16 %v12794_v2, %v12789_v20 }
 0x77b   : > { %v6815_v6 = vpop.xlane.xlu1 %6814  ;;  %v13392_v63 = vpop.eup %13391  ;;  %v15735_v13 = vmul.f32 %v13390_v56, %v17769_v23  ;;  %v12835_v56 = vunpack.i.h.bf16 %v17768_v30 }
 0x77c   : > { %17765 = vst [vmem:[#allocation44_spill] sm:$0xff] %v15724_v36  ;;  %v8278_v53 = vpack.c.bf16 %v15724_v36, %v15721_v45  ;;  %v15744_v54 = vmul.f32 %v13392_v63, %v17773_v25  ;;  %v17777_v25 = vld [vmem:[#allocation50_spill] sm:$0xff] }
 0x77d   : > { %v13394_v37 = vpop.eup %13393  ;;  %17770 = vst [vmem:[#allocation31_spill] sm:$0xff] %v15735_v13  ;;  %v12798_v47 = vunpack.i.l.bf16 %v17777_v25  ;;  %v17782_v45 = vld [vmem:[#allocation30_spill] sm:$0xff] }
 0x77e   : > { %v15738_v34 = vmul.f32 %v13394_v37, %v17771_v32  ;;  %11832 = vmatmul.mubr.msk.bf16.vlgmr.msra.gmra.mxu1 %vm6326_vm3, %v8278_v53  ;;  %v13396_v49 = vpop.eup %13395  ;;  %17774 = vst [vmem:[#allocation53_spill] sm:$0xff] %v15744_v54  ;;  %v12830_v32 = vunpack.i.h.bf16 %v17767_v22  ;;  %v8313_v53 = vpack.c.bf16 %v12832_v3, %v12827_v35  ;;  %v17775_v37 = vld [vmem:[#allocation23_spill] sm:$0xff] }
 0x77f   : > { %11842 = vmatpush3.bf16.msra.mxu1 %v8312_v51  ;;  %v6818_v36 = vpop.xlane.xlu1 %6817  ;;  %11843 = vmatprep.mubr.msk.bf16.mxu1 %vm13534_vm1, %v17706_v5  ;;  %v13398_v2 = vpop.eup %13397  ;;  %v15752_v51 = vmul.f32 %v13396_v49, %v17775_v37  ;;  %v17780_v3 = vld [vmem:[#allocation55_spill] sm:$0xff] }
 0x780   : > { %17772 = vst [vmem:[#allocation48_spill] sm:$0xff] %v15738_v34  ;;  %13413 = vrcp.f32 %v6818_v36  ;;  %v8279_v20 = vpack.c.bf16 %v15738_v34, %v15735_v13  ;;  %11853 = vmatprep.subr.bf16.mxu1 %v17706_v5  ;;  %v13400_v63 = vpop.eup %13399  ;;  %v17778_v34 = vld [vmem:[#allocation33_spill] sm:$0xff]  ;;  %v12839_v49 = vunpack.i.l.bf16 %v17780_v3  ;;  %v8314_v37 = vpack.c.bf16 %v12835_v56, %v12830_v32 }
 0x781   : > { %17776 = vst [vmem:[#allocation52_spill] sm:$0xff] %v15752_v51  ;;  %13415 = vrcp.f32 %v6815_v6  ;;  %v13402_v23 = vpop.eup %13401  ;;  %v15759_v22 = vmul.f32 %v13398_v2, %v17778_v34  ;;  %v8280_v35 = vpack.c.bf16 %v15744_v54, %v15752_v51  ;;  %v15767_v0 = vmul.f32 %v13400_v63, %v17782_v45  ;;  %v17784_v51 = vld [vmem:[#allocation43_spill] sm:$0xff] }
 0x782   : > { %11838 = vmatmul.mubr.msk.bf16.vlgmr.msra.gmra.mxu0 %vm6326_vm3, %v8279_v20  ;;  %v13404_v6 = vpop.eup %13403  ;;  %v17781_v20 = vld [vmem:[#allocation58_spill] sm:$0xff]  ;;  %v12842_v56 = vunpack.i.h.bf16 %v17780_v3  ;;  %13417 = vrcp.f32 %v15570_v12 }
 0x783   : > { %11848 = vmatpush3.bf16.msra.mxu0 %v8313_v53  ;;  %v12850_v36 = vpop.permute.xlu1 %12849  ;;  %11849 = vmatprep.mubr.msk.bf16.mxu0 %vm13534_vm1, %v17706_v5  ;;  %17779 = vst [vmem:[#allocation41_spill] sm:$0xff] %v15759_v22  ;;  %v12844_v53 = vunpack.i.l.bf16 %v17781_v20  ;;  %v13406_v9 = vpop.eup %13405  ;;  %17783 = vst [vmem:[#allocation24_spill] sm:$0xff] %v15767_v0  ;;  %v15773_v44 = vmul.f32 %v13404_v6, %v17784_v51  ;;  %v8281_v32 = vpack.c.bf16 %v15759_v22, %v15767_v0  ;;  %v17789_v6 = vld [vmem:[#allocation17_spill] sm:$0xff]  ;;  %v17790_v0 = vld [vmem:[#allocation16_spill] sm:$0xff] }
 0x784   : > { %v12851_v30 = vunpack.i.l.bf16 %v12850_v36  ;;  %11859 = vmatprep.subr.bf16.mxu0 %v17706_v5  ;;  %v13408_v34 = vpop.eup %13407  ;;  %v12852_v2 = vunpack.i.h.bf16 %v12850_v36  ;;  %v12847_v63 = vunpack.i.h.bf16 %v17781_v20  ;;  %v12767_v22 = vunpack.i.l.bf16 %v17789_v6 }
 0x785   : > { %v13410_v54 = vpop.eup %13409  ;;  %17785 = vst [vmem:[#allocation23_spill] sm:$0xff] %v15773_v44  ;;  %v8315_v36 = vpack.c.bf16 %v12844_v53, %v12839_v49  ;;  %v12762_v13 = vunpack.i.l.bf16 %v17790_v0  ;;  %v17793_v49 = vld [vmem:[#allocation49_spill] sm:$0xff] }
 0x786   : > { %v12853_v21 = vpack.i.bf16 %v12851_v30, %v12798_v47  ;;  %11844 = vmatmul.mubr.msk.bf16.vlgmr.msra.gmra.mxu1 %vm6326_vm3, %v8280_v35  ;;  %v13412_v45 = vpop.eup %13411  ;;  %v12799_v47 = vunpack.i.h.bf16 %v17777_v25  ;;  %v17786_v30 = vld [vmem:[#allocation37_spill] sm:$0xff]  ;;  %v15791_v25 = vmul.f32 %v13406_v9, %v17791_v42  ;;  %v8316_v42 = vpack.c.bf16 %v12847_v63, %v12842_v56 }
 0x787   : > { %11854 = vmatpush3.bf16.msra.mxu1 %v8314_v37  ;;  %11855 = vmatprep.mubr.msk.bf16.mxu1 %vm13534_vm1, %v17706_v5  ;;  %v15782_v35 = vmul.f32 %v13402_v23, %v17786_v30  ;;  %v17787_v37 = vld [vmem:[#allocation45_spill] sm:$0xff]  ;;  %v15799_v20 = vmul.f32 %v13412_v45, %v17793_v49 }
 0x788   : > { %11865 = vmatprep.subr.bf16.mxu1 %v17706_v5  ;;  %v15785_v51 = vmul.f32 %v13408_v34, %v17787_v37  ;;  %v12855_v3 = vpack.i.bf16 %v12852_v2, %v12799_v47  ;;  %v17795_v9 = vld [vmem:[#allocation57_spill] sm:$0xff]  ;;  %v7728_v45 = vrot.slane %v15791_v25, 7  ;;  %v7865_v56 = vrot.slane %v15791_v25, 1 }
 0x789   : > { %12854 = vxpose.xlu0.b32.start [1/2] (short) (narrow) %v12853_v21, 32  ;;  %v17792_v21 = vld [vmem:[#allocation46_spill] sm:$0xff]  ;;  %17794 = vst [vmem:[#allocation33_spill] sm:$0xff] %v15799_v20  ;;  %v7862_v30 = vrot.slane %v15782_v35, 3  ;;  %v8283_v63 = vpack.c.bf16 %v15782_v35, %v15799_v20 }
 0x78a   : > { %17788 = vst [vmem:[#allocation50_spill] sm:$0xff] %v15785_v51  ;;  %11850 = vmatmul.mubr.msk.bf16.vlgmr.msra.gmra.mxu0 %vm6326_vm3, %v8281_v32  ;;  %v15796_v23 = vmul.f32 %v13410_v54, %v17792_v21  ;;  %v8282_v53 = vpack.c.bf16 %v15773_v44, %v15785_v51  ;;  %v12877_v32 = vpack.i.bf16 %v12767_v22, %v12762_v13  ;;  %v7726_v54 = vrot.slane %v15782_v35, 1 }
 0x78b   : > { %11860 = vmatpush3.bf16.msra.mxu0 %v8315_v36  ;;  %11861 = vmatprep.mubr.msk.bf16.mxu0 %vm13534_vm1, %v17706_v5  ;;  %v7794_v36 = vrot.slane %v15782_v35, 2 }
 0x78c   : > { %11871 = vmatprep.subr.bf16.mxu0 %v17706_v5  ;;  %v7730_v22 = vrot.slane %v15796_v23, 6  ;;  %v7798_v21 = vrot.slane %v15796_v23, 7  ;;  %v8071_v51 = vrot.slane %v15796_v23, 3 }
 0x78d   : > { %v13414_v34 = vpop.eup %13413  ;;  %12856 = vxpose.xlu0.b32.end [2/2] (short) (narrow) %v12855_v3, 32 }
 0x78e   : > { %v15805_v2 = vmul.f32 %v13414_v34, %v17795_v9  ;;  %11856 = vmatmul.mubr.msk.bf16.vlgmr.msra.gmra.mxu1 %vm6326_vm3, %v8282_v53  ;;  %v13416_v47 = vpop.eup %13415  ;;  %v7930_v53 = vrot.slane %v15782_v35, 4  ;;  %v17796_v34 = vld [vmem:[#allocation54_spill] sm:$0xff] }
 0x78f   : > { %11866 = vmatpush3.bf16.msra.mxu1 %v8316_v42  ;;  %11867 = vmatprep.mubr.msk.bf16.mxu1 %vm13534_vm1, %v17706_v5  ;;  %v15827_v42 = vmul.f32 %v13416_v47, %v17796_v34  ;;  %v7933_v47 = vrot.slane %v15791_v25, 2  ;;  %v7935_v34 = vrot.slane %v15796_v23, 1 }
 0x790   : > { %11877 = vmatprep.subr.bf16.mxu1 %v17706_v5  ;;  %v7727_v13 = vsel %vm7064_vm4, %v15805_v2, %v7726_v54  ;;  %v7795_v37 = vrot.slane %v15805_v2, 1  ;;  %v7863_v49 = vrot.slane %v15805_v2, 2  ;;  %v7931_v44 = vrot.slane %v15805_v2, 3 }
 0x791   : > { %v7729_v3 = vsel %vm7067_vm5, %v7728_v45, %v7727_v13  ;;  %17797 = vst [vmem:[#allocation55_spill] sm:$0xff] %v15827_v42 }
 0x792   : > { %11862 = vmatmul.mubr.msk.bf16.vlgmr.msra.gmra.mxu0 %vm6326_vm3, %v8283_v63  ;;  %v15831_v9 = vsel %vm7070_vm6, %v7730_v22, %v7729_v3  ;;  %v7796_v54 = vsel %vm7064_vm4, %v7795_v37, %v7794_v36  ;;  %v7864_v13 = vsel %vm7064_vm4, %v7863_v49, %v7862_v30  ;;  %v8284_v63 = vpack.c.bf16 %v15805_v2, %v15827_v42 }
 0x793   : > { %11873 = vmatprep.mubr.msk.bf16.mxu0 %vm13534_vm1, %v17706_v5  ;;  %v7797_v45 = vsel %vm7067_vm5, %v15791_v25, %v7796_v54  ;;  %v7866_v36 = vsel %vm7067_vm5, %v7865_v56, %v7864_v13  ;;  %v7932_v37 = vsel %vm7064_vm4, %v7931_v44, %v7930_v53  ;;  %v12770_v3 = vunpack.i.h.bf16 %v17789_v6  ;;  %v17798_v53 = vld [vmem:[#allocation14_spill] sm:$0xff] }
 0x794   : > { %v15845_v22 = vsel %vm7070_vm6, %v7798_v21, %v7797_v45  ;;  %v12765_v54 = vunpack.i.h.bf16 %v17790_v0  ;;  %v15853_v30 = vsel %vm7070_vm6, %v15796_v23, %v7866_v36  ;;  %v7934_v49 = vsel %vm7067_vm5, %v7933_v47, %v7932_v37  ;;  %v17799_v45 = vld [vmem:[#allocation15_spill] sm:$0xff] }
 0x795   : > { %v15858_v21 = vsel %vm7070_vm6, %v7935_v34, %v7934_v49  ;;  %v7998_v56 = vrot.slane %v15782_v35, 5  ;;  %v7999_v44 = vrot.slane %v15805_v2, 4  ;;  %v12755_v6 = vunpack.i.h.bf16 %v17798_v53 }
 0x796   : > { %12878 = vxpose.xlu0.b32.start.end [1/1] (short) (narrow) %v12877_v32, 16  ;;  %11868 = vmatmul.mubr.msk.bf16.vlgmr.msra.gmra.mxu1 %vm6326_vm3, %v8284_v63  ;;  %v12760_v0 = vunpack.i.h.bf16 %v17799_v45  ;;  %v8001_v13 = vrot.slane %v15791_v25, 3  ;;  %v8003_v47 = vrot.slane %v15796_v23, 2  ;;  %v8066_v34 = vrot.slane %v15782_v35, 6 }
 0x797   : > { %11879 = vmatprep.mubr.msk.bf16.mxu1 %vm13534_vm1, %v17706_v5  ;;  %v8000_v32 = vsel %vm7064_vm4, %v7999_v44, %v7998_v56  ;;  %v8067_v63 = vrot.slane %v15805_v2, 5  ;;  %v12901_v36 = vpack.i.bf16 %v12770_v3, %v12765_v54  ;;  %v8069_v49 = vrot.slane %v15791_v25, 4 }
 0x798   : > { %v8002_v37 = vsel %vm7067_vm5, %v8001_v13, %v8000_v32  ;;  %v12889_v44 = vpack.i.bf16 %v12760_v0, %v12755_v6  ;;  %v8134_v42 = vrot.slane %v15782_v35, 7  ;;  %v8135_v3 = vrot.slane %v15805_v2, 6 }
 0x799   : > { %v8004_v53 = vsel %vm7070_vm6, %v8003_v47, %v8002_v37  ;;  %v8068_v45 = vsel %vm7064_vm4, %v8067_v63, %v8066_v34  ;;  %v8137_v54 = vrot.slane %v15791_v25, 5  ;;  %v8139_v32 = vrot.slane %v15796_v23, 4 }
 0x79a   : > { %v8070_v56 = vsel %vm7067_vm5, %v8069_v49, %v8068_v45  ;;  %v8136_v13 = vsel %vm7064_vm4, %v8135_v3, %v8134_v42  ;;  %v7066_v47 = vrot.slane %v15441_v55, 6  ;;  %v7069_v63 = vrot.slane %v15483_v46, 5 }
 0x79b   : > { %12902 = vxpose.xlu0.b32.start.end [1/1] (short) (narrow) %v12901_v36, 16  ;;  %v8072_v20 = vsel %vm7070_vm6, %v8071_v51, %v8070_v56  ;;  %v8138_v34 = vsel %vm7067_vm5, %v8137_v54, %v8136_v13  ;;  %v7072_v0 = vrot.slane %v15462_v17, 4  ;;  %v7075_v37 = vrot.slane %v15480_v28, 3  ;;  %v17801_v54 = vld [vmem:[#allocation42_spill] sm:$0xff] }
 0x79c   : > { %v8140_v6 = vsel %vm7070_vm6, %v8139_v32, %v8138_v34  ;;  %v7068_v51 = vsel %vm7067_vm5, %v7066_v47, %v15359_v58  ;;  %v7666_v55 = vrot.slane %v15805_v2, 7  ;;  %v7668_v46 = vrot.slane %v15791_v25, 6  ;;  %v13418_v2 = vpop.eup %13417 }
 0x79d   : > { %v7071_v36 = vsel %vm7070_vm6, %v7069_v63, %v7068_v51  ;;  %v7670_v58 = vrot.slane %v15796_v23, 5  ;;  %v15909_v13 = vmul.f32 %v13418_v2, %v17801_v54 }
 0x79e   : > { %12890 = vxpose.xlu1.b32.start.end [1/1] (short) (narrow) %v12889_v44, 16  ;;  %v7074_v42 = vsel %vm7073_vm7, %v7072_v0, %v7071_v36  ;;  %v7667_v45 = vsel %vm7064_vm4, %v7666_v55, %v15782_v35 }
 0x79f   : > { %v15894_v49 = vsel %vm7076_vm8, %v7075_v37, %v7074_v42  ;;  %v7669_v17 = vsel %vm7067_vm5, %v7668_v46, %v7667_v45  ;;  %v7732_v35 = vrot.slane %v15909_v13, 5  ;;  %v8005_v34 = vrot.slane %v15909_v13, 1 }
 0x7a0   : > { %17800 = vst [vmem:[#allocation58_spill] sm:$0xff] %v15894_v49  ;;  %v7671_v56 = vsel %vm7070_vm6, %v7670_v58, %v7669_v17  ;;  %v7800_v12 = vrot.slane %v15909_v13, 6  ;;  %v7868_v51 = vrot.slane %v15909_v13, 7 }
 0x7a1   : > { %v7733_v63 = vsel %vm7073_vm7, %v7732_v35, %v15831_v9  ;;  %v8006_v42 = vsel %vm7073_vm7, %v8005_v34, %v8004_v53  ;;  %v15956_v34 = vpop.xlane.xlu0 %6853 }
 0x7a2   : > { %v7869_v55 = vsel %vm7073_vm7, %v7868_v51, %v15853_v30  ;;  %v7672_v51 = vrot.slane %v15909_v13, 4 }
 0x7b4   : > { %v15903_v44 = vpop.xlane.xlu1 %6832 }
 0x7b8   : > { %v15906_v28 = vpop.xlane.xlu1 %6838 }
 0x7bc   : > { %v6842_v3 = vpop.xlane.xlu1 %6841 }
 0x7bd   : > { %13419 = vrcp.f32 %v6842_v3  ;;  %v8073_v3 = vrot.slane %v15909_v13, 2 }
 0x7be   : > { %13421 = vrcp.f32 %v15473_v19 }
 0x7bf   : > { %v8074_v2 = vsel %vm7073_vm7, %v8073_v3, %v8072_v20  ;;  %13423 = vrcp.f32 %v15698_v7 }
 0x7c0   : > { %13425 = vrcp.f32 %v15903_v44 }
 0x7c1   : > { %13427 = vrcp.f32 %v15906_v28 }
 0x7c2   : > { %13429 = vrcp.f32 %v15618_v15 }
 0x7c3   : > { %13431 = vrcp.f32 %v15675_v62 }
 0x7ca   : > { %v13420_v32 = vpop.eup %13419 }
 0x7cb   : > { %v15913_v47 = vmul.f32 %v13420_v32, %v15394_v39  ;;  %v7801_v39 = vsel %vm7073_vm7, %v7800_v12, %v15845_v22  ;;  %v7937_v22 = vsel %vm7073_vm7, %v15909_v13, %v15858_v21  ;;  %v13422_v1 = vpop.eup %13421 }
 0x7cd   : > { %v7734_v0 = vrot.slane %v15913_v47, 4  ;;  %v7802_v36 = vrot.slane %v15913_v47, 5  ;;  %v7870_v37 = vrot.slane %v15913_v47, 6  ;;  %v7938_v9 = vrot.slane %v15913_v47, 7 }
 0x7ce   : > { %v15931_v46 = vsel %vm7076_vm8, %v15913_v47, %v8006_v42  ;;  %v8075_v17 = vrot.slane %v15913_v47, 1  ;;  %v8143_v12 = vrot.slane %v15913_v47, 2  ;;  %v7674_v20 = vrot.slane %v15913_v47, 3 }
 0x7cf   : > { %17802 = vst [vmem:[#allocation30_spill] sm:$0xff] %v15931_v46  ;;  %v15934_v45 = vsel %vm7076_vm8, %v7734_v0, %v7733_v63  ;;  %v15937_v58 = vsel %vm7076_vm8, %v7802_v36, %v7801_v39  ;;  %v15940_v53 = vsel %vm7076_vm8, %v7870_v37, %v7869_v55  ;;  %v15946_v30 = vsel %vm7076_vm8, %v7938_v9, %v7937_v22  ;;  %v15972_v55 = vpop.xlane.xlu0 %6862  ;;  %v15976_v22 = vpop.xlane.xlu1 %6850 }
 0x7d0   : > { %17803 = vst [vmem:[#allocation43_spill] sm:$0xff] %v15934_v45  ;;  %17804 = vst [vmem:[#allocation37_spill] sm:$0xff] %v15937_v58  ;;  %v15954_v32 = vsel %vm7076_vm8, %v8075_v17, %v8074_v2  ;;  %v8141_v63 = vrot.slane %v15909_v13, 3  ;;  %v7673_v37 = vsel %vm7073_vm7, %v7672_v51, %v7671_v56  ;;  %13433 = vrcp.f32 %v15976_v22 }
 0x7d1   : > { %17805 = vst [vmem:[#allocation45_spill] sm:$0xff] %v15940_v53  ;;  %17806 = vst [vmem:[#allocation17_spill] sm:$0xff] %v15946_v30  ;;  %v15970_v39 = vsel %vm7076_vm8, %v7674_v20, %v7673_v37  ;;  %13435 = vrcp.f32 %v15956_v34 }
 0x7d2   : > { %17807 = vst [vmem:[#allocation16_spill] sm:$0xff] %v15954_v32  ;;  %v8142_v0 = vsel %vm7073_vm7, %v8141_v63, %v8140_v6  ;;  %17809 = vst [vmem:[#allocation46_spill] sm:$0xff] %v15970_v39 }
 0x7d3   : > { %v15966_v36 = vsel %vm7076_vm8, %v8143_v12, %v8142_v0  ;;  %v15978_v3 = vpop.xlane.xlu0 %6868 }
 0x7d4   : > { %17808 = vst [vmem:[#allocation39_spill] sm:$0xff] %v15966_v36 }
 0x7d7   : > { %v15951_v54 = vpop.f32.mrf.mxu0  ;;  %v15984_v63 = vpop.xlane.xlu0 %6871 }
 0x7d9   : > { %v11767_v35 = vpop.f32.mrf.mxu0 }
 0x7da   : > { %v15982_v35 = vpop.xlane.xlu1 %6856 }
 0x7db   : > { %v15959_v21 = vpop.f32.mrf.mxu0  ;;  %v15988_v12 = vpop.xlane.xlu0 %6877 }
 0x7dd   : > { %v11768_v42 = vpop.f32.mrf.mxu0 }
 0x7de   : > { %v15986_v56 = vpop.xlane.xlu1 %6859 }
 0x7df   : > { %v15992_v0 = vpop.xlane.xlu0 %6880  ;;  %13437 = vrcp.f32 %v15986_v56 }
 0x7e2   : > { %v15990_v51 = vpop.xlane.xlu1 %6865 }
 0x7e3   : > { %v15974_v9 = vpop.f32.mrf.mxu1  ;;  %v15996_v37 = vpop.xlane.xlu0 %6886  ;;  %13439 = vrcp.f32 %v15990_v51 }
 0x7e4   : > { %13441 = vrcp.f32 %v15972_v55 }
 0x7e5   : > { %v11773_v17 = vpop.f32.mrf.mxu1  ;;  %13443 = vrcp.f32 %v15982_v35 }
 0x7e6   : > { %v15994_v20 = vpop.xlane.xlu1 %6874  ;;  %13445 = vrcp.f32 %v15984_v63 }
 0x7e7   : > { %v15980_v6 = vpop.f32.mrf.mxu1  ;;  %v16000_v17 = vpop.xlane.xlu0 %6889  ;;  %13447 = vrcp.f32 %v15994_v20 }
 0x7e8   : > { %13449 = vrcp.f32 %v15978_v3 }
 0x7e9   : > { %v11774_v2 = vpop.f32.mrf.mxu1  ;;  %13451 = vrcp.f32 %v15988_v12 }
 0x7ea   : > { %v15998_v42 = vpop.xlane.xlu1 %6883  ;;  %13453 = vrcp.f32 %v15992_v0 }
 0x7ee   : > { %v16004_v49 = vpop.xlane.xlu1 %6892 }
 0x7f2   : > { %v16008_v30 = vpop.xlane.xlu1 %6895 }
 0x802   : > { %v16002_v2 = vpop.f32.mrf.mxu0 }
 0x804   : > { %v11779_v39 = vpop.f32.mrf.mxu0 }
 0x805   : > { %v12857_v36 = vpop.trf.xlu0 }
 0x806   : > { %v16006_v32 = vpop.f32.mrf.mxu0  ;;  %v12858_v40 = vunpack.i.l.bf16 %v12857_v36 }
 0x808   : > { %v11780_v46 = vpop.f32.mrf.mxu0 }
 0x809   : > { %v12862_v53 = vpop.trf.xlu0  ;;  %v16018_v46 = vpop.xlane.xlu1 %6898 }
 0x80a   : > { %v16010_v58 = vpop.f32.mrf.mxu0  ;;  %v12863_v45 = vunpack.i.l.bf16 %v12862_v53  ;;  %17810 = vst [vmem:[#allocation49_spill] sm:$0xff] %v16018_v46 }
 0x80c   : > { %v11791_v24 = vpop.f32.mrf.mxu0  ;;  %v12913_v43 = vpack.i.bf16 %v12863_v45, %v12858_v40  ;;  %v12866_v40 = vunpack.i.h.bf16 %v12862_v53 }
 0x80d   : > { %v12867_v39 = vpop.trf.xlu0  ;;  %v16024_v7 = vpop.xlane.xlu1 %6901 }
 0x80e   : > { %12914 = vxpose.xlu0.b32.start.end [1/1] (short) (narrow) %v12913_v43, 16  ;;  %v16014_v27 = vpop.f32.mrf.mxu1  ;;  %v16016_v4 = vpop.f32.mrf.mxu0  ;;  %v12868_v11 = vunpack.i.l.bf16 %v12867_v39 }
 0x810   : > { %v11785_v41 = vpop.f32.mrf.mxu1  ;;  %v11792_v52 = vpop.f32.mrf.mxu0 }
 0x811   : > { %v12872_v38 = vpop.trf.xlu0  ;;  %v12861_v52 = vunpack.i.h.bf16 %v12857_v36  ;;  %v16035_v36 = vmul.f32 %v13422_v1, %v17811_v18 }
 0x812   : > { %v16020_v48 = vpop.f32.mrf.mxu1  ;;  %v12873_v26 = vunpack.i.l.bf16 %v12872_v38  ;;  %v12876_v53 = vunpack.i.h.bf16 %v12872_v38  ;;  %v12871_v38 = vunpack.i.h.bf16 %v12867_v39 }
 0x813   : > { %v12937_v28 = vpack.i.bf16 %v12866_v40, %v12861_v52  ;;  %17812 = vst [vmem:[#allocation57_spill] sm:$0xff] %v16035_v36  ;;  %v8285_v1 = vpack.c.bf16 %v15791_v25, %v16035_v36 }
 0x814   : > { %v11786_v19 = vpop.f32.mrf.mxu1  ;;  %v12925_v24 = vpack.i.bf16 %v12873_v26, %v12868_v11  ;;  %v12949_v22 = vpack.i.bf16 %v12876_v53, %v12871_v38 }
 0x815   : > { %v12879_v43 = vpop.trf.xlu0  ;;  %v13424_v19 = vpop.eup %13423  ;;  %13455 = vrcp.f32 %v16000_v17 }
 0x816   : > { %12926 = vxpose.xlu0.b32.start.end [1/1] (short) (narrow) %v12925_v24, 16  ;;  %v16026_v45 = vpop.f32.mrf.mxu1  ;;  %v12883_v61 = vunpack.i.h.bf16 %v12879_v43  ;;  %v12880_v8 = vunpack.i.l.bf16 %v12879_v43  ;;  %v17813_v43 = vld [vmem:[#allocation36_spill] sm:$0xff] }
 0x817   : > { %v16028_v41 = vpop.f32.mrf.mxu0 }
 0x818   : > { %v11797_v44 = vpop.f32.mrf.mxu1 }
 0x819   : > { %v12884_v26 = vpop.trf.xlu0  ;;  %v11803_v11 = vpop.f32.mrf.mxu0  ;;  %v16041_v44 = vmul.f32 %v13424_v19, %v17813_v43 }
 0x81a   : > { %v12888_v10 = vunpack.i.h.bf16 %v12884_v26  ;;  %v12885_v24 = vunpack.i.l.bf16 %v12884_v26  ;;  %v16032_v50 = vpop.f32.mrf.mxu1  ;;  %v12891_v57 = vpop.trf.xlu1 }
 0x81b   : > { %12938 = vxpose.xlu0.b32.start.end [1/1] (short) (narrow) %v12937_v28, 16  ;;  %v16038_v15 = vpop.f32.mrf.mxu0  ;;  %17814 = vst [vmem:[#allocation54_spill] sm:$0xff] %v16041_v44  ;;  %v12895_v52 = vunpack.i.h.bf16 %v12891_v57  ;;  %v12892_v26 = vunpack.i.l.bf16 %v12891_v57  ;;  %v8286_v19 = vpack.c.bf16 %v15796_v23, %v16041_v44  ;;  %v13426_v57 = vpop.eup %13425  ;;  %13457 = vrcp.f32 %v15998_v42 }
 0x81c   : > { %v11798_v62 = vpop.f32.mrf.mxu1  ;;  %v8317_v11 = vpack.c.bf16 %v12885_v24, %v12880_v8  ;;  %v8318_v40 = vpack.c.bf16 %v12888_v10, %v12883_v61  ;;  %v13428_v23 = vpop.eup %13427  ;;  %13459 = vrcp.f32 %v15996_v37 }
 0x81d   : > { %v11804_v46 = vpop.f32.mrf.mxu0  ;;  %v12903_v18 = vpop.trf.xlu0  ;;  %v16056_v62 = vmul.f32 %v13426_v57, %v15374_v29 }
 0x81e   : > { %11872 = vmatpush3.bf16.msra.mxu0 %v8317_v11  ;;  %11878 = vmatpush3.bf16.msra.mxu1 %v8318_v40  ;;  %v12896_v28 = vpop.trf.xlu1  ;;  %v12904_v53 = vunpack.i.l.bf16 %v12903_v18  ;;  %v12907_v40 = vunpack.i.h.bf16 %v12903_v18 }
 0x81f   : > { %v8676_v43 = vpop.f32.mrf.mxu1  ;;  %v12900_v8 = vunpack.i.h.bf16 %v12896_v28  ;;  %v12897_v10 = vunpack.i.l.bf16 %v12896_v28  ;;  %11883 = vmatprep.subr.bf16.mxu0 %v17706_v5  ;;  %11889 = vmatprep.subr.bf16.mxu1 %v17706_v5  ;;  %17815 = vst [vmem:[#allocation14_spill] sm:$0xff] %v16056_v62 }
 0x820   : > { %v12988_v61 = vpack.i.bf16 %v8676_v43, %v16014_v27  ;;  %12950 = vxpose.xlu0.b32.start.end [1/1] (short) (narrow) %v12949_v22, 16  ;;  %v12961_v27 = vpack.i.bf16 %v16010_v58, %v15951_v54 }
 0x821   : > { %v11809_v25 = vpop.f32.mrf.mxu1  ;;  %11874 = vmatmul.mubr.msk.bf16.vlgmr.msra.gmra.mxu0 %vm6326_vm3, %v8285_v1  ;;  %11880 = vmatmul.mubr.msk.bf16.vlgmr.msra.gmra.mxu1 %vm6326_vm3, %v8286_v19  ;;  %v8319_v34 = vpack.c.bf16 %v12897_v10, %v12892_v26  ;;  %v8320_v39 = vpack.c.bf16 %v12900_v8, %v12895_v52  ;;  %v12908_v46 = vpop.trf.xlu0  ;;  %v16065_v1 = vmul.f32 %v13428_v23, %v15387_v14  ;;  %v17817_v10 = vld [vmem:[#allocation47_spill] sm:$0xff] }
 0x822   : > { %12989 = vxpose.xlu1.b32.start [1/2] (short) (narrow) %v12988_v61, 8  ;;  %11885 = vmatprep.mubr.msk.bf16.mxu0 %vm13534_vm1, %v17706_v5  ;;  %v12909_v24 = vunpack.i.l.bf16 %v12908_v46  ;;  %v12912_v38 = vunpack.i.h.bf16 %v12908_v46  ;;  %v13430_v26 = vpop.eup %13429  ;;  %v12963_v14 = vpack.i.bf16 %v16016_v4, %v15959_v21  ;;  %v12970_v4 = vpack.i.bf16 %v16026_v45, %v15974_v9  ;;  %v17819_v21 = vld [vmem:[#allocation28_spill] sm:$0xff] }
 0x823   : > { %v8679_v11 = vpop.f32.mrf.mxu1  ;;  %11884 = vmatpush3.bf16.msra.mxu0 %v8319_v34  ;;  %11890 = vmatpush3.bf16.msra.mxu1 %v8320_v39  ;;  %17816 = vst [vmem:[#allocation15_spill] sm:$0xff] %v16065_v1  ;;  %v13432_v58 = vpop.eup %13431  ;;  %v8288_v22 = vpack.c.bf16 %v15913_v47, %v16065_v1  ;;  %v16090_v61 = vmul.f32 %v13430_v26, %v17819_v21  ;;  %v17821_v25 = vld [vmem:[#allocation56_spill] sm:$0xff]  ;;  %13461 = vrcp.f32 %v16008_v30 }
 0x824   : > { %v12990_v52 = vpack.i.bf16 %v8679_v11, %v16020_v48  ;;  %11891 = vmatprep.mubr.msk.bf16.mxu1 %vm13534_vm1, %v17706_v5  ;;  %11895 = vmatprep.subr.bf16.mxu0 %v17706_v5  ;;  %v8321_v54 = vpack.c.bf16 %v12909_v24, %v12904_v53  ;;  %v8287_v48 = vpack.c.bf16 %v15909_v13, %v16056_v62  ;;  %v13434_v19 = vpop.eup %13433  ;;  %13463 = vrcp.f32 %v16024_v7 }
 0x825   : > { %v11810_v29 = vpop.f32.mrf.mxu1  ;;  %12962 = vxpose.xlu0.b32.start [1/2] (short) (narrow) %v12961_v27, 8  ;;  %11901 = vmatprep.subr.bf16.mxu1 %v17706_v5  ;;  %v8322_v28 = vpack.c.bf16 %v12912_v38, %v12907_v40  ;;  %v13436_v8 = vpop.eup %13435  ;;  %v16077_v57 = vmul.f32 %v13432_v58, %v17817_v10  ;;  %v16080_v13 = vmul.f32 %v13434_v19, %v15414_v33  ;;  %13465 = vrcp.f32 %v16004_v49 }
 0x826   : > { %12991 = vxpose.xlu1.b32.end [2/2] (short) (narrow) %v12990_v52, 8  ;;  %17820 = vst [vmem:[#allocation29_spill] sm:$0xff] %v16090_v61  ;;  %v16093_v34 = vmul.f32 %v13436_v8, %v17821_v25  ;;  %v12972_v45 = vpack.i.bf16 %v16032_v50, %v15980_v6  ;;  %v12979_v24 = vpack.i.bf16 %v16028_v41, %v16002_v2 }
 0x827   : > { %v8720_v18 = vpop.f32.mrf.mxu0  ;;  %17818 = vst [vmem:[#allocation42_spill] sm:$0xff] %v16080_v13  ;;  %v8289_v46 = vpack.c.bf16 %v16077_v57, %v16090_v61  ;;  %v12981_v50 = vpack.i.bf16 %v16038_v15, %v16006_v32 }
 0x828   : > { %v8290_v9 = vpack.c.bf16 %v16093_v34, %v16080_v13 }
 0x829   : > { %11886 = vmatmul.mubr.msk.bf16.vlgmr.msra.gmra.mxu0 %vm6326_vm3, %v8287_v48  ;;  %11892 = vmatmul.mubr.msk.bf16.vlgmr.msra.gmra.mxu1 %vm6326_vm3, %v8288_v22  ;;  %v11815_v43 = vpop.f32.mrf.mxu0 }
 0x82a   : > { %12964 = vxpose.xlu0.b32.end [2/2] (short) (narrow) %v12963_v14, 8  ;;  %11896 = vmatpush3.bf16.msra.mxu0 %v8321_v54 }
 0x82b   : > { %v8723_v47 = vpop.f32.mrf.mxu0  ;;  %11902 = vmatpush3.bf16.msra.mxu1 %v8322_v28  ;;  %11897 = vmatprep.mubr.msk.bf16.mxu0 %vm13534_vm1, %v17706_v5 }
 0x82c   : > { %11903 = vmatprep.mubr.msk.bf16.mxu1 %vm13534_vm1, %v17706_v5  ;;  %11907 = vmatprep.subr.bf16.mxu0 %v17706_v5 }
 0x82d   : > { %v11816_v33 = vpop.f32.mrf.mxu0  ;;  %11913 = vmatprep.subr.bf16.mxu1 %v17706_v5 }
 0x82e   : > { %12971 = vxpose.xlu0.b32.start [1/2] (short) (narrow) %v12970_v4, 8 }
 0x82f   : > { %v8764_v39 = vpop.f32.mrf.mxu1 }
 0x831   : > { %v11821_v23 = vpop.f32.mrf.mxu1  ;;  %11898 = vmatmul.mubr.msk.bf16.vlgmr.msra.gmra.mxu0 %vm6326_vm3, %v8289_v46  ;;  %11904 = vmatmul.mubr.msk.bf16.vlgmr.msra.gmra.mxu1 %vm6326_vm3, %v8290_v9 }
 0x832   : > { %12973 = vxpose.xlu0.b32.end [2/2] (short) (narrow) %v12972_v45, 8  ;;  %11909 = vmatprep.mubr.msk.bf16.mxu0 %vm13534_vm1, %v17706_v5 }
 0x833   : > { %v8767_v53 = vpop.f32.mrf.mxu1  ;;  %11915 = vmatprep.mubr.msk.bf16.mxu1 %vm13534_vm1, %v17706_v5 }
 0x835   : > { %v11822_v27 = vpop.f32.mrf.mxu1 }
 0x836   : > { %12980 = vxpose.xlu0.b32.start [1/2] (short) (narrow) %v12979_v24, 8  ;;  %v8808_v11 = vpop.f32.mrf.mxu0 }
 0x838   : > { %v11827_v6 = vpop.f32.mrf.mxu0 }
 0x83a   : > { %12982 = vxpose.xlu0.b32.end [2/2] (short) (narrow) %v12981_v50, 8  ;;  %v8811_v40 = vpop.f32.mrf.mxu0 }
 0x83c   : > { %v11828_v38 = vpop.f32.mrf.mxu0 }
 0x83e   : > { %v8852_v52 = vpop.f32.mrf.mxu1 }
 0x840   : > { %v11833_v26 = vpop.f32.mrf.mxu1 }
 0x841   : > { %v13438_v26 = vpop.eup %13437 }
 0x842   : > { %v8855_v29 = vpop.f32.mrf.mxu1  ;;  %v8896_v58 = vpop.f32.mrf.mxu0  ;;  %v16130_v63 = vmul.f32 %v13438_v26, %v15431_v59 }
 0x843   : > { %v12997_v54 = vpack.i.bf16 %v8896_v58, %v8720_v18 }
 0x844   : > { %v11834_v48 = vpop.f32.mrf.mxu1  ;;  %v11839_v22 = vpop.f32.mrf.mxu0 }
 0x845   : > { %12998 = vxpose.xlu0.b32.start [1/2] (short) (narrow) %v12997_v54, 8  ;;  %v17822_v22 = vld [vmem:[#allocation59_spill] sm:$0xff] }
 0x846   : > { %v8899_v28 = vpop.f32.mrf.mxu0  ;;  %v8940_v2 = vpop.f32.mrf.mxu1 }
 0x847   : > { %v12999_v41 = vpack.i.bf16 %v8899_v28, %v8723_v47  ;;  %v13006_v19 = vpack.i.bf16 %v8940_v2, %v8764_v39 }
 0x848   : > { %v11840_v14 = vpop.f32.mrf.mxu0  ;;  %v11845_v43 = vpop.f32.mrf.mxu1 }
 0x849   : > { %13007 = vxpose.xlu1.b32.start [1/2] (short) (narrow) %v13006_v19, 8  ;;  %13000 = vxpose.xlu0.b32.end [2/2] (short) (narrow) %v12999_v41, 8 }
 0x84a   : > { %v8943_v32 = vpop.f32.mrf.mxu1  ;;  %v8984_v15 = vpop.f32.mrf.mxu0 }
 0x84b   : > { %v13008_v8 = vpack.i.bf16 %v8943_v32, %v8767_v53  ;;  %v13015_v10 = vpack.i.bf16 %v8984_v15, %v8808_v11  ;;  %v17823_v15 = vld [vmem:[#allocation61_spill] sm:$0xff] }
 0x84c   : > { %v11846_v4 = vpop.f32.mrf.mxu1  ;;  %v11851_v21 = vpop.f32.mrf.mxu0 }
 0x84d   : > { %13009 = vxpose.xlu1.b32.end [2/2] (short) (narrow) %v13008_v8, 8  ;;  %13016 = vxpose.xlu0.b32.start [1/2] (short) (narrow) %v13015_v10, 8  ;;  %v17825_v21 = vld [vmem:[#allocation60_spill] sm:$0xff] }
 0x84e   : > { %v8987_v18 = vpop.f32.mrf.mxu0  ;;  %v9028_v25 = vpop.f32.mrf.mxu1 }
 0x84f   : > { %v13017_v33 = vpack.i.bf16 %v8987_v18, %v8811_v40  ;;  %v13024_v46 = vpack.i.bf16 %v9028_v25, %v8852_v52  ;;  %v17826_v25 = vld [vmem:[#allocation62_spill] sm:$0xff] }
 0x850   : > { %v11852_v9 = vpop.f32.mrf.mxu0  ;;  %v11857_v45 = vpop.f32.mrf.mxu1 }
 0x851   : > { %13025 = vxpose.xlu1.b32.start [1/2] (short) (narrow) %v13024_v46, 8  ;;  %13018 = vxpose.xlu0.b32.end [2/2] (short) (narrow) %v13017_v33, 8  ;;  %v17828_v46 = vld [vmem:[#allocation49_spill] sm:$0xff] }
 0x852   : > { %v9031_v47 = vpop.f32.mrf.mxu1  ;;  %v16112_v39 = vpop.f32.mrf.mxu0  ;;  %13467 = vrcp.f32 %v17828_v46  ;;  %v17840_v46 = vld [vmem:[#allocation20_spill] sm:$0xff] }
 0x853   : > { %v13026_v23 = vpack.i.bf16 %v9031_v47, %v8855_v29  ;;  %v13440_v29 = vpop.eup %13439 }
 0x854   : > { %v11858_v24 = vpop.f32.mrf.mxu1  ;;  %v11863_v27 = vpop.f32.mrf.mxu0  ;;  %v16133_v20 = vmul.f32 %v13440_v29, %v15471_v16  ;;  %v17830_v29 = vld [vmem:[#allocation40_spill] sm:$0xff] }
 0x855   : > { %13027 = vxpose.xlu1.b32.end [2/2] (short) (narrow) %v13026_v23, 8  ;;  %v13442_v58 = vpop.eup %13441 }
 0x856   : > { %v16114_v53 = vpop.f32.mrf.mxu0  ;;  %v16116_v11 = vpop.f32.mrf.mxu1  ;;  %v16138_v0 = vmul.f32 %v13442_v58, %v17822_v22 }
 0x857   : > { %v13444_v55 = vpop.eup %13443 }
 0x858   : > { %v11864_v50 = vpop.f32.mrf.mxu0  ;;  %v11869_v6 = vpop.f32.mrf.mxu1  ;;  %v16141_v28 = vmul.f32 %v13444_v55, %v15425_v60  ;;  %v8292_v42 = vpack.c.bf16 %v16133_v20, %v16138_v0 }
 0x859   : > { %v13446_v59 = vpop.eup %13445 }
 0x85a   : > { %v16118_v38 = vpop.f32.mrf.mxu1  ;;  %v8291_v16 = vpack.c.bf16 %v16130_v63, %v16141_v28  ;;  %v13448_v17 = vpop.eup %13447  ;;  %v16158_v8 = vmul.f32 %v13446_v59, %v17823_v15 }
 0x85b   : > { %v13450_v41 = vpop.eup %13449  ;;  %v16161_v30 = vmul.f32 %v13448_v17, %v15457_v31 }
 0x85c   : > { %v11870_v40 = vpop.f32.mrf.mxu1  ;;  %v13452_v14 = vpop.eup %13451  ;;  %17824 = vst [vmem:[#allocation36_spill] sm:$0xff] %v16158_v8  ;;  %v16166_v18 = vmul.f32 %v13450_v41, %v17825_v21  ;;  %v17839_v21 = vld [vmem:[#allocation69_spill] sm:$0xff] }
 0x85d   : > { %v16169_v33 = vmul.f32 %v13452_v14, %v17826_v25  ;;  %v13454_v45 = vpop.eup %13453  ;;  %v17835_v14 = vld [vmem:[#allocation75_spill] sm:$0xff] }
 0x85e   : > { %v8293_v31 = vpack.c.bf16 %v16158_v8, %v16166_v18  ;;  %v13456_v7 = vpop.eup %13455 }
 0x85f   : > { %17827 = vst [vmem:[#allocation47_spill] sm:$0xff] %v16169_v33  ;;  %v8294_v49 = vpack.c.bf16 %v16169_v33, %v16161_v30  ;;  %v13458_v47 = vpop.eup %13457  ;;  %v16188_v58 = vmul.f32 %v13456_v7, %v17830_v29 }
 0x860   : > { %v13460_v50 = vpop.eup %13459 }
 0x861   : > { %17831 = vst [vmem:[#allocation28_spill] sm:$0xff] %v16188_v58 }
 0x88a   : > { %v12915_v52 = vpop.trf.xlu0 }
 0x88b   : > { %v12919_v56 = vunpack.i.h.bf16 %v12915_v52  ;;  %v12916_v51 = vunpack.i.l.bf16 %v12915_v52  ;;  %v17829_v52 = vld [vmem:[#allocation71_spill] sm:$0xff] }
 0x88c   : > { %v16185_v26 = vmul.f32 %v13454_v45, %v17829_v52 }
 0x88e   : > { %v12920_v54 = vpop.trf.xlu0 }
 0x88f   : > { %v12924_v48 = vunpack.i.h.bf16 %v12920_v54  ;;  %v12921_v35 = vunpack.i.l.bf16 %v12920_v54  ;;  %v17832_v54 = vld [vmem:[#allocation8_spill] sm:$0xff] }
 0x890   : > { %v16191_v55 = vmul.f32 %v13458_v47, %v17832_v54 }
 0x891   : > { %v8323_v3 = vpack.c.bf16 %v12921_v35, %v12916_v51  ;;  %v8324_v12 = vpack.c.bf16 %v12924_v48, %v12919_v56  ;;  %v17834_v48 = vld [vmem:[#allocation13_spill] sm:$0xff] }
 0x892   : > { %v12927_v2 = vpop.trf.xlu0  ;;  %17833 = vst [vmem:[#allocation56_spill] sm:$0xff] %v16191_v55  ;;  %v16194_v35 = vmul.f32 %v13460_v50, %v17834_v48  ;;  %v8295_v22 = vpack.c.bf16 %v16191_v55, %v16185_v26 }
 0x893   : > { %11908 = vmatpush3.bf16.msra.mxu0 %v8323_v3  ;;  %11914 = vmatpush3.bf16.msra.mxu1 %v8324_v12  ;;  %v12931_v60 = vunpack.i.h.bf16 %v12927_v2  ;;  %v12928_v37 = vunpack.i.l.bf16 %v12927_v2  ;;  %v13462_v12 = vpop.eup %13461 }
 0x894   : > { %11919 = vmatprep.subr.bf16.mxu0 %v17706_v5  ;;  %11925 = vmatprep.subr.bf16.mxu1 %v17706_v5  ;;  %v8296_v2 = vpack.c.bf16 %v16188_v58, %v16194_v35  ;;  %v13464_v59 = vpop.eup %13463 }
 0x896   : > { %v12932_v19 = vpop.trf.xlu0  ;;  %11910 = vmatmul.mubr.msk.bf16.vlgmr.msra.gmra.mxu0 %vm6326_vm3, %v8291_v16  ;;  %11916 = vmatmul.mubr.msk.bf16.vlgmr.msra.gmra.mxu1 %vm6326_vm3, %v8292_v42  ;;  %v13466_v16 = vpop.eup %13465 }
 0x897   : > { %v12936_v43 = vunpack.i.h.bf16 %v12932_v19  ;;  %v12933_v32 = vunpack.i.l.bf16 %v12932_v19  ;;  %11921 = vmatprep.mubr.msk.bf16.mxu0 %vm13534_vm1, %v17706_v5  ;;  %11927 = vmatprep.mubr.msk.bf16.mxu1 %vm13534_vm1, %v17706_v5  ;;  %v16215_v25 = vmul.f32 %v13466_v16, %v17839_v21 }
 0x899   : > { %v8325_v10 = vpack.c.bf16 %v12933_v32, %v12928_v37  ;;  %v8326_v4 = vpack.c.bf16 %v12936_v43, %v12931_v60  ;;  %v13468_v60 = vpop.eup %13467  ;;  %v16209_v43 = vmul.f32 %v13462_v12, %v17835_v14  ;;  %v17837_v32 = vld [vmem:[#allocation76_spill] sm:$0xff] }
 0x89a   : > { %v12939_v9 = vpop.trf.xlu0  ;;  %v16212_v15 = vmul.f32 %v13464_v59, %v17837_v32 }
 0x89b   : > { %11920 = vmatpush3.bf16.msra.mxu0 %v8325_v10  ;;  %11926 = vmatpush3.bf16.msra.mxu1 %v8326_v4  ;;  %v12943_v23 = vunpack.i.h.bf16 %v12939_v9  ;;  %v12940_v24 = vunpack.i.l.bf16 %v12939_v9  ;;  %17836 = vst [vmem:[#allocation59_spill] sm:$0xff] %v16209_v43  ;;  %v16218_v9 = vmul.f32 %v13468_v60, %v17840_v46  ;;  %v8297_v45 = vpack.c.bf16 %v16209_v43, %v16215_v25  ;;  %v17876_v43 = vld [vmem:[#allocation50_spill] sm:$0xff] }
 0x89c   : > { %11931 = vmatprep.subr.bf16.mxu0 %v17706_v5  ;;  %11937 = vmatprep.subr.bf16.mxu1 %v17706_v5  ;;  %17838 = vst [vmem:[#allocation61_spill] sm:$0xff] %v16212_v15 }
 0x89e   : > { %v12944_v27 = vpop.trf.xlu0  ;;  %11922 = vmatmul.mubr.msk.bf16.vlgmr.msra.gmra.mxu0 %vm6326_vm3, %v8293_v31  ;;  %11928 = vmatmul.mubr.msk.bf16.vlgmr.msra.gmra.mxu1 %vm6326_vm3, %v8294_v49 }
 0x89f   : > { %v12948_v6 = vunpack.i.h.bf16 %v12944_v27  ;;  %v12945_v40 = vunpack.i.l.bf16 %v12944_v27  ;;  %11933 = vmatprep.mubr.msk.bf16.mxu0 %vm13534_vm1, %v17706_v5  ;;  %11939 = vmatprep.mubr.msk.bf16.mxu1 %vm13534_vm1, %v17706_v5 }
 0x8a1   : > { %v8327_v56 = vpack.c.bf16 %v12945_v40, %v12940_v24  ;;  %v8328_v51 = vpack.c.bf16 %v12948_v6, %v12943_v23 }
 0x8a2   : > { %v12951_v3 = vpop.trf.xlu0 }
 0x8a3   : > { %11932 = vmatpush3.bf16.msra.mxu0 %v8327_v56  ;;  %11938 = vmatpush3.bf16.msra.mxu1 %v8328_v51  ;;  %v12955_v42 = vunpack.i.h.bf16 %v12951_v3  ;;  %v12952_v17 = vunpack.i.l.bf16 %v12951_v3 }
 0x8a4   : > { %11943 = vmatprep.subr.bf16.mxu0 %v17706_v5  ;;  %11949 = vmatprep.subr.bf16.mxu1 %v17706_v5 }
 0x8a6   : > { %v12956_v41 = vpop.trf.xlu0  ;;  %11934 = vmatmul.mubr.msk.bf16.vlgmr.msra.gmra.mxu0 %vm6326_vm3, %v8295_v22  ;;  %11940 = vmatmul.mubr.msk.bf16.vlgmr.msra.gmra.mxu1 %vm6326_vm3, %v8296_v2 }
 0x8a7   : > { %v12960_v37 = vunpack.i.h.bf16 %v12956_v41  ;;  %v12957_v19 = vunpack.i.l.bf16 %v12956_v41  ;;  %11945 = vmatprep.mubr.msk.bf16.mxu0 %vm13534_vm1, %v17706_v5  ;;  %11951 = vmatprep.mubr.msk.bf16.mxu1 %vm13534_vm1, %v17706_v5  ;;  %v8298_v5 = vpack.c.bf16 %v16212_v15, %v16218_v9 }
 0x8a9   : > { %v8329_v10 = vpack.c.bf16 %v12957_v19, %v12952_v17  ;;  %v8330_v4 = vpack.c.bf16 %v12960_v37, %v12955_v42 }
 0x8aa   : > { %v16230_v59 = vpop.trf.xlu0 }
 0x8ab   : > { %11944 = vmatpush3.bf16.msra.mxu0 %v8329_v10  ;;  %11950 = vmatpush3.bf16.msra.mxu1 %v8330_v4  ;;  %v12992_v4 = vpop.trf.xlu1 }
 0x8ae   : > { %11946 = vmatmul.mubr.msk.bf16.vlgmr.msra.gmra.mxu0 %vm6326_vm3, %v8297_v45  ;;  %11952 = vmatmul.mubr.msk.bf16.vlgmr.msra.gmra.mxu1 %vm6326_vm3, %v8298_v5  ;;  %v16232_v60 = vpop.trf.xlu0 }
 0x8b2   : > { %v12983_v10 = vpop.trf.xlu0 }
 0x8c1   : > { %v13001_v21 = vpop.trf.xlu0 }
 0x8c5   : > { %v13010_v46 = vpop.trf.xlu1 }
 0x8c9   : > { %v13019_v45 = vpop.trf.xlu0 }
 0x8cd   : > { %v13028_v5 = vpop.trf.xlu1 }
 0x8e1   : > { %v9160_v31 = vpop.f32.mrf.mxu0  ;;  %v9204_v49 = vpop.f32.mrf.mxu1 }
 0x8e3   : > { %v11875_v7 = vpop.f32.mrf.mxu0  ;;  %v11881_v47 = vpop.f32.mrf.mxu1 }
 0x8e5   : > { %v9163_v23 = vpop.f32.mrf.mxu0  ;;  %v9207_v24 = vpop.f32.mrf.mxu1 }
 0x8e7   : > { %v11876_v27 = vpop.f32.mrf.mxu0  ;;  %v11882_v50 = vpop.f32.mrf.mxu1 }
 0x8e9   : > { %v9248_v6 = vpop.f32.mrf.mxu0  ;;  %v9292_v40 = vpop.f32.mrf.mxu1 }
 0x8ea   : > { %v13033_v52 = vpack.i.bf16 %v9248_v6, %v16112_v39  ;;  %v13042_v29 = vpack.i.bf16 %v9292_v40, %v16116_v11 }
 0x8eb   : > { %v11887_v56 = vpop.f32.mrf.mxu0  ;;  %v11893_v51 = vpop.f32.mrf.mxu1 }
 0x8ec   : > { %13043 = vxpose.xlu1.b32.start [1/2] (short) (narrow) %v13042_v29, 8  ;;  %13034 = vxpose.xlu0.b32.start [1/2] (short) (narrow) %v13033_v52, 8 }
 0x8ed   : > { %v9251_v54 = vpop.f32.mrf.mxu0  ;;  %v9295_v48 = vpop.f32.mrf.mxu1 }
 0x8ee   : > { %v13035_v3 = vpack.i.bf16 %v9251_v54, %v16114_v53  ;;  %v13044_v12 = vpack.i.bf16 %v9295_v48, %v16118_v38 }
 0x8ef   : > { %v11888_v22 = vpop.f32.mrf.mxu0  ;;  %v11894_v2 = vpop.f32.mrf.mxu1 }
 0x8f0   : > { %13045 = vxpose.xlu1.b32.end [2/2] (short) (narrow) %v13044_v12, 8  ;;  %13036 = vxpose.xlu0.b32.end [2/2] (short) (narrow) %v13035_v3, 8 }
 0x8f1   : > { %v9336_v16 = vpop.f32.mrf.mxu0  ;;  %v9380_v39 = vpop.f32.mrf.mxu1 }
 0x8f2   : > { %v13051_v42 = vpack.i.bf16 %v9336_v16, %v9160_v31  ;;  %v13060_v11 = vpack.i.bf16 %v9380_v39, %v9204_v49 }
 0x8f3   : > { %v11899_v17 = vpop.f32.mrf.mxu0  ;;  %v11905_v41 = vpop.f32.mrf.mxu1 }
 0x8f4   : > { %13061 = vxpose.xlu1.b32.start [1/2] (short) (narrow) %v13060_v11, 8  ;;  %13052 = vxpose.xlu0.b32.start [1/2] (short) (narrow) %v13051_v42, 8 }
 0x8f5   : > { %v9339_v37 = vpop.f32.mrf.mxu0  ;;  %v9383_v53 = vpop.f32.mrf.mxu1 }
 0x8f6   : > { %v13053_v19 = vpack.i.bf16 %v9339_v37, %v9163_v23  ;;  %v13062_v38 = vpack.i.bf16 %v9383_v53, %v9207_v24 }
 0x8f7   : > { %v11900_v14 = vpop.f32.mrf.mxu0  ;;  %v11906_v32 = vpop.f32.mrf.mxu1 }
 0x8f8   : > { %13063 = vxpose.xlu1.b32.end [2/2] (short) (narrow) %v13062_v38, 8  ;;  %13054 = vxpose.xlu0.b32.end [2/2] (short) (narrow) %v13053_v19, 8 }
 0x956   : > { %v9424_v31 = vpop.f32.mrf.mxu0  ;;  %v9468_v49 = vpop.f32.mrf.mxu1 }
 0x958   : > { %v11911_v7 = vpop.f32.mrf.mxu0  ;;  %v11917_v47 = vpop.f32.mrf.mxu1 }
 0x95a   : > { %v9427_v27 = vpop.f32.mrf.mxu0  ;;  %v9471_v50 = vpop.f32.mrf.mxu1 }
 0x95c   : > { %v11912_v6 = vpop.f32.mrf.mxu0  ;;  %v11918_v40 = vpop.f32.mrf.mxu1 }
 0x95e   : > { %v9512_v23 = vpop.f32.mrf.mxu0  ;;  %v9556_v24 = vpop.f32.mrf.mxu1 }
 0x960   : > { %v11923_v52 = vpop.f32.mrf.mxu0  ;;  %v11929_v29 = vpop.f32.mrf.mxu1 }
 0x962   : > { %v9515_v56 = vpop.f32.mrf.mxu0  ;;  %v9559_v51 = vpop.f32.mrf.mxu1 }
 0x964   : > { %v11924_v54 = vpop.f32.mrf.mxu0  ;;  %v11930_v48 = vpop.f32.mrf.mxu1 }
 0x966   : > { %v9600_v3 = vpop.f32.mrf.mxu0  ;;  %v9644_v12 = vpop.f32.mrf.mxu1 }
 0x967   : > { %v13069_v22 = vpack.i.bf16 %v9600_v3, %v9424_v31  ;;  %v13078_v2 = vpack.i.bf16 %v9644_v12, %v9468_v49  ;;  %v17843_v3 = vld [vmem:[#allocation72_spill] sm:$0xff] }
 0x968   : > { %v11935_v16 = vpop.f32.mrf.mxu0  ;;  %v11941_v39 = vpop.f32.mrf.mxu1  ;;  %v7140_v12 = vrot.slane %v17843_v3, 3 }
 0x969   : > { %13079 = vxpose.xlu1.b32.start [1/2] (short) (narrow) %v13078_v2, 8  ;;  %13070 = vxpose.xlu0.b32.start [1/2] (short) (narrow) %v13069_v22, 8  ;;  %v13037_v42 = vpop.trf.xlu0  ;;  %v13046_v11 = vpop.trf.xlu1  ;;  %v17844_v22 = vld [vmem:[#allocation5_spill] sm:$0xff] }
 0x96a   : > { %v9603_v17 = vpop.f32.mrf.mxu0  ;;  %v9647_v41 = vpop.f32.mrf.mxu1  ;;  %v17848_v16 = vld [vmem:[#allocation73_spill] sm:$0xff] }
 0x96b   : > { %v13071_v37 = vpack.i.bf16 %v9603_v17, %v9427_v27  ;;  %v13080_v53 = vpack.i.bf16 %v9647_v41, %v9471_v50  ;;  %v7708_v39 = vrot.slane %v17848_v16, 3  ;;  %v17850_v41 = vld [vmem:[#allocation26_spill] sm:$0xff] }
 0x96c   : > { %v11936_v19 = vpop.f32.mrf.mxu0  ;;  %v11942_v38 = vpop.f32.mrf.mxu1 }
 0x96d   : > { %13081 = vxpose.xlu1.b32.end [2/2] (short) (narrow) %v13080_v53, 8  ;;  %13072 = vxpose.xlu0.b32.end [2/2] (short) (narrow) %v13071_v37, 8  ;;  %v7710_v37 = vrot.slane %v17850_v41, 2  ;;  %v17851_v53 = vld [vmem:[#allocation55_spill] sm:$0xff] }
 0x96e   : > { %v9688_v14 = vpop.f32.mrf.mxu0  ;;  %v9732_v32 = vpop.f32.mrf.mxu1  ;;  %v7227_v19 = vrot.slane %v17851_v53, 1 }
 0x96f   : > { %v13087_v7 = vpack.i.bf16 %v9688_v14, %v9512_v23  ;;  %v13096_v47 = vpack.i.bf16 %v9732_v32, %v9556_v24  ;;  %v17841_v23 = vld [vmem:[#allocation7_spill] sm:$0xff]  ;;  %v17852_v14 = vld [vmem:[#allocation33_spill] sm:$0xff] }
 0x970   : > { %v11953_v31 = vpop.f32.mrf.mxu1  ;;  %v11947_v49 = vpop.f32.mrf.mxu0  ;;  %v7700_v24 = vrot.slane %v17841_v23, 7  ;;  %v7226_v32 = vrot.slane %v17852_v14, 2 }
 0x971   : > { %13097 = vxpose.xlu1.b32.start [1/2] (short) (narrow) %v13096_v47, 8  ;;  %13088 = vxpose.xlu0.b32.start [1/2] (short) (narrow) %v13087_v7, 8  ;;  %v13055_v6 = vpop.trf.xlu0  ;;  %v13064_v40 = vpop.trf.xlu1  ;;  %v7736_v47 = vrot.slane %v16077_v57, 3 }
 0x972   : > { %v9691_v52 = vpop.f32.mrf.mxu0  ;;  %v9735_v29 = vpop.f32.mrf.mxu1  ;;  %v7228_v49 = vsel %vm7064_vm4, %v7227_v19, %v7226_v32 }
 0x973   : > { %v13089_v54 = vpack.i.bf16 %v9691_v52, %v9515_v56  ;;  %v13098_v48 = vpack.i.bf16 %v9735_v29, %v9559_v51  ;;  %v17842_v56 = vld [vmem:[#allocation9_spill] sm:$0xff]  ;;  %v7738_v52 = vrot.slane %v16093_v34, 2  ;;  %v7208_v29 = vrot.slane %v17843_v3, 4 }
 0x974   : > { %v11954_v27 = vpop.f32.mrf.mxu1  ;;  %v11948_v50 = vpop.f32.mrf.mxu0  ;;  %v7702_v51 = vrot.slane %v17842_v56, 6 }
 0x975   : > { %13099 = vxpose.xlu1.b32.end [2/2] (short) (narrow) %v13098_v48, 8  ;;  %13090 = vxpose.xlu0.b32.end [2/2] (short) (narrow) %v13089_v54, 8  ;;  %v7229_v54 = vsel %vm7067_vm5, %v16035_v36, %v7228_v49  ;;  %v7232_v48 = vrot.slane %v16056_v62, 6  ;;  %v7230_v50 = vrot.slane %v16041_v44, 7  ;;  %v7778_v49 = vrot.slane %v17850_v41, 3 }
 0x979   : > { %13106 = vxpose.xlu0.b32.start [1/4] (short) (narrow) %v16230_v59, 16  ;;  %13124 = vxpose.xlu1.b32.start [1/4] (short) (narrow) %v13001_v21, 16  ;;  %v7701_v59 = vsel %vm7067_vm5, %v7700_v24, %v17844_v22  ;;  %v17846_v21 = vld [vmem:[#allocation6_spill] sm:$0xff]  ;;  %v7234_v24 = vrot.slane %v16065_v1, 5 }
 0x97a   : > { %v7772_v19 = vrot.slane %v17846_v21, 6 }
 0x97d   : > { %13108 = vxpose.xlu0.b32.cont [2/4] (short) (narrow) %v16232_v60, 16  ;;  %13126 = vxpose.xlu1.b32.cont [2/4] (short) (narrow) %v13010_v46, 16  ;;  %v7703_v60 = vsel %vm7070_vm6, %v7702_v51, %v7701_v59  ;;  %v7704_v46 = vrot.slane %v17846_v21, 5  ;;  %v7770_v51 = vrot.slane %v17842_v56, 7 }
 0x97f   : > { %v7705_v2 = vsel %vm7073_vm7, %v7704_v46, %v7703_v60  ;;  %v7231_v60 = vsel %vm7070_vm6, %v7230_v50, %v7229_v54 }
 0x981   : > { %13110 = vxpose.xlu0.b32.cont [3/4] (short) (narrow) %v12983_v10, 16  ;;  %13128 = vxpose.xlu1.b32.cont [3/4] (short) (narrow) %v13019_v45, 16  ;;  %v17845_v10 = vld [vmem:[#allocation67_spill] sm:$0xff]  ;;  %v17847_v45 = vld [vmem:[#allocation22_spill] sm:$0xff] }
 0x982   : > { %v7210_v59 = vrot.slane %v17847_v45, 3 }
 0x985   : > { %13112 = vxpose.xlu0.b32.end [4/4] (short) (narrow) %v12992_v4, 16  ;;  %13130 = vxpose.xlu1.b32.end [4/4] (short) (narrow) %v13028_v5, 16  ;;  %v7141_v4 = vsel %vm7079_vm9, %v7140_v12, %v17845_v10  ;;  %v7142_v5 = vrot.slane %v17847_v45, 2  ;;  %v17854_v12 = vld [vmem:[#allocation68_spill] sm:$0xff]  ;;  %v7233_v10 = vsel %vm7073_vm7, %v7232_v48, %v7231_v60  ;;  %v7804_v48 = vrot.slane %v16077_v57, 4 }
 0x986   : > { %v7209_v22 = vsel %vm7079_vm9, %v7208_v29, %v17854_v12  ;;  %v7294_v29 = vrot.slane %v17852_v14, 3  ;;  %v7297_v12 = vrot.slane %v16035_v36, 1 }
 0x989   : > { %13142 = vxpose.xlu0.b32.start [1/4] (short) (narrow) %v13037_v42, 16  ;;  %v7143_v42 = vsel %vm7082_vm10, %v7142_v5, %v7141_v4  ;;  %v17855_v4 = vld [vmem:[#allocation38_spill] sm:$0xff]  ;;  %v7211_v5 = vsel %vm7082_vm10, %v7210_v59, %v7209_v22  ;;  %v7806_v22 = vrot.slane %v16093_v34, 3  ;;  %v7276_v59 = vrot.slane %v17843_v3, 5 }
 0x98a   : > { %v7769_v46 = vsel %vm7067_vm5, %v17841_v23, %v17855_v4  ;;  %v7837_v4 = vrot.slane %v17841_v23, 1 }
 0x98d   : > { %13144 = vxpose.xlu0.b32.cont [2/4] (short) (narrow) %v13046_v11, 16  ;;  %v17849_v11 = vld [vmem:[#allocation70_spill] sm:$0xff] }
 0x98e   : > { %v7706_v17 = vrot.slane %v17849_v11, 4 }
 0x990   : > { %v7707_v38 = vsel %vm7076_vm8, %v7706_v17, %v7705_v2  ;;  %v7235_v2 = vsel %vm7076_vm8, %v7234_v24, %v7233_v10  ;;  %v13179_v17 = vld [vmem:[%s17414_s5 + $0x8] sm:$0xff]   ;;  %v17856_v24 = vld [vmem:[#allocation37_spill] sm:$0xff]  ;;  %v7300_v10 = vrot.slane %v16056_v62, 7 }
 0x991   : > { %13146 = vxpose.xlu0.b32.cont [3/4] (short) (narrow) %v13055_v6, 16  ;;  %v7709_v7 = vsel %vm7079_vm9, %v7708_v39, %v7707_v38  ;;  %v17853_v6 = vld [vmem:[#allocation43_spill] sm:$0xff]  ;;  %v7238_v39 = vrot.slane %v16080_v13, 3  ;;  %11955 = vmatprep.subr.bf16.mxu0 %v13179_v17 }
 0x992   : > { %v7711_v31 = vsel %vm7082_vm10, %v7710_v37, %v7709_v7  ;;  %v7236_v37 = vrot.slane %v16090_v61, 4  ;;  %v7776_v7 = vrot.slane %v17848_v16, 4  ;;  %11956 = vmatpush3.bf16.msra.mxu0 %v13179_v17  ;;  %v7278_v17 = vrot.slane %v17847_v45, 4 }
 0x994   : > { %v7237_v38 = vsel %vm7079_vm9, %v7236_v37, %v7235_v2  ;;  %v17857_v2 = vld [vmem:[#allocation12_spill] sm:$0xff] }
 0x995   : > { %13148 = vxpose.xlu0.b32.end [4/4] (short) (narrow) %v13064_v40, 16  ;;  %v7737_v40 = vsel %vm7079_vm9, %v7736_v47, %v17853_v6  ;;  %v7239_v47 = vsel %vm7082_vm10, %v7238_v39, %v7237_v38  ;;  %v7295_v6 = vrot.slane %v17851_v53, 2  ;;  %v7277_v39 = vsel %vm7079_vm9, %v7276_v59, %v17857_v2 }
 0x996   : > { %v7739_v27 = vsel %vm7082_vm10, %v7738_v52, %v7737_v40  ;;  %v13180_v40 = vld [vmem:[%s17414_s5] sm:$0xff]   ;;  %v7842_v2 = vrot.slane %v17849_v11, 6 }
 0x997   : > { %11957 = vmatprep.subr.bf16.mxu0 %v13180_v40  ;;  %v7296_v50 = vsel %vm7064_vm4, %v7295_v6, %v7294_v29  ;;  %v7279_v6 = vsel %vm7082_vm10, %v7278_v17, %v7277_v39  ;;  %v7846_v39 = vrot.slane %v17850_v41, 4  ;;  %v7362_v17 = vrot.slane %v17852_v14, 4 }
 0x998   : > { %11958 = vmatpush3.bf16.msra.mxu0 %v13180_v40  ;;  %v7298_v60 = vsel %vm7067_vm5, %v7297_v12, %v7296_v50  ;;  %v7412_v50 = vrot.slane %v17843_v3, 7 }
 0x999   : > { %v7299_v37 = vsel %vm7070_vm6, %v16041_v44, %v7298_v60 }
 0x9be   : > { %7186 = vrot.lane.b32.xlu0 %v7143_v42, %s13535_s28  ;;  %v7771_v42 = vsel %vm7070_vm6, %v7770_v51, %v7769_v46  ;;  %v7805_v51 = vsel %vm7079_vm9, %v7804_v48, %v17856_v24  ;;  %v7344_v48 = vrot.slane %v17843_v3, 6  ;;  %v7363_v24 = vrot.slane %v17851_v53, 3 }
 0x9bf   : > { %v7773_v32 = vsel %vm7073_vm7, %v7772_v19, %v7771_v42  ;;  %v7807_v46 = vsel %vm7082_vm10, %v7806_v22, %v7805_v51  ;;  %v7840_v42 = vrot.slane %v17846_v21, 7  ;;  %v7977_v19 = vrot.slane %v17846_v21, 1 }
 0x9c0   : > { %v7907_v51 = vrot.slane %v17842_v56, 1  ;;  %v8047_v22 = vrot.slane %v17849_v11, 1 }
 0x9c2   : > { %7754 = vrot.lane.b32.xlu0 %v7711_v31, %s13535_s28  ;;  %v7774_v31 = vrot.slane %v17849_v11, 5 }
 0x9c4   : > { %v7775_v52 = vsel %vm7076_vm8, %v7774_v31, %v7773_v32  ;;  %v7301_v32 = vsel %vm7073_vm7, %v7300_v10, %v7299_v37  ;;  %v7844_v10 = vrot.slane %v17848_v16, 5  ;;  %v17860_v37 = vld [vmem:[#allocation11_spill] sm:$0xff] }
 0x9c5   : > { %v7777_v54 = vsel %vm7079_vm9, %v7776_v7, %v7775_v52  ;;  %v17858_v7 = vld [vmem:[#allocation10_spill] sm:$0xff]  ;;  %v7306_v52 = vrot.slane %v16080_v13, 4 }
 0x9c6   : > { %7758 = vrot.lane.b32.xlu0 %v7739_v27, %s13535_s28  ;;  %v7779_v27 = vsel %vm7082_vm10, %v7778_v49, %v7777_v54  ;;  %v7304_v54 = vrot.slane %v16090_v61, 5 }
 0x9ca   : > { %7254 = vrot.lane.b32.xlu0 %v7211_v5, %s13536_s16  ;;  %v7302_v5 = vrot.slane %v16065_v1, 6 }
 0x9cc   : > { %v7303_v40 = vsel %vm7076_vm8, %v7302_v5, %v7301_v32 }
 0x9cd   : > { %v7305_v59 = vsel %vm7079_vm9, %v7304_v54, %v7303_v40  ;;  %v7364_v40 = vsel %vm7064_vm4, %v7363_v24, %v7362_v17 }
 0x9ce   : > { %7258 = vrot.lane.b32.xlu0 %v7239_v47, %s13536_s16  ;;  %v7838_v47 = vsel %vm7067_vm5, %v7837_v4, %v17858_v7  ;;  %v17859_v4 = vld [vmem:[#allocation21_spill] sm:$0xff]  ;;  %v7307_v5 = vsel %vm7082_vm10, %v7306_v52, %v7305_v59  ;;  %v7973_v7 = vrot.slane %v17841_v23, 3  ;;  %v7872_v59 = vrot.slane %v16077_v57, 5 }
 0x9cf   : > { %v7839_v29 = vsel %vm7070_vm6, %v17842_v56, %v7838_v47  ;;  %v7910_v47 = vrot.slane %v17849_v11, 7 }
 0x9d0   : > { %v7841_v60 = vsel %vm7073_vm7, %v7840_v42, %v7839_v29  ;;  %v7367_v29 = vrot.slane %v16041_v44, 1  ;;  %v7370_v42 = vrot.slane %v16065_v1, 7 }
 0x9d2   : > { %7822 = vrot.lane.b32.xlu0 %v7779_v27, %s13536_s16  ;;  %v7905_v27 = vrot.slane %v17841_v23, 2 }
 0x9d4   : > { %v7906_v32 = vsel %vm7067_vm5, %v7905_v27, %v17860_v37  ;;  %v7365_v27 = vrot.slane %v16035_v36, 2 }
 0x9d5   : > { %v7908_v52 = vsel %vm7070_vm6, %v7907_v51, %v7906_v32  ;;  %v17862_v51 = vld [vmem:[#allocation45_spill] sm:$0xff]  ;;  %v17863_v32 = vld [vmem:[#allocation63_spill] sm:$0xff] }
 0x9d6   : > { %7826 = vrot.lane.b32.xlu0 %v7807_v46, %s13536_s16  ;;  %v7909_v17 = vsel %vm7073_vm7, %v17846_v21, %v7908_v52  ;;  %v7975_v52 = vrot.slane %v17842_v56, 2 }
 0x9d7   : > { %v7911_v31 = vsel %vm7076_vm8, %v7910_v47, %v7909_v17  ;;  %v7372_v47 = vrot.slane %v16090_v61, 6  ;;  %v7914_v17 = vrot.slane %v17850_v41, 5 }
 0x9da   : > { %7322 = vrot.lane.b32.xlu0 %v7279_v6, %s13537_s24  ;;  %v7843_v6 = vsel %vm7076_vm8, %v7842_v2, %v7841_v60  ;;  %v8041_v60 = vrot.slane %v17841_v23, 4  ;;  %v7873_v2 = vsel %vm7079_vm9, %v7872_v59, %v17862_v51  ;;  %v7912_v59 = vrot.slane %v17848_v16, 6 }
 0x9db   : > { %v7845_v54 = vsel %vm7079_vm9, %v7844_v10, %v7843_v6  ;;  %v7366_v10 = vsel %vm7067_vm5, %v7365_v27, %v7364_v40  ;;  %v7974_v6 = vsel %vm7067_vm5, %v7973_v7, %v17863_v32  ;;  %v7414_v40 = vrot.slane %v17847_v45, 6 }
 0x9dc   : > { %v7847_v49 = vsel %vm7082_vm10, %v7846_v39, %v7845_v54  ;;  %v7874_v39 = vrot.slane %v16093_v34, 4  ;;  %v7346_v54 = vrot.slane %v17847_v45, 5  ;;  %v7368_v32 = vsel %vm7070_vm6, %v7367_v29, %v7366_v10 }
 0x9dd   : > { %v7976_v12 = vsel %vm7070_vm6, %v7975_v52, %v7974_v6  ;;  %v8043_v29 = vrot.slane %v17842_v56, 3  ;;  %v7482_v10 = vrot.slane %v17847_v45, 7  ;;  %v17865_v6 = vld [vmem:[#allocation34_spill] sm:$0xff]  ;;  %v7433_v52 = vrot.slane %v16035_v36, 3 }
 0x9de   : > { %7326 = vrot.lane.b32.xlu0 %v7307_v5, %s13537_s24  ;;  %v17861_v5 = vld [vmem:[#allocation31_spill] sm:$0xff]  ;;  %v7875_v7 = vsel %vm7082_vm10, %v7874_v39, %v7873_v2  ;;  %v7374_v2 = vrot.slane %v16080_v13, 5  ;;  %v7431_v39 = vrot.slane %v17851_v53, 4 }
 0x9e2   : > { %7890 = vrot.lane.b32.xlu0 %v7847_v49, %s13537_s24  ;;  %v17864_v49 = vld [vmem:[#allocation74_spill] sm:$0xff] }
 0x9e3   : > { %v7345_v24 = vsel %vm7079_vm9, %v7344_v48, %v17864_v49  ;;  %v7369_v49 = vsel %vm7073_vm7, %v16056_v62, %v7368_v32 }
 0x9e4   : > { %v7347_v48 = vsel %vm7082_vm10, %v7346_v54, %v7345_v24  ;;  %v7371_v37 = vsel %vm7076_vm8, %v7370_v42, %v7369_v49  ;;  %v7913_v24 = vsel %vm7079_vm9, %v7912_v59, %v7911_v31  ;;  %v7413_v42 = vsel %vm7079_vm9, %v7412_v50, %v17865_v6  ;;  %v17866_v59 = vld [vmem:[#allocation64_spill] sm:$0xff] }
 0x9e5   : > { %v13073_v27 = vpop.trf.xlu0  ;;  %v13082_v51 = vpop.trf.xlu1  ;;  %v7430_v54 = vrot.slane %v17852_v14, 5  ;;  %v7980_v31 = vrot.slane %v17848_v16, 7  ;;  %v8042_v32 = vsel %vm7067_vm5, %v8041_v60, %v17866_v59  ;;  %v7982_v6 = vrot.slane %v17850_v41, 6 }
 0x9e6   : > { %7894 = vrot.lane.b32.xlu0 %v7875_v7, %s13537_s24  ;;  %13160 = vxpose.xlu1.b32.start [1/4] (short) (narrow) %v13073_v27, 16  ;;  %v7373_v27 = vsel %vm7079_vm9, %v7372_v47, %v7371_v37  ;;  %v7978_v7 = vsel %vm7073_vm7, %v7977_v19, %v7976_v12  ;;  %v8044_v38 = vsel %vm7070_vm6, %v8043_v29, %v8042_v32  ;;  %v7940_v12 = vrot.slane %v16077_v57, 6  ;;  %v17867_v47 = vld [vmem:[#allocation77_spill] sm:$0xff] }
 0x9e7   : > { %v7375_v49 = vsel %vm7082_vm10, %v7374_v2, %v7373_v27  ;;  %v7432_v50 = vsel %vm7064_vm4, %v7431_v39, %v7430_v54  ;;  %v7915_v19 = vsel %vm7082_vm10, %v7914_v17, %v7913_v24  ;;  %v7979_v37 = vsel %vm7076_vm8, %v17849_v11, %v7978_v7  ;;  %v17869_v24 = vld [vmem:[#allocation17_spill] sm:$0xff] }
 0x9e8   : > { %v7415_v60 = vsel %vm7082_vm10, %v7414_v40, %v7413_v42  ;;  %v7981_v2 = vsel %vm7079_vm9, %v7980_v31, %v7979_v37  ;;  %v7481_v39 = vsel %vm7079_vm9, %v17843_v3, %v17867_v47  ;;  %v17868_v29 = vrot.slane %v17846_v21, 2 }
 0x9e9   : > { %v7941_v17 = vsel %vm7079_vm9, %v7940_v12, %v17869_v24  ;;  %v7434_v54 = vsel %vm7067_vm5, %v7433_v52, %v7432_v50  ;;  %v7437_v40 = vrot.slane %v16056_v62, 1  ;;  %v7942_v42 = vrot.slane %v16093_v34, 5  ;;  %v17871_v52 = vld [vmem:[#allocation32_spill] sm:$0xff]  ;;  %v17872_v12 = vld [vmem:[#allocation18_spill] sm:$0xff] }
 0x9ea   : > { %7390 = vrot.lane.b32.xlu0 %v7347_v48, %s13532_s27  ;;  %13162 = vxpose.xlu1.b32.cont [2/4] (short) (narrow) %v13082_v51, 16  ;;  %v8046_v51 = vsel %vm7073_vm7, %v17868_v29, %v8044_v38  ;;  %v7435_v27 = vrot.slane %v16041_v44, 2  ;;  %v16445_v7 = vsel %vm7082_vm10, %v7982_v6, %v7981_v2  ;;  %v7440_v38 = vrot.slane %v16090_v61, 7 }
 0x9eb   : > { %v8048_v59 = vsel %vm7076_vm8, %v8047_v22, %v8046_v51  ;;  %v8050_v32 = vrot.slane %v17850_v41, 7  ;;  %v7943_v50 = vsel %vm7082_vm10, %v7942_v42, %v7941_v17  ;;  %v16458_v6 = vsel %vm7082_vm10, %v7482_v10, %v7481_v39  ;;  %v17873_v51 = vld [vmem:[#allocation35_spill] sm:$0xff]  ;;  %v17874_v17 = vld [vmem:[#allocation52_spill] sm:$0xff] }
 0x9ec   : > { %v7146_v37 = vrot.slane %v17872_v12, 7  ;;  %v8049_v29 = vsel %vm7079_vm9, %v17848_v16, %v8048_v59  ;;  %v7148_v24 = vrot.slane %v17873_v51, 6  ;;  %v7152_v42 = vrot.slane %v17874_v17, 4  ;;  %v17875_v10 = vld [vmem:[#allocation24_spill] sm:$0xff] }
 0x9ed   : > { %v13091_v48 = vpop.trf.xlu0  ;;  %v13100_v46 = vpop.trf.xlu1 }
 0x9ee   : > { %7394 = vrot.lane.b32.xlu0 %v7375_v49, %s13532_s27  ;;  %13164 = vxpose.xlu1.b32.cont [3/4] (short) (narrow) %v13091_v48, 16  ;;  %v17870_v48 = vrot.slane %v17859_v4, 1 }
 0x9f0   : > { %v7145_v49 = vsel %vm7064_vm4, %v17871_v52, %v17870_v48 }
 0x9f2   : > { %7958 = vrot.lane.b32.xlu0 %v7915_v19, %s13532_s27  ;;  %v7436_v19 = vsel %vm7070_vm6, %v7435_v27, %v7434_v54  ;;  %13166 = vxpose.xlu1.b32.end [4/4] (short) (narrow) %v13100_v46, 16  ;;  %v16468_v54 = vsel %vm7082_vm10, %v8050_v32, %v8049_v29  ;;  %v7442_v46 = vrot.slane %v16080_v13, 6 }
 0x9f3   : > { %v7438_v22 = vsel %vm7073_vm7, %v7437_v40, %v7436_v19  ;;  %v7147_v40 = vsel %vm7067_vm5, %v7146_v37, %v7145_v49  ;;  %v8008_v49 = vrot.slane %v16077_v57, 7  ;;  %v7499_v37 = vrot.slane %v17851_v53, 5 }
 0x9f4   : > { %v7149_v29 = vsel %vm7070_vm6, %v7148_v24, %v7147_v40  ;;  %v8010_v40 = vrot.slane %v16093_v34, 6 }
 0x9f5   : > { %v13113_v2 = vpop.trf.xlu0  ;;  %v13131_v47 = vpop.trf.xlu1 }
 0x9f6   : > { %7962 = vrot.lane.b32.xlu0 %v7943_v50, %s13532_s27  ;;  %v13117_v27 = vunpack.i.h.bf16 %v13113_v2  ;;  %v13114_v48 = vunpack.i.l.bf16 %v13113_v2  ;;  %v7439_v50 = vsel %vm7076_vm8, %v16065_v1, %v7438_v22  ;;  %v13132_v59 = vunpack.i.l.bf16 %v13131_v47 }
 0x9f7   : > { %v7441_v2 = vsel %vm7079_vm9, %v7440_v38, %v7439_v50  ;;  %v17878_v38 = vld [vmem:[#allocation51_spill] sm:$0xff] }
 0x9f8   : > { %v7443_v33 = vsel %vm7082_vm10, %v7442_v46, %v7441_v2  ;;  %v7712_v50 = vrot.slane %v17878_v38, 1  ;;  %v17881_v2 = vld [vmem:[#allocation48_spill] sm:$0xff] }
 0x9f9   : > { %v13118_v19 = vpop.trf.xlu0  ;;  %v13136_v31 = vpop.trf.xlu1 }
 0x9fa   : > { %7458 = vrot.lane.b32.xlu0 %v7415_v60, %s13538_s25  ;;  %v13122_v15 = vunpack.i.h.bf16 %v13118_v19  ;;  %v13119_v32 = vunpack.i.l.bf16 %v13118_v19  ;;  %v13137_v39 = vunpack.i.l.bf16 %v13136_v31  ;;  %v17877_v60 = vrot.slane %v17861_v5, 5  ;;  %v17879_v19 = vld [vmem:[#allocation19_spill] sm:$0xff] }
 0x9fc   : > { %v11020_v22 = vpack.c.bf16 %v13122_v15, %v13117_v27  ;;  %v11019_v55 = vpack.c.bf16 %v13119_v32, %v13114_v48  ;;  %v11021_v8 = vpack.c.bf16 %v13137_v39, %v13132_v59  ;;  %v7151_v24 = vsel %vm7073_vm7, %v17877_v60, %v7149_v29  ;;  %v17880_v48 = vld [vmem:[#allocation44_spill] sm:$0xff] }
 0x9fd   : > { %v7714_v15 = vrot.slane %v17879_v19, 7  ;;  %v7498_v27 = vrot.slane %v17852_v14, 6  ;;  %v7716_v46 = vrot.slane %v17880_v48, 6  ;;  %v13135_v32 = vunpack.i.h.bf16 %v13131_v47  ;;  %v17882_v47 = vld [vmem:[#allocation25_spill] sm:$0xff]  ;;  %v17884_v19 = vld [vmem:[#allocation27_spill] sm:$0xff] }
 0x9fe   : > { %7462 = vrot.lane.b32.xlu0 %v7443_v33, %s13538_s25  ;;  %11959 = vmatprep.mubr.msk.bf16.mxu0 %vm365_vm0, %v11019_v55  ;;  %v13140_v33 = vunpack.i.h.bf16 %v13136_v31  ;;  %v7503_v39 = vrot.slane %v16041_v44, 3  ;;  %v7718_v60 = vrot.slane %v17881_v2, 5  ;;  %v17883_v31 = vld [vmem:[#allocation30_spill] sm:$0xff]  ;;  %v7153_v29 = vsel %vm7076_vm8, %v7152_v42, %v7151_v24 }
 0x9ff   : > { %11960 = vmatmul.mubr.msk.bf16.vlgmr.msra.gmra.mxu0 %vm365_vm0, %v11020_v22  ;;  %v7500_v55 = vsel %vm7064_vm4, %v7499_v37, %v7498_v27  ;;  %v7713_v22 = vsel %vm7064_vm4, %v17882_v47, %v7712_v50  ;;  %v8009_v59 = vsel %vm7079_vm9, %v8008_v49, %v17883_v31  ;;  %v8109_v50 = vrot.slane %v17841_v23, 5 }
 0xa00   : > { %11963 = vmatprep.mubr.msk.bf16.mxu0 %vm365_vm0, %v11021_v8  ;;  %v17885_v8 = vrot.slane %v17843_v3, 1  ;;  %v7715_v27 = vsel %vm7067_vm5, %v7714_v15, %v7713_v22  ;;  %v11022_v2 = vpack.c.bf16 %v13140_v33, %v13135_v32  ;;  %v7505_v42 = vrot.slane %v16056_v62, 2 }
 0xa01   : > { %v7717_v58 = vsel %vm7070_vm6, %v7716_v46, %v7715_v27  ;;  %v8111_v31 = vrot.slane %v17842_v56, 4  ;;  %v7507_v15 = vrot.slane %v16065_v1, 1  ;;  %v17887_v46 = vld [vmem:[#allocation53_spill] sm:$0xff]  ;;  %v17888_v32 = vrot.slane %v17875_v10, 3 }
 0xa02   : > { %8026 = vrot.lane.b32.xlu0 %v16445_v7, %s13538_s25  ;;  %v7550_v37 = vsel %vm7079_vm9, %v17885_v8, %v17884_v19  ;;  %v17886_v7 = vrot.slane %v16035_v36, 4  ;;  %v7719_v24 = vsel %vm7073_vm7, %v7718_v60, %v7717_v58  ;;  %v8011_v19 = vsel %vm7082_vm10, %v8010_v40, %v8009_v59 }
 0xa03   : > { %v7720_v8 = vrot.slane %v17887_v46, 4  ;;  %v7155_v33 = vsel %vm7079_vm9, %v17888_v32, %v7153_v29  ;;  %v16532_v58 = vsel %vm7082_vm10, %v17847_v45, %v7550_v37  ;;  %v7158_v40 = vrot.slane %v17852_v14, 1 }
 0xa04   : > { %v7502_v49 = vsel %vm7067_vm5, %v17886_v7, %v7500_v55  ;;  %v17889_v55 = vld [vmem:[#allocation65_spill] sm:$0xff]  ;;  %v7510_v3 = vrot.slane %v16080_v13, 7 }
 0xa05   : > { %v13149_v27 = vpop.trf.xlu0  ;;  %v7504_v60 = vsel %vm7070_vm6, %v7503_v39, %v7502_v49  ;;  %v7721_v59 = vsel %vm7076_vm8, %v7720_v8, %v7719_v24  ;;  %v8110_v7 = vsel %vm7067_vm5, %v8109_v50, %v17889_v55  ;;  %v7159_v39 = vsel %vm7064_vm4, %v17851_v53, %v7158_v40  ;;  %v17890_v49 = vld [vmem:[#allocation41_spill] sm:$0xff] }
 0xa06   : > { %8030 = vrot.lane.b32.xlu0 %v8011_v19, %s13538_s25  ;;  %v7506_v19 = vsel %vm7073_vm7, %v7505_v42, %v7504_v60  ;;  %v8112_v22 = vsel %vm7070_vm6, %v8111_v31, %v8110_v7  ;;  %v13153_v29 = vunpack.i.h.bf16 %v13149_v27  ;;  %v13150_v32 = vunpack.i.l.bf16 %v13149_v27  ;;  %v17891_v31 = vld [vmem:[#allocation23_spill] sm:$0xff] }
 0xa07   : > { %11964 = vmatmul.mubr.msk.bf16.gmra.mxu0 %vm365_vm0, %v11022_v2  ;;  %v7508_v37 = vsel %vm7076_vm8, %v7507_v15, %v7506_v19  ;;  %v7722_v24 = vrot.slane %v17890_v49, 3  ;;  %v7724_v60 = vrot.slane %v17891_v31, 2  ;;  %v17892_v27 = vrot.slane %v17846_v21, 3 }
 0xa08   : > { %v7213_v55 = vrot.slane %v17871_v52, 1  ;;  %v7509_v40 = vsel %vm7079_vm9, %v16090_v61, %v7508_v37  ;;  %v7567_v7 = vrot.slane %v17851_v53, 6  ;;  %v8115_v21 = vrot.slane %v17849_v11, 2 }
 0xa09   : > { %v13154_v8 = vpop.trf.xlu0  ;;  %v7723_v42 = vsel %vm7079_vm9, %v7722_v24, %v7721_v59  ;;  %v8114_v15 = vsel %vm7073_vm7, %v17892_v27, %v8112_v22  ;;  %v7172_v24 = vrot.slane %v16141_v28, 1  ;;  %v17894_v22 = vrot.slane %v17876_v43, 2 }
 0xa0a   : > { %7526 = vrot.lane.b32.xlu0 %v16458_v6, %s13531_s26  ;;  %v13158_v2 = vunpack.i.h.bf16 %v13154_v8  ;;  %v13155_v50 = vunpack.i.l.bf16 %v13154_v8  ;;  %v7511_v6 = vsel %vm7082_vm10, %v7510_v3, %v7509_v40  ;;  %v17893_v8 = vrot.slane %v16035_v36, 7 }
 0xa0b   : > { %v7157_v37 = vsel %vm7082_vm10, %v17894_v22, %v7155_v33  ;;  %v7164_v27 = vrot.slane %v16056_v62, 5  ;;  %v7216_v3 = vrot.slane %v17873_v51, 7  ;;  %v8078_v33 = vrot.slane %v16093_v34, 7 }
 0xa0c   : > { %v11024_v19 = vpack.c.bf16 %v13158_v2, %v13153_v29  ;;  %v11023_v49 = vpack.c.bf16 %v13155_v50, %v13150_v32  ;;  %v7161_v59 = vsel %vm7067_vm5, %v17893_v8, %v7159_v39  ;;  %v7566_v29 = vrot.slane %v17852_v14, 7 }
 0xa0d   : > { %v7166_v32 = vrot.slane %v16065_v1, 4  ;;  %v16574_v39 = vsel %vm7082_vm10, %v7724_v60, %v7723_v42  ;;  %v8116_v2 = vsel %vm7076_vm8, %v8115_v21, %v8114_v15  ;;  %v8117_v50 = vrot.slane %v17848_v16, 1 }
 0xa0e   : > { %7530 = vrot.lane.b32.xlu0 %v7511_v6, %s13531_s26  ;;  %11967 = vmatprep.mubr.msk.bf16.mxu0 %vm365_vm0, %v11023_v49  ;;  %v17895_v40 = vrot.slane %v16041_v44, 6  ;;  %v7568_v8 = vsel %vm7064_vm4, %v7567_v7, %v7566_v29  ;;  %v17896_v49 = vrot.slane %v17859_v4, 2  ;;  %v7173_v42 = vsel %vm7064_vm4, %v16138_v0, %v7172_v24 }
 0xa0f   : > { %11968 = vmatmul.mubr.msk.bf16.gmra.mxu0 %vm365_vm0, %v11024_v19  ;;  %v7174_v21 = vrot.slane %v16166_v18, 7  ;;  %v7176_v60 = vrot.slane %v16161_v30, 6  ;;  %v17897_v19 = vld [vmem:[#allocation16_spill] sm:$0xff] }
 0xa10   : > { %v7163_v6 = vsel %vm7070_vm6, %v17895_v40, %v7161_v59  ;;  %v7214_v22 = vsel %vm7064_vm4, %v7213_v55, %v17896_v49  ;;  %v8077_v7 = vsel %vm7079_vm9, %v16077_v57, %v17897_v19  ;;  %v7178_v55 = vrot.slane %v16185_v26, 5  ;;  %7188 = vrot.lane.b32.xlu1 %v7157_v37, %s13535_s28 }
 0xa11   : > { %v7215_v15 = vsel %vm7067_vm5, %v17872_v12, %v7214_v22  ;;  %v7165_v59 = vsel %vm7073_vm7, %v7164_v27, %v7163_v6  ;;  %v7170_v40 = vrot.slane %v16080_v13, 2  ;;  %v7180_v49 = vrot.slane %v16194_v35, 4 }
 0xa12   : > { %8094 = vrot.lane.b32.xlu0 %v16468_v54, %s13531_s26  ;;  %v7217_v24 = vsel %vm7070_vm6, %v7216_v3, %v7215_v15  ;;  %v7167_v29 = vsel %vm7076_vm8, %v7166_v32, %v7165_v59  ;;  %v17898_v22 = vrot.slane %v16035_v36, 5  ;;  %v7175_v19 = vsel %vm7067_vm5, %v7174_v21, %v7173_v42 }
 0xa13   : > { %v7573_v27 = vrot.slane %v16056_v62, 3  ;;  %v8118_v6 = vsel %vm7079_vm9, %v8117_v50, %v8116_v2  ;;  %v8079_v32 = vsel %vm7082_vm10, %v8078_v33, %v8077_v7  ;;  %v7177_v15 = vsel %vm7070_vm6, %v7176_v60, %v7175_v19 }
 0xa14   : > { %v7570_v54 = vsel %vm7067_vm5, %v17898_v22, %v7568_v8  ;;  %v7575_v59 = vrot.slane %v16065_v1, 2  ;;  %v17899_v36 = vrot.slane %v17861_v5, 6  ;;  %v17900_v37 = vrot.slane %v16090_v61, 3  ;;  %v17909_v1 = vld [vmem:[#allocation61_spill] sm:$0xff] }
 0xa15   : > { %v7179_v2 = vsel %vm7073_vm7, %v7178_v55, %v7177_v15  ;;  %v17901_v50 = vrot.slane %v16041_v44, 4  ;;  %v7220_v21 = vrot.slane %v17874_v17, 5  ;;  %v8119_v22 = vsel %vm7082_vm10, %v17850_v41, %v8118_v6 }
 0xa16   : > { %v7219_v8 = vsel %vm7073_vm7, %v17899_v36, %v7217_v24  ;;  %8098 = vrot.lane.b32.xlu0 %v8079_v32, %s13531_s26  ;;  %v7169_v42 = vsel %vm7079_vm9, %v17900_v37, %v7167_v29  ;;  %v7181_v7 = vsel %vm7076_vm8, %v7180_v49, %v7179_v2  ;;  %v7184_v36 = vrot.slane %v16218_v9, 2  ;;  %v17902_v49 = vld [vmem:[#allocation36_spill] sm:$0xff]  ;;  %v17903_v37 = vld [vmem:[#allocation47_spill] sm:$0xff] }
 0xa17   : > { %v7572_v33 = vsel %vm7070_vm6, %v17901_v50, %v7570_v54  ;;  %v7171_v60 = vsel %vm7082_vm10, %v7170_v40, %v7169_v42  ;;  %v7740_v24 = vrot.slane %v16130_v63, 1  ;;  %v7182_v29 = vrot.slane %v16215_v25, 3 }
 0xa18   : > { %7190 = vrot.lane.b32.xlu1 %v7171_v60, %s13535_s28  ;;  %v7574_v55 = vsel %vm7073_vm7, %v7573_v27, %v7572_v33  ;;  %v7221_v54 = vsel %vm7076_vm8, %v7220_v21, %v7219_v8  ;;  %v7742_v32 = vrot.slane %v17902_v49, 7  ;;  %v7222_v15 = vrot.slane %v17875_v10, 4 }
 0xa19   : > { %v7576_v19 = vsel %vm7076_vm8, %v7575_v59, %v7574_v55  ;;  %v7741_v40 = vsel %vm7064_vm4, %v16133_v20, %v7740_v24  ;;  %v7183_v27 = vsel %vm7079_vm9, %v7182_v29, %v7181_v7  ;;  %v7744_v42 = vrot.slane %v17903_v37, 6  ;;  %v17905_v7 = vld [vmem:[#allocation56_spill] sm:$0xff] }
 0xa1a   : > { %7594 = vrot.lane.b32.xlu0 %v16532_v58, %s13539_s29  ;;  %v7224_v6 = vrot.slane %v17876_v43, 3  ;;  %v7781_v8 = vrot.slane %v17882_v47, 1  ;;  %v7185_v59 = vsel %vm7082_vm10, %v7184_v36, %v7183_v27  ;;  %v7223_v2 = vsel %vm7079_vm9, %v7222_v15, %v7221_v54  ;;  %v17906_v55 = vld [vmem:[#allocation28_spill] sm:$0xff] }
 0xa1b   : > { %v7241_v50 = vrot.slane %v16138_v0, 1  ;;  %v7780_v33 = vrot.slane %v17878_v38, 2  ;;  %v17904_v58 = vrot.slane %v16090_v61, 1  ;;  %v7743_v60 = vsel %vm7067_vm5, %v7742_v32, %v7741_v40  ;;  %v17907_v27 = vld [vmem:[#allocation48_spill] sm:$0xff] }
 0xa1c   : > { %7192 = vrot.lane.b32.xlu1 %v7185_v59, %s13535_s28  ;;  %v7746_v24 = vrot.slane %v17905_v7, 5  ;;  %v7784_v29 = vrot.slane %v17880_v48, 7  ;;  %v7748_v54 = vrot.slane %v17906_v55, 4  ;;  %v7240_v15 = vrot.slane %v16141_v28, 2  ;;  %v17908_v59 = vld [vmem:[#allocation59_spill] sm:$0xff] }
 0xa1d   : > { %v7578_v21 = vsel %vm7079_vm9, %v17904_v58, %v7576_v19  ;;  %v7786_v3 = vrot.slane %v17907_v27, 6  ;;  %v7750_v61 = vrot.slane %v17908_v59, 3  ;;  %v7225_v19 = vsel %vm7082_vm10, %v7224_v6, %v7223_v2 }
 0xa1e   : > { %v7579_v36 = vsel %vm7082_vm10, %v16080_v13, %v7578_v21  ;;  %v7081_v40 = vrot.slane %v17847_v45, 1  ;;  %v7782_v32 = vsel %vm7064_vm4, %v7781_v8, %v7780_v33  ;;  %v7745_v58 = vsel %vm7070_vm6, %v7744_v42, %v7743_v60  ;;  %v17910_v13 = vld [vmem:[#allocation19_spill] sm:$0xff] }
 0xa1f   : > { %7598 = vrot.lane.b32.xlu0 %v7579_v36, %s13539_s29  ;;  %v7752_v21 = vrot.slane %v17909_v1, 2  ;;  %v7783_v44 = vsel %vm7067_vm5, %v17910_v13, %v7782_v32  ;;  %v7640_v62 = vrot.slane %v17841_v23, 6  ;;  %v7747_v36 = vsel %vm7073_vm7, %v7746_v24, %v7745_v58  ;;  %v17915_v58 = vld [vmem:[#allocation72_spill] sm:$0xff] }
 0xa20   : > { %7756 = vrot.lane.b32.xlu1 %v16574_v39, %s13535_s28  ;;  %v7785_v6 = vsel %vm7070_vm6, %v7784_v29, %v7783_v44  ;;  %v7788_v45 = vrot.slane %v17887_v46, 5  ;;  %v7642_v8 = vrot.slane %v17842_v56, 5  ;;  %v7749_v42 = vsel %vm7076_vm8, %v7748_v54, %v7747_v36  ;;  %v17911_v39 = vld [vmem:[#allocation39_spill] sm:$0xff]  ;;  %v17913_v56 = vld [vmem:[#allocation41_spill] sm:$0xff]  ;;  %v17917_v36 = vld [vmem:[#allocation66_spill] sm:$0xff] }
 0xa21   : > { %v7242_v2 = vsel %vm7064_vm4, %v7241_v50, %v7240_v15  ;;  %v7244_v33 = vrot.slane %v16161_v30, 7  ;;  %v7787_v60 = vsel %vm7073_vm7, %v7786_v3, %v7785_v6  ;;  %v7751_v23 = vsel %vm7079_vm9, %v7750_v61, %v7749_v42  ;;  %v17914_v15 = vld [vmem:[#allocation58_spill] sm:$0xff] }
 0xa22   : > { %v17912_v24 = vrot.slane %v16077_v57, 1  ;;  %v7246_v29 = vrot.slane %v16185_v26, 6  ;;  %v7790_v32 = vrot.slane %v17913_v56, 4  ;;  %v7753_v54 = vsel %vm7082_vm10, %v7752_v21, %v7751_v23 }
 0xa23   : > { %8162 = vrot.lane.b32.xlu0 %v8119_v22, %s13539_s29  ;;  %v7248_v50 = vrot.slane %v16194_v35, 5  ;;  %v17916_v3 = vrot.slane %v17915_v58, 2  ;;  %v7641_v61 = vsel %vm7067_vm5, %v7640_v62, %v17917_v36  ;;  %v7243_v6 = vsel %vm7067_vm5, %v16166_v18, %v7242_v2  ;;  %v17918_v58 = vld [vmem:[#allocation6_spill] sm:$0xff] }
 0xa24   : > { %v8146_v44 = vsel %vm7079_vm9, %v17912_v24, %v17911_v39  ;;  %7760 = vrot.lane.b32.xlu1 %v7753_v54, %s13535_s28  ;;  %v7789_v42 = vsel %vm7076_vm8, %v7788_v45, %v7787_v60  ;;  %v7643_v39 = vsel %vm7070_vm6, %v7642_v8, %v7641_v61  ;;  %v7281_v21 = vrot.slane %v17871_v52, 2 }
 0xa25   : > { %v7080_v22 = vsel %vm7079_vm9, %v17916_v3, %v17914_v15  ;;  %v8147_v23 = vsel %vm7082_vm10, %v16093_v34, %v8146_v44  ;;  %v7245_v24 = vsel %vm7070_vm6, %v7244_v33, %v7243_v6  ;;  %v7809_v15 = vrot.slane %v16133_v20, 1 }
 0xa26   : > { %v7283_v62 = vrot.slane %v17872_v12, 1  ;;  %v7247_v54 = vsel %vm7073_vm7, %v7246_v29, %v7245_v24  ;;  %v7792_v2 = vrot.slane %v17891_v31, 3  ;;  %v7646_v45 = vrot.slane %v17849_v11, 3 }
 0xa27   : > { %8166 = vrot.lane.b32.xlu0 %v8147_v23, %s13539_s29  ;;  %v7648_v8 = vrot.slane %v17848_v16, 2  ;;  %v7249_v60 = vsel %vm7076_vm8, %v7248_v50, %v7247_v54  ;;  %v7252_v44 = vrot.slane %v16218_v9, 3  ;;  %v17919_v33 = vrot.slane %v17918_v58, 4 }
 0xa28   : > { %v7808_v36 = vrot.slane %v16130_v63, 2  ;;  %7256 = vrot.lane.b32.xlu1 %v7225_v19, %s13536_s16  ;;  %v7250_v29 = vrot.slane %v16215_v25, 4  ;;  %v7791_v61 = vsel %vm7079_vm9, %v7790_v32, %v7789_v42  ;;  %v7650_v11 = vrot.slane %v17850_v41, 1 }
 0xa29   : > { %v7645_v3 = vsel %vm7073_vm7, %v17919_v33, %v7643_v39  ;;  %v17920_v16 = vrot.slane %v17859_v4, 3  ;;  %v7083_v6 = vsel %vm7082_vm10, %v7081_v40, %v7080_v22  ;;  %v7286_v24 = vrot.slane %v17861_v5, 7 }
 0xa2a   : > { %v7810_v23 = vsel %vm7064_vm4, %v7809_v15, %v7808_v36  ;;  %v7251_v19 = vsel %vm7079_vm9, %v7250_v29, %v7249_v60  ;;  %v7647_v54 = vsel %vm7076_vm8, %v7646_v45, %v7645_v3  ;;  %v7812_v32 = vrot.slane %v17903_v37, 7 }
 0xa2b   : > { %v7282_v50 = vsel %vm7064_vm4, %v7281_v21, %v17920_v16  ;;  %v7253_v42 = vsel %vm7082_vm10, %v7252_v44, %v7251_v19  ;;  %v7793_v21 = vsel %vm7082_vm10, %v7792_v2, %v7791_v61  ;;  %v7649_v40 = vsel %vm7079_vm9, %v7648_v8, %v7647_v54 }
 0xa2c   : > { %v7284_v39 = vsel %vm7067_vm5, %v7283_v62, %v7282_v50  ;;  %v7676_v22 = vrot.slane %v16077_v57, 2  ;;  %7260 = vrot.lane.b32.xlu1 %v7253_v42, %s13536_s16  ;;  %v7651_v15 = vsel %vm7082_vm10, %v7650_v11, %v7649_v40  ;;  %v7811_v62 = vsel %vm7067_vm5, %v17902_v49, %v7810_v23 }
 0xa2d   : > { %v7285_v41 = vsel %vm7070_vm6, %v17873_v51, %v7284_v39  ;;  %v7814_v45 = vrot.slane %v17905_v7, 6  ;;  %v7288_v60 = vrot.slane %v17874_v17, 6  ;;  %v7816_v58 = vrot.slane %v17906_v55, 5 }
 0xa2e   : > { %v7287_v44 = vsel %vm7073_vm7, %v7286_v24, %v7285_v41  ;;  %v7308_v2 = vrot.slane %v16141_v28, 3  ;;  %v7849_v8 = vrot.slane %v17882_v47, 2  ;;  %v7818_v57 = vrot.slane %v17908_v59, 4 }
 0xa2f   : > { %v7290_v33 = vrot.slane %v17875_v10, 5  ;;  %v7292_v3 = vrot.slane %v17876_v43, 4  ;;  %v7851_v36 = vrot.slane %v17910_v13, 1  ;;  %v7813_v29 = vsel %vm7070_vm6, %v7812_v32, %v7811_v62 }
 0xa30   : > { %v7820_v61 = vrot.slane %v17909_v1, 3  ;;  %v7309_v11 = vrot.slane %v16138_v0, 2  ;;  %v7848_v16 = vrot.slane %v17878_v38, 3  ;;  %v7187_v50 = vpop.permute.xlu0 %7186  ;;  %7824 = vrot.lane.b32.xlu1 %v7793_v21, %s13536_s16  ;;  %v7815_v23 = vsel %vm7073_vm7, %v7814_v45, %v7813_v29 }
 0xa31   : > { %v7289_v39 = vsel %vm7076_vm8, %v7288_v60, %v7287_v44  ;;  %v7311_v24 = vrot.slane %v16166_v18, 1  ;;  %v7854_v19 = vrot.slane %v17907_v27, 7  ;;  %v8174_v54 = vsel %vm6326_vm3, %v7083_v6, %v7187_v50 }
 0xa32   : > { %v7817_v32 = vsel %vm7076_vm8, %v7816_v58, %v7815_v23  ;;  %v7310_v41 = vsel %vm7064_vm4, %v7309_v11, %v7308_v2  ;;  %v7850_v42 = vsel %vm7064_vm4, %v7849_v8, %v7848_v16  ;;  %v7314_v21 = vrot.slane %v16185_v26, 7 }
 0xa33   : > { %v7819_v40 = vsel %vm7079_vm9, %v7818_v57, %v7817_v32  ;;  %v7852_v62 = vsel %vm7067_vm5, %v7851_v36, %v7850_v42  ;;  %v7349_v45 = vrot.slane %v17871_v52, 3  ;;  %v7291_v44 = vsel %vm7079_vm9, %v7290_v33, %v7289_v39  ;;  %v17921_v33 = vld [vmem:[#allocation46_spill] sm:$0xff] }
 0xa34   : > { %v7821_v60 = vsel %vm7082_vm10, %v7820_v61, %v7819_v40  ;;  %v7316_v6 = vrot.slane %v16194_v35, 6  ;;  %v7853_v58 = vsel %vm7070_vm6, %v17880_v48, %v7852_v62  ;;  %v7755_v2 = vpop.permute.xlu0 %7754  ;;  %v7312_v8 = vsel %vm7067_vm5, %v7311_v24, %v7310_v41 }
 0xa35   : > { %7828 = vrot.lane.b32.xlu1 %v7821_v60, %s13536_s16  ;;  %v7855_v57 = vsel %vm7073_vm7, %v7854_v19, %v7853_v58  ;;  %v7351_v36 = vrot.slane %v17872_v12, 2  ;;  %v7353_v29 = vrot.slane %v17873_v51, 1  ;;  %v16784_v61 = vsel %vm6326_vm3, %v7651_v15, %v7755_v2  ;;  %s13540_s16 = smov [#allocation2]  }
 0xa36   : > { %v7677_v11 = vsel %vm7079_vm9, %v7676_v22, %v17921_v33  ;;  %v7313_v16 = vsel %vm7070_vm6, %v16161_v30, %v7312_v8  ;;  %v7877_v50 = vrot.slane %v16133_v20, 2  ;;  %v7678_v23 = vrot.slane %v16093_v34, 1  ;;  %s13473_s17 = sshll.u32 %s13540_s16, 4  ;;  %s13474_s17 = int_to_ptr.vmem [resolvable:$false] %s13473_s17 }
 0xa37   : > { %v7293_v39 = vsel %vm7082_vm10, %v7292_v3, %v7291_v44  ;;  %v7315_v24 = vsel %vm7073_vm7, %v7314_v21, %v7313_v16  ;;  %v7856_v19 = vrot.slane %v17887_v46, 6  ;;  %v7320_v15 = vrot.slane %v16218_v9, 4  ;;  %s13475_s23 = scalar_lea.vmem %s13474_s17, 2048 }
 0xa38   : > { %v7317_v32 = vsel %vm7076_vm8, %v7316_v6, %v7315_v24  ;;  %v7876_v41 = vrot.slane %v16130_v63, 3  ;;  %v17922_v22 = vrot.slane %v17859_v4, 4  ;;  %v7679_v40 = vsel %vm7082_vm10, %v7678_v23, %v7677_v11  ;;  %v7759_v62 = vpop.permute.xlu0 %7758 }
 0xa39   : > { %7324 = vrot.lane.b32.xlu1 %v7293_v39, %s13537_s24  ;;  %v7318_v34 = vrot.slane %v16215_v25, 5  ;;  %v7857_v3 = vsel %vm7076_vm8, %v7856_v19, %v7855_v57  ;;  %v16807_v60 = vsel %vm6326_vm3, %v7679_v40, %v7759_v62  ;;  %v7858_v44 = vrot.slane %v17913_v56, 5 }
 0xa3a   : > { %v7350_v42 = vsel %vm7064_vm4, %v7349_v45, %v17922_v22  ;;  %v7878_v6 = vsel %vm7064_vm4, %v7877_v50, %v7876_v41  ;;  %v7860_v2 = vrot.slane %v17891_v31, 4  ;;  %v7879_v8 = vrot.slane %v17902_v49, 1 }
 0xa3b   : > { %v7352_v21 = vsel %vm7067_vm5, %v7351_v36, %v7350_v42  ;;  %v7319_v58 = vsel %vm7079_vm9, %v7318_v34, %v7317_v32  ;;  %v7859_v57 = vsel %vm7079_vm9, %v7858_v44, %v7857_v3  ;;  %v7882_v16 = vrot.slane %v17905_v7, 7 }
 0xa3c   : > { %v7354_v45 = vsel %vm7070_vm6, %v7353_v29, %v7352_v21  ;;  %v7321_v33 = vsel %vm7082_vm10, %v7320_v15, %v7319_v58  ;;  %v7255_v36 = vpop.permute.xlu0 %7254  ;;  %v7880_v11 = vsel %vm7067_vm5, %v7879_v8, %v7878_v6  ;;  %v7356_v50 = vrot.slane %v17874_v17, 7 }
 0xa3d   : > { %7328 = vrot.lane.b32.xlu1 %v7321_v33, %s13537_s24  ;;  %v7355_v29 = vsel %vm7073_vm7, %v17861_v5, %v7354_v45  ;;  %v16824_v23 = vsel %vm365_vm0, %v8174_v54, %v7255_v36  ;;  %v7884_v39 = vrot.slane %v17906_v55, 6  ;;  %v7376_v24 = vrot.slane %v16141_v28, 4 }
 0xa3e   : > { %v7917_v19 = vrot.slane %v17882_v47, 3  ;;  %v7861_v32 = vsel %vm7082_vm10, %v7860_v2, %v7859_v57  ;;  %v7886_v15 = vrot.slane %v17908_v59, 5  ;;  %v7377_v41 = vrot.slane %v16138_v0, 3 }
 0xa3f   : > { %v7919_v22 = vrot.slane %v17910_v13, 2  ;;  %v7881_v42 = vsel %vm7070_vm6, %v17903_v37, %v7880_v11  ;;  %v7888_v54 = vrot.slane %v17909_v1, 4  ;;  %v7916_v40 = vrot.slane %v17878_v38, 4 }
 0xa40   : > { %v7921_v62 = vrot.slane %v17880_v48, 1  ;;  %v16838_v34 = vpop.permute.xlu0 %7258  ;;  %v7883_v3 = vsel %vm7073_vm7, %v7882_v16, %v7881_v42  ;;  %v7357_v21 = vsel %vm7076_vm8, %v7356_v50, %v7355_v29  ;;  %v7358_v44 = vrot.slane %v17875_v10, 6 }
 0xa41   : > { %7892 = vrot.lane.b32.xlu1 %v7861_v32, %s13537_s24  ;;  %v7885_v6 = vsel %vm7076_vm8, %v7884_v39, %v7883_v3  ;;  %v7378_v45 = vsel %vm7064_vm4, %v7377_v41, %v7376_v24  ;;  %v7381_v58 = vrot.slane %v16161_v30, 1  ;;  %v7918_v2 = vsel %vm7064_vm4, %v7917_v19, %v7916_v40 }
 0xa42   : > { %v7887_v8 = vsel %vm7079_vm9, %v7886_v15, %v7885_v6  ;;  %v7379_v33 = vrot.slane %v16166_v18, 2  ;;  %v7920_v57 = vsel %vm7067_vm5, %v7919_v22, %v7918_v2  ;;  %v7359_v11 = vsel %vm7079_vm9, %v7358_v44, %v7357_v21 }
 0xa43   : > { %v7889_v36 = vsel %vm7082_vm10, %v7888_v54, %v7887_v8  ;;  %v7384_v16 = vrot.slane %v16194_v35, 7  ;;  %v7922_v29 = vsel %vm7070_vm6, %v7921_v62, %v7920_v57  ;;  %v7360_v39 = vrot.slane %v17876_v43, 5 }
 0xa44   : > { %v7823_v50 = vpop.permute.xlu0 %7822  ;;  %v7380_v24 = vsel %vm7067_vm5, %v7379_v33, %v7378_v45  ;;  %v7416_v19 = vrot.slane %v17859_v4, 5  ;;  %v7945_v41 = vrot.slane %v16133_v20, 3  ;;  %v7417_v22 = vrot.slane %v17871_v52, 4 }
 0xa45   : > { %7896 = vrot.lane.b32.xlu1 %v7889_v36, %s13537_s24  ;;  %v16861_v32 = vsel %vm365_vm0, %v16784_v61, %v7823_v50  ;;  %v7382_v15 = vsel %vm7070_vm6, %v7381_v58, %v7380_v24  ;;  %v7361_v42 = vsel %vm7082_vm10, %v7360_v39, %v7359_v11  ;;  %v7923_v40 = vsel %vm7073_vm7, %v17907_v27, %v7922_v29  ;;  %s17283_s24 = scalar_lea.vmem %s17417_s8, %s11304_s22 }
 0xa46   : > { %v7383_v54 = vsel %vm7073_vm7, %v16185_v26, %v7382_v15  ;;  %v7419_v62 = vrot.slane %v17872_v12, 3  ;;  %v7388_v61 = vrot.slane %v16218_v9, 5  ;;  %v7944_v21 = vrot.slane %v16130_v63, 4 }
 0xa47   : > { %v7385_v3 = vsel %vm7076_vm8, %v7384_v16, %v7383_v54  ;;  %v7421_v44 = vrot.slane %v17873_v51, 2  ;;  %v7386_v45 = vrot.slane %v16215_v25, 6  ;;  %v7924_v58 = vrot.slane %v17887_v46, 7 }
 0xa48   : > { %v7827_v6 = vpop.permute.xlu0 %7826  ;;  %v7928_v2 = vrot.slane %v17891_v31, 5  ;;  %v7946_v33 = vsel %vm7064_vm4, %v7945_v41, %v7944_v21  ;;  %v7947_v57 = vrot.slane %v17902_v49, 2  ;;  %v7418_v36 = vsel %vm7064_vm4, %v7417_v22, %v7416_v19 }
 0xa49   : > { %7392 = vrot.lane.b32.xlu1 %v7361_v42, %s13532_s27  ;;  %v16882_v8 = vsel %vm365_vm0, %v16807_v60, %v7827_v6  ;;  %v7387_v11 = vsel %vm7079_vm9, %v7386_v45, %v7385_v3  ;;  %v7925_v16 = vsel %vm7076_vm8, %v7924_v58, %v7923_v40  ;;  %v7420_v29 = vsel %vm7067_vm5, %v7419_v62, %v7418_v36 }
 0xa4a   : > { %17923 = vst [vmem:[#allocation60_spill] sm:$0xff] %v16882_v8  ;;  %v7389_v50 = vsel %vm7082_vm10, %v7388_v61, %v7387_v11  ;;  %v7926_v39 = vrot.slane %v17913_v56, 6  ;;  %v7422_v60 = vsel %vm7070_vm6, %v7421_v44, %v7420_v29  ;;  %v7444_v24 = vrot.slane %v16141_v28, 5 }
 0xa4b   : > { %v7948_v19 = vsel %vm7067_vm5, %v7947_v57, %v7946_v33  ;;  %v7949_v41 = vrot.slane %v17903_v37, 1  ;;  %v7423_v22 = vrot.slane %v17861_v5, 1  ;;  %v7952_v40 = vrot.slane %v17906_v55, 7 }
 0xa4c   : > { %v7323_v15 = vpop.permute.xlu0 %7322  ;;  %v7927_v54 = vsel %vm7079_vm9, %v7926_v39, %v7925_v16  ;;  %v7445_v62 = vrot.slane %v16138_v0, 4  ;;  %v7954_v61 = vrot.slane %v17908_v59, 6  ;;  %v7985_v44 = vrot.slane %v17882_v47, 4 }
 0xa4d   : > { %7396 = vrot.lane.b32.xlu1 %v7389_v50, %s13532_s27  ;;  %v16900_v42 = vsel %vm8182_vm11, %v16824_v23, %v7323_v15  ;;  %v7929_v3 = vsel %vm7082_vm10, %v7928_v2, %v7927_v54  ;;  %v7424_v21 = vsel %vm7073_vm7, %v7423_v22, %v7422_v60  ;;  %v7950_v6 = vsel %vm7070_vm6, %v7949_v41, %v7948_v19 }
 0xa4e   : > { %17924 = vst [vmem:[#allocation62_spill] sm:$0xff] %v16900_v42  ;;  %v7956_v45 = vrot.slane %v17909_v1, 5  ;;  %v7446_v23 = vsel %vm7064_vm4, %v7445_v62, %v7444_v24  ;;  %v7449_v58 = vrot.slane %v16161_v30, 2  ;;  %v7951_v2 = vsel %vm7073_vm7, %v17905_v7, %v7950_v6 }
 0xa4f   : > { %v7447_v57 = vrot.slane %v16166_v18, 3  ;;  %v7451_v36 = vrot.slane %v16185_v26, 1  ;;  %v7987_v11 = vrot.slane %v17910_v13, 3  ;;  %v7953_v16 = vsel %vm7076_vm8, %v7952_v40, %v7951_v2 }
 0xa50   : > { %v16913_v33 = vpop.permute.xlu0 %7326  ;;  %v7425_v29 = vsel %vm7076_vm8, %v17874_v17, %v7424_v21  ;;  %v7984_v50 = vrot.slane %v17878_v38, 5  ;;  %v7989_v39 = vrot.slane %v17880_v48, 2  ;;  %v7955_v60 = vsel %vm7079_vm9, %v7954_v61, %v7953_v16 }
 0xa51   : > { %7960 = vrot.lane.b32.xlu1 %v7929_v3, %s13532_s27  ;;  %v7426_v24 = vrot.slane %v17875_v10, 7  ;;  %v7448_v15 = vsel %vm7067_vm5, %v7447_v57, %v7446_v23  ;;  %v7991_v19 = vrot.slane %v17907_v27, 1  ;;  %v7957_v41 = vsel %vm7082_vm10, %v7956_v45, %v7955_v60 }
 0xa52   : > { %v7450_v22 = vsel %vm7070_vm6, %v7449_v58, %v7448_v15  ;;  %v7986_v54 = vsel %vm7064_vm4, %v7985_v44, %v7984_v50  ;;  %v8013_v40 = vrot.slane %v16133_v20, 4  ;;  %v7485_v6 = vrot.slane %v17871_v52, 5 }
 0xa53   : > { %v7427_v3 = vsel %vm7079_vm9, %v7426_v24, %v7425_v29  ;;  %v7452_v61 = vsel %vm7073_vm7, %v7451_v36, %v7450_v22  ;;  %v7988_v21 = vsel %vm7067_vm5, %v7987_v11, %v7986_v54  ;;  %v7428_v45 = vrot.slane %v17876_v43, 6 }
 0xa54   : > { %v16934_v62 = vpop.permute.xlu0 %7890  ;;  %v7990_v23 = vsel %vm7070_vm6, %v7989_v39, %v7988_v21  ;;  %v8012_v44 = vrot.slane %v16130_v63, 5  ;;  %v7487_v58 = vrot.slane %v17872_v12, 4  ;;  %v7484_v57 = vrot.slane %v17859_v4, 6 }
 0xa55   : > { %7964 = vrot.lane.b32.xlu1 %v7957_v41, %s13532_s27  ;;  %v7992_v2 = vsel %vm7073_vm7, %v7991_v19, %v7990_v23  ;;  %v7489_v16 = vrot.slane %v17873_v51, 3  ;;  %v7429_v36 = vsel %vm7082_vm10, %v7428_v45, %v7427_v3  ;;  %v7453_v11 = vsel %vm7076_vm8, %v16194_v35, %v7452_v61 }
 0xa56   : > { %v7456_v29 = vrot.slane %v16218_v9, 6  ;;  %v8014_v50 = vsel %vm7064_vm4, %v8013_v40, %v8012_v44  ;;  %v7454_v60 = vrot.slane %v16215_v25, 7  ;;  %v8015_v24 = vrot.slane %v17902_v49, 3 }
 0xa57   : > { %v7486_v15 = vsel %vm7064_vm4, %v7485_v6, %v7484_v57  ;;  %v7993_v19 = vsel %vm7076_vm8, %v17887_v46, %v7992_v2  ;;  %v7994_v41 = vrot.slane %v17913_v56, 7  ;;  %v7996_v22 = vrot.slane %v17891_v31, 6 }
 0xa58   : > { %v16953_v39 = vpop.permute.xlu0 %7894  ;;  %v7488_v54 = vsel %vm7067_vm5, %v7487_v58, %v7486_v15  ;;  %v7455_v40 = vsel %vm7079_vm9, %v7454_v60, %v7453_v11  ;;  %v8016_v3 = vsel %vm7067_vm5, %v8015_v24, %v8014_v50  ;;  %v8019_v61 = vrot.slane %v17905_v7, 1 }
 0xa59   : > { %17925 = vst [vmem:[#allocation49_spill] sm:$0xff] %v16953_v39  ;;  %7460 = vrot.lane.b32.xlu1 %v7429_v36, %s13538_s25  ;;  %v7490_v21 = vsel %vm7070_vm6, %v7489_v16, %v7488_v54  ;;  %v7457_v45 = vsel %vm7082_vm10, %v7456_v29, %v7455_v40  ;;  %v8017_v6 = vrot.slane %v17903_v37, 2  ;;  %v7491_v23 = vrot.slane %v17861_v5, 2 }
 0xa5a   : > { %v8053_v44 = vrot.slane %v17882_v47, 5  ;;  %v7995_v58 = vsel %vm7079_vm9, %v7994_v41, %v7993_v19  ;;  %v7493_v57 = vrot.slane %v17874_v17, 1  ;;  %v7512_v36 = vrot.slane %v16141_v28, 6 }
 0xa5b   : > { %v8055_v16 = vrot.slane %v17910_v13, 4  ;;  %v8018_v11 = vsel %vm7070_vm6, %v8017_v6, %v8016_v3  ;;  %v7492_v29 = vsel %vm7073_vm7, %v7491_v23, %v7490_v21  ;;  %v8052_v50 = vrot.slane %v17878_v38, 6 }
 0xa5c   : > { %v16972_v2 = vpop.permute.xlu0 %7390  ;;  %v8057_v60 = vrot.slane %v17880_v48, 3  ;;  %v8020_v24 = vsel %vm7073_vm7, %v8019_v61, %v8018_v11  ;;  %v8022_v15 = vrot.slane %v17908_v59, 7  ;;  %v7513_v19 = vrot.slane %v16138_v0, 5 }
 0xa5d   : > { %17926 = vst [vmem:[#allocation71_spill] sm:$0xff] %v16972_v2  ;;  %7464 = vrot.lane.b32.xlu1 %v7457_v45, %s13538_s25  ;;  %v8059_v41 = vrot.slane %v17907_v27, 2  ;;  %v7997_v54 = vsel %vm7082_vm10, %v7996_v22, %v7995_v58  ;;  %v8021_v40 = vsel %vm7076_vm8, %v17906_v55, %v8020_v24  ;;  %v8024_v3 = vrot.slane %v17909_v1, 6 }
 0xa5e   : > { %v8054_v21 = vsel %vm7064_vm4, %v8053_v44, %v8052_v50  ;;  %v7494_v61 = vsel %vm7076_vm8, %v7493_v57, %v7492_v29  ;;  %v7514_v6 = vsel %vm7064_vm4, %v7513_v19, %v7512_v36  ;;  %v7517_v23 = vrot.slane %v16161_v30, 3 }
 0xa5f   : > { %v8056_v11 = vsel %vm7067_vm5, %v8055_v16, %v8054_v21  ;;  %v7515_v22 = vrot.slane %v16166_v18, 4  ;;  %v7519_v58 = vrot.slane %v16185_v26, 2  ;;  %v8081_v44 = vrot.slane %v16133_v20, 5 }
 0xa60   : > { %v16992_v45 = vpop.permute.xlu0 %7394  ;;  %v8058_v24 = vsel %vm7070_vm6, %v8057_v60, %v8056_v11  ;;  %v8023_v50 = vsel %vm7079_vm9, %v8022_v15, %v8021_v40  ;;  %v8061_v16 = vrot.slane %v17887_v46, 1  ;;  %v8080_v19 = vrot.slane %v16130_v63, 6 }
 0xa61   : > { %8028 = vrot.lane.b32.xlu1 %v7997_v54, %s13538_s25  ;;  %v7521_v54 = vrot.slane %v16194_v35, 1  ;;  %v8060_v57 = vsel %vm7073_vm7, %v8059_v41, %v8058_v24  ;;  %v8025_v36 = vsel %vm7082_vm10, %v8024_v3, %v8023_v50  ;;  %v7516_v29 = vsel %vm7067_vm5, %v7515_v22, %v7514_v6 }
 0xa62   : > { %v7495_v60 = vsel %vm7079_vm9, %v17875_v10, %v7494_v61  ;;  %v7496_v15 = vrot.slane %v17876_v43, 7  ;;  %v7518_v40 = vsel %vm7070_vm6, %v7517_v23, %v7516_v29  ;;  %v7553_v41 = vrot.slane %v17871_v52, 6  ;;  %v13167_v24 = vpop.trf.xlu1 }
 0xa63   : > { %v7520_v3 = vsel %vm7073_vm7, %v7519_v58, %v7518_v40  ;;  %v8062_v6 = vsel %vm7076_vm8, %v8061_v16, %v8060_v57  ;;  %v8082_v11 = vsel %vm7064_vm4, %v8081_v44, %v8080_v19  ;;  %v7555_v22 = vrot.slane %v17872_v12, 5 }
 0xa64   : > { %v17010_v21 = vpop.permute.xlu0 %7958  ;;  %v7522_v50 = vsel %vm7076_vm8, %v7521_v54, %v7520_v3  ;;  %v7552_v61 = vrot.slane %v17859_v4, 7  ;;  %v7557_v8 = vrot.slane %v17873_v51, 4  ;;  %v7497_v23 = vsel %vm7082_vm10, %v7496_v15, %v7495_v60 }
 0xa65   : > { %17927 = vst [vmem:[#allocation40_spill] sm:$0xff] %v17010_v21  ;;  %8032 = vrot.lane.b32.xlu1 %v8025_v36, %s13538_s25  ;;  %v7524_v36 = vrot.slane %v16218_v9, 7  ;;  %v8083_v29 = vrot.slane %v17902_v49, 4  ;;  %v8063_v44 = vsel %vm7079_vm9, %v17913_v56, %v8062_v6  ;;  %v8064_v57 = vrot.slane %v17891_v31, 7 }
 0xa66   : > { %v8085_v54 = vrot.slane %v17903_v37, 3  ;;  %v7554_v16 = vsel %vm7064_vm4, %v7553_v41, %v7552_v61  ;;  %v7523_v19 = vsel %vm7079_vm9, %v16215_v25, %v7522_v50  ;;  %v8087_v15 = vrot.slane %v17905_v7, 2 }
 0xa67   : > { %v8084_v60 = vsel %vm7067_vm5, %v8083_v29, %v8082_v11  ;;  %v7556_v40 = vsel %vm7067_vm5, %v7555_v22, %v7554_v16  ;;  %v13171_v3 = vunpack.i.h.bf16 %v13167_v24  ;;  %v7525_v6 = vsel %vm7082_vm10, %v7524_v36, %v7523_v19 }
 0xa68   : > { %v17028_v58 = vpop.permute.xlu0 %7962  ;;  %v7558_v39 = vsel %vm7070_vm6, %v7557_v8, %v7556_v40  ;;  %v8089_v41 = vrot.slane %v17906_v55, 1  ;;  %v7559_v11 = vrot.slane %v17861_v5, 3  ;;  %v8086_v22 = vsel %vm7070_vm6, %v8085_v54, %v8084_v60 }
 0xa69   : > { %17928 = vst [vmem:[#allocation8_spill] sm:$0xff] %v17028_v58  ;;  %7528 = vrot.lane.b32.xlu1 %v7497_v23, %s13531_s26  ;;  %v13168_v23 = vunpack.i.l.bf16 %v13167_v24  ;;  %v13172_v58 = vpop.trf.xlu1  ;;  %v7580_v24 = vrot.slane %v16141_v28, 7  ;;  %v8065_v36 = vsel %vm7082_vm10, %v8064_v57, %v8063_v44  ;;  %v8088_v8 = vsel %vm7073_vm7, %v8087_v15, %v8086_v22 }
 0xa6a   : > { %v13176_v21 = vunpack.i.h.bf16 %v13172_v58  ;;  %v13173_v42 = vunpack.i.l.bf16 %v13172_v58  ;;  %v7560_v29 = vsel %vm7073_vm7, %v7559_v11, %v7558_v39  ;;  %v8092_v58 = vrot.slane %v17909_v1, 7 }
 0xa6b   : > { %v7561_v16 = vrot.slane %v17874_v17, 2  ;;  %v7581_v19 = vrot.slane %v16138_v0, 6  ;;  %v8090_v44 = vsel %vm7076_vm8, %v8089_v41, %v8088_v8  ;;  %v7563_v39 = vrot.slane %v17875_v10, 1 }
 0xa6c   : > { %v17043_v2 = vpop.permute.xlu0 %7458  ;;  %v11026_v50 = vpack.c.bf16 %v13176_v21, %v13171_v3  ;;  %v11025_v61 = vpack.c.bf16 %v13173_v42, %v13168_v23  ;;  %v8121_v42 = vrot.slane %v17882_v47, 6  ;;  %v8120_v57 = vrot.slane %v17878_v38, 7 }
 0xa6d   : > { %7532 = vrot.lane.b32.xlu1 %v7525_v6, %s13531_s26  ;;  %v8123_v54 = vrot.slane %v17910_v13, 5  ;;  %v7562_v60 = vsel %vm7076_vm8, %v7561_v16, %v7560_v29  ;;  %v7582_v15 = vsel %vm7064_vm4, %v7581_v19, %v7580_v24  ;;  %v7585_v40 = vrot.slane %v16161_v30, 4 }
 0xa6e   : > { %11971 = vmatprep.mubr.msk.bf16.mxu0 %vm365_vm0, %v11025_v61  ;;  %v8125_v3 = vrot.slane %v17880_v48, 4  ;;  %v8091_v23 = vsel %vm7079_vm9, %v17908_v59, %v8090_v44  ;;  %v7583_v6 = vrot.slane %v16166_v18, 5  ;;  %v7587_v41 = vrot.slane %v16185_v26, 3 }
 0xa6f   : > { %11972 = vmatmul.mubr.msk.bf16.gmra.mxu0 %vm365_vm0, %v11026_v50  ;;  %v8127_v11 = vrot.slane %v17907_v27, 3  ;;  %v8093_v50 = vsel %vm7082_vm10, %v8092_v58, %v8091_v23  ;;  %v7589_v61 = vrot.slane %v16194_v35, 2  ;;  %v8122_v22 = vsel %vm7064_vm4, %v8121_v42, %v8120_v57 }
 0xa70   : > { %v17058_v21 = vpop.permute.xlu0 %7462  ;;  %v7584_v8 = vsel %vm7067_vm5, %v7583_v6, %v7582_v15  ;;  %v8124_v29 = vsel %vm7067_vm5, %v8123_v54, %v8122_v22  ;;  %v8149_v58 = vrot.slane %v16133_v20, 6  ;;  %v7591_v15 = vrot.slane %v16215_v25, 1 }
 0xa71   : > { %8096 = vrot.lane.b32.xlu1 %v8065_v36, %s13531_s26  ;;  %v7564_v36 = vsel %vm7079_vm9, %v7563_v39, %v7562_v60  ;;  %v7586_v16 = vsel %vm7070_vm6, %v7585_v40, %v7584_v8  ;;  %v8126_v19 = vsel %vm7070_vm6, %v8125_v3, %v8124_v29  ;;  %v8129_v39 = vrot.slane %v17887_v46, 2 }
 0xa72   : > { %v7588_v44 = vsel %vm7073_vm7, %v7587_v41, %v7586_v16  ;;  %v8128_v42 = vsel %vm7073_vm7, %v8127_v11, %v8126_v19  ;;  %v7565_v57 = vsel %vm7082_vm10, %v17876_v43, %v7564_v36  ;;  %v8148_v60 = vrot.slane %v16130_v63, 7 }
 0xa73   : > { %v7590_v23 = vsel %vm7076_vm8, %v7589_v61, %v7588_v44  ;;  %v8130_v40 = vsel %vm7076_vm8, %v8129_v39, %v8128_v42  ;;  %v8131_v41 = vrot.slane %v17913_v56, 1  ;;  %v8151_v11 = vrot.slane %v17902_v49, 5  ;;  %v17929_v39 = vld [vmem:[#allocation57_spill] sm:$0xff] }
 0xa74   : > { %v17078_v24 = vpop.permute.xlu0 %8026  ;;  %v8150_v3 = vsel %vm7064_vm4, %v8149_v58, %v8148_v60  ;;  %v7592_v6 = vsel %vm7079_vm9, %v7591_v15, %v7590_v23  ;;  %v8155_v29 = vrot.slane %v17905_v7, 3  ;;  %v8153_v16 = vrot.slane %v17903_v37, 4 }
 0xa75   : > { %8100 = vrot.lane.b32.xlu1 %v8093_v50, %s13531_s26  ;;  %v7098_v50 = vrot.slane %v17851_v53, 7  ;;  %v7593_v61 = vsel %vm7082_vm10, %v16218_v9, %v7592_v6  ;;  %v8132_v36 = vsel %vm7079_vm9, %v8131_v41, %v8130_v40  ;;  %v8152_v8 = vsel %vm7067_vm5, %v8151_v11, %v8150_v3  ;;  %v17930_v6 = vld [vmem:[#allocation14_spill] sm:$0xff]  ;;  %s332_s26 = sand.u32 1, %s13521_s10  }
 0xa76   : > { %v8157_v19 = vrot.slane %v17906_v55, 2  ;;  %v8159_v58 = vrot.slane %v17908_v59, 1  ;;  %v7084_v53 = vrot.slane %v17871_v52, 7  ;;  %v8133_v42 = vsel %vm7082_vm10, %v17891_v31, %v8132_v36  ;;  %v17932_v36 = vld [vmem:[#allocation15_spill] sm:$0xff]  ;;  %s11302_s27 = sshll.u32 %s332_s26, 6 }
 0xa77   : > { %v7099_v44 = vsel %vm7064_vm4, %v7098_v50, %v17852_v14  ;;  %v7086_v23 = vrot.slane %v17872_v12, 6  ;;  %v7100_v60 = vrot.slane %v17929_v39, 6  ;;  %v7088_v52 = vrot.slane %v17873_v51, 5  ;;  %v17931_v50 = vld [vmem:[#allocation54_spill] sm:$0xff]  ;;  %s17222_s28 = scalar_lea.vmem [#allocation2], %s11302_s27  ;;  %s17357_s27 = scalar_lea.sflag [#allocation3], %s332_s26 }
 0xa78   : > { %v17094_v54 = vpop.permute.xlu0 %8030  ;;  %v7104_v41 = vrot.slane %v17930_v6, 4  ;;  %v7085_v12 = vsel %vm7064_vm4, %v7084_v53, %v17859_v4  ;;  %s11211_s22 = sshll.u32 %s17222_s28, 4  ;;  %s17351_s22 = int_to_ptr.vmem [resolvable:$true] %s11211_s22 }
 0xa79   : > { %7596 = vrot.lane.b32.xlu1 %v7565_v57, %s13539_s29  ;;  %v8154_v57 = vsel %vm7070_vm6, %v8153_v16, %v8152_v8  ;;  %v7101_v14 = vsel %vm7067_vm5, %v7100_v60, %v7099_v44  ;;  %v7106_v8 = vrot.slane %v17932_v36, 3  ;;  %v7087_v51 = vsel %vm7067_vm5, %v7086_v23, %v7085_v12  ;;  %v17934_v23 = vld [vmem:[#allocation29_spill] sm:$0xff]  ;;  %s13469_s14 = scalar_lea.vmem %s17351_s22, 1024  ;;  %p13476_p0 = scmp.lt.s32.totalorder %s17351_s22, %s13474_s17 }
 0xa7a   : > { %v8156_v40 = vsel %vm7073_vm7, %v8155_v29, %v8154_v57  ;;  %v17933_v57 = vld [vmem:[#allocation42_spill] sm:$0xff]  ;;  %p13470_p11 = scmp.ne.s32.totalorder %s17351_s22, %s13469_s14  ;;  %p13477_p1 = scmp.lt.s32.totalorder %s13475_s23, %s13469_s14 }
 0xa7b   : > { %v8158_v3 = vsel %vm7076_vm8, %v8157_v19, %v8156_v40  ;;  %v7089_v19 = vsel %vm7070_vm6, %v7088_v52, %v7087_v51  ;;  %v7110_v39 = vrot.slane %v17933_v57, 1  ;;  %v7108_v40 = vrot.slane %v17934_v23, 2  ;;  %v17937_v57 = vld [vmem:[#allocation40_spill] sm:$0xff] }
 0xa7c   : > { %v17106_v22 = vpop.permute.xlu0 %7526  ;;  %v8160_v11 = vsel %vm7079_vm9, %v8159_v58, %v8158_v3  ;;  %v7090_v58 = vrot.slane %v17861_v5, 4  ;;  %v7092_v3 = vrot.slane %v17874_v17, 3  ;;  %p13471_p12 = pnand %p13470_p11, %p13631_p5  ;;  %p13478_p2 = por %p13477_p1, %p13476_p0 }
 0xa7d   : > { %7600 = vrot.lane.b32.xlu1 %v7593_v61, %s13539_s29  ;;  %v7102_v61 = vrot.slane %v17931_v50, 5  ;;  %v8161_v29 = vsel %vm7082_vm10, %v17909_v1, %v8160_v11  ;;  %v7094_v11 = vrot.slane %v17875_v10, 2  ;;  %v7112_v10 = vrot.slane %v16138_v0, 7 }
 0xa7e   : > { %v7091_v60 = vsel %vm7073_vm7, %v7090_v58, %v7089_v19  ;;  %v7654_v19 = vrot.slane %v17910_v13, 6  ;;  %v8215_v13 = vsel %vm8182_vm11, %v16861_v32, %v16934_v62  ;;  %v7116_v32 = vrot.slane %v16161_v30, 5  ;;  %p13472_p13 = pneg %p13471_p12 }
 0xa7f   : > { %v7103_v44 = vsel %vm7070_vm6, %v7102_v61, %v7101_v14  ;;  %v7093_v14 = vsel %vm7076_vm8, %v7092_v3, %v7091_v60  ;;  %v7113_v0 = vsel %vm7064_vm4, %v7112_v10, %v16141_v28  ;;  %v7118_v3 = vrot.slane %v16185_v26, 4 }
 0xa80   : > { %v17123_v15 = vpop.permute.xlu0 %7530  ;;  %v7105_v4 = vsel %vm7073_vm7, %v7104_v41, %v7103_v44  ;;  %v7095_v36 = vsel %vm7079_vm9, %v7094_v11, %v7093_v14  ;;  %v7114_v44 = vrot.slane %v16166_v18, 6  ;;  %v17938_v14 = vld [vmem:[#allocation49_spill] sm:$0xff]  ;;  %v7120_v30 = vrot.slane %v16194_v35, 3  ;;  %p13479_p3 = pnand %p13478_p2, %p13472_p13 }
 0xa81   : > { %8164 = vrot.lane.b32.xlu1 %v8133_v42, %s13539_s29  ;;  %v7107_v42 = vsel %vm7076_vm8, %v7106_v8, %v7105_v4  ;;  %v7652_v8 = vrot.slane %v17882_v47, 7  ;;  %v7658_v47 = vrot.slane %v17907_v27, 4  ;;  %v17936_v4 = vld [vmem:[#allocation62_spill] sm:$0xff]  ;;  %v7680_v35 = vrot.slane %v16133_v20, 7 }
 0xa82   : > { %v17144_v53 = vpop.permute.xlu1 %7188  ;;  %v7109_v52 = vsel %vm7079_vm9, %v7108_v40, %v7107_v42  ;;  %v7115_v40 = vsel %vm7067_vm5, %v7114_v44, %v7113_v0  ;;  %v7124_v20 = vrot.slane %v16218_v9, 1  ;;  %v7122_v44 = vrot.slane %v16215_v25, 2 }
 0xa83   : > { %v7111_v5 = vsel %vm7082_vm10, %v7110_v39, %v7109_v52  ;;  %v7653_v18 = vsel %vm7064_vm4, %v7652_v8, %v17878_v38  ;;  %v7681_v0 = vsel %vm7064_vm4, %v7680_v35, %v16130_v63 }
 0xa84   : > { %v8095_v16 = vpop.permute.xlu0 %8094  ;;  %v7655_v27 = vsel %vm7067_vm5, %v7654_v19, %v7653_v18 }
 0xa85   : > { %8168 = vrot.lane.b32.xlu1 %v8161_v29, %s13539_s29  ;;  %v7096_v29 = vrot.slane %v17876_v43, 1  ;;  %s17349_s29 = scalar_lea.hbm %s17418_s9, %s11402_s21 }
 0xa88   : > { %v8099_v6 = vpop.permute.xlu0 %8098 }
 0xa8a   : > { %v7191_v41 = vpop.permute.xlu1 %7190 }
 0xa8b   : > { %v8176_v12 = vsel %vm6326_vm3, %v7111_v5, %v7191_v41  ;;  %v17940_v41 = vld [vmem:[#allocation8_spill] sm:$0xff] }
 0xa8c   : > { %v8180_v50 = vsel %vm365_vm0, %v8176_v12, %v16838_v34  ;;  %v7595_v61 = vpop.permute.xlu0 %7594  ;;  %v7656_v34 = vrot.slane %v17880_v48, 5  ;;  %v17935_v48 = vld [vmem:[#allocation71_spill] sm:$0xff] }
 0xa8d   : > { %v8185_v17 = vsel %vm8182_vm11, %v8180_v50, %v16913_v33  ;;  %v7097_v33 = vsel %vm7082_vm10, %v7096_v29, %v7095_v36  ;;  %v8188_v42 = vsel %vm8187_vm12, %v17936_v4, %v17935_v48  ;;  %v7117_v36 = vsel %vm7070_vm6, %v7116_v32, %v7115_v40 }
 0xa8e   : > { %v17163_v51 = vpop.permute.xlu1 %7192  ;;  %v8190_v43 = vsel %vm8187_vm12, %v8185_v17, %v16992_v45  ;;  %v8219_v45 = vsel %vm8187_vm12, %v8215_v13, %v17937_v57  ;;  %v8193_v28 = vsel %vm8192_vm13, %v8188_v42, %v17043_v2  ;;  %v17939_v2 = vld [vmem:[#allocation60_spill] sm:$0xff]  ;;  %v7119_v8 = vsel %vm7073_vm7, %v7118_v3, %v7117_v36 }
 0xa8f   : > { %v8223_v38 = vsel %vm8192_vm13, %v8219_v45, %v17078_v24  ;;  %v8195_v62 = vsel %vm8192_vm13, %v8190_v43, %v17058_v21  ;;  %v8198_v60 = vsel %vm8197_vm14, %v8193_v28, %v17106_v22  ;;  %v8217_v5 = vsel %vm8182_vm11, %v17939_v2, %v17938_v14 }
 0xa90   : > { %v8227_v23 = vsel %vm8197_vm14, %v8223_v38, %v8095_v16  ;;  %v8203_v24 = vsel %vm8202_vm15, %v8198_v60, %v7595_v61  ;;  %v8221_v22 = vsel %vm8187_vm12, %v8217_v5, %v17940_v41  ;;  %v8200_v16 = vsel %vm8197_vm14, %v8195_v62, %v17123_v15 }
 0xa91   : > { %v7599_v58 = vpop.permute.xlu0 %7598  ;;  %v8225_v50 = vsel %vm8192_vm13, %v8221_v22, %v17094_v54  ;;  %v7657_v61 = vsel %vm7070_vm6, %v7656_v34, %v7655_v27  ;;  %v7660_v15 = vrot.slane %v17887_v46, 3  ;;  %v7121_v19 = vsel %vm7076_vm8, %v7120_v30, %v7119_v8 }
 0xa92   : > { %v17187_v39 = vpop.permute.xlu1 %7756  ;;  %v8229_v17 = vsel %vm8197_vm14, %v8225_v50, %v8099_v6  ;;  %v7659_v29 = vsel %vm7073_vm7, %v7658_v47, %v7657_v61  ;;  %v8205_v6 = vsel %vm8202_vm15, %v8200_v16, %v7599_v58  ;;  %v8175_v46 = vsel %vm6326_vm3, %v7097_v33, %v17144_v53 }
 0xa93   : > { %v7661_v13 = vsel %vm7076_vm8, %v7660_v15, %v7659_v29  ;;  %v7123_v9 = vsel %vm7079_vm9, %v7122_v44, %v7121_v19  ;;  %v7662_v58 = vrot.slane %v17913_v56, 2  ;;  %v7682_v48 = vrot.slane %v17902_v49, 6 }
 0xa94   : > { %v7125_v25 = vsel %vm7082_vm10, %v7124_v20, %v7123_v9  ;;  %v7664_v53 = vrot.slane %v17891_v31, 1  ;;  %v7686_v42 = vrot.slane %v17905_v7, 4  ;;  %v7684_v56 = vrot.slane %v17903_v37, 5 }
 0xa95   : > { %v8163_v52 = vpop.permute.xlu0 %8162  ;;  %v8177_v33 = vsel %vm6326_vm3, %v7125_v25, %v17163_v51  ;;  %v7663_v4 = vsel %vm7079_vm9, %v7662_v58, %v7661_v13  ;;  %v7683_v63 = vsel %vm7067_vm5, %v7682_v48, %v7681_v0  ;;  %v7688_v49 = vrot.slane %v17906_v55, 3 }
 0xa96   : > { %v8231_v21 = vsel %vm8202_vm15, %v8227_v23, %v8163_v52  ;;  %v7761_v26 = vpop.permute.xlu1 %7760  ;;  %v7690_v27 = vrot.slane %v17908_v59, 2  ;;  %v7665_v31 = vsel %vm7082_vm10, %v7664_v53, %v7663_v4  ;;  %v7685_v28 = vsel %vm7070_vm6, %v7684_v56, %v7683_v63 }
 0xa97   : > { %v8243_v11 = vcombine.low %v8203_v24, %v8231_v21  ;;  %v8244_v12 = vcombine.high %v8203_v24, %v8231_v21  ;;  %v7692_v51 = vrot.slane %v17909_v1, 1  ;;  %v8208_v38 = vsel %vm6326_vm3, %v7665_v31, %v17187_v39  ;;  %v17276_v24 = vld [vmem:[%s17415_s6] ss:$0 sm:$0xff] }
 0xa98   : > { %v7687_v7 = vsel %vm7073_vm7, %v7686_v42, %v7685_v28 }
 0xa99   : > { %8259 = vst [vmem:[%s17222_s28] sm:$0xff] %v8243_v11  ;;  %8260 = vst [vmem:[%s17222_s28 + $0x8] sm:$0xff] %v8244_v12  ;;  %v8167_v54 = vpop.permute.xlu0 %8166  ;;  %v7689_v37 = vsel %vm7076_vm8, %v7688_v49, %v7687_v7 }
 0xa9a   : > { %v8233_v10 = vsel %vm8202_vm15, %v8229_v17, %v8167_v54  ;;  %v7257_v47 = vpop.permute.xlu1 %7256  ;;  %v7691_v59 = vsel %vm7079_vm9, %v7690_v27, %v7689_v37 }
 0xa9b   : > { %v8247_v34 = vcombine.low %v8205_v6, %v8233_v10  ;;  %v8248_v43 = vcombine.high %v8205_v6, %v8233_v10  ;;  %v8179_v18 = vsel %vm365_vm0, %v8175_v46, %v7257_v47  ;;  %v7693_v62 = vsel %vm7082_vm10, %v7692_v51, %v7691_v59 }
 0xa9c   : > { %v8210_v60 = vsel %vm6326_vm3, %v7693_v62, %v7761_v26 }
 0xa9d   : > { %8263 = vst [vmem:[%s17222_s28 + $0x20] sm:$0xff] %v8247_v34  ;;  %8264 = vst [vmem:[%s17222_s28 + $0x28] sm:$0xff] %v8248_v43 }
 0xa9e   : > { %v7261_v57 = vpop.permute.xlu1 %7260 }
 0xa9f   : > { %v8181_v45 = vsel %vm365_vm0, %v8177_v33, %v7261_v57 }
 0xaa2   : > { %v7825_v32 = vpop.permute.xlu1 %7824 }
 0xaa3   : > { %v17261_v55 = vsel %vm365_vm0, %v8208_v38, %v7825_v32 }
 0xaa7   : > { %v7829_v23 = vpop.permute.xlu1 %7828 }
 0xaa8   : > { %v17267_v1 = vsel %vm365_vm0, %v8210_v60, %v7829_v23 }
 0xaab   : > { %v7325_v39 = vpop.permute.xlu1 %7324 }
 0xaac   : > { %v8184_v40 = vsel %vm8182_vm11, %v8179_v18, %v7325_v39 }
 0xaaf   : > { %v7329_v3 = vpop.permute.xlu1 %7328 }
 0xab0   : > { %v17271_v52 = vsel %vm8182_vm11, %v8181_v45, %v7329_v3 }
 0xab3   : > { %v7893_v14 = vpop.permute.xlu1 %7892 }
 0xab4   : > { %v8216_v42 = vsel %vm8182_vm11, %v17261_v55, %v7893_v14 }
 0xab7   : > { %v7897_v2 = vpop.permute.xlu1 %7896 }
 0xab8   : > { %v8218_v51 = vsel %vm8182_vm11, %v17267_v1, %v7897_v2 }
 0xabb   : > { %v7393_v5 = vpop.permute.xlu1 %7392 }
 0xabc   : > { %v8189_v57 = vsel %vm8187_vm12, %v8184_v40, %v7393_v5 }
 0xabf   : > { %v7397_v30 = vpop.permute.xlu1 %7396  ;;  %v11961_v21 = vpop.f32.mrf.mxu0 }
 0xac0   : > { %v11117_v41 = vadd.f32 %v11961_v21, %v17276_v24  ;;  %v8191_v32 = vsel %vm8187_vm12, %v17271_v52, %v7397_v30 }
 0xac1   : > { %v11108_v22 = vpop.f32.mrf.mxu0 }
 0xac2   : > { %11173 = vst.msk [vmem:[%s17283_s24 + $0x10] sm:$0xff] %vm365_vm0, %v11117_v41  ;;  %v11109_v11 = vadd.f32 %v17276_v24, %v11108_v22 }
 0xac3   : > { %v7961_v16 = vpop.permute.xlu1 %7960  ;;  %v11962_v12 = vpop.f32.mrf.mxu0 }
 0xac4   : > { %11171 = vst.msk [vmem:[%s17283_s24] sm:$0xff] %vm365_vm0, %v11109_v11  ;;  %v11120_v26 = vadd.f32 %v11962_v12, %v17276_v24  ;;  %v8220_v56 = vsel %vm8187_vm12, %v8216_v42, %v7961_v16 }
 0xac5   : > { %v11111_v50 = vpop.f32.mrf.mxu0 }
 0xac6   : > { %11174 = vst.msk [vmem:[%s17283_s24 + $0x18] sm:$0xff] %vm365_vm0, %v11120_v26  ;;  %v11112_v61 = vadd.f32 %v17276_v24, %v11111_v50 }
 0xac7   : > { %v7965_v36 = vpop.permute.xlu1 %7964  ;;  %v11965_v35 = vpop.f32.mrf.mxu0 }
 0xac8   : > { %11172 = vst.msk [vmem:[%s17283_s24 + $0x8] sm:$0xff] %vm365_vm0, %v11112_v61  ;;  %v11133_v17 = vadd.f32 %v11965_v35, %v17276_v24  ;;  %v8222_v37 = vsel %vm8187_vm12, %v8218_v51, %v7965_v36 }
 0xac9   : > { %v11124_v8 = vpop.f32.mrf.mxu0 }
 0xaca   : > { %11177 = vst.msk [vmem:[%s17283_s24 + $0x30] sm:$0xff] %vm365_vm0, %v11133_v17  ;;  %v11125_v15 = vadd.f32 %v17276_v24, %v11124_v8 }
 0xacb   : > { %v7461_v29 = vpop.permute.xlu1 %7460  ;;  %v11966_v54 = vpop.f32.mrf.mxu0 }
 0xacc   : > { %11175 = vst.msk [vmem:[%s17283_s24 + $0x20] sm:$0xff] %vm365_vm0, %v11125_v15  ;;  %v11136_v19 = vadd.f32 %v11966_v54, %v17276_v24  ;;  %v8194_v49 = vsel %vm8192_vm13, %v8189_v57, %v7461_v29 }
 0xacd   : > { %v11127_v20 = vpop.f32.mrf.mxu0 }
 0xace   : > { %11178 = vst.msk [vmem:[%s17283_s24 + $0x38] sm:$0xff] %vm365_vm0, %v11136_v19  ;;  %v11128_v10 = vadd.f32 %v17276_v24, %v11127_v20 }
 0xacf   : > { %v7465_v6 = vpop.permute.xlu1 %7464  ;;  %v11969_v46 = vpop.f32.mrf.mxu0 }
 0xad0   : > { %11176 = vst.msk [vmem:[%s17283_s24 + $0x28] sm:$0xff] %vm365_vm0, %v11128_v10  ;;  %v11149_v44 = vadd.f32 %v11969_v46, %v17276_v24  ;;  %v8196_v62 = vsel %vm8192_vm13, %v8191_v32, %v7465_v6 }
 0xad1   : > { %v11140_v34 = vpop.f32.mrf.mxu0 }
 0xad2   : > { %11181 = vst.msk [vmem:[%s17283_s24 + $0x50] sm:$0xff] %vm365_vm0, %v11149_v44  ;;  %v11141_v47 = vadd.f32 %v17276_v24, %v11140_v34 }
 0xad3   : > { %v8029_v43 = vpop.permute.xlu1 %8028  ;;  %v11970_v13 = vpop.f32.mrf.mxu0 }
 0xad4   : > { %11179 = vst.msk [vmem:[%s17283_s24 + $0x40] sm:$0xff] %vm365_vm0, %v11141_v47  ;;  %v11152_v0 = vadd.f32 %v11970_v13, %v17276_v24  ;;  %v8224_v45 = vsel %vm8192_vm13, %v8220_v56, %v8029_v43 }
 0xad5   : > { %v11143_v18 = vpop.f32.mrf.mxu0 }
 0xad6   : > { %11182 = vst.msk [vmem:[%s17283_s24 + $0x58] sm:$0xff] %vm365_vm0, %v11152_v0  ;;  %v11144_v58 = vadd.f32 %v17276_v24, %v11143_v18 }
 0xad7   : > { %v8033_v9 = vpop.permute.xlu1 %8032 }
 0xad8   : > { %11180 = vst.msk [vmem:[%s17283_s24 + $0x48] sm:$0xff] %vm365_vm0, %v11144_v58  ;;  %v8226_v60 = vsel %vm8192_vm13, %v8222_v37, %v8033_v9 }
 0xadb   : > { %v7529_v48 = vpop.permute.xlu1 %7528 }
 0xadc   : > { %v8199_v27 = vsel %vm8197_vm14, %v8194_v49, %v7529_v48 }
 0xadf   : > { %v7533_v25 = vpop.permute.xlu1 %7532 }
 0xae0   : > { %v8201_v23 = vsel %vm8197_vm14, %v8196_v62, %v7533_v25 }
 0xae3   : > { %v8097_v53 = vpop.permute.xlu1 %8096 }
 0xae4   : > { %v8228_v31 = vsel %vm8197_vm14, %v8224_v45, %v8097_v53 }
 0xae7   : > { %v8101_v33 = vpop.permute.xlu1 %8100 }
 0xae8   : > { %v8230_v1 = vsel %vm8197_vm14, %v8226_v60, %v8101_v33 }
 0xaeb   : > { %v7597_v4 = vpop.permute.xlu1 %7596 }
 0xaec   : > { %v8204_v38 = vsel %vm8202_vm15, %v8199_v27, %v7597_v4 }
 0xaef   : > { %v7601_v63 = vpop.permute.xlu1 %7600 }
 0xaf0   : > { %v8206_v40 = vsel %vm8202_vm15, %v8201_v23, %v7601_v63 }
 0xaf3   : > { %v8165_v28 = vpop.permute.xlu1 %8164 }
 0xaf4   : > { %v8232_v7 = vsel %vm8202_vm15, %v8228_v31, %v8165_v28 }
 0xaf5   : > { %v8245_v55 = vcombine.low %v8204_v38, %v8232_v7  ;;  %v8246_v59 = vcombine.high %v8204_v38, %v8232_v7 }
 0xaf7   : > { %8261 = vst [vmem:[%s17222_s28 + $0x10] sm:$0xff] %v8245_v55  ;;  %8262 = vst [vmem:[%s17222_s28 + $0x18] sm:$0xff] %v8246_v59  ;;  %v8169_v39 = vpop.permute.xlu1 %8168 }
 0xaf8   : > { %v8234_v3 = vsel %vm8202_vm15, %v8230_v1, %v8169_v39 }
 0xaf9   : > { %v8249_v52 = vcombine.low %v8206_v40, %v8234_v3  ;;  %v8250_v14 = vcombine.high %v8206_v40, %v8234_v3 }
 0xafb   : > { %8265 = vst [vmem:[%s17222_s28 + $0x30] sm:$0xff] %v8249_v52  ;;  %8266 = vst [vmem:[%s17222_s28 + $0x38] sm:$0xff] %v8250_v14 }
 0xafc   : > { %13482 = shalt.err (!%p13479_p3)
}
 0xafd   : > { %s13483_s26 = scalar_lea.hbm %s17349_s29, 1024  ;;  %s13487_s13 = scalar_lea.hbm %s17418_s9, 2048 }
 0xafe   : > { %p13484_p4 = scmp.ne.s32.totalorder %s17349_s29, %s13483_s26  ;;  %p13488_p9 = scmp.lt.s32.totalorder %s17349_s29, %s17418_s9 }
 0xaff   : > { %p13489_p10 = scmp.lt.s32.totalorder %s13487_s13, %s13483_s26 }
 0xb00   : > { %p13485_p7 = pnand %p13484_p4, %p13631_p5 }
 0xb01   : > { %p13490_p11 = por %p13489_p10, %p13488_p9 }
 0xb02   : > { %p13486_p8 = pneg %p13485_p7 }
 0xb04   : > { %p13491_p12 = pnand %p13490_p11, %p13486_p8 }
 0xb06   : > { %13494 = shalt.err (!%p13491_p12)
}
 0xb07   : > { %s13541_s14 = smov 128   ;;  %s13542_s17 = smov 8  }
 0xb08   : > { %11979 = dma.vmem_to_hbm [thread:$0]  (%p13631_p5), %s17351_s22, 1024, %s17349_s29, %s17357_s27, %s13541_s14, %s13541_s14, %s13542_s17  }
 0xb2f   : > { %v11973_v2 = vpop.f32.mrf.mxu0 }
 0xb30   : > { %v11165_v5 = vadd.f32 %v11973_v2, %v17276_v24 }
 0xb31   : > { %v11156_v30 = vpop.f32.mrf.mxu0 }
 0xb32   : > { %11185 = vst.msk [vmem:[%s17283_s24 + $0x70] sm:$0xff] %vm365_vm0, %v11165_v5  ;;  %v11157_v21 = vadd.f32 %v17276_v24, %v11156_v30 }
 0xb33   : > { %v11974_v41 = vpop.f32.mrf.mxu0 }
 0xb34   : > { %11183 = vst.msk [vmem:[%s17283_s24 + $0x60] sm:$0xff] %vm365_vm0, %v11157_v21  ;;  %v11168_v22 = vadd.f32 %v11974_v41, %v17276_v24 }
 0xb35   : > { %v11159_v16 = vpop.f32.mrf.mxu0 }
 0xb36   : > { %11186 = vst.msk [vmem:[%s17283_s24 + $0x78] sm:$0xff] %vm365_vm0, %v11168_v22  ;;  %v11160_v11 = vadd.f32 %v17276_v24, %v11159_v16 }
 0xb38   : > { %11184 = vst.msk [vmem:[%s17283_s24 + $0x68] sm:$0xff] %vm365_vm0, %v11160_v11 }
 0xb39 PF: > { %p11985_p5 = scmp.ge.s32.totalorder %s13529_s12, 2  ;;  %s11234_s19 = sand.u32 1, %s13517_s30  }
 0xb3a   : > { %s11235_s22 = scalar_lea.sflag [#allocation3], %s11234_s19 }
 0xb3b   : > { %p11982_p13 = pnand %p11985_p5, %p13635_p6 }
 0xb3d   : > { %p11983_p0 = pneg %p11982_p13 }
 0xb3f   : > { %13512 = dma.done.wait (%p11983_p0), %s11235_s22, 1024  }
 0xb40   : > { %13514 = vsyncadd (%p11983_p0), %s11235_s22, 4294966272  ;;  %p20_p1 = scmp.ge.s32.totalorder %s13618_s15, 4   ;;  %s17941_s30 = smov %s13521_s10 }
 0xb41   : > { %s17942_s10 = smov %s13525_s11  ;;  %s17943_s11 = smov %s13629_s18 }
 0xb42   : > { %s17944_s12 = smov %s13618_s15  ;;  %22 = sbr.rel (!%p20_p1) target bundleno = 3 (0x3), region = 99 }
 0xb47   :  { %11240 = vsyncpa [#allocation3], 1 }
 0xb48   :  { %11242 = vsyncpa [#allocation3 + $0x1], 1 }

</bundles_post_ra>
